<compile_context>
chip_gen: v7x
topology: tpu7x:2x2x1
jax: 0.10.0
libtpu: 0.0.40
codegen_flags: <defaults>
</compile_context>

<pallas_src>
import functools
import numpy as np
import jax
import jax.numpy as jnp
from jax import lax
from jax.experimental import pallas as pl
from jax.experimental.pallas import tpu as pltpu

# ---- module hyper-parameters (from the PyTorch source) ----
VOCAB_SIZE = 4096 + 1
EMBED_DIM = 128
HIDDEN_DIM = 100          # PyTorch hidden size
HIDDEN_PAD = 128          # lane-aligned per-gate width used inside the kernel
N_LAYERS = 2
FC_HIDDEN_DIM = 64
OUTPUT_DIM = 1
SUBLANE = 8               # f32 sublane tile


# -------------------- fused kernel: 2-layer BiLSTM + MLP head -----------------
def _fused_rnn_kernel(x_ref,
                      w0ih_ref, b0_ref, w0hhf_ref, w0hhr_ref,
                      w1ih_ref, b1_ref, w1hhf_ref, w1hhr_ref,
                      wh1_ref, bh1_ref, wh2_ref, bh2_ref,
                      out_ref,
                      gx_seq, h0_seq,
                      *, T, BP, HP, UNROLL):
    G4 = 4 * HP  # per-direction gate width (i,f,g,o each HP lanes)

    def cell(gates, c):
        # gates: (BP, 4*HP) pre-activations; padded lanes are exact zeros.
        i_g = jax.nn.sigmoid(gates[:, 0 * HP:1 * HP])
        f_g = jax.nn.sigmoid(gates[:, 1 * HP:2 * HP])
        g_g = jnp.tanh(gates[:, 2 * HP:3 * HP])
        o_g = jax.nn.sigmoid(gates[:, 3 * HP:4 * HP])
        c_new = f_g * c + i_g * g_g
        h_new = o_g * jnp.tanh(c_new)
        return h_new, c_new

    def row(t):
        return pl.ds(t * BP, BP)

    # ---- hoisted layer-0 input projection (+ bias), all timesteps, both directions ----
    # (T*BP, E) x (E, 8*HP): fwd gates in lanes 0:4HP, rev gates in 4HP:8HP.
    gx_seq[...] = (jnp.dot(x_ref[...], w0ih_ref[...],
                           preferred_element_type=jnp.float32) + b0_ref[...])

    zeros = jnp.zeros((BP, HP), jnp.float32)

    # ---- layer 0: fwd + rev interleaved in one loop; per-step work is h @ W_hh ----
    def l0_body(t, carry):
        hf, cf, hr, cr = carry
        tr = T - 1 - t
        gf = (jnp.dot(hf, w0hhf_ref[...], preferred_element_type=jnp.float32)
              + gx_seq[row(t), pl.ds(0, G4)])
        gr = (jnp.dot(hr, w0hhr_ref[...], preferred_element_type=jnp.float32)
              + gx_seq[row(tr), pl.ds(G4, G4)])
        hf, cf = cell(gf, cf)
        hr, cr = cell(gr, cr)
        h0_seq[row(t), pl.ds(0, HP)] = hf        # fwd output at time t
        h0_seq[row(tr), pl.ds(HP, HP)] = hr      # rev output at time T-1-t
        return hf, cf, hr, cr

    lax.fori_loop(0, T, l0_body, (zeros, zeros, zeros, zeros), unroll=UNROLL)

    # ---- hoisted layer-1 input projection over the whole layer-0 output slab ----
    # (T*BP, 2*HP) x (2*HP, 8*HP); reuses gx_seq (layer-0 values no longer needed).
    gx_seq[...] = (jnp.dot(h0_seq[...], w1ih_ref[...],
                           preferred_element_type=jnp.float32) + b1_ref[...])

    # ---- layer 1: fwd + rev interleaved; only the final hidden states are kept ----
    def l1_body(t, carry):
        hf, cf, hr, cr = carry
        tr = T - 1 - t
        gf = (jnp.dot(hf, w1hhf_ref[...], preferred_element_type=jnp.float32)
              + gx_seq[row(t), pl.ds(0, G4)])
        gr = (jnp.dot(hr, w1hhr_ref[...], preferred_element_type=jnp.float32)
              + gx_seq[row(tr), pl.ds(G4, G4)])
        hf, cf = cell(gf, cf)
        hr, cr = cell(gr, cr)
        return hf, cf, hr, cr

    h1f, _, h1r, _ = lax.fori_loop(0, T, l1_body, (zeros, zeros, zeros, zeros),
                                   unroll=UNROLL)

    # ---- head: Linear -> ReLU -> Linear -> Sigmoid (padded lanes are exact zeros) ----
    hidden = jnp.concatenate([h1f, h1r], axis=-1)                       # (BP, 2*HP)
    z = jnp.dot(hidden, wh1_ref[...], preferred_element_type=jnp.float32) + bh1_ref[...]
    z = jnp.maximum(z, 0.0)
    y = jnp.dot(z, wh2_ref[...], preferred_element_type=jnp.float32) + bh2_ref[...]
    out_ref[...] = jax.nn.sigmoid(y).astype(out_ref.dtype)


def fused_forward(x, params, *, T, BP):
    """x: (T*BP, E) f32 time-major embedded tokens (batch padded to BP).
    Returns (BP, 1) probabilities (rows >= true batch are padding)."""
    HP = HIDDEN_PAD
    vmem = pl.BlockSpec(memory_space=pltpu.MemorySpace.VMEM)

    weight_args = (params["w0ih"], params["b0"], params["w0hhf"], params["w0hhr"],
                   params["w1ih"], params["b1"], params["w1hhf"], params["w1hhr"],
                   params["wh1"], params["bh1"], params["wh2"], params["bh2"])

    # advisory cost estimate
    flops = (2 * T * BP * EMBED_DIM * 8 * HP            # layer-0 input projection
             + 2 * T * BP * 2 * HP * 8 * HP             # layer-1 input projection
             + 4 * T * 2 * BP * HP * 4 * HP             # recurrent matmuls (4 dir-layers)
             + 2 * BP * (2 * HP * FC_HIDDEN_DIM + FC_HIDDEN_DIM * OUTPUT_DIM))
    transcendentals = 4 * T * 5 * BP * HP + BP * OUTPUT_DIM
    bytes_accessed = 4 * (int(x.size)
                          + sum(int(np.prod(w.shape)) for w in weight_args)
                          + BP * OUTPUT_DIM)

    kernel = functools.partial(_fused_rnn_kernel, T=T, BP=BP, HP=HP,
                               UNROLL=min(T, 8))
    return pl.pallas_call(
        kernel,
        out_shape=jax.ShapeDtypeStruct((BP, OUTPUT_DIM), jnp.float32),
        in_specs=[vmem] * (1 + len(weight_args)),
        out_specs=pl.BlockSpec(memory_space=pltpu.MemorySpace.VMEM),
        scratch_shapes=[pltpu.VMEM((T * BP, 8 * HP), jnp.float32),   # hoisted gate projections
                        pltpu.VMEM((T * BP, 2 * HP), jnp.float32)],  # layer-0 output sequence
        cost_estimate=pl.CostEstimate(flops=flops,
                                      transcendentals=transcendentals,
                                      bytes_accessed=bytes_accessed),
    )(x, *weight_args)


# -------------------- parameter init (PyTorch-shaped, packed to padded layout) ----
def init_params(key):
    H, HP, E = HIDDEN_DIM, HIDDEN_PAD, EMBED_DIM
    k = 1.0 / np.sqrt(H)
    keys = iter(jax.random.split(key, 64))

    def uni(shape, bound):
        return np.asarray(jax.random.uniform(next(keys), shape, jnp.float32,
                                             minval=-bound, maxval=bound))

    params = {"embedding": jax.random.normal(next(keys), (VOCAB_SIZE, E), jnp.float32)}

    def make_dir(in_dim):
        """PyTorch-shaped random weights for one LSTM direction."""
        return dict(w_ih=uni((4 * H, in_dim), k), w_hh=uni((4 * H, H), k),
                    b_ih=uni((4 * H,), k), b_hh=uni((4 * H,), k))

    def pack_ih(dirs, in_segments):
        """Pack fwd+rev input-to-hidden weights into W:(n_seg*HP, 8*HP), b:(1, 8*HP).
        in_segments: list of (pytorch_col_start, n_valid) per 128-lane input segment.
        Padded rows/cols are exact zeros."""
        n_seg = len(in_segments)
        W = np.zeros((n_seg * HP, 8 * HP), np.float32)
        b = np.zeros((1, 8 * HP), np.float32)
        for d, p in enumerate(dirs):                  # d=0 fwd -> lanes 0:4HP, d=1 rev
            off = d * 4 * HP
            for g in range(4):                        # gate order i, f, g, o
                wg = p["w_ih"][g * H:(g + 1) * H, :]  # (H, in_dim)
                for s, (c0, nv) in enumerate(in_segments):
                    W[s * HP:s * HP + nv,
                      off + g * HP:off + g * HP + H] = wg[:, c0:c0 + nv].T
                b[0, off + g * HP:off + g * HP + H] = (p["b_ih"][g * H:(g + 1) * H]
                                                       + p["b_hh"][g * H:(g + 1) * H])
        return jnp.asarray(W), jnp.asarray(b)

    def pack_hh(p):
        """Pack one direction's recurrent weight into (HP, 4*HP)."""
        W = np.zeros((HP, 4 * HP), np.float32)
        for g in range(4):
            W[0:H, g * HP:g * HP + H] = p["w_hh"][g * H:(g + 1) * H, :].T
        return jnp.asarray(W)

    # layer 0: input is the raw embedding (E = 128, one full lane tile)
    l0f, l0r = make_dir(E), make_dir(E)
    params["w0ih"], params["b0"] = pack_ih([l0f, l0r], [(0, E)])
    params["w0hhf"], params["w0hhr"] = pack_hh(l0f), pack_hh(l0r)

    # layer 1: input is [h_fwd | h_rev], each direction in its own 128-lane segment
    l1f, l1r = make_dir(2 * H), make_dir(2 * H)
    params["w1ih"], params["b1"] = pack_ih([l1f, l1r], [(0, H), (H, H)])
    params["w1hhf"], params["w1hhr"] = pack_hh(l1f), pack_hh(l1r)

    # head: fc_hidden (2H -> 64) packed over the padded (2*HP) hidden layout
    kf = 1.0 / np.sqrt(2 * H)
    fw1 = uni((FC_HIDDEN_DIM, 2 * H), kf)             # PyTorch (out, in)
    fb1 = uni((FC_HIDDEN_DIM,), kf)
    W1 = np.zeros((2 * HP, FC_HIDDEN_DIM), np.float32)
    W1[0:H, :] = fw1[:, 0:H].T                        # multiplies hidden_state[-2]
    W1[HP:HP + H, :] = fw1[:, H:2 * H].T              # multiplies hidden_state[-1]
    params["wh1"] = jnp.asarray(W1)
    params["bh1"] = jnp.asarray(fb1.reshape(1, FC_HIDDEN_DIM))

    ko = 1.0 / np.sqrt(FC_HIDDEN_DIM)
    fw2 = uni((OUTPUT_DIM, FC_HIDDEN_DIM), ko)
    fb2 = uni((OUTPUT_DIM,), ko)
    params["wh2"] = jnp.asarray(fw2.T)
    params["bh2"] = jnp.asarray(fb2.reshape(1, OUTPUT_DIM))
    return params


# -------------------- full forward pass ---------------------------------------
@jax.jit
def rnn_seq_classifier_forward(text, params):
    # text: (B, T) int32 token ids.  Pad batch to the sublane tile with token id 0
    # and transpose the tiny int token array (cheaper than transposing f32
    # embeddings) so the gather yields time-major (T, BP, E).
    B, T = text.shape
    BP = ((B + SUBLANE - 1) // SUBLANE) * SUBLANE
    tokens = jnp.pad(text, ((0, BP - B), (0, 0)))
    x = jnp.take(params["embedding"], tokens.T, axis=0)      # (T, BP, E)
    x = x.reshape(T * BP, EMBED_DIM)                          # time-major slab
    out = fused_forward(x, params, T=T, BP=BP)                # (BP, 1)
    return out[:B]                                            # (B, 1)


if __name__ == "__main__":
    B, T = 2, 8
    key = jax.random.PRNGKey(0)
    k_tok, k_param = jax.random.split(key)
    text = jax.random.randint(k_tok, (B, T), 0, VOCAB_SIZE, dtype=jnp.int32)
    params = init_params(k_param)

    out = rnn_seq_classifier_forward(text, params)
    out = jax.block_until_ready(out)
    assert out.shape == (B, OUTPUT_DIM)
    assert bool(jnp.all((out >= 0.0) & (out <= 1.0)))
    print("KERNEL_OK")
</pallas_src>

<mosaic_0001>
module attributes {stable_mosaic.version = 11 : i64} {
  func.func @_fused_rnn_kernel(%arg0: memref<64x128xf32, #tpu.memory_space<vmem>>, %arg1: memref<128x1024xf32, #tpu.memory_space<vmem>>, %arg2: memref<1x1024xf32, #tpu.memory_space<vmem>>, %arg3: memref<128x512xf32, #tpu.memory_space<vmem>>, %arg4: memref<128x512xf32, #tpu.memory_space<vmem>>, %arg5: memref<256x1024xf32, #tpu.memory_space<vmem>>, %arg6: memref<1x1024xf32, #tpu.memory_space<vmem>>, %arg7: memref<128x512xf32, #tpu.memory_space<vmem>>, %arg8: memref<128x512xf32, #tpu.memory_space<vmem>>, %arg9: memref<256x64xf32, #tpu.memory_space<vmem>>, %arg10: memref<1x64xf32, #tpu.memory_space<vmem>>, %arg11: memref<64x1xf32, #tpu.memory_space<vmem>>, %arg12: memref<1x1xf32, #tpu.memory_space<vmem>>, %arg13: memref<8x1xf32, #tpu.memory_space<vmem>>, %arg14: memref<64x1024xf32, #tpu.memory_space<vmem>>, %arg15: memref<64x256xf32, #tpu.memory_space<vmem>>) attributes {dimension_semantics = [], scalar_prefetch = 0 : i64, scratch_operands = 2 : i64, tpu.core_type = #tpu.core_type<tc>} {
    %c0 = arith.constant 0 : index
    %c0_0 = arith.constant 0 : index
    %0 = vector.load %arg0[%c0, %c0_0] : memref<64x128xf32, #tpu.memory_space<vmem>>, vector<64x128xf32>
    %c0_1 = arith.constant 0 : index
    %c0_2 = arith.constant 0 : index
    %1 = vector.load %arg1[%c0_1, %c0_2] : memref<128x1024xf32, #tpu.memory_space<vmem>>, vector<128x1024xf32>
    %cst = arith.constant dense<0.000000e+00> : vector<64x1024xf32>
    %2 = tpu.matmul %0, %1, %cst {dimension_numbers = #tpu.dot_dimension_numbers<[1], [0], [0], [1], [0, 0, 1, 1], [], []>} : vector<64x128xf32>, vector<128x1024xf32>, vector<64x1024xf32> -> vector<64x1024xf32>
    %c0_3 = arith.constant 0 : index
    %c0_4 = arith.constant 0 : index
    %3 = vector.load %arg2[%c0_3, %c0_4] : memref<1x1024xf32, #tpu.memory_space<vmem>>, vector<1x1024xf32>
    %4 = vector.broadcast %3 : vector<1x1024xf32> to vector<64x1024xf32>
    %5 = arith.addf %2, %4 : vector<64x1024xf32>
    %c0_5 = arith.constant 0 : index
    %c0_6 = arith.constant 0 : index
    %6 = vector.load %arg14[%c0_5, %c0_6] : memref<64x1024xf32, #tpu.memory_space<vmem>>, vector<64x1024xf32>
    tpu.vector_store %arg14[%c0_5, %c0_6], %5 {strides = array<i32>} : memref<64x1024xf32, #tpu.memory_space<vmem>>, vector<64x1024xf32>,
    %cst_7 = arith.constant 0.000000e+00 : f32
    %7 = vector.broadcast %cst_7 : f32 to vector<8x128xf32>
    %c0_i32 = arith.constant 0 : i32
    %c7_i32 = arith.constant 7 : i32
    %8 = arith.subi %c7_i32, %c0_i32 : i32
    %c0_8 = arith.constant 0 : index
    %c0_9 = arith.constant 0 : index
    %9 = vector.load %arg3[%c0_8, %c0_9] : memref<128x512xf32, #tpu.memory_space<vmem>>, vector<128x512xf32>
    %cst_10 = arith.constant dense<0.000000e+00> : vector<8x512xf32>
    %10 = tpu.matmul %7, %9, %cst_10 {dimension_numbers = #tpu.dot_dimension_numbers<[1], [0], [0], [1], [0, 0, 1, 1], [], []>} : vector<8x128xf32>, vector<128x512xf32>, vector<8x512xf32> -> vector<8x512xf32>
    %c8_i32 = arith.constant 8 : i32
    %11 = arith.muli %c0_i32, %c8_i32 : i32
    %12 = arith.index_cast %11 : i32 to index
    %c0_11 = arith.constant 0 : index
    %13 = vector.load %arg14[%12, %c0_11] : memref<64x1024xf32, #tpu.memory_space<vmem>>, vector<8x512xf32>
    %14 = arith.addf %10, %13 : vector<8x512xf32>
    %c0_12 = arith.constant 0 : index
    %c0_13 = arith.constant 0 : index
    %15 = vector.load %arg4[%c0_12, %c0_13] : memref<128x512xf32, #tpu.memory_space<vmem>>, vector<128x512xf32>
    %cst_14 = arith.constant dense<0.000000e+00> : vector<8x512xf32>
    %16 = tpu.matmul %7, %15, %cst_14 {dimension_numbers = #tpu.dot_dimension_numbers<[1], [0], [0], [1], [0, 0, 1, 1], [], []>} : vector<8x128xf32>, vector<128x512xf32>, vector<8x512xf32> -> vector<8x512xf32>
    %c8_i32_15 = arith.constant 8 : i32
    %17 = arith.muli %8, %c8_i32_15 : i32
    %18 = arith.index_cast %17 : i32 to index
    %c512 = arith.constant 512 : index
    %19 = vector.load %arg14[%18, %c512] : memref<64x1024xf32, #tpu.memory_space<vmem>>, vector<8x512xf32>
    %20 = arith.addf %16, %19 : vector<8x512xf32>
    %21 = vector.extract_strided_slice %14 {offsets = [0, 0], sizes = [8, 128], strides = [1, 1]} : vector<8x512xf32> to vector<8x128xf32>
    %22 = arith.negf %21 : vector<8x128xf32>
    %23 = math.exp %22 : vector<8x128xf32>
    %cst_16 = arith.constant 1.000000e+00 : f32
    %24 = vector.broadcast %cst_16 : f32 to vector<8x128xf32>
    %25 = arith.addf %24, %23 : vector<8x128xf32>
    %26 = arith.divf %24, %25 : vector<8x128xf32>
    %27 = vector.extract_strided_slice %14 {offsets = [0, 128], sizes = [8, 128], strides = [1, 1]} : vector<8x512xf32> to vector<8x128xf32>
    %28 = arith.negf %27 : vector<8x128xf32>
    %29 = math.exp %28 : vector<8x128xf32>
    %cst_17 = arith.constant 1.000000e+00 : f32
    %30 = vector.broadcast %cst_17 : f32 to vector<8x128xf32>
    %31 = arith.addf %30, %29 : vector<8x128xf32>
    %32 = arith.divf %30, %31 : vector<8x128xf32>
    %33 = vector.extract_strided_slice %14 {offsets = [0, 256], sizes = [8, 128], strides = [1, 1]} : vector<8x512xf32> to vector<8x128xf32>
    %34 = math.tanh %33 : vector<8x128xf32>
    %35 = vector.extract_strided_slice %14 {offsets = [0, 384], sizes = [8, 128], strides = [1, 1]} : vector<8x512xf32> to vector<8x128xf32>
    %36 = arith.negf %35 : vector<8x128xf32>
    %37 = math.exp %36 : vector<8x128xf32>
    %cst_18 = arith.constant 1.000000e+00 : f32
    %38 = vector.broadcast %cst_18 : f32 to vector<8x128xf32>
    %39 = arith.addf %38, %37 : vector<8x128xf32>
    %40 = arith.divf %38, %39 : vector<8x128xf32>
    %41 = arith.mulf %32, %7 : vector<8x128xf32>
    %42 = arith.mulf %26, %34 : vector<8x128xf32>
    %43 = arith.addf %41, %42 : vector<8x128xf32>
    %44 = math.tanh %43 : vector<8x128xf32>
    %45 = arith.mulf %40, %44 : vector<8x128xf32>
    %46 = vector.extract_strided_slice %20 {offsets = [0, 0], sizes = [8, 128], strides = [1, 1]} : vector<8x512xf32> to vector<8x128xf32>
    %47 = arith.negf %46 : vector<8x128xf32>
    %48 = math.exp %47 : vector<8x128xf32>
    %cst_19 = arith.constant 1.000000e+00 : f32
    %49 = vector.broadcast %cst_19 : f32 to vector<8x128xf32>
    %50 = arith.addf %49, %48 : vector<8x128xf32>
    %51 = arith.divf %49, %50 : vector<8x128xf32>
    %52 = vector.extract_strided_slice %20 {offsets = [0, 128], sizes = [8, 128], strides = [1, 1]} : vector<8x512xf32> to vector<8x128xf32>
    %53 = arith.negf %52 : vector<8x128xf32>
    %54 = math.exp %53 : vector<8x128xf32>
    %cst_20 = arith.constant 1.000000e+00 : f32
    %55 = vector.broadcast %cst_20 : f32 to vector<8x128xf32>
    %56 = arith.addf %55, %54 : vector<8x128xf32>
    %57 = arith.divf %55, %56 : vector<8x128xf32>
    %58 = vector.extract_strided_slice %20 {offsets = [0, 256], sizes = [8, 128], strides = [1, 1]} : vector<8x512xf32> to vector<8x128xf32>
    %59 = math.tanh %58 : vector<8x128xf32>
    %60 = vector.extract_strided_slice %20 {offsets = [0, 384], sizes = [8, 128], strides = [1, 1]} : vector<8x512xf32> to vector<8x128xf32>
    %61 = arith.negf %60 : vector<8x128xf32>
    %62 = math.exp %61 : vector<8x128xf32>
    %cst_21 = arith.constant 1.000000e+00 : f32
    %63 = vector.broadcast %cst_21 : f32 to vector<8x128xf32>
    %64 = arith.addf %63, %62 : vector<8x128xf32>
    %65 = arith.divf %63, %64 : vector<8x128xf32>
    %66 = arith.mulf %57, %7 : vector<8x128xf32>
    %67 = arith.mulf %51, %59 : vector<8x128xf32>
    %68 = arith.addf %66, %67 : vector<8x128xf32>
    %69 = math.tanh %68 : vector<8x128xf32>
    %70 = arith.mulf %65, %69 : vector<8x128xf32>
    %c8_i32_22 = arith.constant 8 : i32
    %71 = arith.muli %c0_i32, %c8_i32_22 : i32
    %72 = arith.index_cast %71 : i32 to index
    %c0_23 = arith.constant 0 : index
    %73 = vector.load %arg15[%72, %c0_23] : memref<64x256xf32, #tpu.memory_space<vmem>>, vector<8x128xf32>
    tpu.vector_store %arg15[%72, %c0_23], %45 {strides = array<i32>} : memref<64x256xf32, #tpu.memory_space<vmem>>, vector<8x128xf32>,
    %c8_i32_24 = arith.constant 8 : i32
    %74 = arith.muli %8, %c8_i32_24 : i32
    %75 = arith.index_cast %74 : i32 to index
    %c128 = arith.constant 128 : index
    %76 = vector.load %arg15[%75, %c128] : memref<64x256xf32, #tpu.memory_space<vmem>>, vector<8x128xf32>
    tpu.vector_store %arg15[%75, %c128], %70 {strides = array<i32>} : memref<64x256xf32, #tpu.memory_space<vmem>>, vector<8x128xf32>,
    %c1_i32 = arith.constant 1 : i32
    %c7_i32_25 = arith.constant 7 : i32
    %77 = arith.subi %c7_i32_25, %c1_i32 : i32
    %c0_26 = arith.constant 0 : index
    %c0_27 = arith.constant 0 : index
    %78 = vector.load %arg3[%c0_26, %c0_27] : memref<128x512xf32, #tpu.memory_space<vmem>>, vector<128x512xf32>
    %cst_28 = arith.constant dense<0.000000e+00> : vector<8x512xf32>
    %79 = tpu.matmul %45, %78, %cst_28 {dimension_numbers = #tpu.dot_dimension_numbers<[1], [0], [0], [1], [0, 0, 1, 1], [], []>} : vector<8x128xf32>, vector<128x512xf32>, vector<8x512xf32> -> vector<8x512xf32>
    %c8_i32_29 = arith.constant 8 : i32
    %80 = arith.muli %c1_i32, %c8_i32_29 : i32
    %81 = arith.index_cast %80 : i32 to index
    %c0_30 = arith.constant 0 : index
    %82 = vector.load %arg14[%81, %c0_30] : memref<64x1024xf32, #tpu.memory_space<vmem>>, vector<8x512xf32>
    %83 = arith.addf %79, %82 : vector<8x512xf32>
    %c0_31 = arith.constant 0 : index
    %c0_32 = arith.constant 0 : index
    %84 = vector.load %arg4[%c0_31, %c0_32] : memref<128x512xf32, #tpu.memory_space<vmem>>, vector<128x512xf32>
    %cst_33 = arith.constant dense<0.000000e+00> : vector<8x512xf32>
    %85 = tpu.matmul %70, %84, %cst_33 {dimension_numbers = #tpu.dot_dimension_numbers<[1], [0], [0], [1], [0, 0, 1, 1], [], []>} : vector<8x128xf32>, vector<128x512xf32>, vector<8x512xf32> -> vector<8x512xf32>
    %c8_i32_34 = arith.constant 8 : i32
    %86 = arith.muli %77, %c8_i32_34 : i32
    %87 = arith.index_cast %86 : i32 to index
    %c512_35 = arith.constant 512 : index
    %88 = vector.load %arg14[%87, %c512_35] : memref<64x1024xf32, #tpu.memory_space<vmem>>, vector<8x512xf32>
    %89 = arith.addf %85, %88 : vector<8x512xf32>
    %90 = vector.extract_strided_slice %83 {offsets = [0, 0], sizes = [8, 128], strides = [1, 1]} : vector<8x512xf32> to vector<8x128xf32>
    %91 = arith.negf %90 : vector<8x128xf32>
    %92 = math.exp %91 : vector<8x128xf32>
    %cst_36 = arith.constant 1.000000e+00 : f32
    %93 = vector.broadcast %cst_36 : f32 to vector<8x128xf32>
    %94 = arith.addf %93, %92 : vector<8x128xf32>
    %95 = arith.divf %93, %94 : vector<8x128xf32>
    %96 = vector.extract_strided_slice %83 {offsets = [0, 128], sizes = [8, 128], strides = [1, 1]} : vector<8x512xf32> to vector<8x128xf32>
    %97 = arith.negf %96 : vector<8x128xf32>
    %98 = math.exp %97 : vector<8x128xf32>
    %cst_37 = arith.constant 1.000000e+00 : f32
    %99 = vector.broadcast %cst_37 : f32 to vector<8x128xf32>
    %100 = arith.addf %99, %98 : vector<8x128xf32>
    %101 = arith.divf %99, %100 : vector<8x128xf32>
    %102 = vector.extract_strided_slice %83 {offsets = [0, 256], sizes = [8, 128], strides = [1, 1]} : vector<8x512xf32> to vector<8x128xf32>
    %103 = math.tanh %102 : vector<8x128xf32>
    %104 = vector.extract_strided_slice %83 {offsets = [0, 384], sizes = [8, 128], strides = [1, 1]} : vector<8x512xf32> to vector<8x128xf32>
    %105 = arith.negf %104 : vector<8x128xf32>
    %106 = math.exp %105 : vector<8x128xf32>
    %cst_38 = arith.constant 1.000000e+00 : f32
    %107 = vector.broadcast %cst_38 : f32 to vector<8x128xf32>
    %108 = arith.addf %107, %106 : vector<8x128xf32>
    %109 = arith.divf %107, %108 : vector<8x128xf32>
    %110 = arith.mulf %101, %43 : vector<8x128xf32>
    %111 = arith.mulf %95, %103 : vector<8x128xf32>
    %112 = arith.addf %110, %111 : vector<8x128xf32>
    %113 = math.tanh %112 : vector<8x128xf32>
    %114 = arith.mulf %109, %113 : vector<8x128xf32>
    %115 = vector.extract_strided_slice %89 {offsets = [0, 0], sizes = [8, 128], strides = [1, 1]} : vector<8x512xf32> to vector<8x128xf32>
    %116 = arith.negf %115 : vector<8x128xf32>
    %117 = math.exp %116 : vector<8x128xf32>
    %cst_39 = arith.constant 1.000000e+00 : f32
    %118 = vector.broadcast %cst_39 : f32 to vector<8x128xf32>
    %119 = arith.addf %118, %117 : vector<8x128xf32>
    %120 = arith.divf %118, %119 : vector<8x128xf32>
    %121 = vector.extract_strided_slice %89 {offsets = [0, 128], sizes = [8, 128], strides = [1, 1]} : vector<8x512xf32> to vector<8x128xf32>
    %122 = arith.negf %121 : vector<8x128xf32>
    %123 = math.exp %122 : vector<8x128xf32>
    %cst_40 = arith.constant 1.000000e+00 : f32
    %124 = vector.broadcast %cst_40 : f32 to vector<8x128xf32>
    %125 = arith.addf %124, %123 : vector<8x128xf32>
    %126 = arith.divf %124, %125 : vector<8x128xf32>
    %127 = vector.extract_strided_slice %89 {offsets = [0, 256], sizes = [8, 128], strides = [1, 1]} : vector<8x512xf32> to vector<8x128xf32>
    %128 = math.tanh %127 : vector<8x128xf32>
    %129 = vector.extract_strided_slice %89 {offsets = [0, 384], sizes = [8, 128], strides = [1, 1]} : vector<8x512xf32> to vector<8x128xf32>
    %130 = arith.negf %129 : vector<8x128xf32>
    %131 = math.exp %130 : vector<8x128xf32>
    %cst_41 = arith.constant 1.000000e+00 : f32
    %132 = vector.broadcast %cst_41 : f32 to vector<8x128xf32>
    %133 = arith.addf %132, %131 : vector<8x128xf32>
    %134 = arith.divf %132, %133 : vector<8x128xf32>
    %135 = arith.mulf %126, %68 : vector<8x128xf32>
    %136 = arith.mulf %120, %128 : vector<8x128xf32>
    %137 = arith.addf %135, %136 : vector<8x128xf32>
    %138 = math.tanh %137 : vector<8x128xf32>
    %139 = arith.mulf %134, %138 : vector<8x128xf32>
    %c8_i32_42 = arith.constant 8 : i32
    %140 = arith.muli %c1_i32, %c8_i32_42 : i32
    %141 = arith.index_cast %140 : i32 to index
    %c0_43 = arith.constant 0 : index
    %142 = vector.load %arg15[%141, %c0_43] : memref<64x256xf32, #tpu.memory_space<vmem>>, vector<8x128xf32>
    tpu.vector_store %arg15[%141, %c0_43], %114 {strides = array<i32>} : memref<64x256xf32, #tpu.memory_space<vmem>>, vector<8x128xf32>,
    %c8_i32_44 = arith.constant 8 : i32
    %143 = arith.muli %77, %c8_i32_44 : i32
    %144 = arith.index_cast %143 : i32 to index
    %c128_45 = arith.constant 128 : index
    %145 = vector.load %arg15[%144, %c128_45] : memref<64x256xf32, #tpu.memory_space<vmem>>, vector<8x128xf32>
    tpu.vector_store %arg15[%144, %c128_45], %139 {strides = array<i32>} : memref<64x256xf32, #tpu.memory_space<vmem>>, vector<8x128xf32>,
    %c2_i32 = arith.constant 2 : i32
    %c7_i32_46 = arith.constant 7 : i32
    %146 = arith.subi %c7_i32_46, %c2_i32 : i32
    %c0_47 = arith.constant 0 : index
    %c0_48 = arith.constant 0 : index
    %147 = vector.load %arg3[%c0_47, %c0_48] : memref<128x512xf32, #tpu.memory_space<vmem>>, vector<128x512xf32>
    %cst_49 = arith.constant dense<0.000000e+00> : vector<8x512xf32>
    %148 = tpu.matmul %114, %147, %cst_49 {dimension_numbers = #tpu.dot_dimension_numbers<[1], [0], [0], [1], [0, 0, 1, 1], [], []>} : vector<8x128xf32>, vector<128x512xf32>, vector<8x512xf32> -> vector<8x512xf32>
    %c8_i32_50 = arith.constant 8 : i32
    %149 = arith.muli %c2_i32, %c8_i32_50 : i32
    %150 = arith.index_cast %149 : i32 to index
    %c0_51 = arith.constant 0 : index
    %151 = vector.load %arg14[%150, %c0_51] : memref<64x1024xf32, #tpu.memory_space<vmem>>, vector<8x512xf32>
    %152 = arith.addf %148, %151 : vector<8x512xf32>
    %c0_52 = arith.constant 0 : index
    %c0_53 = arith.constant 0 : index
    %153 = vector.load %arg4[%c0_52, %c0_53] : memref<128x512xf32, #tpu.memory_space<vmem>>, vector<128x512xf32>
    %cst_54 = arith.constant dense<0.000000e+00> : vector<8x512xf32>
    %154 = tpu.matmul %139, %153, %cst_54 {dimension_numbers = #tpu.dot_dimension_numbers<[1], [0], [0], [1], [0, 0, 1, 1], [], []>} : vector<8x128xf32>, vector<128x512xf32>, vector<8x512xf32> -> vector<8x512xf32>
    %c8_i32_55 = arith.constant 8 : i32
    %155 = arith.muli %146, %c8_i32_55 : i32
    %156 = arith.index_cast %155 : i32 to index
    %c512_56 = arith.constant 512 : index
    %157 = vector.load %arg14[%156, %c512_56] : memref<64x1024xf32, #tpu.memory_space<vmem>>, vector<8x512xf32>
    %158 = arith.addf %154, %157 : vector<8x512xf32>
    %159 = vector.extract_strided_slice %152 {offsets = [0, 0], sizes = [8, 128], strides = [1, 1]} : vector<8x512xf32> to vector<8x128xf32>
    %160 = arith.negf %159 : vector<8x128xf32>
    %161 = math.exp %160 : vector<8x128xf32>
    %cst_57 = arith.constant 1.000000e+00 : f32
    %162 = vector.broadcast %cst_57 : f32 to vector<8x128xf32>
    %163 = arith.addf %162, %161 : vector<8x128xf32>
    %164 = arith.divf %162, %163 : vector<8x128xf32>
    %165 = vector.extract_strided_slice %152 {offsets = [0, 128], sizes = [8, 128], strides = [1, 1]} : vector<8x512xf32> to vector<8x128xf32>
    %166 = arith.negf %165 : vector<8x128xf32>
    %167 = math.exp %166 : vector<8x128xf32>
    %cst_58 = arith.constant 1.000000e+00 : f32
    %168 = vector.broadcast %cst_58 : f32 to vector<8x128xf32>
    %169 = arith.addf %168, %167 : vector<8x128xf32>
    %170 = arith.divf %168, %169 : vector<8x128xf32>
    %171 = vector.extract_strided_slice %152 {offsets = [0, 256], sizes = [8, 128], strides = [1, 1]} : vector<8x512xf32> to vector<8x128xf32>
    %172 = math.tanh %171 : vector<8x128xf32>
    %173 = vector.extract_strided_slice %152 {offsets = [0, 384], sizes = [8, 128], strides = [1, 1]} : vector<8x512xf32> to vector<8x128xf32>
    %174 = arith.negf %173 : vector<8x128xf32>
    %175 = math.exp %174 : vector<8x128xf32>
    %cst_59 = arith.constant 1.000000e+00 : f32
    %176 = vector.broadcast %cst_59 : f32 to vector<8x128xf32>
    %177 = arith.addf %176, %175 : vector<8x128xf32>
    %178 = arith.divf %176, %177 : vector<8x128xf32>
    %179 = arith.mulf %170, %112 : vector<8x128xf32>
    %180 = arith.mulf %164, %172 : vector<8x128xf32>
    %181 = arith.addf %179, %180 : vector<8x128xf32>
    %182 = math.tanh %181 : vector<8x128xf32>
    %183 = arith.mulf %178, %182 : vector<8x128xf32>
    %184 = vector.extract_strided_slice %158 {offsets = [0, 0], sizes = [8, 128], strides = [1, 1]} : vector<8x512xf32> to vector<8x128xf32>
    %185 = arith.negf %184 : vector<8x128xf32>
    %186 = math.exp %185 : vector<8x128xf32>
    %cst_60 = arith.constant 1.000000e+00 : f32
    %187 = vector.broadcast %cst_60 : f32 to vector<8x128xf32>
    %188 = arith.addf %187, %186 : vector<8x128xf32>
    %189 = arith.divf %187, %188 : vector<8x128xf32>
    %190 = vector.extract_strided_slice %158 {offsets = [0, 128], sizes = [8, 128], strides = [1, 1]} : vector<8x512xf32> to vector<8x128xf32>
    %191 = arith.negf %190 : vector<8x128xf32>
    %192 = math.exp %191 : vector<8x128xf32>
    %cst_61 = arith.constant 1.000000e+00 : f32
    %193 = vector.broadcast %cst_61 : f32 to vector<8x128xf32>
    %194 = arith.addf %193, %192 : vector<8x128xf32>
    %195 = arith.divf %193, %194 : vector<8x128xf32>
    %196 = vector.extract_strided_slice %158 {offsets = [0, 256], sizes = [8, 128], strides = [1, 1]} : vector<8x512xf32> to vector<8x128xf32>
    %197 = math.tanh %196 : vector<8x128xf32>
    %198 = vector.extract_strided_slice %158 {offsets = [0, 384], sizes = [8, 128], strides = [1, 1]} : vector<8x512xf32> to vector<8x128xf32>
    %199 = arith.negf %198 : vector<8x128xf32>
    %200 = math.exp %199 : vector<8x128xf32>
    %cst_62 = arith.constant 1.000000e+00 : f32
    %201 = vector.broadcast %cst_62 : f32 to vector<8x128xf32>
    %202 = arith.addf %201, %200 : vector<8x128xf32>
    %203 = arith.divf %201, %202 : vector<8x128xf32>
    %204 = arith.mulf %195, %137 : vector<8x128xf32>
    %205 = arith.mulf %189, %197 : vector<8x128xf32>
    %206 = arith.addf %204, %205 : vector<8x128xf32>
    %207 = math.tanh %206 : vector<8x128xf32>
    %208 = arith.mulf %203, %207 : vector<8x128xf32>
    %c8_i32_63 = arith.constant 8 : i32
    %209 = arith.muli %c2_i32, %c8_i32_63 : i32
    %210 = arith.index_cast %209 : i32 to index
    %c0_64 = arith.constant 0 : index
    %211 = vector.load %arg15[%210, %c0_64] : memref<64x256xf32, #tpu.memory_space<vmem>>, vector<8x128xf32>
    tpu.vector_store %arg15[%210, %c0_64], %183 {strides = array<i32>} : memref<64x256xf32, #tpu.memory_space<vmem>>, vector<8x128xf32>,
    %c8_i32_65 = arith.constant 8 : i32
    %212 = arith.muli %146, %c8_i32_65 : i32
    %213 = arith.index_cast %212 : i32 to index
    %c128_66 = arith.constant 128 : index
    %214 = vector.load %arg15[%213, %c128_66] : memref<64x256xf32, #tpu.memory_space<vmem>>, vector<8x128xf32>
    tpu.vector_store %arg15[%213, %c128_66], %208 {strides = array<i32>} : memref<64x256xf32, #tpu.memory_space<vmem>>, vector<8x128xf32>,
    %c3_i32 = arith.constant 3 : i32
    %c7_i32_67 = arith.constant 7 : i32
    %215 = arith.subi %c7_i32_67, %c3_i32 : i32
    %c0_68 = arith.constant 0 : index
    %c0_69 = arith.constant 0 : index
    %216 = vector.load %arg3[%c0_68, %c0_69] : memref<128x512xf32, #tpu.memory_space<vmem>>, vector<128x512xf32>
    %cst_70 = arith.constant dense<0.000000e+00> : vector<8x512xf32>
    %217 = tpu.matmul %183, %216, %cst_70 {dimension_numbers = #tpu.dot_dimension_numbers<[1], [0], [0], [1], [0, 0, 1, 1], [], []>} : vector<8x128xf32>, vector<128x512xf32>, vector<8x512xf32> -> vector<8x512xf32>
    %c8_i32_71 = arith.constant 8 : i32
    %218 = arith.muli %c3_i32, %c8_i32_71 : i32
    %219 = arith.index_cast %218 : i32 to index
    %c0_72 = arith.constant 0 : index
    %220 = vector.load %arg14[%219, %c0_72] : memref<64x1024xf32, #tpu.memory_space<vmem>>, vector<8x512xf32>
    %221 = arith.addf %217, %220 : vector<8x512xf32>
    %c0_73 = arith.constant 0 : index
    %c0_74 = arith.constant 0 : index
    %222 = vector.load %arg4[%c0_73, %c0_74] : memref<128x512xf32, #tpu.memory_space<vmem>>, vector<128x512xf32>
    %cst_75 = arith.constant dense<0.000000e+00> : vector<8x512xf32>
    %223 = tpu.matmul %208, %222, %cst_75 {dimension_numbers = #tpu.dot_dimension_numbers<[1], [0], [0], [1], [0, 0, 1, 1], [], []>} : vector<8x128xf32>, vector<128x512xf32>, vector<8x512xf32> -> vector<8x512xf32>
    %c8_i32_76 = arith.constant 8 : i32
    %224 = arith.muli %215, %c8_i32_76 : i32
    %225 = arith.index_cast %224 : i32 to index
    %c512_77 = arith.constant 512 : index
    %226 = vector.load %arg14[%225, %c512_77] : memref<64x1024xf32, #tpu.memory_space<vmem>>, vector<8x512xf32>
    %227 = arith.addf %223, %226 : vector<8x512xf32>
    %228 = vector.extract_strided_slice %221 {offsets = [0, 0], sizes = [8, 128], strides = [1, 1]} : vector<8x512xf32> to vector<8x128xf32>
    %229 = arith.negf %228 : vector<8x128xf32>
    %230 = math.exp %229 : vector<8x128xf32>
    %cst_78 = arith.constant 1.000000e+00 : f32
    %231 = vector.broadcast %cst_78 : f32 to vector<8x128xf32>
    %232 = arith.addf %231, %230 : vector<8x128xf32>
    %233 = arith.divf %231, %232 : vector<8x128xf32>
    %234 = vector.extract_strided_slice %221 {offsets = [0, 128], sizes = [8, 128], strides = [1, 1]} : vector<8x512xf32> to vector<8x128xf32>
    %235 = arith.negf %234 : vector<8x128xf32>
    %236 = math.exp %235 : vector<8x128xf32>
    %cst_79 = arith.constant 1.000000e+00 : f32
    %237 = vector.broadcast %cst_79 : f32 to vector<8x128xf32>
    %238 = arith.addf %237, %236 : vector<8x128xf32>
    %239 = arith.divf %237, %238 : vector<8x128xf32>
    %240 = vector.extract_strided_slice %221 {offsets = [0, 256], sizes = [8, 128], strides = [1, 1]} : vector<8x512xf32> to vector<8x128xf32>
    %241 = math.tanh %240 : vector<8x128xf32>
    %242 = vector.extract_strided_slice %221 {offsets = [0, 384], sizes = [8, 128], strides = [1, 1]} : vector<8x512xf32> to vector<8x128xf32>
    %243 = arith.negf %242 : vector<8x128xf32>
    %244 = math.exp %243 : vector<8x128xf32>
    %cst_80 = arith.constant 1.000000e+00 : f32
    %245 = vector.broadcast %cst_80 : f32 to vector<8x128xf32>
    %246 = arith.addf %245, %244 : vector<8x128xf32>
    %247 = arith.divf %245, %246 : vector<8x128xf32>
    %248 = arith.mulf %239, %181 : vector<8x128xf32>
    %249 = arith.mulf %233, %241 : vector<8x128xf32>
    %250 = arith.addf %248, %249 : vector<8x128xf32>
    %251 = math.tanh %250 : vector<8x128xf32>
    %252 = arith.mulf %247, %251 : vector<8x128xf32>
    %253 = vector.extract_strided_slice %227 {offsets = [0, 0], sizes = [8, 128], strides = [1, 1]} : vector<8x512xf32> to vector<8x128xf32>
    %254 = arith.negf %253 : vector<8x128xf32>
    %255 = math.exp %254 : vector<8x128xf32>
    %cst_81 = arith.constant 1.000000e+00 : f32
    %256 = vector.broadcast %cst_81 : f32 to vector<8x128xf32>
    %257 = arith.addf %256, %255 : vector<8x128xf32>
    %258 = arith.divf %256, %257 : vector<8x128xf32>
    %259 = vector.extract_strided_slice %227 {offsets = [0, 128], sizes = [8, 128], strides = [1, 1]} : vector<8x512xf32> to vector<8x128xf32>
    %260 = arith.negf %259 : vector<8x128xf32>
    %261 = math.exp %260 : vector<8x128xf32>
    %cst_82 = arith.constant 1.000000e+00 : f32
    %262 = vector.broadcast %cst_82 : f32 to vector<8x128xf32>
    %263 = arith.addf %262, %261 : vector<8x128xf32>
    %264 = arith.divf %262, %263 : vector<8x128xf32>
    %265 = vector.extract_strided_slice %227 {offsets = [0, 256], sizes = [8, 128], strides = [1, 1]} : vector<8x512xf32> to vector<8x128xf32>
    %266 = math.tanh %265 : vector<8x128xf32>
    %267 = vector.extract_strided_slice %227 {offsets = [0, 384], sizes = [8, 128], strides = [1, 1]} : vector<8x512xf32> to vector<8x128xf32>
    %268 = arith.negf %267 : vector<8x128xf32>
    %269 = math.exp %268 : vector<8x128xf32>
    %cst_83 = arith.constant 1.000000e+00 : f32
    %270 = vector.broadcast %cst_83 : f32 to vector<8x128xf32>
    %271 = arith.addf %270, %269 : vector<8x128xf32>
    %272 = arith.divf %270, %271 : vector<8x128xf32>
    %273 = arith.mulf %264, %206 : vector<8x128xf32>
    %274 = arith.mulf %258, %266 : vector<8x128xf32>
    %275 = arith.addf %273, %274 : vector<8x128xf32>
    %276 = math.tanh %275 : vector<8x128xf32>
    %277 = arith.mulf %272, %276 : vector<8x128xf32>
    %c8_i32_84 = arith.constant 8 : i32
    %278 = arith.muli %c3_i32, %c8_i32_84 : i32
    %279 = arith.index_cast %278 : i32 to index
    %c0_85 = arith.constant 0 : index
    %280 = vector.load %arg15[%279, %c0_85] : memref<64x256xf32, #tpu.memory_space<vmem>>, vector<8x128xf32>
    tpu.vector_store %arg15[%279, %c0_85], %252 {strides = array<i32>} : memref<64x256xf32, #tpu.memory_space<vmem>>, vector<8x128xf32>,
    %c8_i32_86 = arith.constant 8 : i32
    %281 = arith.muli %215, %c8_i32_86 : i32
    %282 = arith.index_cast %281 : i32 to index
    %c128_87 = arith.constant 128 : index
    %283 = vector.load %arg15[%282, %c128_87] : memref<64x256xf32, #tpu.memory_space<vmem>>, vector<8x128xf32>
    tpu.vector_store %arg15[%282, %c128_87], %277 {strides = array<i32>} : memref<64x256xf32, #tpu.memory_space<vmem>>, vector<8x128xf32>,
    %c4_i32 = arith.constant 4 : i32
    %c7_i32_88 = arith.constant 7 : i32
    %284 = arith.subi %c7_i32_88, %c4_i32 : i32
    %c0_89 = arith.constant 0 : index
    %c0_90 = arith.constant 0 : index
    %285 = vector.load %arg3[%c0_89, %c0_90] : memref<128x512xf32, #tpu.memory_space<vmem>>, vector<128x512xf32>
    %cst_91 = arith.constant dense<0.000000e+00> : vector<8x512xf32>
    %286 = tpu.matmul %252, %285, %cst_91 {dimension_numbers = #tpu.dot_dimension_numbers<[1], [0], [0], [1], [0, 0, 1, 1], [], []>} : vector<8x128xf32>, vector<128x512xf32>, vector<8x512xf32> -> vector<8x512xf32>
    %c8_i32_92 = arith.constant 8 : i32
    %287 = arith.muli %c4_i32, %c8_i32_92 : i32
    %288 = arith.index_cast %287 : i32 to index
    %c0_93 = arith.constant 0 : index
    %289 = vector.load %arg14[%288, %c0_93] : memref<64x1024xf32, #tpu.memory_space<vmem>>, vector<8x512xf32>
    %290 = arith.addf %286, %289 : vector<8x512xf32>
    %c0_94 = arith.constant 0 : index
    %c0_95 = arith.constant 0 : index
    %291 = vector.load %arg4[%c0_94, %c0_95] : memref<128x512xf32, #tpu.memory_space<vmem>>, vector<128x512xf32>
    %cst_96 = arith.constant dense<0.000000e+00> : vector<8x512xf32>
    %292 = tpu.matmul %277, %291, %cst_96 {dimension_numbers = #tpu.dot_dimension_numbers<[1], [0], [0], [1], [0, 0, 1, 1], [], []>} : vector<8x128xf32>, vector<128x512xf32>, vector<8x512xf32> -> vector<8x512xf32>
    %c8_i32_97 = arith.constant 8 : i32
    %293 = arith.muli %284, %c8_i32_97 : i32
    %294 = arith.index_cast %293 : i32 to index
    %c512_98 = arith.constant 512 : index
    %295 = vector.load %arg14[%294, %c512_98] : memref<64x1024xf32, #tpu.memory_space<vmem>>, vector<8x512xf32>
    %296 = arith.addf %292, %295 : vector<8x512xf32>
    %297 = vector.extract_strided_slice %290 {offsets = [0, 0], sizes = [8, 128], strides = [1, 1]} : vector<8x512xf32> to vector<8x128xf32>
    %298 = arith.negf %297 : vector<8x128xf32>
    %299 = math.exp %298 : vector<8x128xf32>
    %cst_99 = arith.constant 1.000000e+00 : f32
    %300 = vector.broadcast %cst_99 : f32 to vector<8x128xf32>
    %301 = arith.addf %300, %299 : vector<8x128xf32>
    %302 = arith.divf %300, %301 : vector<8x128xf32>
    %303 = vector.extract_strided_slice %290 {offsets = [0, 128], sizes = [8, 128], strides = [1, 1]} : vector<8x512xf32> to vector<8x128xf32>
    %304 = arith.negf %303 : vector<8x128xf32>
    %305 = math.exp %304 : vector<8x128xf32>
    %cst_100 = arith.constant 1.000000e+00 : f32
    %306 = vector.broadcast %cst_100 : f32 to vector<8x128xf32>
    %307 = arith.addf %306, %305 : vector<8x128xf32>
    %308 = arith.divf %306, %307 : vector<8x128xf32>
    %309 = vector.extract_strided_slice %290 {offsets = [0, 256], sizes = [8, 128], strides = [1, 1]} : vector<8x512xf32> to vector<8x128xf32>
    %310 = math.tanh %309 : vector<8x128xf32>
    %311 = vector.extract_strided_slice %290 {offsets = [0, 384], sizes = [8, 128], strides = [1, 1]} : vector<8x512xf32> to vector<8x128xf32>
    %312 = arith.negf %311 : vector<8x128xf32>
    %313 = math.exp %312 : vector<8x128xf32>
    %cst_101 = arith.constant 1.000000e+00 : f32
    %314 = vector.broadcast %cst_101 : f32 to vector<8x128xf32>
    %315 = arith.addf %314, %313 : vector<8x128xf32>
    %316 = arith.divf %314, %315 : vector<8x128xf32>
    %317 = arith.mulf %308, %250 : vector<8x128xf32>
    %318 = arith.mulf %302, %310 : vector<8x128xf32>
    %319 = arith.addf %317, %318 : vector<8x128xf32>
    %320 = math.tanh %319 : vector<8x128xf32>
    %321 = arith.mulf %316, %320 : vector<8x128xf32>
    %322 = vector.extract_strided_slice %296 {offsets = [0, 0], sizes = [8, 128], strides = [1, 1]} : vector<8x512xf32> to vector<8x128xf32>
    %323 = arith.negf %322 : vector<8x128xf32>
    %324 = math.exp %323 : vector<8x128xf32>
    %cst_102 = arith.constant 1.000000e+00 : f32
    %325 = vector.broadcast %cst_102 : f32 to vector<8x128xf32>
    %326 = arith.addf %325, %324 : vector<8x128xf32>
    %327 = arith.divf %325, %326 : vector<8x128xf32>
    %328 = vector.extract_strided_slice %296 {offsets = [0, 128], sizes = [8, 128], strides = [1, 1]} : vector<8x512xf32> to vector<8x128xf32>
    %329 = arith.negf %328 : vector<8x128xf32>
    %330 = math.exp %329 : vector<8x128xf32>
    %cst_103 = arith.constant 1.000000e+00 : f32
    %331 = vector.broadcast %cst_103 : f32 to vector<8x128xf32>
    %332 = arith.addf %331, %330 : vector<8x128xf32>
    %333 = arith.divf %331, %332 : vector<8x128xf32>
    %334 = vector.extract_strided_slice %296 {offsets = [0, 256], sizes = [8, 128], strides = [1, 1]} : vector<8x512xf32> to vector<8x128xf32>
    %335 = math.tanh %334 : vector<8x128xf32>
    %336 = vector.extract_strided_slice %296 {offsets = [0, 384], sizes = [8, 128], strides = [1, 1]} : vector<8x512xf32> to vector<8x128xf32>
    %337 = arith.negf %336 : vector<8x128xf32>
    %338 = math.exp %337 : vector<8x128xf32>
    %cst_104 = arith.constant 1.000000e+00 : f32
    %339 = vector.broadcast %cst_104 : f32 to vector<8x128xf32>
    %340 = arith.addf %339, %338 : vector<8x128xf32>
    %341 = arith.divf %339, %340 : vector<8x128xf32>
    %342 = arith.mulf %333, %275 : vector<8x128xf32>
    %343 = arith.mulf %327, %335 : vector<8x128xf32>
    %344 = arith.addf %342, %343 : vector<8x128xf32>
    %345 = math.tanh %344 : vector<8x128xf32>
    %346 = arith.mulf %341, %345 : vector<8x128xf32>
    %c8_i32_105 = arith.constant 8 : i32
    %347 = arith.muli %c4_i32, %c8_i32_105 : i32
    %348 = arith.index_cast %347 : i32 to index
    %c0_106 = arith.constant 0 : index
    %349 = vector.load %arg15[%348, %c0_106] : memref<64x256xf32, #tpu.memory_space<vmem>>, vector<8x128xf32>
    tpu.vector_store %arg15[%348, %c0_106], %321 {strides = array<i32>} : memref<64x256xf32, #tpu.memory_space<vmem>>, vector<8x128xf32>,
    %c8_i32_107 = arith.constant 8 : i32
    %350 = arith.muli %284, %c8_i32_107 : i32
    %351 = arith.index_cast %350 : i32 to index
    %c128_108 = arith.constant 128 : index
    %352 = vector.load %arg15[%351, %c128_108] : memref<64x256xf32, #tpu.memory_space<vmem>>, vector<8x128xf32>
    tpu.vector_store %arg15[%351, %c128_108], %346 {strides = array<i32>} : memref<64x256xf32, #tpu.memory_space<vmem>>, vector<8x128xf32>,
    %c5_i32 = arith.constant 5 : i32
    %c7_i32_109 = arith.constant 7 : i32
    %353 = arith.subi %c7_i32_109, %c5_i32 : i32
    %c0_110 = arith.constant 0 : index
    %c0_111 = arith.constant 0 : index
    %354 = vector.load %arg3[%c0_110, %c0_111] : memref<128x512xf32, #tpu.memory_space<vmem>>, vector<128x512xf32>
    %cst_112 = arith.constant dense<0.000000e+00> : vector<8x512xf32>
    %355 = tpu.matmul %321, %354, %cst_112 {dimension_numbers = #tpu.dot_dimension_numbers<[1], [0], [0], [1], [0, 0, 1, 1], [], []>} : vector<8x128xf32>, vector<128x512xf32>, vector<8x512xf32> -> vector<8x512xf32>
    %c8_i32_113 = arith.constant 8 : i32
    %356 = arith.muli %c5_i32, %c8_i32_113 : i32
    %357 = arith.index_cast %356 : i32 to index
    %c0_114 = arith.constant 0 : index
    %358 = vector.load %arg14[%357, %c0_114] : memref<64x1024xf32, #tpu.memory_space<vmem>>, vector<8x512xf32>
    %359 = arith.addf %355, %358 : vector<8x512xf32>
    %c0_115 = arith.constant 0 : index
    %c0_116 = arith.constant 0 : index
    %360 = vector.load %arg4[%c0_115, %c0_116] : memref<128x512xf32, #tpu.memory_space<vmem>>, vector<128x512xf32>
    %cst_117 = arith.constant dense<0.000000e+00> : vector<8x512xf32>
    %361 = tpu.matmul %346, %360, %cst_117 {dimension_numbers = #tpu.dot_dimension_numbers<[1], [0], [0], [1], [0, 0, 1, 1], [], []>} : vector<8x128xf32>, vector<128x512xf32>, vector<8x512xf32> -> vector<8x512xf32>
    %c8_i32_118 = arith.constant 8 : i32
    %362 = arith.muli %353, %c8_i32_118 : i32
    %363 = arith.index_cast %362 : i32 to index
    %c512_119 = arith.constant 512 : index
    %364 = vector.load %arg14[%363, %c512_119] : memref<64x1024xf32, #tpu.memory_space<vmem>>, vector<8x512xf32>
    %365 = arith.addf %361, %364 : vector<8x512xf32>
    %366 = vector.extract_strided_slice %359 {offsets = [0, 0], sizes = [8, 128], strides = [1, 1]} : vector<8x512xf32> to vector<8x128xf32>
    %367 = arith.negf %366 : vector<8x128xf32>
    %368 = math.exp %367 : vector<8x128xf32>
    %cst_120 = arith.constant 1.000000e+00 : f32
    %369 = vector.broadcast %cst_120 : f32 to vector<8x128xf32>
    %370 = arith.addf %369, %368 : vector<8x128xf32>
    %371 = arith.divf %369, %370 : vector<8x128xf32>
    %372 = vector.extract_strided_slice %359 {offsets = [0, 128], sizes = [8, 128], strides = [1, 1]} : vector<8x512xf32> to vector<8x128xf32>
    %373 = arith.negf %372 : vector<8x128xf32>
    %374 = math.exp %373 : vector<8x128xf32>
    %cst_121 = arith.constant 1.000000e+00 : f32
    %375 = vector.broadcast %cst_121 : f32 to vector<8x128xf32>
    %376 = arith.addf %375, %374 : vector<8x128xf32>
    %377 = arith.divf %375, %376 : vector<8x128xf32>
    %378 = vector.extract_strided_slice %359 {offsets = [0, 256], sizes = [8, 128], strides = [1, 1]} : vector<8x512xf32> to vector<8x128xf32>
    %379 = math.tanh %378 : vector<8x128xf32>
    %380 = vector.extract_strided_slice %359 {offsets = [0, 384], sizes = [8, 128], strides = [1, 1]} : vector<8x512xf32> to vector<8x128xf32>
    %381 = arith.negf %380 : vector<8x128xf32>
    %382 = math.exp %381 : vector<8x128xf32>
    %cst_122 = arith.constant 1.000000e+00 : f32
    %383 = vector.broadcast %cst_122 : f32 to vector<8x128xf32>
    %384 = arith.addf %383, %382 : vector<8x128xf32>
    %385 = arith.divf %383, %384 : vector<8x128xf32>
    %386 = arith.mulf %377, %319 : vector<8x128xf32>
    %387 = arith.mulf %371, %379 : vector<8x128xf32>
    %388 = arith.addf %386, %387 : vector<8x128xf32>
    %389 = math.tanh %388 : vector<8x128xf32>
    %390 = arith.mulf %385, %389 : vector<8x128xf32>
    %391 = vector.extract_strided_slice %365 {offsets = [0, 0], sizes = [8, 128], strides = [1, 1]} : vector<8x512xf32> to vector<8x128xf32>
    %392 = arith.negf %391 : vector<8x128xf32>
    %393 = math.exp %392 : vector<8x128xf32>
    %cst_123 = arith.constant 1.000000e+00 : f32
    %394 = vector.broadcast %cst_123 : f32 to vector<8x128xf32>
    %395 = arith.addf %394, %393 : vector<8x128xf32>
    %396 = arith.divf %394, %395 : vector<8x128xf32>
    %397 = vector.extract_strided_slice %365 {offsets = [0, 128], sizes = [8, 128], strides = [1, 1]} : vector<8x512xf32> to vector<8x128xf32>
    %398 = arith.negf %397 : vector<8x128xf32>
    %399 = math.exp %398 : vector<8x128xf32>
    %cst_124 = arith.constant 1.000000e+00 : f32
    %400 = vector.broadcast %cst_124 : f32 to vector<8x128xf32>
    %401 = arith.addf %400, %399 : vector<8x128xf32>
    %402 = arith.divf %400, %401 : vector<8x128xf32>
    %403 = vector.extract_strided_slice %365 {offsets = [0, 256], sizes = [8, 128], strides = [1, 1]} : vector<8x512xf32> to vector<8x128xf32>
    %404 = math.tanh %403 : vector<8x128xf32>
    %405 = vector.extract_strided_slice %365 {offsets = [0, 384], sizes = [8, 128], strides = [1, 1]} : vector<8x512xf32> to vector<8x128xf32>
    %406 = arith.negf %405 : vector<8x128xf32>
    %407 = math.exp %406 : vector<8x128xf32>
    %cst_125 = arith.constant 1.000000e+00 : f32
    %408 = vector.broadcast %cst_125 : f32 to vector<8x128xf32>
    %409 = arith.addf %408, %407 : vector<8x128xf32>
    %410 = arith.divf %408, %409 : vector<8x128xf32>
    %411 = arith.mulf %402, %344 : vector<8x128xf32>
    %412 = arith.mulf %396, %404 : vector<8x128xf32>
    %413 = arith.addf %411, %412 : vector<8x128xf32>
    %414 = math.tanh %413 : vector<8x128xf32>
    %415 = arith.mulf %410, %414 : vector<8x128xf32>
    %c8_i32_126 = arith.constant 8 : i32
    %416 = arith.muli %c5_i32, %c8_i32_126 : i32
    %417 = arith.index_cast %416 : i32 to index
    %c0_127 = arith.constant 0 : index
    %418 = vector.load %arg15[%417, %c0_127] : memref<64x256xf32, #tpu.memory_space<vmem>>, vector<8x128xf32>
    tpu.vector_store %arg15[%417, %c0_127], %390 {strides = array<i32>} : memref<64x256xf32, #tpu.memory_space<vmem>>, vector<8x128xf32>,
    %c8_i32_128 = arith.constant 8 : i32
    %419 = arith.muli %353, %c8_i32_128 : i32
    %420 = arith.index_cast %419 : i32 to index
    %c128_129 = arith.constant 128 : index
    %421 = vector.load %arg15[%420, %c128_129] : memref<64x256xf32, #tpu.memory_space<vmem>>, vector<8x128xf32>
    tpu.vector_store %arg15[%420, %c128_129], %415 {strides = array<i32>} : memref<64x256xf32, #tpu.memory_space<vmem>>, vector<8x128xf32>,
    %c6_i32 = arith.constant 6 : i32
    %c7_i32_130 = arith.constant 7 : i32
    %422 = arith.subi %c7_i32_130, %c6_i32 : i32
    %c0_131 = arith.constant 0 : index
    %c0_132 = arith.constant 0 : index
    %423 = vector.load %arg3[%c0_131, %c0_132] : memref<128x512xf32, #tpu.memory_space<vmem>>, vector<128x512xf32>
    %cst_133 = arith.constant dense<0.000000e+00> : vector<8x512xf32>
    %424 = tpu.matmul %390, %423, %cst_133 {dimension_numbers = #tpu.dot_dimension_numbers<[1], [0], [0], [1], [0, 0, 1, 1], [], []>} : vector<8x128xf32>, vector<128x512xf32>, vector<8x512xf32> -> vector<8x512xf32>
    %c8_i32_134 = arith.constant 8 : i32
    %425 = arith.muli %c6_i32, %c8_i32_134 : i32
    %426 = arith.index_cast %425 : i32 to index
    %c0_135 = arith.constant 0 : index
    %427 = vector.load %arg14[%426, %c0_135] : memref<64x1024xf32, #tpu.memory_space<vmem>>, vector<8x512xf32>
    %428 = arith.addf %424, %427 : vector<8x512xf32>
    %c0_136 = arith.constant 0 : index
    %c0_137 = arith.constant 0 : index
    %429 = vector.load %arg4[%c0_136, %c0_137] : memref<128x512xf32, #tpu.memory_space<vmem>>, vector<128x512xf32>
    %cst_138 = arith.constant dense<0.000000e+00> : vector<8x512xf32>
    %430 = tpu.matmul %415, %429, %cst_138 {dimension_numbers = #tpu.dot_dimension_numbers<[1], [0], [0], [1], [0, 0, 1, 1], [], []>} : vector<8x128xf32>, vector<128x512xf32>, vector<8x512xf32> -> vector<8x512xf32>
    %c8_i32_139 = arith.constant 8 : i32
    %431 = arith.muli %422, %c8_i32_139 : i32
    %432 = arith.index_cast %431 : i32 to index
    %c512_140 = arith.constant 512 : index
    %433 = vector.load %arg14[%432, %c512_140] : memref<64x1024xf32, #tpu.memory_space<vmem>>, vector<8x512xf32>
    %434 = arith.addf %430, %433 : vector<8x512xf32>
    %435 = vector.extract_strided_slice %428 {offsets = [0, 0], sizes = [8, 128], strides = [1, 1]} : vector<8x512xf32> to vector<8x128xf32>
    %436 = arith.negf %435 : vector<8x128xf32>
    %437 = math.exp %436 : vector<8x128xf32>
    %cst_141 = arith.constant 1.000000e+00 : f32
    %438 = vector.broadcast %cst_141 : f32 to vector<8x128xf32>
    %439 = arith.addf %438, %437 : vector<8x128xf32>
    %440 = arith.divf %438, %439 : vector<8x128xf32>
    %441 = vector.extract_strided_slice %428 {offsets = [0, 128], sizes = [8, 128], strides = [1, 1]} : vector<8x512xf32> to vector<8x128xf32>
    %442 = arith.negf %441 : vector<8x128xf32>
    %443 = math.exp %442 : vector<8x128xf32>
    %cst_142 = arith.constant 1.000000e+00 : f32
    %444 = vector.broadcast %cst_142 : f32 to vector<8x128xf32>
    %445 = arith.addf %444, %443 : vector<8x128xf32>
    %446 = arith.divf %444, %445 : vector<8x128xf32>
    %447 = vector.extract_strided_slice %428 {offsets = [0, 256], sizes = [8, 128], strides = [1, 1]} : vector<8x512xf32> to vector<8x128xf32>
    %448 = math.tanh %447 : vector<8x128xf32>
    %449 = vector.extract_strided_slice %428 {offsets = [0, 384], sizes = [8, 128], strides = [1, 1]} : vector<8x512xf32> to vector<8x128xf32>
    %450 = arith.negf %449 : vector<8x128xf32>
    %451 = math.exp %450 : vector<8x128xf32>
    %cst_143 = arith.constant 1.000000e+00 : f32
    %452 = vector.broadcast %cst_143 : f32 to vector<8x128xf32>
    %453 = arith.addf %452, %451 : vector<8x128xf32>
    %454 = arith.divf %452, %453 : vector<8x128xf32>
    %455 = arith.mulf %446, %388 : vector<8x128xf32>
    %456 = arith.mulf %440, %448 : vector<8x128xf32>
    %457 = arith.addf %455, %456 : vector<8x128xf32>
    %458 = math.tanh %457 : vector<8x128xf32>
    %459 = arith.mulf %454, %458 : vector<8x128xf32>
    %460 = vector.extract_strided_slice %434 {offsets = [0, 0], sizes = [8, 128], strides = [1, 1]} : vector<8x512xf32> to vector<8x128xf32>
    %461 = arith.negf %460 : vector<8x128xf32>
    %462 = math.exp %461 : vector<8x128xf32>
    %cst_144 = arith.constant 1.000000e+00 : f32
    %463 = vector.broadcast %cst_144 : f32 to vector<8x128xf32>
    %464 = arith.addf %463, %462 : vector<8x128xf32>
    %465 = arith.divf %463, %464 : vector<8x128xf32>
    %466 = vector.extract_strided_slice %434 {offsets = [0, 128], sizes = [8, 128], strides = [1, 1]} : vector<8x512xf32> to vector<8x128xf32>
    %467 = arith.negf %466 : vector<8x128xf32>
    %468 = math.exp %467 : vector<8x128xf32>
    %cst_145 = arith.constant 1.000000e+00 : f32
    %469 = vector.broadcast %cst_145 : f32 to vector<8x128xf32>
    %470 = arith.addf %469, %468 : vector<8x128xf32>
    %471 = arith.divf %469, %470 : vector<8x128xf32>
    %472 = vector.extract_strided_slice %434 {offsets = [0, 256], sizes = [8, 128], strides = [1, 1]} : vector<8x512xf32> to vector<8x128xf32>
    %473 = math.tanh %472 : vector<8x128xf32>
    %474 = vector.extract_strided_slice %434 {offsets = [0, 384], sizes = [8, 128], strides = [1, 1]} : vector<8x512xf32> to vector<8x128xf32>
    %475 = arith.negf %474 : vector<8x128xf32>
    %476 = math.exp %475 : vector<8x128xf32>
    %cst_146 = arith.constant 1.000000e+00 : f32
    %477 = vector.broadcast %cst_146 : f32 to vector<8x128xf32>
    %478 = arith.addf %477, %476 : vector<8x128xf32>
    %479 = arith.divf %477, %478 : vector<8x128xf32>
    %480 = arith.mulf %471, %413 : vector<8x128xf32>
    %481 = arith.mulf %465, %473 : vector<8x128xf32>
    %482 = arith.addf %480, %481 : vector<8x128xf32>
    %483 = math.tanh %482 : vector<8x128xf32>
    %484 = arith.mulf %479, %483 : vector<8x128xf32>
    %c8_i32_147 = arith.constant 8 : i32
    %485 = arith.muli %c6_i32, %c8_i32_147 : i32
    %486 = arith.index_cast %485 : i32 to index
    %c0_148 = arith.constant 0 : index
    %487 = vector.load %arg15[%486, %c0_148] : memref<64x256xf32, #tpu.memory_space<vmem>>, vector<8x128xf32>
    tpu.vector_store %arg15[%486, %c0_148], %459 {strides = array<i32>} : memref<64x256xf32, #tpu.memory_space<vmem>>, vector<8x128xf32>,
    %c8_i32_149 = arith.constant 8 : i32
    %488 = arith.muli %422, %c8_i32_149 : i32
    %489 = arith.index_cast %488 : i32 to index
    %c128_150 = arith.constant 128 : index
    %490 = vector.load %arg15[%489, %c128_150] : memref<64x256xf32, #tpu.memory_space<vmem>>, vector<8x128xf32>
    tpu.vector_store %arg15[%489, %c128_150], %484 {strides = array<i32>} : memref<64x256xf32, #tpu.memory_space<vmem>>, vector<8x128xf32>,
    %c7_i32_151 = arith.constant 7 : i32
    %c7_i32_152 = arith.constant 7 : i32
    %491 = arith.subi %c7_i32_152, %c7_i32_151 : i32
    %c0_153 = arith.constant 0 : index
    %c0_154 = arith.constant 0 : index
    %492 = vector.load %arg3[%c0_153, %c0_154] : memref<128x512xf32, #tpu.memory_space<vmem>>, vector<128x512xf32>
    %cst_155 = arith.constant dense<0.000000e+00> : vector<8x512xf32>
    %493 = tpu.matmul %459, %492, %cst_155 {dimension_numbers = #tpu.dot_dimension_numbers<[1], [0], [0], [1], [0, 0, 1, 1], [], []>} : vector<8x128xf32>, vector<128x512xf32>, vector<8x512xf32> -> vector<8x512xf32>
    %c8_i32_156 = arith.constant 8 : i32
    %494 = arith.muli %c7_i32_151, %c8_i32_156 : i32
    %495 = arith.index_cast %494 : i32 to index
    %c0_157 = arith.constant 0 : index
    %496 = vector.load %arg14[%495, %c0_157] : memref<64x1024xf32, #tpu.memory_space<vmem>>, vector<8x512xf32>
    %497 = arith.addf %493, %496 : vector<8x512xf32>
    %c0_158 = arith.constant 0 : index
    %c0_159 = arith.constant 0 : index
    %498 = vector.load %arg4[%c0_158, %c0_159] : memref<128x512xf32, #tpu.memory_space<vmem>>, vector<128x512xf32>
    %cst_160 = arith.constant dense<0.000000e+00> : vector<8x512xf32>
    %499 = tpu.matmul %484, %498, %cst_160 {dimension_numbers = #tpu.dot_dimension_numbers<[1], [0], [0], [1], [0, 0, 1, 1], [], []>} : vector<8x128xf32>, vector<128x512xf32>, vector<8x512xf32> -> vector<8x512xf32>
    %c8_i32_161 = arith.constant 8 : i32
    %500 = arith.muli %491, %c8_i32_161 : i32
    %501 = arith.index_cast %500 : i32 to index
    %c512_162 = arith.constant 512 : index
    %502 = vector.load %arg14[%501, %c512_162] : memref<64x1024xf32, #tpu.memory_space<vmem>>, vector<8x512xf32>
    %503 = arith.addf %499, %502 : vector<8x512xf32>
    %504 = vector.extract_strided_slice %497 {offsets = [0, 0], sizes = [8, 128], strides = [1, 1]} : vector<8x512xf32> to vector<8x128xf32>
    %505 = arith.negf %504 : vector<8x128xf32>
    %506 = math.exp %505 : vector<8x128xf32>
    %cst_163 = arith.constant 1.000000e+00 : f32
    %507 = vector.broadcast %cst_163 : f32 to vector<8x128xf32>
    %508 = arith.addf %507, %506 : vector<8x128xf32>
    %509 = arith.divf %507, %508 : vector<8x128xf32>
    %510 = vector.extract_strided_slice %497 {offsets = [0, 128], sizes = [8, 128], strides = [1, 1]} : vector<8x512xf32> to vector<8x128xf32>
    %511 = arith.negf %510 : vector<8x128xf32>
    %512 = math.exp %511 : vector<8x128xf32>
    %cst_164 = arith.constant 1.000000e+00 : f32
    %513 = vector.broadcast %cst_164 : f32 to vector<8x128xf32>
    %514 = arith.addf %513, %512 : vector<8x128xf32>
    %515 = arith.divf %513, %514 : vector<8x128xf32>
    %516 = vector.extract_strided_slice %497 {offsets = [0, 256], sizes = [8, 128], strides = [1, 1]} : vector<8x512xf32> to vector<8x128xf32>
    %517 = math.tanh %516 : vector<8x128xf32>
    %518 = vector.extract_strided_slice %497 {offsets = [0, 384], sizes = [8, 128], strides = [1, 1]} : vector<8x512xf32> to vector<8x128xf32>
    %519 = arith.negf %518 : vector<8x128xf32>
    %520 = math.exp %519 : vector<8x128xf32>
    %cst_165 = arith.constant 1.000000e+00 : f32
    %521 = vector.broadcast %cst_165 : f32 to vector<8x128xf32>
    %522 = arith.addf %521, %520 : vector<8x128xf32>
    %523 = arith.divf %521, %522 : vector<8x128xf32>
    %524 = arith.mulf %515, %457 : vector<8x128xf32>
    %525 = arith.mulf %509, %517 : vector<8x128xf32>
    %526 = arith.addf %524, %525 : vector<8x128xf32>
    %527 = math.tanh %526 : vector<8x128xf32>
    %528 = arith.mulf %523, %527 : vector<8x128xf32>
    %529 = vector.extract_strided_slice %503 {offsets = [0, 0], sizes = [8, 128], strides = [1, 1]} : vector<8x512xf32> to vector<8x128xf32>
    %530 = arith.negf %529 : vector<8x128xf32>
    %531 = math.exp %530 : vector<8x128xf32>
    %cst_166 = arith.constant 1.000000e+00 : f32
    %532 = vector.broadcast %cst_166 : f32 to vector<8x128xf32>
    %533 = arith.addf %532, %531 : vector<8x128xf32>
    %534 = arith.divf %532, %533 : vector<8x128xf32>
    %535 = vector.extract_strided_slice %503 {offsets = [0, 128], sizes = [8, 128], strides = [1, 1]} : vector<8x512xf32> to vector<8x128xf32>
    %536 = arith.negf %535 : vector<8x128xf32>
    %537 = math.exp %536 : vector<8x128xf32>
    %cst_167 = arith.constant 1.000000e+00 : f32
    %538 = vector.broadcast %cst_167 : f32 to vector<8x128xf32>
    %539 = arith.addf %538, %537 : vector<8x128xf32>
    %540 = arith.divf %538, %539 : vector<8x128xf32>
    %541 = vector.extract_strided_slice %503 {offsets = [0, 256], sizes = [8, 128], strides = [1, 1]} : vector<8x512xf32> to vector<8x128xf32>
    %542 = math.tanh %541 : vector<8x128xf32>
    %543 = vector.extract_strided_slice %503 {offsets = [0, 384], sizes = [8, 128], strides = [1, 1]} : vector<8x512xf32> to vector<8x128xf32>
    %544 = arith.negf %543 : vector<8x128xf32>
    %545 = math.exp %544 : vector<8x128xf32>
    %cst_168 = arith.constant 1.000000e+00 : f32
    %546 = vector.broadcast %cst_168 : f32 to vector<8x128xf32>
    %547 = arith.addf %546, %545 : vector<8x128xf32>
    %548 = arith.divf %546, %547 : vector<8x128xf32>
    %549 = arith.mulf %540, %482 : vector<8x128xf32>
    %550 = arith.mulf %534, %542 : vector<8x128xf32>
    %551 = arith.addf %549, %550 : vector<8x128xf32>
    %552 = math.tanh %551 : vector<8x128xf32>
    %553 = arith.mulf %548, %552 : vector<8x128xf32>
    %c8_i32_169 = arith.constant 8 : i32
    %554 = arith.muli %c7_i32_151, %c8_i32_169 : i32
    %555 = arith.index_cast %554 : i32 to index
    %c0_170 = arith.constant 0 : index
    %556 = vector.load %arg15[%555, %c0_170] : memref<64x256xf32, #tpu.memory_space<vmem>>, vector<8x128xf32>
    tpu.vector_store %arg15[%555, %c0_170], %528 {strides = array<i32>} : memref<64x256xf32, #tpu.memory_space<vmem>>, vector<8x128xf32>,
    %c8_i32_171 = arith.constant 8 : i32
    %557 = arith.muli %491, %c8_i32_171 : i32
    %558 = arith.index_cast %557 : i32 to index
    %c128_172 = arith.constant 128 : index
    %559 = vector.load %arg15[%558, %c128_172] : memref<64x256xf32, #tpu.memory_space<vmem>>, vector<8x128xf32>
    tpu.vector_store %arg15[%558, %c128_172], %553 {strides = array<i32>} : memref<64x256xf32, #tpu.memory_space<vmem>>, vector<8x128xf32>,
    %c8_i32_173 = arith.constant 8 : i32
    %c0_174 = arith.constant 0 : index
    %c0_175 = arith.constant 0 : index
    %560 = vector.load %arg15[%c0_174, %c0_175] : memref<64x256xf32, #tpu.memory_space<vmem>>, vector<64x256xf32>
    %c0_176 = arith.constant 0 : index
    %c0_177 = arith.constant 0 : index
    %561 = vector.load %arg5[%c0_176, %c0_177] : memref<256x1024xf32, #tpu.memory_space<vmem>>, vector<256x1024xf32>
    %cst_178 = arith.constant dense<0.000000e+00> : vector<64x1024xf32>
    %562 = tpu.matmul %560, %561, %cst_178 {dimension_numbers = #tpu.dot_dimension_numbers<[1], [0], [0], [1], [0, 0, 1, 1], [], []>} : vector<64x256xf32>, vector<256x1024xf32>, vector<64x1024xf32> -> vector<64x1024xf32>
    %c0_179 = arith.constant 0 : index
    %c0_180 = arith.constant 0 : index
    %563 = vector.load %arg6[%c0_179, %c0_180] : memref<1x1024xf32, #tpu.memory_space<vmem>>, vector<1x1024xf32>
    %564 = vector.broadcast %563 : vector<1x1024xf32> to vector<64x1024xf32>
    %565 = arith.addf %562, %564 : vector<64x1024xf32>
    %c0_181 = arith.constant 0 : index
    %c0_182 = arith.constant 0 : index
    %566 = vector.load %arg14[%c0_181, %c0_182] : memref<64x1024xf32, #tpu.memory_space<vmem>>, vector<64x1024xf32>
    tpu.vector_store %arg14[%c0_181, %c0_182], %565 {strides = array<i32>} : memref<64x1024xf32, #tpu.memory_space<vmem>>, vector<64x1024xf32>,
    %c0_i32_183 = arith.constant 0 : i32
    %c7_i32_184 = arith.constant 7 : i32
    %567 = arith.subi %c7_i32_184, %c0_i32_183 : i32
    %c0_185 = arith.constant 0 : index
    %c0_186 = arith.constant 0 : index
    %568 = vector.load %arg7[%c0_185, %c0_186] : memref<128x512xf32, #tpu.memory_space<vmem>>, vector<128x512xf32>
    %cst_187 = arith.constant dense<0.000000e+00> : vector<8x512xf32>
    %569 = tpu.matmul %7, %568, %cst_187 {dimension_numbers = #tpu.dot_dimension_numbers<[1], [0], [0], [1], [0, 0, 1, 1], [], []>} : vector<8x128xf32>, vector<128x512xf32>, vector<8x512xf32> -> vector<8x512xf32>
    %c8_i32_188 = arith.constant 8 : i32
    %570 = arith.muli %c0_i32_183, %c8_i32_188 : i32
    %571 = arith.index_cast %570 : i32 to index
    %c0_189 = arith.constant 0 : index
    %572 = vector.load %arg14[%571, %c0_189] : memref<64x1024xf32, #tpu.memory_space<vmem>>, vector<8x512xf32>
    %573 = arith.addf %569, %572 : vector<8x512xf32>
    %c0_190 = arith.constant 0 : index
    %c0_191 = arith.constant 0 : index
    %574 = vector.load %arg8[%c0_190, %c0_191] : memref<128x512xf32, #tpu.memory_space<vmem>>, vector<128x512xf32>
    %cst_192 = arith.constant dense<0.000000e+00> : vector<8x512xf32>
    %575 = tpu.matmul %7, %574, %cst_192 {dimension_numbers = #tpu.dot_dimension_numbers<[1], [0], [0], [1], [0, 0, 1, 1], [], []>} : vector<8x128xf32>, vector<128x512xf32>, vector<8x512xf32> -> vector<8x512xf32>
    %c8_i32_193 = arith.constant 8 : i32
    %576 = arith.muli %567, %c8_i32_193 : i32
    %577 = arith.index_cast %576 : i32 to index
    %c512_194 = arith.constant 512 : index
    %578 = vector.load %arg14[%577, %c512_194] : memref<64x1024xf32, #tpu.memory_space<vmem>>, vector<8x512xf32>
    %579 = arith.addf %575, %578 : vector<8x512xf32>
    %580 = vector.extract_strided_slice %573 {offsets = [0, 0], sizes = [8, 128], strides = [1, 1]} : vector<8x512xf32> to vector<8x128xf32>
    %581 = arith.negf %580 : vector<8x128xf32>
    %582 = math.exp %581 : vector<8x128xf32>
    %cst_195 = arith.constant 1.000000e+00 : f32
    %583 = vector.broadcast %cst_195 : f32 to vector<8x128xf32>
    %584 = arith.addf %583, %582 : vector<8x128xf32>
    %585 = arith.divf %583, %584 : vector<8x128xf32>
    %586 = vector.extract_strided_slice %573 {offsets = [0, 128], sizes = [8, 128], strides = [1, 1]} : vector<8x512xf32> to vector<8x128xf32>
    %587 = arith.negf %586 : vector<8x128xf32>
    %588 = math.exp %587 : vector<8x128xf32>
    %cst_196 = arith.constant 1.000000e+00 : f32
    %589 = vector.broadcast %cst_196 : f32 to vector<8x128xf32>
    %590 = arith.addf %589, %588 : vector<8x128xf32>
    %591 = arith.divf %589, %590 : vector<8x128xf32>
    %592 = vector.extract_strided_slice %573 {offsets = [0, 256], sizes = [8, 128], strides = [1, 1]} : vector<8x512xf32> to vector<8x128xf32>
    %593 = math.tanh %592 : vector<8x128xf32>
    %594 = vector.extract_strided_slice %573 {offsets = [0, 384], sizes = [8, 128], strides = [1, 1]} : vector<8x512xf32> to vector<8x128xf32>
    %595 = arith.negf %594 : vector<8x128xf32>
    %596 = math.exp %595 : vector<8x128xf32>
    %cst_197 = arith.constant 1.000000e+00 : f32
    %597 = vector.broadcast %cst_197 : f32 to vector<8x128xf32>
    %598 = arith.addf %597, %596 : vector<8x128xf32>
    %599 = arith.divf %597, %598 : vector<8x128xf32>
    %600 = arith.mulf %591, %7 : vector<8x128xf32>
    %601 = arith.mulf %585, %593 : vector<8x128xf32>
    %602 = arith.addf %600, %601 : vector<8x128xf32>
    %603 = math.tanh %602 : vector<8x128xf32>
    %604 = arith.mulf %599, %603 : vector<8x128xf32>
    %605 = vector.extract_strided_slice %579 {offsets = [0, 0], sizes = [8, 128], strides = [1, 1]} : vector<8x512xf32> to vector<8x128xf32>
    %606 = arith.negf %605 : vector<8x128xf32>
    %607 = math.exp %606 : vector<8x128xf32>
    %cst_198 = arith.constant 1.000000e+00 : f32
    %608 = vector.broadcast %cst_198 : f32 to vector<8x128xf32>
    %609 = arith.addf %608, %607 : vector<8x128xf32>
    %610 = arith.divf %608, %609 : vector<8x128xf32>
    %611 = vector.extract_strided_slice %579 {offsets = [0, 128], sizes = [8, 128], strides = [1, 1]} : vector<8x512xf32> to vector<8x128xf32>
    %612 = arith.negf %611 : vector<8x128xf32>
    %613 = math.exp %612 : vector<8x128xf32>
    %cst_199 = arith.constant 1.000000e+00 : f32
    %614 = vector.broadcast %cst_199 : f32 to vector<8x128xf32>
    %615 = arith.addf %614, %613 : vector<8x128xf32>
    %616 = arith.divf %614, %615 : vector<8x128xf32>
    %617 = vector.extract_strided_slice %579 {offsets = [0, 256], sizes = [8, 128], strides = [1, 1]} : vector<8x512xf32> to vector<8x128xf32>
    %618 = math.tanh %617 : vector<8x128xf32>
    %619 = vector.extract_strided_slice %579 {offsets = [0, 384], sizes = [8, 128], strides = [1, 1]} : vector<8x512xf32> to vector<8x128xf32>
    %620 = arith.negf %619 : vector<8x128xf32>
    %621 = math.exp %620 : vector<8x128xf32>
    %cst_200 = arith.constant 1.000000e+00 : f32
    %622 = vector.broadcast %cst_200 : f32 to vector<8x128xf32>
    %623 = arith.addf %622, %621 : vector<8x128xf32>
    %624 = arith.divf %622, %623 : vector<8x128xf32>
    %625 = arith.mulf %616, %7 : vector<8x128xf32>
    %626 = arith.mulf %610, %618 : vector<8x128xf32>
    %627 = arith.addf %625, %626 : vector<8x128xf32>
    %628 = math.tanh %627 : vector<8x128xf32>
    %629 = arith.mulf %624, %628 : vector<8x128xf32>
    %c1_i32_201 = arith.constant 1 : i32
    %c7_i32_202 = arith.constant 7 : i32
    %630 = arith.subi %c7_i32_202, %c1_i32_201 : i32
    %c0_203 = arith.constant 0 : index
    %c0_204 = arith.constant 0 : index
    %631 = vector.load %arg7[%c0_203, %c0_204] : memref<128x512xf32, #tpu.memory_space<vmem>>, vector<128x512xf32>
    %cst_205 = arith.constant dense<0.000000e+00> : vector<8x512xf32>
    %632 = tpu.matmul %604, %631, %cst_205 {dimension_numbers = #tpu.dot_dimension_numbers<[1], [0], [0], [1], [0, 0, 1, 1], [], []>} : vector<8x128xf32>, vector<128x512xf32>, vector<8x512xf32> -> vector<8x512xf32>
    %c8_i32_206 = arith.constant 8 : i32
    %633 = arith.muli %c1_i32_201, %c8_i32_206 : i32
    %634 = arith.index_cast %633 : i32 to index
    %c0_207 = arith.constant 0 : index
    %635 = vector.load %arg14[%634, %c0_207] : memref<64x1024xf32, #tpu.memory_space<vmem>>, vector<8x512xf32>
    %636 = arith.addf %632, %635 : vector<8x512xf32>
    %c0_208 = arith.constant 0 : index
    %c0_209 = arith.constant 0 : index
    %637 = vector.load %arg8[%c0_208, %c0_209] : memref<128x512xf32, #tpu.memory_space<vmem>>, vector<128x512xf32>
    %cst_210 = arith.constant dense<0.000000e+00> : vector<8x512xf32>
    %638 = tpu.matmul %629, %637, %cst_210 {dimension_numbers = #tpu.dot_dimension_numbers<[1], [0], [0], [1], [0, 0, 1, 1], [], []>} : vector<8x128xf32>, vector<128x512xf32>, vector<8x512xf32> -> vector<8x512xf32>
    %c8_i32_211 = arith.constant 8 : i32
    %639 = arith.muli %630, %c8_i32_211 : i32
    %640 = arith.index_cast %639 : i32 to index
    %c512_212 = arith.constant 512 : index
    %641 = vector.load %arg14[%640, %c512_212] : memref<64x1024xf32, #tpu.memory_space<vmem>>, vector<8x512xf32>
    %642 = arith.addf %638, %641 : vector<8x512xf32>
    %643 = vector.extract_strided_slice %636 {offsets = [0, 0], sizes = [8, 128], strides = [1, 1]} : vector<8x512xf32> to vector<8x128xf32>
    %644 = arith.negf %643 : vector<8x128xf32>
    %645 = math.exp %644 : vector<8x128xf32>
    %cst_213 = arith.constant 1.000000e+00 : f32
    %646 = vector.broadcast %cst_213 : f32 to vector<8x128xf32>
    %647 = arith.addf %646, %645 : vector<8x128xf32>
    %648 = arith.divf %646, %647 : vector<8x128xf32>
    %649 = vector.extract_strided_slice %636 {offsets = [0, 128], sizes = [8, 128], strides = [1, 1]} : vector<8x512xf32> to vector<8x128xf32>
    %650 = arith.negf %649 : vector<8x128xf32>
    %651 = math.exp %650 : vector<8x128xf32>
    %cst_214 = arith.constant 1.000000e+00 : f32
    %652 = vector.broadcast %cst_214 : f32 to vector<8x128xf32>
    %653 = arith.addf %652, %651 : vector<8x128xf32>
    %654 = arith.divf %652, %653 : vector<8x128xf32>
    %655 = vector.extract_strided_slice %636 {offsets = [0, 256], sizes = [8, 128], strides = [1, 1]} : vector<8x512xf32> to vector<8x128xf32>
    %656 = math.tanh %655 : vector<8x128xf32>
    %657 = vector.extract_strided_slice %636 {offsets = [0, 384], sizes = [8, 128], strides = [1, 1]} : vector<8x512xf32> to vector<8x128xf32>
    %658 = arith.negf %657 : vector<8x128xf32>
    %659 = math.exp %658 : vector<8x128xf32>
    %cst_215 = arith.constant 1.000000e+00 : f32
    %660 = vector.broadcast %cst_215 : f32 to vector<8x128xf32>
    %661 = arith.addf %660, %659 : vector<8x128xf32>
    %662 = arith.divf %660, %661 : vector<8x128xf32>
    %663 = arith.mulf %654, %602 : vector<8x128xf32>
    %664 = arith.mulf %648, %656 : vector<8x128xf32>
    %665 = arith.addf %663, %664 : vector<8x128xf32>
    %666 = math.tanh %665 : vector<8x128xf32>
    %667 = arith.mulf %662, %666 : vector<8x128xf32>
    %668 = vector.extract_strided_slice %642 {offsets = [0, 0], sizes = [8, 128], strides = [1, 1]} : vector<8x512xf32> to vector<8x128xf32>
    %669 = arith.negf %668 : vector<8x128xf32>
    %670 = math.exp %669 : vector<8x128xf32>
    %cst_216 = arith.constant 1.000000e+00 : f32
    %671 = vector.broadcast %cst_216 : f32 to vector<8x128xf32>
    %672 = arith.addf %671, %670 : vector<8x128xf32>
    %673 = arith.divf %671, %672 : vector<8x128xf32>
    %674 = vector.extract_strided_slice %642 {offsets = [0, 128], sizes = [8, 128], strides = [1, 1]} : vector<8x512xf32> to vector<8x128xf32>
    %675 = arith.negf %674 : vector<8x128xf32>
    %676 = math.exp %675 : vector<8x128xf32>
    %cst_217 = arith.constant 1.000000e+00 : f32
    %677 = vector.broadcast %cst_217 : f32 to vector<8x128xf32>
    %678 = arith.addf %677, %676 : vector<8x128xf32>
    %679 = arith.divf %677, %678 : vector<8x128xf32>
    %680 = vector.extract_strided_slice %642 {offsets = [0, 256], sizes = [8, 128], strides = [1, 1]} : vector<8x512xf32> to vector<8x128xf32>
    %681 = math.tanh %680 : vector<8x128xf32>
    %682 = vector.extract_strided_slice %642 {offsets = [0, 384], sizes = [8, 128], strides = [1, 1]} : vector<8x512xf32> to vector<8x128xf32>
    %683 = arith.negf %682 : vector<8x128xf32>
    %684 = math.exp %683 : vector<8x128xf32>
    %cst_218 = arith.constant 1.000000e+00 : f32
    %685 = vector.broadcast %cst_218 : f32 to vector<8x128xf32>
    %686 = arith.addf %685, %684 : vector<8x128xf32>
    %687 = arith.divf %685, %686 : vector<8x128xf32>
    %688 = arith.mulf %679, %627 : vector<8x128xf32>
    %689 = arith.mulf %673, %681 : vector<8x128xf32>
    %690 = arith.addf %688, %689 : vector<8x128xf32>
    %691 = math.tanh %690 : vector<8x128xf32>
    %692 = arith.mulf %687, %691 : vector<8x128xf32>
    %c2_i32_219 = arith.constant 2 : i32
    %c7_i32_220 = arith.constant 7 : i32
    %693 = arith.subi %c7_i32_220, %c2_i32_219 : i32
    %c0_221 = arith.constant 0 : index
    %c0_222 = arith.constant 0 : index
    %694 = vector.load %arg7[%c0_221, %c0_222] : memref<128x512xf32, #tpu.memory_space<vmem>>, vector<128x512xf32>
    %cst_223 = arith.constant dense<0.000000e+00> : vector<8x512xf32>
    %695 = tpu.matmul %667, %694, %cst_223 {dimension_numbers = #tpu.dot_dimension_numbers<[1], [0], [0], [1], [0, 0, 1, 1], [], []>} : vector<8x128xf32>, vector<128x512xf32>, vector<8x512xf32> -> vector<8x512xf32>
    %c8_i32_224 = arith.constant 8 : i32
    %696 = arith.muli %c2_i32_219, %c8_i32_224 : i32
    %697 = arith.index_cast %696 : i32 to index
    %c0_225 = arith.constant 0 : index
    %698 = vector.load %arg14[%697, %c0_225] : memref<64x1024xf32, #tpu.memory_space<vmem>>, vector<8x512xf32>
    %699 = arith.addf %695, %698 : vector<8x512xf32>
    %c0_226 = arith.constant 0 : index
    %c0_227 = arith.constant 0 : index
    %700 = vector.load %arg8[%c0_226, %c0_227] : memref<128x512xf32, #tpu.memory_space<vmem>>, vector<128x512xf32>
    %cst_228 = arith.constant dense<0.000000e+00> : vector<8x512xf32>
    %701 = tpu.matmul %692, %700, %cst_228 {dimension_numbers = #tpu.dot_dimension_numbers<[1], [0], [0], [1], [0, 0, 1, 1], [], []>} : vector<8x128xf32>, vector<128x512xf32>, vector<8x512xf32> -> vector<8x512xf32>
    %c8_i32_229 = arith.constant 8 : i32
    %702 = arith.muli %693, %c8_i32_229 : i32
    %703 = arith.index_cast %702 : i32 to index
    %c512_230 = arith.constant 512 : index
    %704 = vector.load %arg14[%703, %c512_230] : memref<64x1024xf32, #tpu.memory_space<vmem>>, vector<8x512xf32>
    %705 = arith.addf %701, %704 : vector<8x512xf32>
    %706 = vector.extract_strided_slice %699 {offsets = [0, 0], sizes = [8, 128], strides = [1, 1]} : vector<8x512xf32> to vector<8x128xf32>
    %707 = arith.negf %706 : vector<8x128xf32>
    %708 = math.exp %707 : vector<8x128xf32>
    %cst_231 = arith.constant 1.000000e+00 : f32
    %709 = vector.broadcast %cst_231 : f32 to vector<8x128xf32>
    %710 = arith.addf %709, %708 : vector<8x128xf32>
    %711 = arith.divf %709, %710 : vector<8x128xf32>
    %712 = vector.extract_strided_slice %699 {offsets = [0, 128], sizes = [8, 128], strides = [1, 1]} : vector<8x512xf32> to vector<8x128xf32>
    %713 = arith.negf %712 : vector<8x128xf32>
    %714 = math.exp %713 : vector<8x128xf32>
    %cst_232 = arith.constant 1.000000e+00 : f32
    %715 = vector.broadcast %cst_232 : f32 to vector<8x128xf32>
    %716 = arith.addf %715, %714 : vector<8x128xf32>
    %717 = arith.divf %715, %716 : vector<8x128xf32>
    %718 = vector.extract_strided_slice %699 {offsets = [0, 256], sizes = [8, 128], strides = [1, 1]} : vector<8x512xf32> to vector<8x128xf32>
    %719 = math.tanh %718 : vector<8x128xf32>
    %720 = vector.extract_strided_slice %699 {offsets = [0, 384], sizes = [8, 128], strides = [1, 1]} : vector<8x512xf32> to vector<8x128xf32>
    %721 = arith.negf %720 : vector<8x128xf32>
    %722 = math.exp %721 : vector<8x128xf32>
    %cst_233 = arith.constant 1.000000e+00 : f32
    %723 = vector.broadcast %cst_233 : f32 to vector<8x128xf32>
    %724 = arith.addf %723, %722 : vector<8x128xf32>
    %725 = arith.divf %723, %724 : vector<8x128xf32>
    %726 = arith.mulf %717, %665 : vector<8x128xf32>
    %727 = arith.mulf %711, %719 : vector<8x128xf32>
    %728 = arith.addf %726, %727 : vector<8x128xf32>
    %729 = math.tanh %728 : vector<8x128xf32>
    %730 = arith.mulf %725, %729 : vector<8x128xf32>
    %731 = vector.extract_strided_slice %705 {offsets = [0, 0], sizes = [8, 128], strides = [1, 1]} : vector<8x512xf32> to vector<8x128xf32>
    %732 = arith.negf %731 : vector<8x128xf32>
    %733 = math.exp %732 : vector<8x128xf32>
    %cst_234 = arith.constant 1.000000e+00 : f32
    %734 = vector.broadcast %cst_234 : f32 to vector<8x128xf32>
    %735 = arith.addf %734, %733 : vector<8x128xf32>
    %736 = arith.divf %734, %735 : vector<8x128xf32>
    %737 = vector.extract_strided_slice %705 {offsets = [0, 128], sizes = [8, 128], strides = [1, 1]} : vector<8x512xf32> to vector<8x128xf32>
    %738 = arith.negf %737 : vector<8x128xf32>
    %739 = math.exp %738 : vector<8x128xf32>
    %cst_235 = arith.constant 1.000000e+00 : f32
    %740 = vector.broadcast %cst_235 : f32 to vector<8x128xf32>
    %741 = arith.addf %740, %739 : vector<8x128xf32>
    %742 = arith.divf %740, %741 : vector<8x128xf32>
    %743 = vector.extract_strided_slice %705 {offsets = [0, 256], sizes = [8, 128], strides = [1, 1]} : vector<8x512xf32> to vector<8x128xf32>
    %744 = math.tanh %743 : vector<8x128xf32>
    %745 = vector.extract_strided_slice %705 {offsets = [0, 384], sizes = [8, 128], strides = [1, 1]} : vector<8x512xf32> to vector<8x128xf32>
    %746 = arith.negf %745 : vector<8x128xf32>
    %747 = math.exp %746 : vector<8x128xf32>
    %cst_236 = arith.constant 1.000000e+00 : f32
    %748 = vector.broadcast %cst_236 : f32 to vector<8x128xf32>
    %749 = arith.addf %748, %747 : vector<8x128xf32>
    %750 = arith.divf %748, %749 : vector<8x128xf32>
    %751 = arith.mulf %742, %690 : vector<8x128xf32>
    %752 = arith.mulf %736, %744 : vector<8x128xf32>
    %753 = arith.addf %751, %752 : vector<8x128xf32>
    %754 = math.tanh %753 : vector<8x128xf32>
    %755 = arith.mulf %750, %754 : vector<8x128xf32>
    %c3_i32_237 = arith.constant 3 : i32
    %c7_i32_238 = arith.constant 7 : i32
    %756 = arith.subi %c7_i32_238, %c3_i32_237 : i32
    %c0_239 = arith.constant 0 : index
    %c0_240 = arith.constant 0 : index
    %757 = vector.load %arg7[%c0_239, %c0_240] : memref<128x512xf32, #tpu.memory_space<vmem>>, vector<128x512xf32>
    %cst_241 = arith.constant dense<0.000000e+00> : vector<8x512xf32>
    %758 = tpu.matmul %730, %757, %cst_241 {dimension_numbers = #tpu.dot_dimension_numbers<[1], [0], [0], [1], [0, 0, 1, 1], [], []>} : vector<8x128xf32>, vector<128x512xf32>, vector<8x512xf32> -> vector<8x512xf32>
    %c8_i32_242 = arith.constant 8 : i32
    %759 = arith.muli %c3_i32_237, %c8_i32_242 : i32
    %760 = arith.index_cast %759 : i32 to index
    %c0_243 = arith.constant 0 : index
    %761 = vector.load %arg14[%760, %c0_243] : memref<64x1024xf32, #tpu.memory_space<vmem>>, vector<8x512xf32>
    %762 = arith.addf %758, %761 : vector<8x512xf32>
    %c0_244 = arith.constant 0 : index
    %c0_245 = arith.constant 0 : index
    %763 = vector.load %arg8[%c0_244, %c0_245] : memref<128x512xf32, #tpu.memory_space<vmem>>, vector<128x512xf32>
    %cst_246 = arith.constant dense<0.000000e+00> : vector<8x512xf32>
    %764 = tpu.matmul %755, %763, %cst_246 {dimension_numbers = #tpu.dot_dimension_numbers<[1], [0], [0], [1], [0, 0, 1, 1], [], []>} : vector<8x128xf32>, vector<128x512xf32>, vector<8x512xf32> -> vector<8x512xf32>
    %c8_i32_247 = arith.constant 8 : i32
    %765 = arith.muli %756, %c8_i32_247 : i32
    %766 = arith.index_cast %765 : i32 to index
    %c512_248 = arith.constant 512 : index
    %767 = vector.load %arg14[%766, %c512_248] : memref<64x1024xf32, #tpu.memory_space<vmem>>, vector<8x512xf32>
    %768 = arith.addf %764, %767 : vector<8x512xf32>
    %769 = vector.extract_strided_slice %762 {offsets = [0, 0], sizes = [8, 128], strides = [1, 1]} : vector<8x512xf32> to vector<8x128xf32>
    %770 = arith.negf %769 : vector<8x128xf32>
    %771 = math.exp %770 : vector<8x128xf32>
    %cst_249 = arith.constant 1.000000e+00 : f32
    %772 = vector.broadcast %cst_249 : f32 to vector<8x128xf32>
    %773 = arith.addf %772, %771 : vector<8x128xf32>
    %774 = arith.divf %772, %773 : vector<8x128xf32>
    %775 = vector.extract_strided_slice %762 {offsets = [0, 128], sizes = [8, 128], strides = [1, 1]} : vector<8x512xf32> to vector<8x128xf32>
    %776 = arith.negf %775 : vector<8x128xf32>
    %777 = math.exp %776 : vector<8x128xf32>
    %cst_250 = arith.constant 1.000000e+00 : f32
    %778 = vector.broadcast %cst_250 : f32 to vector<8x128xf32>
    %779 = arith.addf %778, %777 : vector<8x128xf32>
    %780 = arith.divf %778, %779 : vector<8x128xf32>
    %781 = vector.extract_strided_slice %762 {offsets = [0, 256], sizes = [8, 128], strides = [1, 1]} : vector<8x512xf32> to vector<8x128xf32>
    %782 = math.tanh %781 : vector<8x128xf32>
    %783 = vector.extract_strided_slice %762 {offsets = [0, 384], sizes = [8, 128], strides = [1, 1]} : vector<8x512xf32> to vector<8x128xf32>
    %784 = arith.negf %783 : vector<8x128xf32>
    %785 = math.exp %784 : vector<8x128xf32>
    %cst_251 = arith.constant 1.000000e+00 : f32
    %786 = vector.broadcast %cst_251 : f32 to vector<8x128xf32>
    %787 = arith.addf %786, %785 : vector<8x128xf32>
    %788 = arith.divf %786, %787 : vector<8x128xf32>
    %789 = arith.mulf %780, %728 : vector<8x128xf32>
    %790 = arith.mulf %774, %782 : vector<8x128xf32>
    %791 = arith.addf %789, %790 : vector<8x128xf32>
    %792 = math.tanh %791 : vector<8x128xf32>
    %793 = arith.mulf %788, %792 : vector<8x128xf32>
    %794 = vector.extract_strided_slice %768 {offsets = [0, 0], sizes = [8, 128], strides = [1, 1]} : vector<8x512xf32> to vector<8x128xf32>
    %795 = arith.negf %794 : vector<8x128xf32>
    %796 = math.exp %795 : vector<8x128xf32>
    %cst_252 = arith.constant 1.000000e+00 : f32
    %797 = vector.broadcast %cst_252 : f32 to vector<8x128xf32>
    %798 = arith.addf %797, %796 : vector<8x128xf32>
    %799 = arith.divf %797, %798 : vector<8x128xf32>
    %800 = vector.extract_strided_slice %768 {offsets = [0, 128], sizes = [8, 128], strides = [1, 1]} : vector<8x512xf32> to vector<8x128xf32>
    %801 = arith.negf %800 : vector<8x128xf32>
    %802 = math.exp %801 : vector<8x128xf32>
    %cst_253 = arith.constant 1.000000e+00 : f32
    %803 = vector.broadcast %cst_253 : f32 to vector<8x128xf32>
    %804 = arith.addf %803, %802 : vector<8x128xf32>
    %805 = arith.divf %803, %804 : vector<8x128xf32>
    %806 = vector.extract_strided_slice %768 {offsets = [0, 256], sizes = [8, 128], strides = [1, 1]} : vector<8x512xf32> to vector<8x128xf32>
    %807 = math.tanh %806 : vector<8x128xf32>
    %808 = vector.extract_strided_slice %768 {offsets = [0, 384], sizes = [8, 128], strides = [1, 1]} : vector<8x512xf32> to vector<8x128xf32>
    %809 = arith.negf %808 : vector<8x128xf32>
    %810 = math.exp %809 : vector<8x128xf32>
    %cst_254 = arith.constant 1.000000e+00 : f32
    %811 = vector.broadcast %cst_254 : f32 to vector<8x128xf32>
    %812 = arith.addf %811, %810 : vector<8x128xf32>
    %813 = arith.divf %811, %812 : vector<8x128xf32>
    %814 = arith.mulf %805, %753 : vector<8x128xf32>
    %815 = arith.mulf %799, %807 : vector<8x128xf32>
    %816 = arith.addf %814, %815 : vector<8x128xf32>
    %817 = math.tanh %816 : vector<8x128xf32>
    %818 = arith.mulf %813, %817 : vector<8x128xf32>
    %c4_i32_255 = arith.constant 4 : i32
    %c7_i32_256 = arith.constant 7 : i32
    %819 = arith.subi %c7_i32_256, %c4_i32_255 : i32
    %c0_257 = arith.constant 0 : index
    %c0_258 = arith.constant 0 : index
    %820 = vector.load %arg7[%c0_257, %c0_258] : memref<128x512xf32, #tpu.memory_space<vmem>>, vector<128x512xf32>
    %cst_259 = arith.constant dense<0.000000e+00> : vector<8x512xf32>
    %821 = tpu.matmul %793, %820, %cst_259 {dimension_numbers = #tpu.dot_dimension_numbers<[1], [0], [0], [1], [0, 0, 1, 1], [], []>} : vector<8x128xf32>, vector<128x512xf32>, vector<8x512xf32> -> vector<8x512xf32>
    %c8_i32_260 = arith.constant 8 : i32
    %822 = arith.muli %c4_i32_255, %c8_i32_260 : i32
    %823 = arith.index_cast %822 : i32 to index
    %c0_261 = arith.constant 0 : index
    %824 = vector.load %arg14[%823, %c0_261] : memref<64x1024xf32, #tpu.memory_space<vmem>>, vector<8x512xf32>
    %825 = arith.addf %821, %824 : vector<8x512xf32>
    %c0_262 = arith.constant 0 : index
    %c0_263 = arith.constant 0 : index
    %826 = vector.load %arg8[%c0_262, %c0_263] : memref<128x512xf32, #tpu.memory_space<vmem>>, vector<128x512xf32>
    %cst_264 = arith.constant dense<0.000000e+00> : vector<8x512xf32>
    %827 = tpu.matmul %818, %826, %cst_264 {dimension_numbers = #tpu.dot_dimension_numbers<[1], [0], [0], [1], [0, 0, 1, 1], [], []>} : vector<8x128xf32>, vector<128x512xf32>, vector<8x512xf32> -> vector<8x512xf32>
    %c8_i32_265 = arith.constant 8 : i32
    %828 = arith.muli %819, %c8_i32_265 : i32
    %829 = arith.index_cast %828 : i32 to index
    %c512_266 = arith.constant 512 : index
    %830 = vector.load %arg14[%829, %c512_266] : memref<64x1024xf32, #tpu.memory_space<vmem>>, vector<8x512xf32>
    %831 = arith.addf %827, %830 : vector<8x512xf32>
    %832 = vector.extract_strided_slice %825 {offsets = [0, 0], sizes = [8, 128], strides = [1, 1]} : vector<8x512xf32> to vector<8x128xf32>
    %833 = arith.negf %832 : vector<8x128xf32>
    %834 = math.exp %833 : vector<8x128xf32>
    %cst_267 = arith.constant 1.000000e+00 : f32
    %835 = vector.broadcast %cst_267 : f32 to vector<8x128xf32>
    %836 = arith.addf %835, %834 : vector<8x128xf32>
    %837 = arith.divf %835, %836 : vector<8x128xf32>
    %838 = vector.extract_strided_slice %825 {offsets = [0, 128], sizes = [8, 128], strides = [1, 1]} : vector<8x512xf32> to vector<8x128xf32>
    %839 = arith.negf %838 : vector<8x128xf32>
    %840 = math.exp %839 : vector<8x128xf32>
    %cst_268 = arith.constant 1.000000e+00 : f32
    %841 = vector.broadcast %cst_268 : f32 to vector<8x128xf32>
    %842 = arith.addf %841, %840 : vector<8x128xf32>
    %843 = arith.divf %841, %842 : vector<8x128xf32>
    %844 = vector.extract_strided_slice %825 {offsets = [0, 256], sizes = [8, 128], strides = [1, 1]} : vector<8x512xf32> to vector<8x128xf32>
    %845 = math.tanh %844 : vector<8x128xf32>
    %846 = vector.extract_strided_slice %825 {offsets = [0, 384], sizes = [8, 128], strides = [1, 1]} : vector<8x512xf32> to vector<8x128xf32>
    %847 = arith.negf %846 : vector<8x128xf32>
    %848 = math.exp %847 : vector<8x128xf32>
    %cst_269 = arith.constant 1.000000e+00 : f32
    %849 = vector.broadcast %cst_269 : f32 to vector<8x128xf32>
    %850 = arith.addf %849, %848 : vector<8x128xf32>
    %851 = arith.divf %849, %850 : vector<8x128xf32>
    %852 = arith.mulf %843, %791 : vector<8x128xf32>
    %853 = arith.mulf %837, %845 : vector<8x128xf32>
    %854 = arith.addf %852, %853 : vector<8x128xf32>
    %855 = math.tanh %854 : vector<8x128xf32>
    %856 = arith.mulf %851, %855 : vector<8x128xf32>
    %857 = vector.extract_strided_slice %831 {offsets = [0, 0], sizes = [8, 128], strides = [1, 1]} : vector<8x512xf32> to vector<8x128xf32>
    %858 = arith.negf %857 : vector<8x128xf32>
    %859 = math.exp %858 : vector<8x128xf32>
    %cst_270 = arith.constant 1.000000e+00 : f32
    %860 = vector.broadcast %cst_270 : f32 to vector<8x128xf32>
    %861 = arith.addf %860, %859 : vector<8x128xf32>
    %862 = arith.divf %860, %861 : vector<8x128xf32>
    %863 = vector.extract_strided_slice %831 {offsets = [0, 128], sizes = [8, 128], strides = [1, 1]} : vector<8x512xf32> to vector<8x128xf32>
    %864 = arith.negf %863 : vector<8x128xf32>
    %865 = math.exp %864 : vector<8x128xf32>
    %cst_271 = arith.constant 1.000000e+00 : f32
    %866 = vector.broadcast %cst_271 : f32 to vector<8x128xf32>
    %867 = arith.addf %866, %865 : vector<8x128xf32>
    %868 = arith.divf %866, %867 : vector<8x128xf32>
    %869 = vector.extract_strided_slice %831 {offsets = [0, 256], sizes = [8, 128], strides = [1, 1]} : vector<8x512xf32> to vector<8x128xf32>
    %870 = math.tanh %869 : vector<8x128xf32>
    %871 = vector.extract_strided_slice %831 {offsets = [0, 384], sizes = [8, 128], strides = [1, 1]} : vector<8x512xf32> to vector<8x128xf32>
    %872 = arith.negf %871 : vector<8x128xf32>
    %873 = math.exp %872 : vector<8x128xf32>
    %cst_272 = arith.constant 1.000000e+00 : f32
    %874 = vector.broadcast %cst_272 : f32 to vector<8x128xf32>
    %875 = arith.addf %874, %873 : vector<8x128xf32>
    %876 = arith.divf %874, %875 : vector<8x128xf32>
    %877 = arith.mulf %868, %816 : vector<8x128xf32>
    %878 = arith.mulf %862, %870 : vector<8x128xf32>
    %879 = arith.addf %877, %878 : vector<8x128xf32>
    %880 = math.tanh %879 : vector<8x128xf32>
    %881 = arith.mulf %876, %880 : vector<8x128xf32>
    %c5_i32_273 = arith.constant 5 : i32
    %c7_i32_274 = arith.constant 7 : i32
    %882 = arith.subi %c7_i32_274, %c5_i32_273 : i32
    %c0_275 = arith.constant 0 : index
    %c0_276 = arith.constant 0 : index
    %883 = vector.load %arg7[%c0_275, %c0_276] : memref<128x512xf32, #tpu.memory_space<vmem>>, vector<128x512xf32>
    %cst_277 = arith.constant dense<0.000000e+00> : vector<8x512xf32>
    %884 = tpu.matmul %856, %883, %cst_277 {dimension_numbers = #tpu.dot_dimension_numbers<[1], [0], [0], [1], [0, 0, 1, 1], [], []>} : vector<8x128xf32>, vector<128x512xf32>, vector<8x512xf32> -> vector<8x512xf32>
    %c8_i32_278 = arith.constant 8 : i32
    %885 = arith.muli %c5_i32_273, %c8_i32_278 : i32
    %886 = arith.index_cast %885 : i32 to index
    %c0_279 = arith.constant 0 : index
    %887 = vector.load %arg14[%886, %c0_279] : memref<64x1024xf32, #tpu.memory_space<vmem>>, vector<8x512xf32>
    %888 = arith.addf %884, %887 : vector<8x512xf32>
    %c0_280 = arith.constant 0 : index
    %c0_281 = arith.constant 0 : index
    %889 = vector.load %arg8[%c0_280, %c0_281] : memref<128x512xf32, #tpu.memory_space<vmem>>, vector<128x512xf32>
    %cst_282 = arith.constant dense<0.000000e+00> : vector<8x512xf32>
    %890 = tpu.matmul %881, %889, %cst_282 {dimension_numbers = #tpu.dot_dimension_numbers<[1], [0], [0], [1], [0, 0, 1, 1], [], []>} : vector<8x128xf32>, vector<128x512xf32>, vector<8x512xf32> -> vector<8x512xf32>
    %c8_i32_283 = arith.constant 8 : i32
    %891 = arith.muli %882, %c8_i32_283 : i32
    %892 = arith.index_cast %891 : i32 to index
    %c512_284 = arith.constant 512 : index
    %893 = vector.load %arg14[%892, %c512_284] : memref<64x1024xf32, #tpu.memory_space<vmem>>, vector<8x512xf32>
    %894 = arith.addf %890, %893 : vector<8x512xf32>
    %895 = vector.extract_strided_slice %888 {offsets = [0, 0], sizes = [8, 128], strides = [1, 1]} : vector<8x512xf32> to vector<8x128xf32>
    %896 = arith.negf %895 : vector<8x128xf32>
    %897 = math.exp %896 : vector<8x128xf32>
    %cst_285 = arith.constant 1.000000e+00 : f32
    %898 = vector.broadcast %cst_285 : f32 to vector<8x128xf32>
    %899 = arith.addf %898, %897 : vector<8x128xf32>
    %900 = arith.divf %898, %899 : vector<8x128xf32>
    %901 = vector.extract_strided_slice %888 {offsets = [0, 128], sizes = [8, 128], strides = [1, 1]} : vector<8x512xf32> to vector<8x128xf32>
    %902 = arith.negf %901 : vector<8x128xf32>
    %903 = math.exp %902 : vector<8x128xf32>
    %cst_286 = arith.constant 1.000000e+00 : f32
    %904 = vector.broadcast %cst_286 : f32 to vector<8x128xf32>
    %905 = arith.addf %904, %903 : vector<8x128xf32>
    %906 = arith.divf %904, %905 : vector<8x128xf32>
    %907 = vector.extract_strided_slice %888 {offsets = [0, 256], sizes = [8, 128], strides = [1, 1]} : vector<8x512xf32> to vector<8x128xf32>
    %908 = math.tanh %907 : vector<8x128xf32>
    %909 = vector.extract_strided_slice %888 {offsets = [0, 384], sizes = [8, 128], strides = [1, 1]} : vector<8x512xf32> to vector<8x128xf32>
    %910 = arith.negf %909 : vector<8x128xf32>
    %911 = math.exp %910 : vector<8x128xf32>
    %cst_287 = arith.constant 1.000000e+00 : f32
    %912 = vector.broadcast %cst_287 : f32 to vector<8x128xf32>
    %913 = arith.addf %912, %911 : vector<8x128xf32>
    %914 = arith.divf %912, %913 : vector<8x128xf32>
    %915 = arith.mulf %906, %854 : vector<8x128xf32>
    %916 = arith.mulf %900, %908 : vector<8x128xf32>
    %917 = arith.addf %915, %916 : vector<8x128xf32>
    %918 = math.tanh %917 : vector<8x128xf32>
    %919 = arith.mulf %914, %918 : vector<8x128xf32>
    %920 = vector.extract_strided_slice %894 {offsets = [0, 0], sizes = [8, 128], strides = [1, 1]} : vector<8x512xf32> to vector<8x128xf32>
    %921 = arith.negf %920 : vector<8x128xf32>
    %922 = math.exp %921 : vector<8x128xf32>
    %cst_288 = arith.constant 1.000000e+00 : f32
    %923 = vector.broadcast %cst_288 : f32 to vector<8x128xf32>
    %924 = arith.addf %923, %922 : vector<8x128xf32>
    %925 = arith.divf %923, %924 : vector<8x128xf32>
    %926 = vector.extract_strided_slice %894 {offsets = [0, 128], sizes = [8, 128], strides = [1, 1]} : vector<8x512xf32> to vector<8x128xf32>
    %927 = arith.negf %926 : vector<8x128xf32>
    %928 = math.exp %927 : vector<8x128xf32>
    %cst_289 = arith.constant 1.000000e+00 : f32
    %929 = vector.broadcast %cst_289 : f32 to vector<8x128xf32>
    %930 = arith.addf %929, %928 : vector<8x128xf32>
    %931 = arith.divf %929, %930 : vector<8x128xf32>
    %932 = vector.extract_strided_slice %894 {offsets = [0, 256], sizes = [8, 128], strides = [1, 1]} : vector<8x512xf32> to vector<8x128xf32>
    %933 = math.tanh %932 : vector<8x128xf32>
    %934 = vector.extract_strided_slice %894 {offsets = [0, 384], sizes = [8, 128], strides = [1, 1]} : vector<8x512xf32> to vector<8x128xf32>
    %935 = arith.negf %934 : vector<8x128xf32>
    %936 = math.exp %935 : vector<8x128xf32>
    %cst_290 = arith.constant 1.000000e+00 : f32
    %937 = vector.broadcast %cst_290 : f32 to vector<8x128xf32>
    %938 = arith.addf %937, %936 : vector<8x128xf32>
    %939 = arith.divf %937, %938 : vector<8x128xf32>
    %940 = arith.mulf %931, %879 : vector<8x128xf32>
    %941 = arith.mulf %925, %933 : vector<8x128xf32>
    %942 = arith.addf %940, %941 : vector<8x128xf32>
    %943 = math.tanh %942 : vector<8x128xf32>
    %944 = arith.mulf %939, %943 : vector<8x128xf32>
    %c6_i32_291 = arith.constant 6 : i32
    %c7_i32_292 = arith.constant 7 : i32
    %945 = arith.subi %c7_i32_292, %c6_i32_291 : i32
    %c0_293 = arith.constant 0 : index
    %c0_294 = arith.constant 0 : index
    %946 = vector.load %arg7[%c0_293, %c0_294] : memref<128x512xf32, #tpu.memory_space<vmem>>, vector<128x512xf32>
    %cst_295 = arith.constant dense<0.000000e+00> : vector<8x512xf32>
    %947 = tpu.matmul %919, %946, %cst_295 {dimension_numbers = #tpu.dot_dimension_numbers<[1], [0], [0], [1], [0, 0, 1, 1], [], []>} : vector<8x128xf32>, vector<128x512xf32>, vector<8x512xf32> -> vector<8x512xf32>
    %c8_i32_296 = arith.constant 8 : i32
    %948 = arith.muli %c6_i32_291, %c8_i32_296 : i32
    %949 = arith.index_cast %948 : i32 to index
    %c0_297 = arith.constant 0 : index
    %950 = vector.load %arg14[%949, %c0_297] : memref<64x1024xf32, #tpu.memory_space<vmem>>, vector<8x512xf32>
    %951 = arith.addf %947, %950 : vector<8x512xf32>
    %c0_298 = arith.constant 0 : index
    %c0_299 = arith.constant 0 : index
    %952 = vector.load %arg8[%c0_298, %c0_299] : memref<128x512xf32, #tpu.memory_space<vmem>>, vector<128x512xf32>
    %cst_300 = arith.constant dense<0.000000e+00> : vector<8x512xf32>
    %953 = tpu.matmul %944, %952, %cst_300 {dimension_numbers = #tpu.dot_dimension_numbers<[1], [0], [0], [1], [0, 0, 1, 1], [], []>} : vector<8x128xf32>, vector<128x512xf32>, vector<8x512xf32> -> vector<8x512xf32>
    %c8_i32_301 = arith.constant 8 : i32
    %954 = arith.muli %945, %c8_i32_301 : i32
    %955 = arith.index_cast %954 : i32 to index
    %c512_302 = arith.constant 512 : index
    %956 = vector.load %arg14[%955, %c512_302] : memref<64x1024xf32, #tpu.memory_space<vmem>>, vector<8x512xf32>
    %957 = arith.addf %953, %956 : vector<8x512xf32>
    %958 = vector.extract_strided_slice %951 {offsets = [0, 0], sizes = [8, 128], strides = [1, 1]} : vector<8x512xf32> to vector<8x128xf32>
    %959 = arith.negf %958 : vector<8x128xf32>
    %960 = math.exp %959 : vector<8x128xf32>
    %cst_303 = arith.constant 1.000000e+00 : f32
    %961 = vector.broadcast %cst_303 : f32 to vector<8x128xf32>
    %962 = arith.addf %961, %960 : vector<8x128xf32>
    %963 = arith.divf %961, %962 : vector<8x128xf32>
    %964 = vector.extract_strided_slice %951 {offsets = [0, 128], sizes = [8, 128], strides = [1, 1]} : vector<8x512xf32> to vector<8x128xf32>
    %965 = arith.negf %964 : vector<8x128xf32>
    %966 = math.exp %965 : vector<8x128xf32>
    %cst_304 = arith.constant 1.000000e+00 : f32
    %967 = vector.broadcast %cst_304 : f32 to vector<8x128xf32>
    %968 = arith.addf %967, %966 : vector<8x128xf32>
    %969 = arith.divf %967, %968 : vector<8x128xf32>
    %970 = vector.extract_strided_slice %951 {offsets = [0, 256], sizes = [8, 128], strides = [1, 1]} : vector<8x512xf32> to vector<8x128xf32>
    %971 = math.tanh %970 : vector<8x128xf32>
    %972 = vector.extract_strided_slice %951 {offsets = [0, 384], sizes = [8, 128], strides = [1, 1]} : vector<8x512xf32> to vector<8x128xf32>
    %973 = arith.negf %972 : vector<8x128xf32>
    %974 = math.exp %973 : vector<8x128xf32>
    %cst_305 = arith.constant 1.000000e+00 : f32
    %975 = vector.broadcast %cst_305 : f32 to vector<8x128xf32>
    %976 = arith.addf %975, %974 : vector<8x128xf32>
    %977 = arith.divf %975, %976 : vector<8x128xf32>
    %978 = arith.mulf %969, %917 : vector<8x128xf32>
    %979 = arith.mulf %963, %971 : vector<8x128xf32>
    %980 = arith.addf %978, %979 : vector<8x128xf32>
    %981 = math.tanh %980 : vector<8x128xf32>
    %982 = arith.mulf %977, %981 : vector<8x128xf32>
    %983 = vector.extract_strided_slice %957 {offsets = [0, 0], sizes = [8, 128], strides = [1, 1]} : vector<8x512xf32> to vector<8x128xf32>
    %984 = arith.negf %983 : vector<8x128xf32>
    %985 = math.exp %984 : vector<8x128xf32>
    %cst_306 = arith.constant 1.000000e+00 : f32
    %986 = vector.broadcast %cst_306 : f32 to vector<8x128xf32>
    %987 = arith.addf %986, %985 : vector<8x128xf32>
    %988 = arith.divf %986, %987 : vector<8x128xf32>
    %989 = vector.extract_strided_slice %957 {offsets = [0, 128], sizes = [8, 128], strides = [1, 1]} : vector<8x512xf32> to vector<8x128xf32>
    %990 = arith.negf %989 : vector<8x128xf32>
    %991 = math.exp %990 : vector<8x128xf32>
    %cst_307 = arith.constant 1.000000e+00 : f32
    %992 = vector.broadcast %cst_307 : f32 to vector<8x128xf32>
    %993 = arith.addf %992, %991 : vector<8x128xf32>
    %994 = arith.divf %992, %993 : vector<8x128xf32>
    %995 = vector.extract_strided_slice %957 {offsets = [0, 256], sizes = [8, 128], strides = [1, 1]} : vector<8x512xf32> to vector<8x128xf32>
    %996 = math.tanh %995 : vector<8x128xf32>
    %997 = vector.extract_strided_slice %957 {offsets = [0, 384], sizes = [8, 128], strides = [1, 1]} : vector<8x512xf32> to vector<8x128xf32>
    %998 = arith.negf %997 : vector<8x128xf32>
    %999 = math.exp %998 : vector<8x128xf32>
    %cst_308 = arith.constant 1.000000e+00 : f32
    %1000 = vector.broadcast %cst_308 : f32 to vector<8x128xf32>
    %1001 = arith.addf %1000, %999 : vector<8x128xf32>
    %1002 = arith.divf %1000, %1001 : vector<8x128xf32>
    %1003 = arith.mulf %994, %942 : vector<8x128xf32>
    %1004 = arith.mulf %988, %996 : vector<8x128xf32>
    %1005 = arith.addf %1003, %1004 : vector<8x128xf32>
    %1006 = math.tanh %1005 : vector<8x128xf32>
    %1007 = arith.mulf %1002, %1006 : vector<8x128xf32>
    %c7_i32_309 = arith.constant 7 : i32
    %c7_i32_310 = arith.constant 7 : i32
    %1008 = arith.subi %c7_i32_310, %c7_i32_309 : i32
    %c0_311 = arith.constant 0 : index
    %c0_312 = arith.constant 0 : index
    %1009 = vector.load %arg7[%c0_311, %c0_312] : memref<128x512xf32, #tpu.memory_space<vmem>>, vector<128x512xf32>
    %cst_313 = arith.constant dense<0.000000e+00> : vector<8x512xf32>
    %1010 = tpu.matmul %982, %1009, %cst_313 {dimension_numbers = #tpu.dot_dimension_numbers<[1], [0], [0], [1], [0, 0, 1, 1], [], []>} : vector<8x128xf32>, vector<128x512xf32>, vector<8x512xf32> -> vector<8x512xf32>
    %c8_i32_314 = arith.constant 8 : i32
    %1011 = arith.muli %c7_i32_309, %c8_i32_314 : i32
    %1012 = arith.index_cast %1011 : i32 to index
    %c0_315 = arith.constant 0 : index
    %1013 = vector.load %arg14[%1012, %c0_315] : memref<64x1024xf32, #tpu.memory_space<vmem>>, vector<8x512xf32>
    %1014 = arith.addf %1010, %1013 : vector<8x512xf32>
    %c0_316 = arith.constant 0 : index
    %c0_317 = arith.constant 0 : index
    %1015 = vector.load %arg8[%c0_316, %c0_317] : memref<128x512xf32, #tpu.memory_space<vmem>>, vector<128x512xf32>
    %cst_318 = arith.constant dense<0.000000e+00> : vector<8x512xf32>
    %1016 = tpu.matmul %1007, %1015, %cst_318 {dimension_numbers = #tpu.dot_dimension_numbers<[1], [0], [0], [1], [0, 0, 1, 1], [], []>} : vector<8x128xf32>, vector<128x512xf32>, vector<8x512xf32> -> vector<8x512xf32>
    %c8_i32_319 = arith.constant 8 : i32
    %1017 = arith.muli %1008, %c8_i32_319 : i32
    %1018 = arith.index_cast %1017 : i32 to index
    %c512_320 = arith.constant 512 : index
    %1019 = vector.load %arg14[%1018, %c512_320] : memref<64x1024xf32, #tpu.memory_space<vmem>>, vector<8x512xf32>
    %1020 = arith.addf %1016, %1019 : vector<8x512xf32>
    %1021 = vector.extract_strided_slice %1014 {offsets = [0, 0], sizes = [8, 128], strides = [1, 1]} : vector<8x512xf32> to vector<8x128xf32>
    %1022 = arith.negf %1021 : vector<8x128xf32>
    %1023 = math.exp %1022 : vector<8x128xf32>
    %cst_321 = arith.constant 1.000000e+00 : f32
    %1024 = vector.broadcast %cst_321 : f32 to vector<8x128xf32>
    %1025 = arith.addf %1024, %1023 : vector<8x128xf32>
    %1026 = arith.divf %1024, %1025 : vector<8x128xf32>
    %1027 = vector.extract_strided_slice %1014 {offsets = [0, 128], sizes = [8, 128], strides = [1, 1]} : vector<8x512xf32> to vector<8x128xf32>
    %1028 = arith.negf %1027 : vector<8x128xf32>
    %1029 = math.exp %1028 : vector<8x128xf32>
    %cst_322 = arith.constant 1.000000e+00 : f32
    %1030 = vector.broadcast %cst_322 : f32 to vector<8x128xf32>
    %1031 = arith.addf %1030, %1029 : vector<8x128xf32>
    %1032 = arith.divf %1030, %1031 : vector<8x128xf32>
    %1033 = vector.extract_strided_slice %1014 {offsets = [0, 256], sizes = [8, 128], strides = [1, 1]} : vector<8x512xf32> to vector<8x128xf32>
    %1034 = math.tanh %1033 : vector<8x128xf32>
    %1035 = vector.extract_strided_slice %1014 {offsets = [0, 384], sizes = [8, 128], strides = [1, 1]} : vector<8x512xf32> to vector<8x128xf32>
    %1036 = arith.negf %1035 : vector<8x128xf32>
    %1037 = math.exp %1036 : vector<8x128xf32>
    %cst_323 = arith.constant 1.000000e+00 : f32
    %1038 = vector.broadcast %cst_323 : f32 to vector<8x128xf32>
    %1039 = arith.addf %1038, %1037 : vector<8x128xf32>
    %1040 = arith.divf %1038, %1039 : vector<8x128xf32>
    %1041 = arith.mulf %1032, %980 : vector<8x128xf32>
    %1042 = arith.mulf %1026, %1034 : vector<8x128xf32>
    %1043 = arith.addf %1041, %1042 : vector<8x128xf32>
    %1044 = math.tanh %1043 : vector<8x128xf32>
    %1045 = arith.mulf %1040, %1044 : vector<8x128xf32>
    %1046 = vector.extract_strided_slice %1020 {offsets = [0, 0], sizes = [8, 128], strides = [1, 1]} : vector<8x512xf32> to vector<8x128xf32>
    %1047 = arith.negf %1046 : vector<8x128xf32>
    %1048 = math.exp %1047 : vector<8x128xf32>
    %cst_324 = arith.constant 1.000000e+00 : f32
    %1049 = vector.broadcast %cst_324 : f32 to vector<8x128xf32>
    %1050 = arith.addf %1049, %1048 : vector<8x128xf32>
    %1051 = arith.divf %1049, %1050 : vector<8x128xf32>
    %1052 = vector.extract_strided_slice %1020 {offsets = [0, 128], sizes = [8, 128], strides = [1, 1]} : vector<8x512xf32> to vector<8x128xf32>
    %1053 = arith.negf %1052 : vector<8x128xf32>
    %1054 = math.exp %1053 : vector<8x128xf32>
    %cst_325 = arith.constant 1.000000e+00 : f32
    %1055 = vector.broadcast %cst_325 : f32 to vector<8x128xf32>
    %1056 = arith.addf %1055, %1054 : vector<8x128xf32>
    %1057 = arith.divf %1055, %1056 : vector<8x128xf32>
    %1058 = vector.extract_strided_slice %1020 {offsets = [0, 256], sizes = [8, 128], strides = [1, 1]} : vector<8x512xf32> to vector<8x128xf32>
    %1059 = math.tanh %1058 : vector<8x128xf32>
    %1060 = vector.extract_strided_slice %1020 {offsets = [0, 384], sizes = [8, 128], strides = [1, 1]} : vector<8x512xf32> to vector<8x128xf32>
    %1061 = arith.negf %1060 : vector<8x128xf32>
    %1062 = math.exp %1061 : vector<8x128xf32>
    %cst_326 = arith.constant 1.000000e+00 : f32
    %1063 = vector.broadcast %cst_326 : f32 to vector<8x128xf32>
    %1064 = arith.addf %1063, %1062 : vector<8x128xf32>
    %1065 = arith.divf %1063, %1064 : vector<8x128xf32>
    %1066 = arith.mulf %1057, %1005 : vector<8x128xf32>
    %1067 = arith.mulf %1051, %1059 : vector<8x128xf32>
    %1068 = arith.addf %1066, %1067 : vector<8x128xf32>
    %1069 = math.tanh %1068 : vector<8x128xf32>
    %1070 = arith.mulf %1065, %1069 : vector<8x128xf32>
    %c8_i32_327 = arith.constant 8 : i32
    %1071 = tpu.concatenate %1045, %1070 in 1 : vector<8x128xf32>, vector<8x128xf32> -> vector<8x256xf32>
    %c0_328 = arith.constant 0 : index
    %c0_329 = arith.constant 0 : index
    %1072 = vector.load %arg9[%c0_328, %c0_329] : memref<256x64xf32, #tpu.memory_space<vmem>>, vector<256x64xf32>
    %cst_330 = arith.constant dense<0.000000e+00> : vector<8x64xf32>
    %1073 = tpu.matmul %1071, %1072, %cst_330 {dimension_numbers = #tpu.dot_dimension_numbers<[1], [0], [0], [1], [0, 0, 1, 1], [], []>} : vector<8x256xf32>, vector<256x64xf32>, vector<8x64xf32> -> vector<8x64xf32>
    %c0_331 = arith.constant 0 : index
    %c0_332 = arith.constant 0 : index
    %1074 = vector.load %arg10[%c0_331, %c0_332] : memref<1x64xf32, #tpu.memory_space<vmem>>, vector<1x64xf32>
    %1075 = vector.broadcast %1074 : vector<1x64xf32> to vector<8x64xf32>
    %1076 = arith.addf %1073, %1075 : vector<8x64xf32>
    %cst_333 = arith.constant 0.000000e+00 : f32
    %1077 = vector.broadcast %cst_333 : f32 to vector<8x64xf32>
    %1078 = arith.maximumf %1076, %1077 : vector<8x64xf32>
    %c0_334 = arith.constant 0 : index
    %c0_335 = arith.constant 0 : index
    %1079 = vector.load %arg11[%c0_334, %c0_335] : memref<64x1xf32, #tpu.memory_space<vmem>>, vector<64x1xf32>
    %cst_336 = arith.constant dense<0.000000e+00> : vector<8x1xf32>
    %1080 = tpu.matmul %1078, %1079, %cst_336 {dimension_numbers = #tpu.dot_dimension_numbers<[1], [0], [0], [1], [0, 0, 1, 1], [], []>} : vector<8x64xf32>, vector<64x1xf32>, vector<8x1xf32> -> vector<8x1xf32>
    %c0_337 = arith.constant 0 : index
    %c0_338 = arith.constant 0 : index
    %1081 = vector.load %arg12[%c0_337, %c0_338] : memref<1x1xf32, #tpu.memory_space<vmem>>, vector<1x1xf32>
    %1082 = vector.broadcast %1081 : vector<1x1xf32> to vector<8x1xf32>
    %1083 = arith.addf %1080, %1082 : vector<8x1xf32>
    %1084 = arith.negf %1083 : vector<8x1xf32>
    %1085 = math.exp %1084 : vector<8x1xf32>
    %cst_339 = arith.constant 1.000000e+00 : f32
    %1086 = vector.broadcast %cst_339 : f32 to vector<8x1xf32>
    %1087 = arith.addf %1086, %1085 : vector<8x1xf32>
    %1088 = arith.divf %1086, %1087 : vector<8x1xf32>
    %c0_340 = arith.constant 0 : index
    %c0_341 = arith.constant 0 : index
    %1089 = vector.load %arg13[%c0_340, %c0_341] : memref<8x1xf32, #tpu.memory_space<vmem>>, vector<8x1xf32>
    tpu.vector_store %arg13[%c0_340, %c0_341], %1088 {strides = array<i32>} : memref<8x1xf32, #tpu.memory_space<vmem>>, vector<8x1xf32>,
    return
  }
}

</mosaic_0001>

<bundles_post_ra>
// kernel: rnn_seq_classifier_forward.1
= control target key start
LH: loop header
LB: loop body
LE: loop exit
PB: predicated region body
PF: predicated region fallthrough
CT: control target
= control target key end

     0   :  { %s14766_s0 = inlined_call_operand.vmem [shape: f32[64,128], index: 0, kind: input, shape index: {}]   ;;  %s14767_s1 = inlined_call_operand.hbm [shape: f32[128,1024], index: 1, kind: input, shape index: {}]   ;;  %s14768_s2 = inlined_call_operand.hbm [shape: f32[1,1024], index: 2, kind: input, shape index: {}]   ;;  %s14769_s3 = inlined_call_operand.hbm [shape: f32[128,512], index: 3, kind: input, shape index: {}]   ;;  %s14770_s4 = inlined_call_operand.hbm [shape: f32[128,512], index: 4, kind: input, shape index: {}]   ;;  %s14771_s5 = inlined_call_operand.hbm [shape: f32[256,1024], index: 5, kind: input, shape index: {}]   ;;  %s14772_s6 = inlined_call_operand.hbm [shape: f32[1,1024], index: 6, kind: input, shape index: {}]   ;;  %s14773_s7 = inlined_call_operand.hbm [shape: f32[128,512], index: 7, kind: input, shape index: {}]   ;;  %s14774_s8 = inlined_call_operand.hbm [shape: f32[128,512], index: 8, kind: input, shape index: {}]   ;;  %s14775_s9 = inlined_call_operand.vmem [shape: f32[256,64], index: 9, kind: input, shape index: {}]   ;;  %s14776_s10 = inlined_call_operand.hbm [shape: f32[1,64], index: 10, kind: input, shape index: {}]   ;;  %s14777_s11 = inlined_call_operand.vmem [shape: f32[64,1], index: 11, kind: input, shape index: {}]   ;;  %s14778_s12 = inlined_call_operand.<no memory space> [shape: f32[1,1], index: 12, kind: input, shape index: {}]   ;;  %s14779_s13 = inlined_call_operand.vmem [shape: f32[8,1], index: 13, kind: output, shape index: {}]  }
   0x1   :  { %v18_v0 = vstv %s14778_s12 }
   0x2   :  { %19 = vst [vmem:[#allocation4] sm:$0x1] %v18_v0 }
   0x3   :  { %20 = vsyncpa [#allocation6], 0 }
   0x4   :  { %21 = vsyncpa [#allocation8], 0 }
   0x5   :  { %22 = vsyncpa [#allocation11], 0 }
   0x6   :  { %23 = vsyncpa [#allocation14], 0 }
   0x7   :  { %24 = vsyncpa [#allocation17], 0  ;;  %s12145_s27 = smov [#allocation7]   ;;  %s11937_s14 = scalar_lea.hbm %s14768_s2, 128 }
   0x8   :  { %s45_s28 = sshll.u32 %s12145_s27, 4  ;;  %p11938_p0 = scmp.ne.s32.totalorder %s14768_s2, %s11937_s14  ;;  %s46_s28 = int_to_ptr.vmem [resolvable:$true] %s45_s28 }
   0x9   :  { %p11941_p1 = scmp.lt.u32.totalorder %s11937_s14, %s14768_s2 }
   0xb   :  { %p11943_p2 = pnand %p11941_p1, %p11938_p0 }
   0xd   :  { %11946 = shalt.err (!%p11943_p2)
}
   0xe   :  { %s11947_s12 = scalar_lea.vmem %s46_s28, 128  ;;  %p11952_p4 = scmp.lt.s32.totalorder %s46_s28, %s46_s28 }
   0xf   :  { %p11948_p3 = scmp.ne.s32.totalorder %s46_s28, %s11947_s12  ;;  %p11953_p5 = scmp.lt.s32.totalorder %s11947_s12, %s11947_s12 }
  0x11   :  { %p11954_p6 = por %p11953_p5, %p11952_p4 }
  0x13   :  { %p11955_p7 = pnand %p11954_p6, %p11948_p3 }
  0x15   :  { %11958 = shalt.err (!%p11955_p7)
}
  0x16   :  { %48 = dma.hbm_to_vmem [thread:$0]  %s14768_s2, 128, %s46_s28, [#allocation8]  }
  0x17   :  { %s12146_s21 = smov [#allocation10]   ;;  %s12147_s23 = smov [#allocation13]  }
  0x18   :  { %s66_s22 = sshll.u32 %s12146_s21, 4  ;;  %s91_s24 = sshll.u32 %s12147_s23, 4  ;;  %s67_s22 = int_to_ptr.vmem [resolvable:$true] %s66_s22  ;;  %s92_s24 = int_to_ptr.vmem [resolvable:$true] %s91_s24 }
  0x19   :  { %s11959_s27 = scalar_lea.hbm %s14770_s4, 8192 }
  0x1a   :  { %p11960_p8 = scmp.ne.s32.totalorder %s14770_s4, %s11959_s27  ;;  %p11963_p9 = scmp.lt.u32.totalorder %s11959_s27, %s14770_s4 }
  0x1c   :  { %p11965_p10 = pnand %p11963_p9, %p11960_p8 }
  0x1e   :  { %11968 = shalt.err (!%p11965_p10)
}
  0x1f   :  { %s11969_s2 = scalar_lea.vmem %s67_s22, 8192  ;;  %p11974_p12 = scmp.lt.s32.totalorder %s67_s22, %s67_s22 }
  0x20   :  { %p11970_p11 = scmp.ne.s32.totalorder %s67_s22, %s11969_s2  ;;  %p11975_p13 = scmp.lt.s32.totalorder %s11969_s2, %s11969_s2 }
  0x22   :  { %p11976_p0 = por %p11975_p13, %p11974_p12 }
  0x24   :  { %p11977_p1 = pnand %p11976_p0, %p11970_p11 }
  0x26   :  { %11980 = shalt.err (!%p11977_p1)
}
  0x27   :  { %s12148_s28 = smov 512   ;;  %s12149_s16 = smov 32  }
  0x28   :  { %72 = dma.hbm_to_vmem [thread:$0]  %s14770_s4, 8192, %s67_s22, [#allocation11], %s12148_s28, %s12148_s28, %s12149_s16  }
  0x29   :  { %s11981_s20 = scalar_lea.hbm %s14772_s6, 128 }
  0x2a   :  { %p11982_p2 = scmp.ne.s32.totalorder %s14772_s6, %s11981_s20  ;;  %p11985_p3 = scmp.lt.u32.totalorder %s11981_s20, %s14772_s6 }
  0x2c   :  { %p11987_p4 = pnand %p11985_p3, %p11982_p2 }
  0x2e   :  { %11990 = shalt.err (!%p11987_p4)
}
  0x2f   :  { %s11991_s27 = scalar_lea.vmem %s92_s24, 128  ;;  %p11996_p6 = scmp.lt.s32.totalorder %s92_s24, %s92_s24 }
  0x30   :  { %p11992_p5 = scmp.ne.s32.totalorder %s92_s24, %s11991_s27  ;;  %p11997_p7 = scmp.lt.s32.totalorder %s11991_s27, %s11991_s27 }
  0x32   :  { %p11998_p8 = por %p11997_p7, %p11996_p6 }
  0x34   :  { %p11999_p9 = pnand %p11998_p8, %p11992_p5 }
  0x36   :  { %12002 = shalt.err (!%p11999_p9)
}
  0x37   :  { %94 = dma.hbm_to_vmem [thread:$0]  %s14772_s6, 128, %s92_s24, [#allocation14]  }
  0x38   :  { %s12150_s29 = smov [#allocation16]   ;;  %s12151_s14 = smov [#allocation5]  }
  0x39   :  { %s112_s30 = sshll.u32 %s12150_s29, 4  ;;  %s32_s15 = sshll.u32 %s12151_s14, 4  ;;  %s113_s30 = int_to_ptr.vmem [resolvable:$true] %s112_s30  ;;  %s33_s15 = int_to_ptr.vmem [resolvable:$true] %s32_s15 }
  0x3a   :  { %s12003_s18 = scalar_lea.hbm %s14774_s8, 8192 }
  0x3b   :  { %p12004_p10 = scmp.ne.s32.totalorder %s14774_s8, %s12003_s18  ;;  %p12007_p11 = scmp.lt.u32.totalorder %s12003_s18, %s14774_s8 }
  0x3d   :  { %p12009_p12 = pnand %p12007_p11, %p12004_p10 }
  0x3f   :  { %12012 = shalt.err (!%p12009_p12)
}
  0x40   :  { %s12013_s6 = scalar_lea.vmem %s113_s30, 8192  ;;  %p12018_p0 = scmp.lt.s32.totalorder %s113_s30, %s113_s30 }
  0x41   :  { %p12014_p13 = scmp.ne.s32.totalorder %s113_s30, %s12013_s6  ;;  %p12019_p1 = scmp.lt.s32.totalorder %s12013_s6, %s12013_s6 }
  0x43   :  { %p12020_p2 = por %p12019_p1, %p12018_p0 }
  0x45   :  { %p12021_p3 = pnand %p12020_p2, %p12014_p13 }
  0x47   :  { %12024 = shalt.err (!%p12021_p3)
}
  0x48   :  { %118 = dma.hbm_to_vmem [thread:$0]  %s14774_s8, 8192, %s113_s30, [#allocation17], %s12148_s28, %s12148_s28, %s12149_s16  }
  0x49   :  { %s12025_s27 = scalar_lea.hbm %s14767_s1, 16384 }
  0x4a   :  { %p12026_p4 = scmp.ne.s32.totalorder %s14767_s1, %s12025_s27  ;;  %p12029_p5 = scmp.lt.u32.totalorder %s12025_s27, %s14767_s1 }
  0x4c   :  { %p12031_p6 = pnand %p12029_p5, %p12026_p4 }
  0x4e   :  { %12034 = shalt.err (!%p12031_p6)
}
  0x4f   :  { %s12035_s2 = scalar_lea.vmem %s33_s15, 16384  ;;  %p12040_p8 = scmp.lt.s32.totalorder %s33_s15, %s33_s15 }
  0x50   :  { %p12036_p7 = scmp.ne.s32.totalorder %s33_s15, %s12035_s2  ;;  %p12041_p9 = scmp.lt.s32.totalorder %s12035_s2, %s12035_s2 }
  0x52   :  { %p12042_p10 = por %p12041_p9, %p12040_p8 }
  0x54   :  { %p12043_p11 = pnand %p12042_p10, %p12036_p7 }
  0x56   :  { %12046 = shalt.err (!%p12043_p11)
}
  0x57   :  { %s12152_s8 = smov 1024   ;;  %s12153_s30 = smov 64  }
  0x58   :  { %38 = dma.hbm_to_vmem [thread:$0]  %s14767_s1, 16384, %s33_s15, [#allocation6], %s12152_s8, %s12152_s8, %s12153_s30  }
  0x59   :  { %s12154_s12 = smov [#allocation9]   ;;  %s12155_s20 = smov [#allocation12]  }
  0x5a   :  { %s54_s19 = sshll.u32 %s12154_s12, 4  ;;  %s78_s21 = sshll.u32 %s12155_s20, 4  ;;  %s55_s19 = int_to_ptr.vmem [resolvable:$true] %s54_s19  ;;  %s79_s21 = int_to_ptr.vmem [resolvable:$true] %s78_s21 }
  0x5b   :  { %s12047_s23 = scalar_lea.hbm %s14769_s3, 8192 }
  0x5c   :  { %p12048_p12 = scmp.ne.s32.totalorder %s14769_s3, %s12047_s23  ;;  %p12051_p13 = scmp.lt.u32.totalorder %s12047_s23, %s14769_s3 }
  0x5e   :  { %p12053_p0 = pnand %p12051_p13, %p12048_p12 }
  0x60   :  { %12056 = shalt.err (!%p12053_p0)
}
  0x61   :  { %s12057_s1 = scalar_lea.vmem %s55_s19, 8192  ;;  %p12062_p2 = scmp.lt.s32.totalorder %s55_s19, %s55_s19 }
  0x62   :  { %p12058_p1 = scmp.ne.s32.totalorder %s55_s19, %s12057_s1  ;;  %p12063_p3 = scmp.lt.s32.totalorder %s12057_s1, %s12057_s1 }
  0x64   :  { %p12064_p4 = por %p12063_p3, %p12062_p2 }
  0x66   :  { %p12065_p5 = pnand %p12064_p4, %p12058_p1 }
  0x68   :  { %12068 = shalt.err (!%p12065_p5)
}
  0x69   :  { %60 = dma.hbm_to_vmem [thread:$0]  %s14769_s3, 8192, %s55_s19, [#allocation8], %s12148_s28, %s12148_s28, %s12149_s16  }
  0x6a   :  { %s12069_s2 = scalar_lea.hbm %s14771_s5, 32768 }
  0x6b   :  { %p12070_p6 = scmp.ne.s32.totalorder %s14771_s5, %s12069_s2  ;;  %p12073_p7 = scmp.lt.u32.totalorder %s12069_s2, %s14771_s5 }
  0x6d   :  { %p12075_p8 = pnand %p12073_p7, %p12070_p6 }
  0x6f   :  { %12078 = shalt.err (!%p12075_p8)
}
  0x70   :  { %s12079_s6 = scalar_lea.vmem %s79_s21, 32768  ;;  %p12084_p10 = scmp.lt.s32.totalorder %s79_s21, %s79_s21 }
  0x71   :  { %p12080_p9 = scmp.ne.s32.totalorder %s79_s21, %s12079_s6  ;;  %p12085_p11 = scmp.lt.s32.totalorder %s12079_s6, %s12079_s6 }
  0x73   :  { %p12086_p12 = por %p12085_p11, %p12084_p10 }
  0x75   :  { %p12087_p13 = pnand %p12086_p12, %p12080_p9 }
  0x77   :  { %12090 = shalt.err (!%p12087_p13)
}
  0x78   :  { %84 = dma.hbm_to_vmem [thread:$0]  %s14771_s5, 32768, %s79_s21, [#allocation11], %s12152_s8, %s12152_s8, %s12153_s30  }
  0x79   :  { %s12156_s24 = smov [#allocation15]   ;;  %s12157_s25 = smov [#allocation18]  }
  0x7a   :  { %s100_s23 = sshll.u32 %s12156_s24, 4  ;;  %s127_s26 = sshll.u32 %s12157_s25, 4  ;;  %s101_s23 = int_to_ptr.vmem [resolvable:$true] %s100_s23  ;;  %s128_s26 = int_to_ptr.vmem [resolvable:$true] %s127_s26 }
  0x7b   :  { %s12091_s1 = scalar_lea.hbm %s14773_s7, 8192 }
  0x7c   :  { %p12092_p0 = scmp.ne.s32.totalorder %s14773_s7, %s12091_s1  ;;  %p12095_p1 = scmp.lt.u32.totalorder %s12091_s1, %s14773_s7 }
  0x7e   :  { %p12097_p2 = pnand %p12095_p1, %p12092_p0 }
  0x80   :  { %12100 = shalt.err (!%p12097_p2)
}
  0x81   :  { %s12101_s5 = scalar_lea.vmem %s101_s23, 8192  ;;  %p12106_p4 = scmp.lt.s32.totalorder %s101_s23, %s101_s23 }
  0x82   :  { %p12102_p3 = scmp.ne.s32.totalorder %s101_s23, %s12101_s5  ;;  %p12107_p5 = scmp.lt.s32.totalorder %s12101_s5, %s12101_s5 }
  0x84   :  { %p12108_p6 = por %p12107_p5, %p12106_p4 }
  0x86   :  { %p12109_p7 = pnand %p12108_p6, %p12102_p3 }
  0x88   :  { %12112 = shalt.err (!%p12109_p7)
}
  0x89   :  { %106 = dma.hbm_to_vmem [thread:$0]  %s14773_s7, 8192, %s101_s23, [#allocation14], %s12148_s28, %s12148_s28, %s12149_s16  }
  0x8a   :  { %s12113_s17 = scalar_lea.hbm %s14776_s10, 16 }
  0x8b   :  { %p12114_p8 = scmp.ne.s32.totalorder %s14776_s10, %s12113_s17  ;;  %p12117_p9 = scmp.lt.u32.totalorder %s12113_s17, %s14776_s10 }
  0x8d   :  { %p12119_p10 = pnand %p12117_p9, %p12114_p8 }
  0x8f   :  { %12122 = shalt.err (!%p12119_p10)
}
  0x90   :  { %s12123_s3 = scalar_lea.vmem %s128_s26, 16  ;;  %s12127_s19 = scalar_lea.vmem %s128_s26, 32 }
  0x91   :  { %p12124_p11 = scmp.ne.s32.totalorder %s128_s26, %s12123_s3  ;;  %p12128_p12 = scmp.lt.s32.totalorder %s128_s26, %s128_s26 }
  0x92   :  { %p12129_p13 = scmp.lt.s32.totalorder %s12127_s19, %s12123_s3 }
  0x94   :  { %p12130_p0 = por %p12129_p13, %p12128_p12 }
  0x96   :  { %p12131_p1 = pnand %p12130_p0, %p12124_p11 }
  0x98   :  { %12134 = shalt.err (!%p12131_p1)
}
  0x99   :  { %130 = dma.hbm_to_vmem [thread:$0]  %s14776_s10, 16, %s128_s26, [#allocation17]  }
  0x9a   :  { %12135 = dma.done.wait [#allocation6], 16384  }
  0x9b   :  { %12136 = vsyncadd [#allocation6], 4294950912 }
  0x9c   :  { %12137 = dma.done.wait [#allocation8], 8320  }
  0x9d   :  { %12138 = vsyncadd [#allocation8], 4294958976 }
  0x9e   :  { %12139 = dma.done.wait [#allocation11], 40960  }
  0x9f   :  { %12140 = vsyncadd [#allocation11], 4294926336 }
  0xa0   :  { %12141 = dma.done.wait [#allocation14], 8320  }
  0xa1   :  { %12142 = vsyncadd [#allocation14], 4294958976 }
  0xa2   :  { %12143 = dma.done.wait [#allocation17], 8208  }
  0xa3   :  { %12144 = vsyncadd [#allocation17], 4294959088  ;;  %v14780_v1 = vmov 0.0   ;;  %v171_v2 = vld [vmem:[#allocation5 + $0x8] sm:$0xff]  ;;  %v173_v4 = vld [vmem:[#allocation5 + $0x18] sm:$0xff]  ;;  %vm12160_vm0 = vmmov 0  }
  0xa4   :  { %404 = vmatprep.mubr.f32.mxu0 %v14780_v1  ;;  %517 = vmatprep.mubr.f32.mxu1 %v14780_v1  ;;  %v179_v3 = vld [vmem:[#allocation5 + $0x48] sm:$0xff]  ;;  %v181_v6 = vld [vmem:[#allocation5 + $0x58] sm:$0xff]  ;;  %v170_v7 = vld [vmem:[#allocation5] sm:$0xff]  ;;  %vm8419_vm1 = vcmask 523264   ;;  %vm8499_vm2 = vcmask 7168  }
  0xa5   :  { %v8673_v5 = vpack.c.bf16 %v179_v3, %v171_v2  ;;  %v178_v8 = vld [vmem:[#allocation5 + $0x40] sm:$0xff]  ;;  %v8705_v9 = vpack.c.bf16 %v181_v6, %v173_v4  ;;  %v172_v11 = vld [vmem:[#allocation5 + $0x10] sm:$0xff]  ;;  %v187_v13 = vld [vmem:[#allocation5 + $0x88] sm:$0xff] }
  0xa6   :  { %v8675_v10 = vpack.c.bf16 %v178_v8, %v170_v7  ;;  %v180_v12 = vld [vmem:[#allocation5 + $0x50] sm:$0xff]  ;;  %v195_v15 = vld [vmem:[#allocation5 + $0xc8] sm:$0xff]  ;;  %v189_v16 = vld [vmem:[#allocation5 + $0x98] sm:$0xff] }
  0xa7   :  { %8674 = vmatprep.subr.bf16.mxu0 %v8673_v5  ;;  %v8707_v14 = vpack.c.bf16 %v180_v12, %v172_v11  ;;  %v197_v17 = vld [vmem:[#allocation5 + $0xd8] sm:$0xff]  ;;  %8706 = vmatprep.subr.bf16.mxu1 %v8705_v9  ;;  %v8677_v18 = vpack.c.bf16 %v195_v15, %v187_v13  ;;  %v186_v20 = vld [vmem:[#allocation5 + $0x80] sm:$0xff]  ;;  %v188_v22 = vld [vmem:[#allocation5 + $0x90] sm:$0xff] }
  0xa8   :  { %8676 = vmatpush1.bf16.msra.mxu0 %v8675_v10  ;;  %v8709_v19 = vpack.c.bf16 %v197_v17, %v189_v16  ;;  %v194_v21 = vld [vmem:[#allocation5 + $0xc0] sm:$0xff]  ;;  %v196_v24 = vld [vmem:[#allocation5 + $0xd0] sm:$0xff]  ;;  %v203_v25 = vld [vmem:[#allocation5 + $0x108] sm:$0xff] }
  0xa9   :  { %8708 = vmatpush1.bf16.msra.mxu1 %v8707_v14  ;;  %v8679_v23 = vpack.c.bf16 %v194_v21, %v186_v20  ;;  %v211_v26 = vld [vmem:[#allocation5 + $0x148] sm:$0xff]  ;;  %8678 = vmatprep.subr.bf16.mxu0 %v8677_v18  ;;  %v8711_v27 = vpack.c.bf16 %v196_v24, %v188_v22  ;;  %v205_v29 = vld [vmem:[#allocation5 + $0x118] sm:$0xff]  ;;  %v202_v31 = vld [vmem:[#allocation5 + $0x100] sm:$0xff] }
  0xaa   :  { %8710 = vmatprep.subr.bf16.mxu1 %v8709_v19  ;;  %v8681_v28 = vpack.c.bf16 %v211_v26, %v203_v25  ;;  %v213_v30 = vld [vmem:[#allocation5 + $0x158] sm:$0xff]  ;;  %v210_v33 = vld [vmem:[#allocation5 + $0x140] sm:$0xff]  ;;  %v204_v34 = vld [vmem:[#allocation5 + $0x110] sm:$0xff] }
  0xab   :  { %v8713_v32 = vpack.c.bf16 %v213_v30, %v205_v29  ;;  %v212_v35 = vld [vmem:[#allocation5 + $0x150] sm:$0xff]  ;;  %v8683_v36 = vpack.c.bf16 %v210_v33, %v202_v31  ;;  %v219_v37 = vld [vmem:[#allocation5 + $0x188] sm:$0xff]  ;;  %v221_v39 = vld [vmem:[#allocation5 + $0x198] sm:$0xff] }
  0xac   :  { %8680 = vmatpush1.bf16.msra.mxu0 %v8679_v23  ;;  %v227_v38 = vld [vmem:[#allocation5 + $0x1c8] sm:$0xff]  ;;  %v8715_v40 = vpack.c.bf16 %v212_v35, %v204_v34  ;;  %v229_v42 = vld [vmem:[#allocation5 + $0x1d8] sm:$0xff]  ;;  %v218_v43 = vld [vmem:[#allocation5 + $0x180] sm:$0xff] }
  0xad   :  { %8712 = vmatpush1.bf16.msra.mxu1 %v8711_v27  ;;  %8682 = vmatprep.subr.bf16.mxu0 %v8681_v28  ;;  %v8685_v41 = vpack.c.bf16 %v227_v38, %v219_v37  ;;  %v226_v44 = vld [vmem:[#allocation5 + $0x1c0] sm:$0xff]  ;;  %v8717_v45 = vpack.c.bf16 %v229_v42, %v221_v39  ;;  %v220_v46 = vld [vmem:[#allocation5 + $0x190] sm:$0xff]  ;;  %v235_v48 = vld [vmem:[#allocation5 + $0x208] sm:$0xff] }
  0xae   :  { %8714 = vmatprep.subr.bf16.mxu1 %v8713_v32  ;;  %v228_v47 = vld [vmem:[#allocation5 + $0x1d0] sm:$0xff]  ;;  %v243_v49 = vld [vmem:[#allocation5 + $0x248] sm:$0xff]  ;;  %v237_v50 = vld [vmem:[#allocation5 + $0x218] sm:$0xff]  ;;  %v8687_v52 = vpack.c.bf16 %v226_v44, %v218_v43 }
  0xaf   :  { %v245_v51 = vld [vmem:[#allocation5 + $0x258] sm:$0xff]  ;;  %v8719_v53 = vpack.c.bf16 %v228_v47, %v220_v46  ;;  %v8689_v54 = vpack.c.bf16 %v243_v49, %v235_v48  ;;  %v234_v55 = vld [vmem:[#allocation5 + $0x200] sm:$0xff]  ;;  %v236_v57 = vld [vmem:[#allocation5 + $0x210] sm:$0xff] }
  0xb0   :  { %8684 = vmatpush1.bf16.msra.mxu0 %v8683_v36  ;;  %v242_v56 = vld [vmem:[#allocation5 + $0x240] sm:$0xff]  ;;  %v8721_v58 = vpack.c.bf16 %v245_v51, %v237_v50  ;;  %v244_v59 = vld [vmem:[#allocation5 + $0x250] sm:$0xff]  ;;  %v251_v60 = vld [vmem:[#allocation5 + $0x288] sm:$0xff] }
  0xb1   :  { %8716 = vmatpush1.bf16.msra.mxu1 %v8715_v40  ;;  %8686 = vmatprep.subr.bf16.mxu0 %v8685_v41  ;;  %v259_v61 = vld [vmem:[#allocation5 + $0x2c8] sm:$0xff]  ;;  %v253_v62 = vld [vmem:[#allocation5 + $0x298] sm:$0xff]  ;;  %v8691_v0 = vpack.c.bf16 %v242_v56, %v234_v55  ;;  %v8723_v2 = vpack.c.bf16 %v244_v59, %v236_v57  ;;  %v250_v4 = vld [vmem:[#allocation5 + $0x280] sm:$0xff] }
  0xb2   :  { %8718 = vmatprep.subr.bf16.mxu1 %v8717_v45  ;;  %v261_v63 = vld [vmem:[#allocation5 + $0x2d8] sm:$0xff]  ;;  %v8693_v3 = vpack.c.bf16 %v259_v61, %v251_v60  ;;  %v258_v5 = vld [vmem:[#allocation5 + $0x2c0] sm:$0xff]  ;;  %v252_v6 = vld [vmem:[#allocation5 + $0x290] sm:$0xff] }
  0xb3   :  { %v8725_v7 = vpack.c.bf16 %v261_v63, %v253_v62  ;;  %v260_v8 = vld [vmem:[#allocation5 + $0x2d0] sm:$0xff]  ;;  %v267_v9 = vld [vmem:[#allocation5 + $0x308] sm:$0xff]  ;;  %v269_v11 = vld [vmem:[#allocation5 + $0x318] sm:$0xff]  ;;  %v8695_v13 = vpack.c.bf16 %v258_v5, %v250_v4 }
  0xb4   :  { %8688 = vmatpush1.bf16.msra.mxu0 %v8687_v52  ;;  %v275_v10 = vld [vmem:[#allocation5 + $0x348] sm:$0xff]  ;;  %v277_v12 = vld [vmem:[#allocation5 + $0x358] sm:$0xff]  ;;  %v8727_v14 = vpack.c.bf16 %v260_v8, %v252_v6  ;;  %v266_v16 = vld [vmem:[#allocation5 + $0x300] sm:$0xff] }
  0xb5   :  { %8720 = vmatpush1.bf16.msra.mxu1 %v8719_v53  ;;  %8690 = vmatprep.subr.bf16.mxu0 %v8689_v54  ;;  %v8697_v15 = vpack.c.bf16 %v275_v10, %v267_v9  ;;  %v274_v17 = vld [vmem:[#allocation5 + $0x340] sm:$0xff]  ;;  %v268_v18 = vld [vmem:[#allocation5 + $0x310] sm:$0xff]  ;;  %v8729_v19 = vpack.c.bf16 %v277_v12, %v269_v11  ;;  %v283_v21 = vld [vmem:[#allocation5 + $0x388] sm:$0xff] }
  0xb6   :  { %8722 = vmatprep.subr.bf16.mxu1 %v8721_v58  ;;  %v276_v20 = vld [vmem:[#allocation5 + $0x350] sm:$0xff]  ;;  %v291_v22 = vld [vmem:[#allocation5 + $0x3c8] sm:$0xff]  ;;  %v285_v23 = vld [vmem:[#allocation5 + $0x398] sm:$0xff]  ;;  %v8699_v25 = vpack.c.bf16 %v274_v17, %v266_v16 }
  0xb7   :  { %v293_v24 = vld [vmem:[#allocation5 + $0x3d8] sm:$0xff]  ;;  %v8731_v26 = vpack.c.bf16 %v276_v20, %v268_v18  ;;  %v8701_v27 = vpack.c.bf16 %v291_v22, %v283_v21  ;;  %v282_v28 = vld [vmem:[#allocation5 + $0x380] sm:$0xff]  ;;  %v284_v30 = vld [vmem:[#allocation5 + $0x390] sm:$0xff] }
  0xb8   :  { %8692 = vmatpush1.bf16.msra.mxu0 %v8691_v0  ;;  %v290_v29 = vld [vmem:[#allocation5 + $0x3c0] sm:$0xff]  ;;  %v8733_v31 = vpack.c.bf16 %v293_v24, %v285_v23  ;;  %v292_v32 = vld [vmem:[#allocation5 + $0x3d0] sm:$0xff]  ;;  %v175_v33 = vld [vmem:[#allocation5 + $0x28] sm:$0xff] }
  0xb9   :  { %8724 = vmatpush1.bf16.msra.mxu1 %v8723_v2  ;;  %8694 = vmatprep.subr.bf16.mxu0 %v8693_v3  ;;  %v183_v34 = vld [vmem:[#allocation5 + $0x68] sm:$0xff]  ;;  %v177_v35 = vld [vmem:[#allocation5 + $0x38] sm:$0xff]  ;;  %v8703_v37 = vpack.c.bf16 %v290_v29, %v282_v28  ;;  %v8735_v38 = vpack.c.bf16 %v292_v32, %v284_v30  ;;  %v174_v40 = vld [vmem:[#allocation5 + $0x20] sm:$0xff] }
  0xba   :  { %8726 = vmatprep.subr.bf16.mxu1 %v8725_v7  ;;  %v185_v36 = vld [vmem:[#allocation5 + $0x78] sm:$0xff]  ;;  %v8737_v39 = vpack.c.bf16 %v183_v34, %v175_v33  ;;  %v182_v41 = vld [vmem:[#allocation5 + $0x60] sm:$0xff]  ;;  %v176_v43 = vld [vmem:[#allocation5 + $0x30] sm:$0xff] }
  0xbb   :  { %v8769_v42 = vpack.c.bf16 %v185_v36, %v177_v35  ;;  %v184_v44 = vld [vmem:[#allocation5 + $0x70] sm:$0xff]  ;;  %v191_v45 = vld [vmem:[#allocation5 + $0xa8] sm:$0xff]  ;;  %v12365_v47 = vld [vmem:[%s14766_s0] sm:$0xff]  ;;  %v8739_v48 = vpack.c.bf16 %v182_v41, %v174_v40 }
  0xbc   :  { %8696 = vmatpush1.bf16.msra.mxu0 %v8695_v13  ;;  %v199_v46 = vld [vmem:[#allocation5 + $0xe8] sm:$0xff]  ;;  %v193_v49 = vld [vmem:[#allocation5 + $0xb8] sm:$0xff]  ;;  %v8771_v51 = vpack.c.bf16 %v184_v44, %v176_v43  ;;  %v190_v52 = vld [vmem:[#allocation5 + $0xa0] sm:$0xff] }
  0xbd   :  { %8728 = vmatpush1.bf16.msra.mxu1 %v8727_v14  ;;  %8698 = vmatprep.subr.bf16.mxu0 %v8697_v15  ;;  %v201_v50 = vld [vmem:[#allocation5 + $0xf8] sm:$0xff]  ;;  %v198_v53 = vld [vmem:[#allocation5 + $0xe0] sm:$0xff]  ;;  %v8741_v54 = vpack.c.bf16 %v199_v46, %v191_v45  ;;  %v192_v55 = vld [vmem:[#allocation5 + $0xb0] sm:$0xff] }
  0xbe   :  { %8730 = vmatprep.subr.bf16.mxu1 %v8729_v19  ;;  %v200_v56 = vld [vmem:[#allocation5 + $0xf0] sm:$0xff]  ;;  %v8773_v57 = vpack.c.bf16 %v201_v50, %v193_v49  ;;  %v207_v58 = vld [vmem:[#allocation5 + $0x128] sm:$0xff]  ;;  %v8743_v61 = vpack.c.bf16 %v198_v53, %v190_v52  ;;  %v209_v62 = vld [vmem:[#allocation5 + $0x138] sm:$0xff] }
  0xbf   :  { %v215_v59 = vld [vmem:[#allocation5 + $0x168] sm:$0xff]  ;;  %v217_v63 = vld [vmem:[#allocation5 + $0x178] sm:$0xff]  ;;  %v8775_v0 = vpack.c.bf16 %v200_v56, %v192_v55  ;;  %v206_v2 = vld [vmem:[#allocation5 + $0x120] sm:$0xff] }
  0xc0   :  { %8700 = vmatpush1.bf16.msra.mxu0 %v8699_v25  ;;  %v12372_v60 = vld [vmem:[%s14766_s0 + $0x8] sm:$0xff]  ;;  %v8745_v4 = vpack.c.bf16 %v215_v59, %v207_v58  ;;  %v208_v5 = vld [vmem:[#allocation5 + $0x130] sm:$0xff]  ;;  %v8777_v7 = vpack.c.bf16 %v217_v63, %v209_v62  ;;  %v225_v12 = vld [vmem:[#allocation5 + $0x1b8] sm:$0xff] }
  0xc1   :  { %8732 = vmatpush1.bf16.msra.mxu1 %v8731_v26  ;;  %8702 = vmatprep.subr.bf16.mxu0 %v8701_v27  ;;  %v214_v3 = vld [vmem:[#allocation5 + $0x160] sm:$0xff]  ;;  %v216_v6 = vld [vmem:[#allocation5 + $0x170] sm:$0xff]  ;;  %v223_v8 = vld [vmem:[#allocation5 + $0x1a8] sm:$0xff] }
  0xc2   :  { %8734 = vmatprep.subr.bf16.mxu1 %v8733_v31  ;;  %v231_v9 = vld [vmem:[#allocation5 + $0x1e8] sm:$0xff]  ;;  %v8747_v11 = vpack.c.bf16 %v214_v3, %v206_v2  ;;  %v233_v13 = vld [vmem:[#allocation5 + $0x1f8] sm:$0xff]  ;;  %v8779_v14 = vpack.c.bf16 %v216_v6, %v208_v5  ;;  %v222_v15 = vld [vmem:[#allocation5 + $0x1a0] sm:$0xff] }
  0xc3   :  { %v12381_v10 = vld [vmem:[%s14766_s0 + $0x10] sm:$0xff]  ;;  %v230_v16 = vld [vmem:[#allocation5 + $0x1e0] sm:$0xff]  ;;  %v8749_v17 = vpack.c.bf16 %v231_v9, %v223_v8  ;;  %v8781_v20 = vpack.c.bf16 %v233_v13, %v225_v12  ;;  %v12390_v23 = vld [vmem:[%s14766_s0 + $0x18] sm:$0xff] }
  0xc4   :  { %8704 = vmatpush1.bf16.msra.mxu0 %v8703_v37  ;;  %v224_v18 = vld [vmem:[#allocation5 + $0x1b0] sm:$0xff]  ;;  %v239_v21 = vld [vmem:[#allocation5 + $0x228] sm:$0xff]  ;;  %v8751_v24 = vpack.c.bf16 %v230_v16, %v222_v15  ;;  %v241_v25 = vld [vmem:[#allocation5 + $0x238] sm:$0xff] }
  0xc5   :  { %8736 = vmatpush1.bf16.msra.mxu1 %v8735_v38  ;;  %8738 = vmatprep.subr.bf16.mxu0 %v8737_v39  ;;  %v232_v19 = vld [vmem:[#allocation5 + $0x1f0] sm:$0xff]  ;;  %v247_v22 = vld [vmem:[#allocation5 + $0x268] sm:$0xff]  ;;  %v249_v26 = vld [vmem:[#allocation5 + $0x278] sm:$0xff] }
  0xc6   :  { %8770 = vmatprep.subr.bf16.mxu1 %v8769_v42  ;;  %v8783_v27 = vpack.c.bf16 %v232_v19, %v224_v18  ;;  %v238_v28 = vld [vmem:[#allocation5 + $0x220] sm:$0xff]  ;;  %v8753_v30 = vpack.c.bf16 %v247_v22, %v239_v21  ;;  %v240_v31 = vld [vmem:[#allocation5 + $0x230] sm:$0xff]  ;;  %v8785_v33 = vpack.c.bf16 %v249_v26, %v241_v25  ;;  %v255_v34 = vld [vmem:[#allocation5 + $0x2a8] sm:$0xff] }
  0xc7   :  { %405 = vmatmul.mubr.f32.vlgmr.msra.gmra.mrb[0].mxu0 %v12365_v47  ;;  %v246_v29 = vld [vmem:[#allocation5 + $0x260] sm:$0xff]  ;;  %v248_v32 = vld [vmem:[#allocation5 + $0x270] sm:$0xff]  ;;  %v263_v35 = vld [vmem:[#allocation5 + $0x2e8] sm:$0xff] }
  0xc8   :  { %518 = vmatmul.mubr.f32.vlgmr.msra.gmra.mrb[0].mxu1 %v12365_v47  ;;  %8740 = vmatpush1.bf16.msra.mxu0 %v8739_v48  ;;  %v12399_v36 = vld [vmem:[%s14766_s0 + $0x20] sm:$0xff]  ;;  %v8755_v37 = vpack.c.bf16 %v246_v29, %v238_v28  ;;  %v8787_v40 = vpack.c.bf16 %v248_v32, %v240_v31  ;;  %v8757_v43 = vpack.c.bf16 %v263_v35, %v255_v34  ;;  %v256_v44 = vld [vmem:[#allocation5 + $0x2b0] sm:$0xff]  ;;  %v271_v48 = vld [vmem:[#allocation5 + $0x328] sm:$0xff] }
  0xc9   :  { %8772 = vmatpush1.bf16.msra.mxu1 %v8771_v51  ;;  %410 = vmatprep.mubr.f32.mxu0 %v14780_v1  ;;  %v257_v38 = vld [vmem:[#allocation5 + $0x2b8] sm:$0xff]  ;;  %v254_v41 = vld [vmem:[#allocation5 + $0x2a0] sm:$0xff]  ;;  %v264_v45 = vld [vmem:[#allocation5 + $0x2f0] sm:$0xff] }
  0xca   :  { %523 = vmatprep.mubr.f32.mxu1 %v14780_v1  ;;  %8742 = vmatprep.subr.bf16.mxu0 %v8741_v54  ;;  %v265_v39 = vld [vmem:[#allocation5 + $0x2f8] sm:$0xff]  ;;  %v262_v42 = vld [vmem:[#allocation5 + $0x2e0] sm:$0xff]  ;;  %v279_v49 = vld [vmem:[#allocation5 + $0x368] sm:$0xff]  ;;  %v8791_v54 = vpack.c.bf16 %v264_v45, %v256_v44 }
  0xcb   :  { %411 = vmatmul.mubr.f32.gmra.mrb[2].mxu0 %v12372_v60  ;;  %8774 = vmatprep.subr.bf16.mxu1 %v8773_v57  ;;  %v8789_v46 = vpack.c.bf16 %v265_v39, %v257_v38  ;;  %v12408_v50 = vld [vmem:[%s14766_s0 + $0x28] sm:$0xff]  ;;  %v8759_v51 = vpack.c.bf16 %v262_v42, %v254_v41  ;;  %v273_v52 = vld [vmem:[#allocation5 + $0x338] sm:$0xff]  ;;  %v8761_v57 = vpack.c.bf16 %v279_v49, %v271_v48  ;;  %v272_v58 = vld [vmem:[#allocation5 + $0x330] sm:$0xff] }
  0xcc   :  { %524 = vmatmul.mubr.f32.gmra.mrb[2].mxu1 %v12372_v60  ;;  %8744 = vmatpush1.bf16.msra.mxu0 %v8743_v61  ;;  %v281_v53 = vld [vmem:[#allocation5 + $0x378] sm:$0xff]  ;;  %v270_v55 = vld [vmem:[#allocation5 + $0x320] sm:$0xff]  ;;  %v280_v59 = vld [vmem:[#allocation5 + $0x370] sm:$0xff] }
  0xcd   :  { %8776 = vmatpush1.bf16.msra.mxu1 %v8775_v0  ;;  %416 = vmatprep.mubr.f32.mxu0 %v14780_v1  ;;  %v278_v56 = vld [vmem:[#allocation5 + $0x360] sm:$0xff]  ;;  %v8793_v61 = vpack.c.bf16 %v281_v53, %v273_v52  ;;  %v287_v62 = vld [vmem:[#allocation5 + $0x3a8] sm:$0xff]  ;;  %v289_v3 = vld [vmem:[#allocation5 + $0x3b8] sm:$0xff]  ;;  %v8795_v5 = vpack.c.bf16 %v280_v59, %v272_v58 }
  0xce   :  { %529 = vmatprep.mubr.f32.mxu1 %v14780_v1  ;;  %8746 = vmatprep.subr.bf16.mxu0 %v8745_v4  ;;  %v295_v63 = vld [vmem:[#allocation5 + $0x3e8] sm:$0xff]  ;;  %v8763_v2 = vpack.c.bf16 %v278_v56, %v270_v55  ;;  %v297_v4 = vld [vmem:[#allocation5 + $0x3f8] sm:$0xff]  ;;  %v286_v6 = vld [vmem:[#allocation5 + $0x3a0] sm:$0xff] }
  0xcf   :  { %417 = vmatmul.mubr.f32.gmra.mrb[4].mxu0 %v12381_v10  ;;  %8778 = vmatprep.subr.bf16.mxu1 %v8777_v7  ;;  %v12417_v0 = vld [vmem:[%s14766_s0 + $0x30] sm:$0xff]  ;;  %v294_v7 = vld [vmem:[#allocation5 + $0x3e0] sm:$0xff]  ;;  %v8765_v8 = vpack.c.bf16 %v295_v63, %v287_v62  ;;  %v8797_v12 = vpack.c.bf16 %v297_v4, %v289_v3  ;;  %v12426_v15 = vld [vmem:[%s14766_s0 + $0x38] sm:$0xff] }
  0xd0   :  { %530 = vmatmul.mubr.f32.gmra.mrb[4].mxu1 %v12381_v10  ;;  %8748 = vmatpush1.bf16.msra.mxu0 %v8747_v11  ;;  %v288_v9 = vld [vmem:[#allocation5 + $0x3b0] sm:$0xff]  ;;  %v8767_v16 = vpack.c.bf16 %v294_v7, %v286_v6  ;;  %v863_v18 = vld [vmem:[#allocation9 + $0x38] sm:$0xff]  ;;  %v860_v21 = vld [vmem:[#allocation9 + $0x20] sm:$0xff] }
  0xd1   :  { %8780 = vmatpush1.bf16.msra.mxu1 %v8779_v14  ;;  %422 = vmatprep.mubr.f32.mxu0 %v14780_v1  ;;  %v296_v11 = vld [vmem:[#allocation5 + $0x3f0] sm:$0xff]  ;;  %v862_v25 = vld [vmem:[#allocation9 + $0x30] sm:$0xff]  ;;  %v871_v31 = vld [vmem:[#allocation9 + $0x78] sm:$0xff] }
  0xd2   :  { %535 = vmatprep.mubr.f32.mxu1 %v14780_v1  ;;  %8750 = vmatprep.subr.bf16.mxu0 %v8749_v17  ;;  %v857_v13 = vld [vmem:[#allocation9 + $0x8] sm:$0xff]  ;;  %v859_v17 = vld [vmem:[#allocation9 + $0x18] sm:$0xff]  ;;  %v8799_v19 = vpack.c.bf16 %v296_v11, %v288_v9  ;;  %v868_v34 = vld [vmem:[#allocation9 + $0x60] sm:$0xff] }
  0xd3   :  { %423 = vmatmul.mubr.f32.gmra.mrb[6].mxu0 %v12390_v23  ;;  %8782 = vmatprep.subr.bf16.mxu1 %v8781_v20  ;;  %v861_v14 = vld [vmem:[#allocation9 + $0x28] sm:$0xff]  ;;  %v856_v20 = vld [vmem:[#allocation9] sm:$0xff]  ;;  %v12433_v26 = vpack.c.bf16 %v863_v18, %v859_v17  ;;  %v870_v38 = vld [vmem:[#allocation9 + $0x70] sm:$0xff] }
  0xd4   :  { %536 = vmatmul.mubr.f32.gmra.mrb[6].mxu1 %v12390_v23  ;;  %8752 = vmatpush1.bf16.msra.mxu0 %v8751_v24  ;;  %v12430_v22 = vpack.c.bf16 %v861_v14, %v857_v13  ;;  %v858_v24 = vld [vmem:[#allocation9 + $0x10] sm:$0xff]  ;;  %v869_v28 = vld [vmem:[#allocation9 + $0x68] sm:$0xff]  ;;  %v12436_v29 = vpack.c.bf16 %v860_v21, %v856_v20  ;;  %v879_v44 = vld [vmem:[#allocation9 + $0xb8] sm:$0xff] }
  0xd5   :  { %8784 = vmatpush1.bf16.msra.mxu1 %v8783_v27  ;;  %428 = vmatprep.mubr.f32.mxu0 %v14780_v1  ;;  %v865_v27 = vld [vmem:[#allocation9 + $0x48] sm:$0xff]  ;;  %v12439_v32 = vpack.c.bf16 %v862_v25, %v858_v24  ;;  %v876_v48 = vld [vmem:[#allocation9 + $0xa0] sm:$0xff]  ;;  %v883_v56 = vld [vmem:[#allocation9 + $0xd8] sm:$0xff] }
  0xd6   :  { %541 = vmatprep.mubr.f32.mxu1 %v14780_v1  ;;  %8754 = vmatprep.subr.bf16.mxu0 %v8753_v30  ;;  %v867_v30 = vld [vmem:[#allocation9 + $0x58] sm:$0xff]  ;;  %v12443_v35 = vpack.c.bf16 %v869_v28, %v865_v27  ;;  %v877_v41 = vld [vmem:[#allocation9 + $0xa8] sm:$0xff]  ;;  %v880_v59 = vld [vmem:[#allocation9 + $0xc0] sm:$0xff] }
  0xd7   :  { %429 = vmatmul.mubr.f32.gmra.mrb[8].mxu0 %v12399_v36  ;;  %8786 = vmatprep.subr.bf16.mxu1 %v8785_v33  ;;  %v864_v33 = vld [vmem:[#allocation9 + $0x40] sm:$0xff]  ;;  %v12447_v39 = vpack.c.bf16 %v871_v31, %v867_v30  ;;  %v881_v53 = vld [vmem:[#allocation9 + $0xc8] sm:$0xff]  ;;  %v886_v63 = vld [vmem:[#allocation9 + $0xf0] sm:$0xff] }
  0xd8   :  { %542 = vmatmul.mubr.f32.gmra.mrb[8].mxu1 %v12399_v36  ;;  %8756 = vmatpush1.bf16.msra.mxu0 %v8755_v37  ;;  %v866_v37 = vld [vmem:[#allocation9 + $0x50] sm:$0xff]  ;;  %v12451_v42 = vpack.c.bf16 %v868_v34, %v864_v33  ;;  %v889_v3 = vld [vmem:[#allocation9 + $0x108] sm:$0xff]  ;;  %v891_v6 = vld [vmem:[#allocation9 + $0x118] sm:$0xff] }
  0xd9   :  { %8788 = vmatpush1.bf16.msra.mxu1 %v8787_v40  ;;  %434 = vmatprep.mubr.f32.mxu0 %v14780_v1  ;;  %v873_v40 = vld [vmem:[#allocation9 + $0x88] sm:$0xff]  ;;  %v12455_v45 = vpack.c.bf16 %v870_v38, %v866_v37  ;;  %v895_v7 = vld [vmem:[#allocation9 + $0x138] sm:$0xff]  ;;  %v888_v9 = vld [vmem:[#allocation9 + $0x100] sm:$0xff] }
  0xda   :  { %547 = vmatprep.mubr.f32.mxu1 %v14780_v1  ;;  %8758 = vmatprep.subr.bf16.mxu0 %v8757_v43  ;;  %v875_v43 = vld [vmem:[#allocation9 + $0x98] sm:$0xff]  ;;  %v12459_v49 = vpack.c.bf16 %v877_v41, %v873_v40  ;;  %v893_v4 = vld [vmem:[#allocation9 + $0x128] sm:$0xff]  ;;  %v892_v11 = vld [vmem:[#allocation9 + $0x120] sm:$0xff]  ;;  %v12495_v14 = vpack.c.bf16 %v895_v7, %v891_v6 }
  0xdb   :  { %435 = vmatmul.mubr.f32.gmra.mrb[10].mxu0 %v12408_v50  ;;  %8790 = vmatprep.subr.bf16.mxu1 %v8789_v46  ;;  %v872_v46 = vld [vmem:[#allocation9 + $0x80] sm:$0xff]  ;;  %v12463_v52 = vpack.c.bf16 %v879_v44, %v875_v43  ;;  %v894_v13 = vld [vmem:[#allocation9 + $0x130] sm:$0xff]  ;;  %v901_v17 = vld [vmem:[#allocation9 + $0x168] sm:$0xff]  ;;  %v12499_v18 = vpack.c.bf16 %v892_v11, %v888_v9 }
  0xdc   :  { %548 = vmatmul.mubr.f32.gmra.mrb[10].mxu1 %v12408_v50  ;;  %8760 = vmatpush1.bf16.msra.mxu0 %v8759_v51  ;;  %v878_v51 = vld [vmem:[#allocation9 + $0xb0] sm:$0xff]  ;;  %v12467_v55 = vpack.c.bf16 %v876_v48, %v872_v46  ;;  %v903_v20 = vld [vmem:[#allocation9 + $0x178] sm:$0xff]  ;;  %v896_v24 = vld [vmem:[#allocation9 + $0x140] sm:$0xff] }
  0xdd   :  { %8792 = vmatpush1.bf16.msra.mxu1 %v8791_v54  ;;  %440 = vmatprep.mubr.f32.mxu0 %v14780_v1  ;;  %v885_v54 = vld [vmem:[#allocation9 + $0xe8] sm:$0xff]  ;;  %v900_v25 = vld [vmem:[#allocation9 + $0x160] sm:$0xff]  ;;  %v902_v28 = vld [vmem:[#allocation9 + $0x170] sm:$0xff] }
  0xde   :  { %553 = vmatprep.mubr.f32.mxu1 %v14780_v1  ;;  %8762 = vmatprep.subr.bf16.mxu0 %v8761_v57  ;;  %v887_v57 = vld [vmem:[#allocation9 + $0xf8] sm:$0xff]  ;;  %v12475_v62 = vpack.c.bf16 %v885_v54, %v881_v53  ;;  %v905_v31 = vld [vmem:[#allocation9 + $0x188] sm:$0xff]  ;;  %v12515_v34 = vpack.c.bf16 %v900_v25, %v896_v24  ;;  %v904_v41 = vld [vmem:[#allocation9 + $0x180] sm:$0xff] }
  0xdf   :  { %441 = vmatmul.mubr.f32.gmra.mrb[12].mxu0 %v12417_v0  ;;  %8794 = vmatprep.subr.bf16.mxu1 %v8793_v61  ;;  %v884_v61 = vld [vmem:[#allocation9 + $0xe0] sm:$0xff]  ;;  %v909_v33 = vld [vmem:[#allocation9 + $0x1a8] sm:$0xff]  ;;  %v907_v37 = vld [vmem:[#allocation9 + $0x198] sm:$0xff] }
  0xe0   :  { %554 = vmatmul.mubr.f32.gmra.mrb[12].mxu1 %v12417_v0  ;;  %8764 = vmatpush1.bf16.msra.mxu0 %v8763_v2  ;;  %v12479_v2 = vpack.c.bf16 %v887_v57, %v883_v56  ;;  %v911_v38 = vld [vmem:[#allocation9 + $0x1b8] sm:$0xff]  ;;  %v908_v43 = vld [vmem:[#allocation9 + $0x1a0] sm:$0xff]  ;;  %v12523_v44 = vpack.c.bf16 %v909_v33, %v905_v31  ;;  %v910_v46 = vld [vmem:[#allocation9 + $0x1b0] sm:$0xff] }
  0xe1   :  { %8796 = vmatpush1.bf16.msra.mxu1 %v8795_v5  ;;  %446 = vmatprep.mubr.f32.mxu0 %v14780_v1  ;;  %v12483_v5 = vpack.c.bf16 %v884_v61, %v880_v59  ;;  %v12527_v48 = vpack.c.bf16 %v911_v38, %v907_v37  ;;  %v12531_v53 = vpack.c.bf16 %v908_v43, %v904_v41  ;;  %v915_v54 = vld [vmem:[#allocation9 + $0x1d8] sm:$0xff]  ;;  %v912_v59 = vld [vmem:[#allocation9 + $0x1c0] sm:$0xff]  ;;  %v1071_v6 = vld [vmem:[#allocation10 + $0x28] sm:$0xff] }
  0xe2   :  { %559 = vmatprep.mubr.f32.mxu1 %v14780_v1  ;;  %8766 = vmatprep.subr.bf16.mxu0 %v8765_v8  ;;  %v919_v56 = vld [vmem:[#allocation9 + $0x1f8] sm:$0xff]  ;;  %v916_v61 = vld [vmem:[#allocation9 + $0x1e0] sm:$0xff]  ;;  %v1079_v24 = vld [vmem:[#allocation10 + $0x68] sm:$0xff] }
  0xe3   :  { %447 = vmatmul.mubr.f32.gmra.mrb[14].mxu0 %v12426_v15  ;;  %8798 = vmatprep.subr.bf16.mxu1 %v8797_v12  ;;  %v12491_v12 = vpack.c.bf16 %v893_v4, %v889_v3  ;;  %v12543_v3 = vpack.c.bf16 %v919_v56, %v915_v54  ;;  %v1067_v4 = vld [vmem:[#allocation10 + $0x8] sm:$0xff]  ;;  %v12547_v7 = vpack.c.bf16 %v916_v61, %v912_v59  ;;  %v1069_v9 = vld [vmem:[#allocation10 + $0x18] sm:$0xff]  ;;  %v1074_v38 = vld [vmem:[#allocation10 + $0x40] sm:$0xff] }
  0xe4   :  { %560 = vmatmul.mubr.f32.gmra.mrb[14].mxu1 %v12426_v15  ;;  %8768 = vmatpush1.bf16.msra.mxu0 %v8767_v16  ;;  %v897_v16 = vld [vmem:[#allocation9 + $0x148] sm:$0xff]  ;;  %v1073_v11 = vld [vmem:[#allocation10 + $0x38] sm:$0xff]  ;;  %v1078_v41 = vld [vmem:[#allocation10 + $0x60] sm:$0xff] }
  0xe5   :  { %8800 = vmatpush1.bf16.msra.mxu1 %v8799_v19  ;;  %630 = vmatprep.mubr.f32.mxu0 %v14780_v1  ;;  %v899_v19 = vld [vmem:[#allocation9 + $0x158] sm:$0xff]  ;;  %v12507_v27 = vpack.c.bf16 %v901_v17, %v897_v16  ;;  %v1070_v16 = vld [vmem:[#allocation10 + $0x20] sm:$0xff]  ;;  %v1068_v17 = vld [vmem:[#allocation10 + $0x10] sm:$0xff]  ;;  %v12559_v25 = vpack.c.bf16 %v1073_v11, %v1069_v9  ;;  %v12579_v56 = vpack.c.bf16 %v1078_v41, %v1074_v38 }
  0xe6   :  { %743 = vmatprep.mubr.f32.mxu1 %v14780_v1  ;;  %8802 = vmatprep.subr.bf16.mxu0 %v12430_v22  ;;  %v12511_v30 = vpack.c.bf16 %v903_v20, %v899_v19  ;;  %v1072_v19 = vld [vmem:[#allocation10 + $0x30] sm:$0xff]  ;;  %v1075_v20 = vld [vmem:[#allocation10 + $0x48] sm:$0xff]  ;;  %v1089_v54 = vld [vmem:[#allocation10 + $0xb8] sm:$0xff] }
  0xe7   :  { %631 = vmatmul.mubr.f32.vlgmr.msra.gmra.mrb[16].mxu0 %v12365_v47  ;;  %8834 = vmatprep.subr.bf16.mxu1 %v12433_v26  ;;  %v12567_v33 = vpack.c.bf16 %v1072_v19, %v1068_v17  ;;  %v12569_v37 = vpack.c.bf16 %v1079_v24, %v1075_v20  ;;  %v1076_v43 = vld [vmem:[#allocation10 + $0x50] sm:$0xff]  ;;  %v1091_v11 = vld [vmem:[#allocation10 + $0xc8] sm:$0xff]  ;;  %v1097_v17 = vld [vmem:[#allocation10 + $0xf8] sm:$0xff] }
  0xe8   :  { %744 = vmatmul.mubr.f32.vlgmr.msra.gmra.mrb[16].mxu1 %v12365_v47  ;;  %8804 = vmatpush1.bf16.msra.mxu0 %v12436_v29  ;;  %v874_v47 = vld [vmem:[#allocation9 + $0x90] sm:$0xff] }
  0xe9   :  { %8836 = vmatpush1.bf16.msra.mxu1 %v12439_v32  ;;  %636 = vmatprep.mubr.f32.mxu0 %v14780_v1  ;;  %v12471_v58 = vpack.c.bf16 %v878_v51, %v874_v47  ;;  %v913_v47 = vld [vmem:[#allocation9 + $0x1c8] sm:$0xff]  ;;  %v1088_v9 = vld [vmem:[#allocation10 + $0xb0] sm:$0xff] }
  0xea   :  { %749 = vmatprep.mubr.f32.mxu1 %v14780_v1  ;;  %8806 = vmatprep.subr.bf16.mxu0 %v12443_v35  ;;  %v917_v51 = vld [vmem:[#allocation9 + $0x1e8] sm:$0xff]  ;;  %v1092_v38 = vld [vmem:[#allocation10 + $0xd0] sm:$0xff] }
  0xeb   :  { %637 = vmatmul.mubr.f32.gmra.mrb[18].mxu0 %v12372_v60  ;;  %8838 = vmatprep.subr.bf16.mxu1 %v12447_v39 }
  0xec   :  { %750 = vmatmul.mubr.f32.gmra.mrb[18].mxu1 %v12372_v60  ;;  %8808 = vmatpush1.bf16.msra.mxu0 %v12451_v42  ;;  %v882_v60 = vld [vmem:[#allocation9 + $0xd0] sm:$0xff] }
  0xed   :  { %8840 = vmatpush1.bf16.msra.mxu1 %v12455_v45  ;;  %642 = vmatprep.mubr.f32.mxu0 %v14780_v1  ;;  %v12487_v8 = vpack.c.bf16 %v886_v63, %v882_v60  ;;  %v12539_v60 = vpack.c.bf16 %v917_v51, %v913_v47  ;;  %v918_v63 = vld [vmem:[#allocation9 + $0x1f0] sm:$0xff]  ;;  %v1087_v47 = vld [vmem:[#allocation10 + $0xa8] sm:$0xff]  ;;  %v1085_v51 = vld [vmem:[#allocation10 + $0x98] sm:$0xff] }
  0xee   :  { %755 = vmatprep.mubr.f32.mxu1 %v14780_v1  ;;  %8810 = vmatprep.subr.bf16.mxu0 %v12459_v49 }
  0xef   :  { %643 = vmatmul.mubr.f32.gmra.mrb[20].mxu0 %v12381_v10  ;;  %8842 = vmatprep.subr.bf16.mxu1 %v12463_v52 }
  0xf0   :  { %756 = vmatmul.mubr.f32.gmra.mrb[20].mxu1 %v12381_v10  ;;  %8812 = vmatpush1.bf16.msra.mxu0 %v12467_v55  ;;  %v890_v10 = vld [vmem:[#allocation9 + $0x110] sm:$0xff] }
  0xf1   :  { %8844 = vmatpush1.bf16.msra.mxu1 %v12471_v58  ;;  %648 = vmatprep.mubr.f32.mxu0 %v14780_v1  ;;  %v12503_v21 = vpack.c.bf16 %v894_v13, %v890_v10  ;;  %v1066_v13 = vld [vmem:[#allocation10] sm:$0xff] }
  0xf2   :  { %761 = vmatprep.mubr.f32.mxu1 %v14780_v1  ;;  %8814 = vmatprep.subr.bf16.mxu0 %v12475_v62  ;;  %v12563_v31 = vpack.c.bf16 %v1070_v16, %v1066_v13  ;;  %v1095_v13 = vld [vmem:[#allocation10 + $0xe8] sm:$0xff]  ;;  %v1093_v16 = vld [vmem:[#allocation10 + $0xd8] sm:$0xff] }
  0xf3   :  { %649 = vmatmul.mubr.f32.gmra.mrb[22].mxu0 %v12390_v23  ;;  %8846 = vmatprep.subr.bf16.mxu1 %v12479_v2  ;;  %v12599_v24 = vpack.c.bf16 %v1095_v13, %v1091_v11  ;;  %v12602_v41 = vpack.c.bf16 %v1097_v17, %v1093_v16  ;;  %v1100_v11 = vld [vmem:[#allocation10 + $0x110] sm:$0xff]  ;;  %v1107_v17 = vld [vmem:[#allocation10 + $0x148] sm:$0xff] }
  0xf4   :  { %762 = vmatmul.mubr.f32.gmra.mrb[22].mxu1 %v12390_v23  ;;  %8816 = vmatpush1.bf16.msra.mxu0 %v12483_v5  ;;  %v898_v23 = vld [vmem:[#allocation9 + $0x150] sm:$0xff] }
  0xf5   :  { %8848 = vmatpush1.bf16.msra.mxu1 %v12487_v8  ;;  %654 = vmatprep.mubr.f32.mxu0 %v14780_v1  ;;  %v12519_v40 = vpack.c.bf16 %v902_v28, %v898_v23  ;;  %v1077_v23 = vld [vmem:[#allocation10 + $0x58] sm:$0xff]  ;;  %14979 = vst [vmem:[#allocation25_spill] sm:$0xff] %v12599_v24  ;;  %14980 = vst [vmem:[#allocation26_spill] sm:$0xff] %v12602_v41  ;;  %v1104_v16 = vld [vmem:[#allocation10 + $0x130] sm:$0xff] }
  0xf6   :  { %767 = vmatprep.mubr.f32.mxu1 %v14780_v1  ;;  %8818 = vmatprep.subr.bf16.mxu0 %v12491_v12  ;;  %v1081_v28 = vld [vmem:[#allocation10 + $0x78] sm:$0xff] }
  0xf7   :  { %655 = vmatmul.mubr.f32.gmra.mrb[24].mxu0 %v12399_v36  ;;  %8850 = vmatprep.subr.bf16.mxu1 %v12495_v14 }
  0xf8   :  { %768 = vmatmul.mubr.f32.gmra.mrb[24].mxu1 %v12399_v36  ;;  %8820 = vmatpush1.bf16.msra.mxu0 %v12499_v18  ;;  %v906_v36 = vld [vmem:[#allocation9 + $0x190] sm:$0xff] }
  0xf9   :  { %8852 = vmatpush1.bf16.msra.mxu1 %v12503_v21  ;;  %660 = vmatprep.mubr.f32.mxu0 %v14780_v1  ;;  %v12535_v57 = vpack.c.bf16 %v910_v46, %v906_v36  ;;  %v1080_v36 = vld [vmem:[#allocation10 + $0x70] sm:$0xff]  ;;  %v1083_v46 = vld [vmem:[#allocation10 + $0x88] sm:$0xff] }
  0xfa   :  { %773 = vmatprep.mubr.f32.mxu1 %v14780_v1  ;;  %8822 = vmatprep.subr.bf16.mxu0 %v12507_v27  ;;  %v12583_v59 = vpack.c.bf16 %v1080_v36, %v1076_v43  ;;  %v12585_v61 = vpack.c.bf16 %v1087_v47, %v1083_v46  ;;  %v1096_v43 = vld [vmem:[#allocation10 + $0xf0] sm:$0xff]  ;;  %v1099_v36 = vld [vmem:[#allocation10 + $0x108] sm:$0xff]  ;;  %v1101_v47 = vld [vmem:[#allocation10 + $0x118] sm:$0xff] }
  0xfb   :  { %661 = vmatmul.mubr.f32.gmra.mrb[26].mxu0 %v12408_v50  ;;  %8854 = vmatprep.subr.bf16.mxu1 %v12511_v30  ;;  %v1103_v46 = vld [vmem:[#allocation10 + $0x128] sm:$0xff] }
  0xfc   :  { %774 = vmatmul.mubr.f32.gmra.mrb[26].mxu1 %v12408_v50  ;;  %8824 = vmatpush1.bf16.msra.mxu0 %v12515_v34  ;;  %v914_v50 = vld [vmem:[#allocation9 + $0x1d0] sm:$0xff] }
  0xfd   :  { %8856 = vmatpush1.bf16.msra.mxu1 %v12519_v40  ;;  %666 = vmatprep.mubr.f32.mxu0 %v14780_v1  ;;  %v12551_v10 = vpack.c.bf16 %v918_v63, %v914_v50  ;;  %v1082_v50 = vld [vmem:[#allocation10 + $0x80] sm:$0xff] }
  0xfe   :  { %779 = vmatprep.mubr.f32.mxu1 %v14780_v1  ;;  %8826 = vmatprep.subr.bf16.mxu0 %v12523_v44  ;;  %v1086_v63 = vld [vmem:[#allocation10 + $0xa0] sm:$0xff] }
  0xff   :  { %667 = vmatmul.mubr.f32.gmra.mrb[28].mxu0 %v12417_v0  ;;  %8858 = vmatprep.subr.bf16.mxu1 %v12527_v48  ;;  %v12593_v19 = vpack.c.bf16 %v1086_v63, %v1082_v50  ;;  %v12609_v50 = vpack.c.bf16 %v1096_v43, %v1092_v38  ;;  %v12611_v63 = vpack.c.bf16 %v1103_v46, %v1099_v36  ;;  %v1106_v36 = vld [vmem:[#allocation10 + $0x140] sm:$0xff] }
 0x100   :  { %780 = vmatmul.mubr.f32.gmra.mrb[28].mxu1 %v12417_v0  ;;  %8828 = vmatpush1.bf16.msra.mxu0 %v12531_v53  ;;  %v12555_v0 = vpack.c.bf16 %v1071_v6, %v1067_v4  ;;  %v1084_v4 = vld [vmem:[#allocation10 + $0x90] sm:$0xff]  ;;  %v12588_v6 = vpack.c.bf16 %v1089_v54, %v1085_v51  ;;  %v1105_v51 = vld [vmem:[#allocation10 + $0x138] sm:$0xff]  ;;  %v12621_v38 = vpack.c.bf16 %v1104_v16, %v1100_v11  ;;  %v1110_v46 = vld [vmem:[#allocation10 + $0x160] sm:$0xff] }
 0x101   :  { %8860 = vmatpush1.bf16.msra.mxu1 %v12535_v57  ;;  %672 = vmatprep.mubr.f32.mxu0 %v14780_v1  ;;  %v12597_v20 = vpack.c.bf16 %v1088_v9, %v1084_v4  ;;  %14982 = vst [vmem:[#allocation28_spill] sm:$0xff] %v12609_v50  ;;  %14983 = vst [vmem:[#allocation29_spill] sm:$0xff] %v12611_v63  ;;  %v1098_v4 = vld [vmem:[#allocation10 + $0x100] sm:$0xff]  ;;  %v12614_v13 = vpack.c.bf16 %v1105_v51, %v1101_v47  ;;  %v1108_v47 = vld [vmem:[#allocation10 + $0x150] sm:$0xff] }
 0x102   :  { %785 = vmatprep.mubr.f32.mxu1 %v14780_v1  ;;  %8830 = vmatprep.subr.bf16.mxu0 %v12539_v60  ;;  %v1102_v9 = vld [vmem:[#allocation10 + $0x120] sm:$0xff]  ;;  %14986 = vst [vmem:[#allocation32_spill] sm:$0xff] %v12621_v38 }
 0x103   :  { %673 = vmatmul.mubr.f32.gmra.mrb[30].mxu0 %v12426_v15  ;;  %8862 = vmatprep.subr.bf16.mxu1 %v12543_v3  ;;  %14978 = vst [vmem:[#allocation24_spill] sm:$0xff] %v12597_v20  ;;  %14984 = vst [vmem:[#allocation30_spill] sm:$0xff] %v12614_v13  ;;  %v1114_v16 = vld [vmem:[#allocation10 + $0x180] sm:$0xff] }
 0x104   :  { %786 = vmatmul.mubr.f32.gmra.mrb[30].mxu1 %v12426_v15  ;;  %8832 = vmatpush1.bf16.msra.mxu0 %v12547_v7  ;;  %v12573_v15 = vpack.c.bf16 %v1081_v28, %v1077_v23  ;;  %v1090_v23 = vld [vmem:[#allocation10 + $0xc0] sm:$0xff] }
 0x105   :  { %8864 = vmatpush1.bf16.msra.mxu1 %v12551_v10  ;;  %988 = vmatprep.mubr.f32.mxu0 %v14780_v1  ;;  %v1094_v28 = vld [vmem:[#allocation10 + $0xe0] sm:$0xff] }
 0x106   :  { %1059 = vmatprep.mubr.f32.mxu1 %v14780_v1  ;;  %8866 = vmatprep.subr.bf16.mxu0 %v12555_v0  ;;  %v12605_v54 = vpack.c.bf16 %v1094_v28, %v1090_v23  ;;  %v1109_v23 = vld [vmem:[#allocation10 + $0x158] sm:$0xff] }
 0x107   :  { %989 = vmatmul.mubr.f32.vlgmr.msra.gmra.mrb[0].mxu0 %v14780_v1  ;;  %8898 = vmatprep.subr.bf16.mxu1 %v12559_v25  ;;  %v1113_v28 = vld [vmem:[#allocation10 + $0x178] sm:$0xff] }
 0x108   :  { %1060 = vmatmul.mubr.f32.vlgmr.msra.gmra.mrb[0].mxu1 %v14780_v1  ;;  %8868 = vmatpush1.bf16.msra.mxu0 %v12563_v31  ;;  %14981 = vst [vmem:[#allocation27_spill] sm:$0xff] %v12605_v54  ;;  %v12626_v51 = vpack.c.bf16 %v1113_v28, %v1109_v23  ;;  %v1116_v23 = vld [vmem:[#allocation10 + $0x190] sm:$0xff] }
 0x109   :  { %8900 = vmatpush1.bf16.msra.mxu1 %v12567_v33  ;;  %8870 = vmatprep.subr.bf16.mxu0 %v12569_v37 }
 0x10a   :  { %8902 = vmatprep.subr.bf16.mxu1 %v12573_v15  ;;  %1198 = vmatprep.mubr.f32.mxu0 %v14780_v1  ;;  %14987 = vst [vmem:[#allocation33_spill] sm:$0xff] %v12626_v51 }
 0x10b   :  { %1269 = vmatprep.mubr.f32.mxu1 %v14780_v1  ;;  %v1111_v1 = vld [vmem:[#allocation10 + $0x168] sm:$0xff] }
 0x10c   :  { %8872 = vmatpush1.bf16.msra.mxu0 %v12579_v56  ;;  %v12623_v43 = vpack.c.bf16 %v1111_v1, %v1107_v17  ;;  %v1118_v17 = vld [vmem:[#allocation10 + $0x1a0] sm:$0xff] }
 0x10d   :  { %8904 = vmatpush1.bf16.msra.mxu1 %v12583_v59  ;;  %8874 = vmatprep.subr.bf16.mxu0 %v12585_v61 }
 0x10e   :  { %8906 = vmatprep.subr.bf16.mxu1 %v12588_v6 }
 0x110   :  { %8876 = vmatpush1.bf16.msra.mxu0 %v12593_v19 }
 0x111   :  { %8908 = vmatpush1.bf16.msra.mxu1 %v12597_v20  ;;  %8878 = vmatprep.subr.bf16.mxu0 %v12599_v24  ;;  %v12617_v20 = vpack.c.bf16 %v1102_v9, %v1098_v4  ;;  %v1115_v24 = vld [vmem:[#allocation10 + $0x188] sm:$0xff]  ;;  %v1117_v4 = vld [vmem:[#allocation10 + $0x198] sm:$0xff] }
 0x112   :  { %8910 = vmatprep.subr.bf16.mxu1 %v12602_v41  ;;  %v1112_v41 = vld [vmem:[#allocation10 + $0x170] sm:$0xff]  ;;  %v1121_v9 = vld [vmem:[#allocation10 + $0x1b8] sm:$0xff] }
 0x113   :  { %14985 = vst [vmem:[#allocation31_spill] sm:$0xff] %v12617_v20  ;;  %v12633_v1 = vpack.c.bf16 %v1112_v41, %v1108_v47  ;;  %v12638_v28 = vpack.c.bf16 %v1121_v9, %v1117_v4  ;;  %v1126_v47 = vld [vmem:[#allocation10 + $0x1e0] sm:$0xff]  ;;  %v1124_v9 = vld [vmem:[#allocation10 + $0x1d0] sm:$0xff] }
 0x114   :  { %8880 = vmatpush1.bf16.msra.mxu0 %v12605_v54  ;;  %v1119_v54 = vld [vmem:[#allocation10 + $0x1a8] sm:$0xff] }
 0x115   :  { %8912 = vmatpush1.bf16.msra.mxu1 %v12609_v50  ;;  %8882 = vmatprep.subr.bf16.mxu0 %v12611_v63  ;;  %v12629_v50 = vpack.c.bf16 %v1110_v46, %v1106_v36  ;;  %v12635_v11 = vpack.c.bf16 %v1119_v54, %v1115_v24  ;;  %v1123_v63 = vld [vmem:[#allocation10 + $0x1c8] sm:$0xff]  ;;  %v1125_v36 = vld [vmem:[#allocation10 + $0x1d8] sm:$0xff]  ;;  %v1122_v54 = vld [vmem:[#allocation10 + $0x1c0] sm:$0xff] }
 0x116   :  { %8914 = vmatprep.subr.bf16.mxu1 %v12614_v13  ;;  %v1120_v13 = vld [vmem:[#allocation10 + $0x1b0] sm:$0xff]  ;;  %v1129_v46 = vld [vmem:[#allocation10 + $0x1f8] sm:$0xff] }
 0x117   :  { %v12645_v24 = vpack.c.bf16 %v1120_v13, %v1116_v23  ;;  %v12650_v4 = vpack.c.bf16 %v1129_v46, %v1125_v36 }
 0x118   :  { %8884 = vmatpush1.bf16.msra.mxu0 %v12617_v20  ;;  %v1127_v20 = vld [vmem:[#allocation10 + $0x1e8] sm:$0xff] }
 0x119   :  { %8916 = vmatpush1.bf16.msra.mxu1 %v12621_v38  ;;  %8886 = vmatprep.subr.bf16.mxu0 %v12623_v43  ;;  %v12641_v38 = vpack.c.bf16 %v1118_v17, %v1114_v16  ;;  %v12647_v41 = vpack.c.bf16 %v1127_v20, %v1123_v63  ;;  %v12653_v16 = vpack.c.bf16 %v1126_v47, %v1122_v54  ;;  %v14988_v20 = vmov 0.0  }
 0x11a   :  { %8918 = vmatprep.subr.bf16.mxu1 %v12626_v51  ;;  %v1128_v51 = vld [vmem:[#allocation10 + $0x1f0] sm:$0xff] }
 0x11b   :  { %v12657_v13 = vpack.c.bf16 %v1128_v51, %v1124_v9 }
 0x11c   :  { %8888 = vmatpush1.bf16.msra.mxu0 %v12629_v50 }
 0x11d   :  { %8920 = vmatpush1.bf16.msra.mxu1 %v12633_v1  ;;  %8890 = vmatprep.subr.bf16.mxu0 %v12635_v11 }
 0x11e   :  { %8922 = vmatprep.subr.bf16.mxu1 %v12638_v28 }
 0x120   :  { %8892 = vmatpush1.bf16.msra.mxu0 %v12641_v38 }
 0x121   :  { %8924 = vmatpush1.bf16.msra.mxu1 %v12645_v24  ;;  %8894 = vmatprep.subr.bf16.mxu0 %v12647_v41 }
 0x122   :  { %8926 = vmatprep.subr.bf16.mxu1 %v12650_v4 }
 0x124   :  { %8896 = vmatpush1.bf16.msra.mxu0 %v12653_v16 }
 0x125   :  { %8928 = vmatpush1.bf16.msra.mxu1 %v12657_v13  ;;  %8930 = vmatprep.subr.bf16.mxu0 %v12430_v22  ;;  %v300_v22 = vlaneseq }
 0x126   :  { %8962 = vmatprep.subr.bf16.mxu1 %v12433_v26 }
 0x127   :  { %1199 = vmatmul.mubr.f32.vlgmr.msra.gmra.mrb[30].mxu0 %v14988_v20  ;;  %v12700_v26 = vshrl.u32 %v300_v22, 7 }
 0x128   :  { %1270 = vmatmul.mubr.f32.vlgmr.msra.gmra.mrb[30].mxu1 %v14988_v20  ;;  %8932 = vmatpush1.bf16.msra.mxu0 %v12436_v29 }
 0x129   :  { %8964 = vmatpush1.bf16.msra.mxu1 %v12439_v32  ;;  %8934 = vmatprep.subr.bf16.mxu0 %v12443_v35  ;;  %14989 = vst [vmem:[#allocation34_spill] sm:$0xff] %v12700_v26  ;;  %v14799_v29 = vsub.s32 0, %v12700_v26  ;;  %v298_v32 = vld [vmem:[#allocation7] sm:$0xff]  ;;  %v14798_v35 = vsub.s32 1, %v12700_v26  ;;  %v14793_v46 = vsub.s32 7, %v12700_v26 }
 0x12a   :  { %8966 = vmatprep.subr.bf16.mxu1 %v12447_v39  ;;  %1458 = vmatprep.mubr.f32.mxu0 %v14988_v20 }
 0x12b   :  { %1529 = vmatprep.mubr.f32.mxu1 %v14988_v20  ;;  %v12706_v39 = vrot.slane %v298_v32, %v14799_v29 }
 0x12c   :  { %8936 = vmatpush1.bf16.msra.mxu0 %v12451_v42  ;;  %v12710_v42 = vrot.slane %v298_v32, %v14798_v35 }
 0x12d   :  { %8968 = vmatpush1.bf16.msra.mxu1 %v12455_v45  ;;  %8938 = vmatprep.subr.bf16.mxu0 %v12459_v49  ;;  %v14797_v49 = vsub.s32 3, %v12700_v26 }
 0x12e   :  { %8970 = vmatprep.subr.bf16.mxu1 %v12463_v52  ;;  %14990 = vst [vmem:[#allocation35_spill] sm:$0xff] %v12710_v42 }
 0x130   :  { %8940 = vmatpush1.bf16.msra.mxu0 %v12467_v55 }
 0x131   :  { %8972 = vmatpush1.bf16.msra.mxu1 %v12471_v58  ;;  %8942 = vmatprep.subr.bf16.mxu0 %v12475_v62 }
 0x132   :  { %8974 = vmatprep.subr.bf16.mxu1 %v12479_v2 }
 0x134   :  { %8944 = vmatpush1.bf16.msra.mxu0 %v12483_v5 }
 0x135   :  { %8976 = vmatpush1.bf16.msra.mxu1 %v12487_v8  ;;  %8946 = vmatprep.subr.bf16.mxu0 %v12491_v12  ;;  %v12717_v12 = vrot.slane %v298_v32, %v14797_v49 }
 0x136   :  { %8978 = vmatprep.subr.bf16.mxu1 %v12495_v14  ;;  %v14796_v14 = vsub.s32 2, %v12700_v26 }
 0x137   :  { %14991 = vst [vmem:[#allocation36_spill] sm:$0xff] %v12717_v12 }
 0x138   :  { %8948 = vmatpush1.bf16.msra.mxu0 %v12499_v18 }
 0x139   :  { %8980 = vmatpush1.bf16.msra.mxu1 %v12503_v21  ;;  %8950 = vmatprep.subr.bf16.mxu0 %v12507_v27  ;;  %v12723_v21 = vrot.slane %v298_v32, %v14796_v14 }
 0x13a   :  { %8982 = vmatprep.subr.bf16.mxu1 %v12511_v30 }
 0x13b   :  { %14992 = vst [vmem:[#allocation37_spill] sm:$0xff] %v12723_v21 }
 0x13c   :  { %8952 = vmatpush1.bf16.msra.mxu0 %v12515_v34 }
 0x13d   :  { %8984 = vmatpush1.bf16.msra.mxu1 %v12519_v40  ;;  %8954 = vmatprep.subr.bf16.mxu0 %v12523_v44 }
 0x13e   :  { %8986 = vmatprep.subr.bf16.mxu1 %v12527_v48 }
 0x140   :  { %8956 = vmatpush1.bf16.msra.mxu0 %v12531_v53  ;;  %v14795_v53 = vsub.s32 4, %v12700_v26 }
 0x141   :  { %8988 = vmatpush1.bf16.msra.mxu1 %v12535_v57  ;;  %8958 = vmatprep.subr.bf16.mxu0 %v12539_v60  ;;  %v14794_v60 = vsub.s32 5, %v12700_v26 }
 0x142   :  { %8990 = vmatprep.subr.bf16.mxu1 %v12543_v3  ;;  %v12730_v63 = vrot.slane %v298_v32, %v14795_v53 }
 0x143   :  { %v12734_v17 = vrot.slane %v298_v32, %v14794_v60 }
 0x144   :  { %8960 = vmatpush1.bf16.msra.mxu0 %v12547_v7  ;;  %14993 = vst [vmem:[#allocation38_spill] sm:$0xff] %v12730_v63 }
 0x145   :  { %8992 = vmatpush1.bf16.msra.mxu1 %v12551_v10  ;;  %8994 = vmatprep.subr.bf16.mxu0 %v12555_v0  ;;  %14994 = vst [vmem:[#allocation39_spill] sm:$0xff] %v12734_v17 }
 0x146   :  { %9026 = vmatprep.subr.bf16.mxu1 %v12559_v25 }
 0x1da   :  { %v990_v45 = vpop.f32.mrb[0].mxu0 }
 0x1db   :  { %v11149_v52 = vadd.f32 %v990_v45, %v12706_v39  ;;  %v1061_v55 = vpop.f32.mrb[0].mxu1  ;;  %v992_v58 = vpop.f32.mrb[1].mxu0 }
 0x1dc   :  { %v11150_v62 = vadd.f32 %v992_v58, %v12710_v42  ;;  %v1063_v2 = vpop.f32.mrb[1].mxu1  ;;  %v11165_v30 = vadd.f32 %v1061_v55, %v12723_v21  ;;  %v12744_v58 = vrot.slane %v298_v32, %v14793_v46 }
 0x1dd   :  { %v8510_v5 = vmul.f32 -1.442695, %v11149_v52  ;;  %v11166_v18 = vadd.f32 %v1063_v2, %v12717_v12 }
 0x1de   :  { %v8511_v8 = vmul.f32 -1.442695, %v11150_v62  ;;  %14995 = vst [vmem:[#allocation40_spill] sm:$0xff] %v12744_v58  ;;  %v14792_v62 = vsub.s32 6, %v12700_v26 }
 0x1df   :  { %11421 = vpow2.f32 %v8510_v5  ;;  %v8512_v27 = vmul.f32 -1.442695, %v11166_v18 }
 0x1e0   :  { %11423 = vpow2.f32 %v8511_v8  ;;  %v12750_v5 = vrot.slane %v298_v32, %v14792_v62 }
 0x1e1   :  { %11425 = vpow2.f32 %v8512_v27 }
 0x1e2   :  { %11427 = vtanh.f32 %v11165_v30 }
 0x1e9   :  { %v11422_v34 = vpop.eup %11421 }
 0x1ea   :  { %v11424_v40 = vpop.eup %11423  ;;  %v1279_v44 = vadd.f32 1.0, %v11422_v34 }
 0x1eb   :  { %v1285_v48 = vadd.f32 1.0, %v11424_v40  ;;  %v11426_v57 = vpop.eup %11425 }
 0x1ec   :  { %11429 = vrcp.f32 %v1279_v44  ;;  %v11428_v3 = vpop.eup %11427  ;;  %v1292_v25 = vadd.f32 1.0, %v11426_v57 }
 0x1ed   :  { %11431 = vrcp.f32 %v1285_v48 }
 0x1ee   :  { %11433 = vrcp.f32 %v1292_v25 }
 0x1f6   :  { %v11430_v7 = vpop.eup %11429 }
 0x1f7   :  { %v11432_v10 = vpop.eup %11431  ;;  %v1296_v0 = vmul.f32 %v11430_v7, %v11428_v3  ;;  %v15000_v7 = vld [vmem:[#allocation27_spill] sm:$0xff] }
 0x1f8   :  { %v1295_v51 = vmul.f32 0.0, %v11432_v10  ;;  %v11434_v8 = vpop.eup %11433 }
 0x1fa   :  { %v12736_v23 = vadd.f32 %v1296_v0, %v1295_v51  ;;  %v1200_v36 = vpop.f32.mrb[30].mxu0  ;;  %v15002_v0 = vld [vmem:[#allocation29_spill] sm:$0xff]  ;;  %v15004_v51 = vld [vmem:[#allocation31_spill] sm:$0xff] }
 0x1fb   :  { %v11195_v54 = vadd.f32 %v1200_v36, %v12730_v63  ;;  %v1271_v47 = vpop.f32.mrb[30].mxu1  ;;  %v1202_v9 = vpop.f32.mrb[31].mxu0  ;;  %v15005_v36 = vld [vmem:[#allocation32_spill] sm:$0xff] }
 0x1fc   :  { %11435 = vtanh.f32 %v12736_v23  ;;  %v11196_v22 = vadd.f32 %v1202_v9, %v12734_v17  ;;  %v1273_v45 = vpop.f32.mrb[31].mxu1  ;;  %v11211_v34 = vadd.f32 %v1271_v47, %v12750_v5  ;;  %v1798_v9 = vld [vmem:[#allocation9 + $0x10] sm:$0xff] }
 0x1fd   :  { %v8513_v52 = vmul.f32 -1.442695, %v11195_v54  ;;  %v11212_v2 = vadd.f32 %v1273_v45, %v12744_v58  ;;  %v15006_v54 = vld [vmem:[#allocation33_spill] sm:$0xff] }
 0x1fe   :  { %v8514_v55 = vmul.f32 -1.442695, %v11196_v22  ;;  %v1802_v22 = vld [vmem:[#allocation9 + $0x30] sm:$0xff] }
 0x1ff   :  { %11437 = vpow2.f32 %v8513_v52  ;;  %v8515_v27 = vmul.f32 -1.442695, %v11212_v2  ;;  %v12805_v45 = vpack.c.bf16 %v1802_v22, %v1798_v9  ;;  %v1805_v52 = vld [vmem:[#allocation9 + $0x48] sm:$0xff]  ;;  %v1807_v2 = vld [vmem:[#allocation9 + $0x58] sm:$0xff] }
 0x200   :  { %11439 = vpow2.f32 %v8514_v55  ;;  %v1809_v55 = vld [vmem:[#allocation9 + $0x68] sm:$0xff] }
 0x201   :  { %11441 = vpow2.f32 %v8515_v27  ;;  %v1804_v27 = vld [vmem:[#allocation9 + $0x40] sm:$0xff]  ;;  %v1829_v9 = vld [vmem:[#allocation9 + $0x108] sm:$0xff] }
 0x202   :  { %11443 = vtanh.f32 %v11211_v34  ;;  %v1808_v34 = vld [vmem:[#allocation9 + $0x60] sm:$0xff]  ;;  %v1833_v22 = vld [vmem:[#allocation9 + $0x128] sm:$0xff] }
 0x206   :  { %v11436_v18 = vpop.eup %11435 }
 0x207   :  { %v12752_v30 = vmul.f32 %v11436_v18, %v11434_v8  ;;  %v12810_v8 = vpack.c.bf16 %v1809_v55, %v1805_v52  ;;  %v1811_v18 = vld [vmem:[#allocation9 + $0x78] sm:$0xff]  ;;  %v12846_v55 = vpack.c.bf16 %v1833_v22, %v1829_v9 }
 0x208   :  { %v1831_v52 = vld [vmem:[#allocation9 + $0x118] sm:$0xff] }
 0x209   :  { %14996 = vst [vmem:[#allocation41_spill] sm:$0xff] %v12752_v30  ;;  %v11438_v40 = vpop.eup %11437  ;;  %1459 = vmatmul.mubr.f32.vlgmr.msra.gmra.mrb[2].mxu0 %v12752_v30  ;;  %1530 = vmatmul.mubr.f32.vlgmr.msra.gmra.mrb[2].mxu1 %v12752_v30  ;;  %v1847_v9 = vld [vmem:[#allocation9 + $0x198] sm:$0xff] }
 0x20a   :  { %v11440_v44 = vpop.eup %11439  ;;  %v1303_v48 = vadd.f32 1.0, %v11438_v40  ;;  %8996 = vmatpush1.bf16.msra.mxu0 %v12563_v31  ;;  %9028 = vmatpush1.bf16.msra.mxu1 %v12567_v33  ;;  %v14997_v31 = vld [vmem:[#allocation24_spill] sm:$0xff]  ;;  %v14998_v33 = vld [vmem:[#allocation25_spill] sm:$0xff]  ;;  %v12812_v40 = vpack.c.bf16 %v1811_v18, %v1807_v2  ;;  %v1828_v18 = vld [vmem:[#allocation9 + $0x100] sm:$0xff] }
 0x20b   :  { %v1309_v32 = vadd.f32 1.0, %v11440_v44  ;;  %8998 = vmatprep.subr.bf16.mxu0 %v12569_v37  ;;  %9030 = vmatprep.subr.bf16.mxu1 %v12573_v15  ;;  %v14999_v37 = vld [vmem:[#allocation26_spill] sm:$0xff]  ;;  %v11442_v15 = vpop.eup %11441  ;;  %v12814_v44 = vpack.c.bf16 %v1808_v34, %v1804_v27 }
 0x20c   :  { %11445 = vrcp.f32 %v1303_v48  ;;  %1668 = vmatprep.mubr.f32.mxu0 %v14988_v20  ;;  %1739 = vmatprep.mubr.f32.mxu1 %v14988_v20  ;;  %v11444_v57 = vpop.eup %11443  ;;  %v1806_v48 = vld [vmem:[#allocation9 + $0x50] sm:$0xff]  ;;  %v1835_v2 = vld [vmem:[#allocation9 + $0x138] sm:$0xff]  ;;  %v1832_v27 = vld [vmem:[#allocation9 + $0x120] sm:$0xff] }
 0x20d   :  { %11447 = vrcp.f32 %v1309_v32  ;;  %v1810_v32 = vld [vmem:[#allocation9 + $0x70] sm:$0xff]  ;;  %v12848_v34 = vpack.c.bf16 %v1835_v2, %v1831_v52  ;;  %v1851_v52 = vld [vmem:[#allocation9 + $0x1b8] sm:$0xff]  ;;  %v1844_v2 = vld [vmem:[#allocation9 + $0x180] sm:$0xff] }
 0x20e   :  { %9000 = vmatpush1.bf16.msra.mxu0 %v12579_v56  ;;  %9032 = vmatpush1.bf16.msra.mxu1 %v12583_v59  ;;  %v15001_v56 = vld [vmem:[#allocation28_spill] sm:$0xff] }
 0x20f   :  { %9002 = vmatprep.subr.bf16.mxu0 %v12585_v61  ;;  %9034 = vmatprep.subr.bf16.mxu1 %v12588_v6  ;;  %v1316_v61 = vadd.f32 1.0, %v11442_v15  ;;  %v15003_v6 = vld [vmem:[#allocation30_spill] sm:$0xff] }
 0x210   :  { %v1815_v15 = vld [vmem:[#allocation9 + $0x98] sm:$0xff] }
 0x211   :  { %11449 = vrcp.f32 %v1316_v61  ;;  %v1814_v61 = vld [vmem:[#allocation9 + $0x90] sm:$0xff] }
 0x212   :  { %9004 = vmatpush1.bf16.msra.mxu0 %v12593_v19  ;;  %9036 = vmatpush1.bf16.msra.mxu1 %v14997_v31  ;;  %v12817_v31 = vpack.c.bf16 %v1810_v32, %v1806_v48  ;;  %v12850_v48 = vpack.c.bf16 %v1832_v27, %v1828_v18  ;;  %v1830_v32 = vld [vmem:[#allocation9 + $0x110] sm:$0xff]  ;;  %v1848_v18 = vld [vmem:[#allocation9 + $0x1a0] sm:$0xff]  ;;  %v12872_v27 = vpack.c.bf16 %v1851_v52, %v1847_v9 }
 0x213   :  { %9006 = vmatprep.subr.bf16.mxu0 %v14998_v33  ;;  %9038 = vmatprep.subr.bf16.mxu1 %v14999_v37  ;;  %v1813_v33 = vld [vmem:[#allocation9 + $0x88] sm:$0xff]  ;;  %v1854_v52 = vld [vmem:[#allocation9 + $0x1d0] sm:$0xff] }
 0x214   :  { %v1817_v37 = vld [vmem:[#allocation9 + $0xa8] sm:$0xff] }
 0x216   :  { %v11446_v3 = vpop.eup %11445  ;;  %9008 = vmatpush1.bf16.msra.mxu0 %v15000_v7  ;;  %9040 = vmatpush1.bf16.msra.mxu1 %v15001_v56  ;;  %v1812_v7 = vld [vmem:[#allocation9 + $0x80] sm:$0xff] }
 0x217   :  { %v11448_v59 = vpop.eup %11447  ;;  %v1320_v10 = vmul.f32 %v11446_v3, %v11444_v57  ;;  %9010 = vmatprep.subr.bf16.mxu0 %v15002_v0  ;;  %9042 = vmatprep.subr.bf16.mxu1 %v15003_v6  ;;  %v12822_v57 = vpack.c.bf16 %v1817_v37, %v1813_v33  ;;  %v1819_v3 = vld [vmem:[#allocation9 + $0xb8] sm:$0xff]  ;;  %v1816_v56 = vld [vmem:[#allocation9 + $0xa0] sm:$0xff]  ;;  %v1818_v0 = vld [vmem:[#allocation9 + $0xb0] sm:$0xff] }
 0x218   :  { %v1319_v19 = vmul.f32 0.0, %v11448_v59  ;;  %v12824_v59 = vpack.c.bf16 %v1819_v3, %v1815_v15  ;;  %v12829_v6 = vpack.c.bf16 %v1818_v0, %v1814_v61  ;;  %v1834_v33 = vld [vmem:[#allocation9 + $0x130] sm:$0xff]  ;;  %v1837_v15 = vld [vmem:[#allocation9 + $0x148] sm:$0xff]  ;;  %v1843_v61 = vld [vmem:[#allocation9 + $0x178] sm:$0xff] }
 0x219   :  { %v12853_v37 = vpack.c.bf16 %v1834_v33, %v1830_v32  ;;  %v1841_v3 = vld [vmem:[#allocation9 + $0x168] sm:$0xff]  ;;  %v1836_v0 = vld [vmem:[#allocation9 + $0x140] sm:$0xff]  ;;  %v12874_v32 = vpack.c.bf16 %v1848_v18, %v1844_v2  ;;  %v1846_v33 = vld [vmem:[#allocation9 + $0x190] sm:$0xff] }
 0x21a   :  { %v12775_v25 = vadd.f32 %v1320_v10, %v1319_v19  ;;  %9012 = vmatpush1.bf16.msra.mxu0 %v15004_v51  ;;  %9044 = vmatpush1.bf16.msra.mxu1 %v15005_v36  ;;  %v12826_v10 = vpack.c.bf16 %v1816_v56, %v1812_v7  ;;  %v1821_v19 = vld [vmem:[#allocation9 + $0xc8] sm:$0xff]  ;;  %v1823_v36 = vld [vmem:[#allocation9 + $0xd8] sm:$0xff]  ;;  %v12858_v56 = vpack.c.bf16 %v1841_v3, %v1837_v15  ;;  %v1850_v15 = vld [vmem:[#allocation9 + $0x1b0] sm:$0xff] }
 0x21b   :  { %9014 = vmatprep.subr.bf16.mxu0 %v12623_v43  ;;  %9046 = vmatprep.subr.bf16.mxu1 %v15006_v54  ;;  %v11450_v43 = vpop.eup %11449  ;;  %v1825_v51 = vld [vmem:[#allocation9 + $0xe8] sm:$0xff]  ;;  %v1839_v7 = vld [vmem:[#allocation9 + $0x158] sm:$0xff]  ;;  %v12877_v3 = vpack.c.bf16 %v1850_v15, %v1846_v33  ;;  %v1858_v2 = vld [vmem:[#allocation9 + $0x1f0] sm:$0xff] }
 0x21c   :  { %11451 = vtanh.f32 %v12775_v25  ;;  %v12834_v54 = vpack.c.bf16 %v1825_v51, %v1821_v19  ;;  %v1840_v19 = vld [vmem:[#allocation9 + $0x160] sm:$0xff]  ;;  %v12860_v51 = vpack.c.bf16 %v1843_v61, %v1839_v7  ;;  %v1853_v7 = vld [vmem:[#allocation9 + $0x1c8] sm:$0xff]  ;;  %v12889_v18 = vpack.c.bf16 %v1858_v2, %v1854_v52 }
 0x21d   :  { %v1857_v61 = vld [vmem:[#allocation9 + $0x1e8] sm:$0xff] }
 0x21e   :  { %9016 = vmatpush1.bf16.msra.mxu0 %v12629_v50  ;;  %9048 = vmatpush1.bf16.msra.mxu1 %v12633_v1  ;;  %v1801_v1 = vld [vmem:[#allocation9 + $0x28] sm:$0xff] }
 0x21f   :  { %9018 = vmatprep.subr.bf16.mxu0 %v12635_v11  ;;  %9050 = vmatprep.subr.bf16.mxu1 %v12638_v28  ;;  %v1799_v11 = vld [vmem:[#allocation9 + $0x18] sm:$0xff]  ;;  %v2007_v33 = vld [vmem:[#allocation10 + $0x8] sm:$0xff] }
 0x220   :  { %v2011_v15 = vld [vmem:[#allocation10 + $0x28] sm:$0xff] }
 0x222   :  { %9020 = vmatpush1.bf16.msra.mxu0 %v12641_v38  ;;  %9052 = vmatpush1.bf16.msra.mxu1 %v12645_v24  ;;  %v1797_v38 = vld [vmem:[#allocation9 + $0x8] sm:$0xff]  ;;  %v1803_v24 = vld [vmem:[#allocation9 + $0x38] sm:$0xff] }
 0x223   :  { %9022 = vmatprep.subr.bf16.mxu0 %v12647_v41  ;;  %9054 = vmatprep.subr.bf16.mxu1 %v12650_v4  ;;  %v12798_v28 = vpack.c.bf16 %v1801_v1, %v1797_v38  ;;  %v1796_v41 = vld [vmem:[#allocation9] sm:$0xff] }
 0x224   :  { %v1800_v4 = vld [vmem:[#allocation9 + $0x20] sm:$0xff] }
 0x225   :  { %v1824_v38 = vld [vmem:[#allocation9 + $0xe0] sm:$0xff] }
 0x226   :  { %v11452_v47 = vpop.eup %11451  ;;  %9024 = vmatpush1.bf16.msra.mxu0 %v12653_v16  ;;  %9056 = vmatpush1.bf16.msra.mxu1 %v12657_v13  ;;  %v12800_v16 = vpack.c.bf16 %v1803_v24, %v1799_v11  ;;  %v12802_v13 = vpack.c.bf16 %v1800_v4, %v1796_v41  ;;  %v1822_v24 = vld [vmem:[#allocation9 + $0xd0] sm:$0xff] }
 0x227   :  { %v12792_v50 = vmul.f32 %v11452_v47, %v11450_v43  ;;  %9058 = vmatprep.subr.bf16.mxu0 %v12798_v28  ;;  %v1827_v43 = vld [vmem:[#allocation9 + $0xf8] sm:$0xff]  ;;  %v1820_v47 = vld [vmem:[#allocation9 + $0xc0] sm:$0xff]  ;;  %v1826_v41 = vld [vmem:[#allocation9 + $0xf0] sm:$0xff] }
 0x228   :  { %9090 = vmatprep.subr.bf16.mxu1 %v12800_v16  ;;  %v12836_v1 = vpack.c.bf16 %v1827_v43, %v1823_v36  ;;  %v12838_v11 = vpack.c.bf16 %v1824_v38, %v1820_v47  ;;  %v12841_v4 = vpack.c.bf16 %v1826_v41, %v1822_v24  ;;  %v12862_v36 = vpack.c.bf16 %v1840_v19, %v1836_v0  ;;  %v1838_v43 = vld [vmem:[#allocation9 + $0x150] sm:$0xff]  ;;  %v1845_v24 = vld [vmem:[#allocation9 + $0x188] sm:$0xff]  ;;  %v1855_v0 = vld [vmem:[#allocation9 + $0x1d8] sm:$0xff] }
 0x229   :  { %15007 = vst [vmem:[#allocation24_spill] sm:$0xff] %v12792_v50  ;;  %1669 = vmatmul.mubr.f32.vlgmr.msra.gmra.mrb[28].mxu0 %v12792_v50  ;;  %1740 = vmatmul.mubr.f32.vlgmr.msra.gmra.mrb[28].mxu1 %v12792_v50  ;;  %v1842_v47 = vld [vmem:[#allocation9 + $0x170] sm:$0xff]  ;;  %v1849_v41 = vld [vmem:[#allocation9 + $0x1a8] sm:$0xff]  ;;  %v12882_v19 = vpack.c.bf16 %v1857_v61, %v1853_v7  ;;  %v2009_v7 = vld [vmem:[#allocation10 + $0x18] sm:$0xff]  ;;  %v12894_v61 = vpack.c.bf16 %v2011_v15, %v2007_v33 }
 0x22a   :  { %1928 = vmatprep.mubr.f32.mxu0 %v14988_v20  ;;  %1999 = vmatprep.mubr.f32.mxu1 %v14988_v20  ;;  %v12865_v38 = vpack.c.bf16 %v1842_v47, %v1838_v43  ;;  %v12870_v22 = vpack.c.bf16 %v1849_v41, %v1845_v24  ;;  %v1859_v43 = vld [vmem:[#allocation9 + $0x1f8] sm:$0xff]  ;;  %v1852_v47 = vld [vmem:[#allocation9 + $0x1c0] sm:$0xff] }
 0x22b   :  { %9060 = vmatpush1.bf16.msra.mxu0 %v12802_v13  ;;  %9092 = vmatpush1.bf16.msra.mxu1 %v12805_v45  ;;  %v1856_v24 = vld [vmem:[#allocation9 + $0x1e0] sm:$0xff]  ;;  %v12884_v41 = vpack.c.bf16 %v1859_v43, %v1855_v0  ;;  %v2013_v0 = vld [vmem:[#allocation10 + $0x38] sm:$0xff] }
 0x22c   :  { %9062 = vmatprep.subr.bf16.mxu0 %v12810_v8  ;;  %9094 = vmatprep.subr.bf16.mxu1 %v12812_v40  ;;  %v12886_v9 = vpack.c.bf16 %v1856_v24, %v1852_v47  ;;  %v12896_v43 = vpack.c.bf16 %v2013_v0, %v2009_v7 }
 0x22f   :  { %9064 = vmatpush1.bf16.msra.mxu0 %v12814_v44  ;;  %9096 = vmatpush1.bf16.msra.mxu1 %v12817_v31 }
 0x230   :  { %9066 = vmatprep.subr.bf16.mxu0 %v12822_v57  ;;  %9098 = vmatprep.subr.bf16.mxu1 %v12824_v59 }
 0x233   :  { %9068 = vmatpush1.bf16.msra.mxu0 %v12826_v10  ;;  %9100 = vmatpush1.bf16.msra.mxu1 %v12829_v6 }
 0x234   :  { %9070 = vmatprep.subr.bf16.mxu0 %v12834_v54  ;;  %9102 = vmatprep.subr.bf16.mxu1 %v12836_v1 }
 0x237   :  { %9072 = vmatpush1.bf16.msra.mxu0 %v12838_v11  ;;  %9104 = vmatpush1.bf16.msra.mxu1 %v12841_v4 }
 0x238   :  { %9074 = vmatprep.subr.bf16.mxu0 %v12846_v55  ;;  %9106 = vmatprep.subr.bf16.mxu1 %v12848_v34 }
 0x23b   :  { %9076 = vmatpush1.bf16.msra.mxu0 %v12850_v48  ;;  %9108 = vmatpush1.bf16.msra.mxu1 %v12853_v37 }
 0x23c   :  { %9078 = vmatprep.subr.bf16.mxu0 %v12858_v56  ;;  %9110 = vmatprep.subr.bf16.mxu1 %v12860_v51 }
 0x23f   :  { %9080 = vmatpush1.bf16.msra.mxu0 %v12862_v36  ;;  %9112 = vmatpush1.bf16.msra.mxu1 %v12865_v38 }
 0x240   :  { %9082 = vmatprep.subr.bf16.mxu0 %v12870_v22  ;;  %9114 = vmatprep.subr.bf16.mxu1 %v12872_v27 }
 0x243   :  { %9084 = vmatpush1.bf16.msra.mxu0 %v12874_v32  ;;  %9116 = vmatpush1.bf16.msra.mxu1 %v12877_v3 }
 0x244   :  { %9086 = vmatprep.subr.bf16.mxu0 %v12882_v19  ;;  %9118 = vmatprep.subr.bf16.mxu1 %v12884_v41 }
 0x247   :  { %9088 = vmatpush1.bf16.msra.mxu0 %v12886_v9  ;;  %9120 = vmatpush1.bf16.msra.mxu1 %v12889_v18 }
 0x248   :  { %9122 = vmatprep.subr.bf16.mxu0 %v12894_v61  ;;  %9154 = vmatprep.subr.bf16.mxu1 %v12896_v43 }
 0x2dc   :  { %v1460_v47 = vpop.f32.mrb[2].mxu0  ;;  %v1531_v24 = vpop.f32.mrb[2].mxu1 }
 0x2dd   :  { %v11151_v52 = vadd.f32 %v1460_v47, %v12706_v39  ;;  %v1462_v2 = vpop.f32.mrb[3].mxu0  ;;  %v1533_v62 = vpop.f32.mrb[3].mxu1  ;;  %v11167_v7 = vadd.f32 %v1531_v24, %v12723_v21  ;;  %v2023_v21 = vld [vmem:[#allocation10 + $0x88] sm:$0xff] }
 0x2de   :  { %v11152_v46 = vadd.f32 %v1462_v2, %v12710_v42  ;;  %v11168_v33 = vadd.f32 %v1533_v62, %v12717_v12  ;;  %v2027_v12 = vld [vmem:[#allocation10 + $0xa8] sm:$0xff]  ;;  %v2025_v42 = vld [vmem:[#allocation10 + $0x98] sm:$0xff] }
 0x2df   :  { %v8516_v60 = vmul.f32 -1.442695, %v11151_v52 }
 0x2e0   :  { %v8517_v53 = vmul.f32 -1.442695, %v11152_v46  ;;  %v8518_v15 = vmul.f32 -1.442695, %v11168_v33 }
 0x2e1   :  { %11453 = vpow2.f32 %v8516_v60 }
 0x2e2   :  { %11455 = vpow2.f32 %v8517_v53 }
 0x2e3   :  { %11457 = vpow2.f32 %v8518_v15 }
 0x2e4   :  { %11459 = vtanh.f32 %v11167_v7 }
 0x2eb   :  { %v11454_v0 = vpop.eup %11453 }
 0x2ec   :  { %v11456_v14 = vpop.eup %11455  ;;  %v1749_v49 = vadd.f32 1.0, %v11454_v0 }
 0x2ed   :  { %v1755_v35 = vadd.f32 1.0, %v11456_v14  ;;  %v11458_v47 = vpop.eup %11457 }
 0x2ee   :  { %11461 = vrcp.f32 %v1749_v49  ;;  %v11460_v29 = vpop.eup %11459  ;;  %v1762_v60 = vadd.f32 1.0, %v11458_v47  ;;  %v2010_v47 = vld [vmem:[#allocation10 + $0x20] sm:$0xff] }
 0x2ef   :  { %11463 = vrcp.f32 %v1755_v35 }
 0x2f0   :  { %11465 = vrcp.f32 %v1762_v60  ;;  %v2019_v60 = vld [vmem:[#allocation10 + $0x68] sm:$0xff] }
 0x2f8   :  { %v11462_v2 = vpop.eup %11461 }
 0x2f9   :  { %v11464_v52 = vpop.eup %11463  ;;  %v1766_v46 = vmul.f32 %v11462_v2, %v11460_v29  ;;  %v2008_v2 = vld [vmem:[#allocation10 + $0x10] sm:$0xff] }
 0x2fa   :  { %v1765_v53 = vmul.f32 %v11464_v52, %v12736_v23  ;;  %v2006_v23 = vld [vmem:[#allocation10] sm:$0xff]  ;;  %v2012_v52 = vld [vmem:[#allocation10 + $0x30] sm:$0xff]  ;;  %v11466_v26 = vpop.eup %11465 }
 0x2fc   :  { %v12905_v62 = vadd.f32 %v1766_v46, %v1765_v53  ;;  %v1670_v33 = vpop.f32.mrb[28].mxu0  ;;  %v1741_v24 = vpop.f32.mrb[28].mxu1  ;;  %v2015_v46 = vld [vmem:[#allocation10 + $0x48] sm:$0xff]  ;;  %v2017_v53 = vld [vmem:[#allocation10 + $0x58] sm:$0xff] }
 0x2fd   :  { %v11193_v0 = vadd.f32 %v1670_v33, %v12730_v63  ;;  %v1672_v15 = vpop.f32.mrb[29].mxu0  ;;  %v1743_v7 = vpop.f32.mrb[29].mxu1  ;;  %v2021_v33 = vld [vmem:[#allocation10 + $0x78] sm:$0xff]  ;;  %v12911_v63 = vpack.c.bf16 %v2010_v47, %v2006_v23 }
 0x2fe   :  { %15008 = vst [vmem:[#allocation25_spill] sm:$0xff] %v12905_v62  ;;  %11467 = vtanh.f32 %v12905_v62  ;;  %v11194_v35 = vadd.f32 %v1672_v15, %v12734_v17  ;;  %v11210_v29 = vadd.f32 %v1743_v7, %v12744_v58  ;;  %v12913_v15 = vpack.c.bf16 %v2012_v52, %v2008_v2  ;;  %v2016_v17 = vld [vmem:[#allocation10 + $0x50] sm:$0xff]  ;;  %v2022_v2 = vld [vmem:[#allocation10 + $0x80] sm:$0xff] }
 0x2ff   :  { %v8519_v49 = vmul.f32 -1.442695, %v11193_v0  ;;  %15009 = vst [vmem:[#allocation26_spill] sm:$0xff] %v12911_v63  ;;  %v2014_v0 = vld [vmem:[#allocation10 + $0x40] sm:$0xff]  ;;  %v11209_v7 = vadd.f32 %v1741_v24, %v12750_v5  ;;  %v12920_v58 = vpack.c.bf16 %v2021_v33, %v2017_v53  ;;  %v2020_v62 = vld [vmem:[#allocation10 + $0x70] sm:$0xff] }
 0x300   :  { %v8520_v14 = vmul.f32 -1.442695, %v11194_v35  ;;  %v8521_v30 = vmul.f32 -1.442695, %v11210_v29  ;;  %15010 = vst [vmem:[#allocation27_spill] sm:$0xff] %v12913_v15  ;;  %v2018_v35 = vld [vmem:[#allocation10 + $0x60] sm:$0xff]  ;;  %v12928_v24 = vpack.c.bf16 %v2020_v62, %v2016_v17 }
 0x301   :  { %11469 = vpow2.f32 %v8519_v49  ;;  %15013 = vst [vmem:[#allocation30_spill] sm:$0xff] %v12920_v58  ;;  %v2029_v29 = vld [vmem:[#allocation10 + $0xb8] sm:$0xff]  ;;  %v2026_v52 = vld [vmem:[#allocation10 + $0xa0] sm:$0xff]  ;;  %v2028_v33 = vld [vmem:[#allocation10 + $0xb0] sm:$0xff] }
 0x302   :  { %11471 = vpow2.f32 %v8520_v14  ;;  %v12918_v14 = vpack.c.bf16 %v2019_v60, %v2015_v46  ;;  %15015 = vst [vmem:[#allocation32_spill] sm:$0xff] %v12928_v24  ;;  %v12932_v60 = vpack.c.bf16 %v2027_v12, %v2023_v21  ;;  %v12934_v53 = vpack.c.bf16 %v2029_v29, %v2025_v42  ;;  %v2037_v17 = vld [vmem:[#allocation10 + $0xf8] sm:$0xff]  ;;  %v2030_v21 = vld [vmem:[#allocation10 + $0xc0] sm:$0xff] }
 0x303   :  { %11473 = vpow2.f32 %v8521_v30  ;;  %v2024_v30 = vld [vmem:[#allocation10 + $0x90] sm:$0xff]  ;;  %v12940_v12 = vpack.c.bf16 %v2026_v52, %v2022_v2  ;;  %v2034_v62 = vld [vmem:[#allocation10 + $0xe0] sm:$0xff] }
 0x304   :  { %15012 = vst [vmem:[#allocation29_spill] sm:$0xff] %v12918_v14  ;;  %11475 = vtanh.f32 %v11209_v7  ;;  %15016 = vst [vmem:[#allocation33_spill] sm:$0xff] %v12932_v60  ;;  %v12942_v42 = vpack.c.bf16 %v2028_v33, %v2024_v30  ;;  %v12952_v2 = vpack.c.bf16 %v2034_v62, %v2030_v21  ;;  %v2038_v30 = vld [vmem:[#allocation10 + $0x100] sm:$0xff]  ;;  %v2053_v21 = vld [vmem:[#allocation10 + $0x178] sm:$0xff] }
 0x305   :  { %15017 = vst [vmem:[#allocation42_spill] sm:$0xff] %v12934_v53  ;;  %15018 = vst [vmem:[#allocation43_spill] sm:$0xff] %v12940_v12  ;;  %v2042_v33 = vld [vmem:[#allocation10 + $0x120] sm:$0xff] }
 0x306   :  { %15019 = vst [vmem:[#allocation44_spill] sm:$0xff] %v12942_v42  ;;  %15022 = vst [vmem:[#allocation47_spill] sm:$0xff] %v12952_v2 }
 0x308   :  { %v11468_v50 = vpop.eup %11467 }
 0x309   :  { %v12915_v49 = vmul.f32 %v11468_v50, %v11466_v26  ;;  %v12926_v50 = vpack.c.bf16 %v2018_v35, %v2014_v0  ;;  %v2035_v0 = vld [vmem:[#allocation10 + $0xe8] sm:$0xff]  ;;  %v2033_v35 = vld [vmem:[#allocation10 + $0xd8] sm:$0xff] }
 0x30a   :  { %v12948_v29 = vpack.c.bf16 %v2037_v17, %v2033_v35  ;;  %v2040_v35 = vld [vmem:[#allocation10 + $0x110] sm:$0xff] }
 0x30b   :  { %15011 = vst [vmem:[#allocation28_spill] sm:$0xff] %v12915_v49  ;;  %v11470_v23 = vpop.eup %11469  ;;  %1929 = vmatmul.mubr.f32.vlgmr.msra.gmra.mrb[4].mxu0 %v12915_v49  ;;  %2000 = vmatmul.mubr.f32.vlgmr.msra.gmra.mrb[4].mxu1 %v12915_v49  ;;  %15014 = vst [vmem:[#allocation31_spill] sm:$0xff] %v12926_v50  ;;  %v2043_v49 = vld [vmem:[#allocation10 + $0x128] sm:$0xff]  ;;  %v2044_v17 = vld [vmem:[#allocation10 + $0x130] sm:$0xff] }
 0x30c   :  { %v11472_v47 = vpop.eup %11471  ;;  %v1773_v26 = vadd.f32 1.0, %v11470_v23  ;;  %9124 = vmatpush1.bf16.msra.mxu0 %v12911_v63  ;;  %9156 = vmatpush1.bf16.msra.mxu1 %v12913_v15  ;;  %v2031_v23 = vld [vmem:[#allocation10 + $0xc8] sm:$0xff]  ;;  %15021 = vst [vmem:[#allocation46_spill] sm:$0xff] %v12948_v29  ;;  %v2052_v15 = vld [vmem:[#allocation10 + $0x170] sm:$0xff] }
 0x30d   :  { %v1779_v46 = vadd.f32 1.0, %v11472_v47  ;;  %9126 = vmatprep.subr.bf16.mxu0 %v12918_v14  ;;  %9158 = vmatprep.subr.bf16.mxu1 %v12920_v58  ;;  %v12946_v7 = vpack.c.bf16 %v2035_v0, %v2031_v23  ;;  %v2032_v47 = vld [vmem:[#allocation10 + $0xd0] sm:$0xff] }
 0x30e   :  { %11477 = vrcp.f32 %v1773_v26  ;;  %2138 = vmatprep.mubr.f32.mxu0 %v14988_v20  ;;  %2209 = vmatprep.mubr.f32.mxu1 %v14988_v20  ;;  %v2036_v26 = vld [vmem:[#allocation10 + $0xf0] sm:$0xff] }
 0x30f   :  { %11479 = vrcp.f32 %v1779_v46  ;;  %15020 = vst [vmem:[#allocation45_spill] sm:$0xff] %v12946_v7  ;;  %v2039_v46 = vld [vmem:[#allocation10 + $0x108] sm:$0xff]  ;;  %v12954_v52 = vpack.c.bf16 %v2036_v26, %v2032_v47  ;;  %v12964_v26 = vpack.c.bf16 %v2042_v33, %v2038_v30 }
 0x310   :  { %9128 = vmatpush1.bf16.msra.mxu0 %v12926_v50  ;;  %9160 = vmatpush1.bf16.msra.mxu1 %v12928_v24  ;;  %v2041_v50 = vld [vmem:[#allocation10 + $0x118] sm:$0xff]  ;;  %v12958_v23 = vpack.c.bf16 %v2043_v49, %v2039_v46  ;;  %v2046_v49 = vld [vmem:[#allocation10 + $0x140] sm:$0xff]  ;;  %v2059_v33 = vld [vmem:[#allocation10 + $0x1a8] sm:$0xff] }
 0x311   :  { %9130 = vmatprep.subr.bf16.mxu0 %v12932_v60  ;;  %9162 = vmatprep.subr.bf16.mxu1 %v12934_v53  ;;  %v2045_v24 = vld [vmem:[#allocation10 + $0x138] sm:$0xff]  ;;  %15023 = vst [vmem:[#allocation48_spill] sm:$0xff] %v12954_v52  ;;  %v2047_v53 = vld [vmem:[#allocation10 + $0x148] sm:$0xff] }
 0x312   :  { %v12960_v0 = vpack.c.bf16 %v2045_v24, %v2041_v50  ;;  %v2051_v60 = vld [vmem:[#allocation10 + $0x168] sm:$0xff]  ;;  %v2050_v50 = vld [vmem:[#allocation10 + $0x160] sm:$0xff] }
 0x313   :  { %v12970_v58 = vpack.c.bf16 %v2051_v60, %v2047_v53  ;;  %v2054_v53 = vld [vmem:[#allocation10 + $0x180] sm:$0xff] }
 0x314   :  { %9132 = vmatpush1.bf16.msra.mxu0 %v12940_v12  ;;  %9164 = vmatpush1.bf16.msra.mxu1 %v12942_v42  ;;  %v11474_v12 = vpop.eup %11473  ;;  %v2049_v42 = vld [vmem:[#allocation10 + $0x158] sm:$0xff] }
 0x315   :  { %9134 = vmatprep.subr.bf16.mxu0 %v12946_v7  ;;  %9166 = vmatprep.subr.bf16.mxu1 %v12948_v29  ;;  %v11476_v62 = vpop.eup %11475  ;;  %v12966_v29 = vpack.c.bf16 %v2044_v17, %v2040_v35  ;;  %v1786_v7 = vadd.f32 1.0, %v11474_v12  ;;  %v12972_v14 = vpack.c.bf16 %v2053_v21, %v2049_v42  ;;  %v2057_v35 = vld [vmem:[#allocation10 + $0x198] sm:$0xff]  ;;  %v12979_v12 = vpack.c.bf16 %v2050_v50, %v2046_v49  ;;  %v2058_v42 = vld [vmem:[#allocation10 + $0x1a0] sm:$0xff]  ;;  %v2067_v49 = vld [vmem:[#allocation10 + $0x1e8] sm:$0xff] }
 0x316   :  { %v2061_v17 = vld [vmem:[#allocation10 + $0x1b8] sm:$0xff] }
 0x317   :  { %11481 = vrcp.f32 %v1786_v7  ;;  %v12987_v21 = vpack.c.bf16 %v2061_v17, %v2057_v35  ;;  %v2065_v50 = vld [vmem:[#allocation10 + $0x1d8] sm:$0xff]  ;;  %v12992_v7 = vpack.c.bf16 %v2058_v42, %v2054_v53  ;;  %v2064_v35 = vld [vmem:[#allocation10 + $0x1d0] sm:$0xff] }
 0x318   :  { %v11478_v47 = vpop.eup %11477  ;;  %9136 = vmatpush1.bf16.msra.mxu0 %v12952_v2  ;;  %9168 = vmatpush1.bf16.msra.mxu1 %v12954_v52  ;;  %v2048_v2 = vld [vmem:[#allocation10 + $0x150] sm:$0xff]  ;;  %v2055_v52 = vld [vmem:[#allocation10 + $0x188] sm:$0xff] }
 0x319   :  { %v11480_v24 = vpop.eup %11479  ;;  %v1790_v46 = vmul.f32 %v11478_v47, %v11476_v62  ;;  %9138 = vmatprep.subr.bf16.mxu0 %v12958_v23  ;;  %9170 = vmatprep.subr.bf16.mxu1 %v12960_v0  ;;  %v12981_v60 = vpack.c.bf16 %v2052_v15, %v2048_v2  ;;  %v2056_v62 = vld [vmem:[#allocation10 + $0x190] sm:$0xff]  ;;  %v2069_v15 = vld [vmem:[#allocation10 + $0x1f8] sm:$0xff] }
 0x31a   :  { %v1789_v30 = vmul.f32 %v11480_v24, %v12775_v25  ;;  %v12985_v25 = vpack.c.bf16 %v2059_v33, %v2055_v52  ;;  %v2060_v47 = vld [vmem:[#allocation10 + $0x1b0] sm:$0xff]  ;;  %v2063_v24 = vld [vmem:[#allocation10 + $0x1c8] sm:$0xff]  ;;  %v2062_v52 = vld [vmem:[#allocation10 + $0x1c0] sm:$0xff] }
 0x31b   :  { %v12994_v2 = vpack.c.bf16 %v2060_v47, %v2056_v62  ;;  %v2066_v33 = vld [vmem:[#allocation10 + $0x1e0] sm:$0xff]  ;;  %v2068_v17 = vld [vmem:[#allocation10 + $0x1f0] sm:$0xff] }
 0x31c   :  { %v12975_v63 = vadd.f32 %v1790_v46, %v1789_v30  ;;  %9140 = vmatpush1.bf16.msra.mxu0 %v12964_v26  ;;  %9172 = vmatpush1.bf16.msra.mxu1 %v12966_v29  ;;  %v12998_v46 = vpack.c.bf16 %v2067_v49, %v2063_v24  ;;  %v13000_v30 = vpack.c.bf16 %v2069_v15, %v2065_v50 }
 0x31d   :  { %9142 = vmatprep.subr.bf16.mxu0 %v12970_v58  ;;  %9174 = vmatprep.subr.bf16.mxu1 %v12972_v14  ;;  %v13004_v53 = vpack.c.bf16 %v2066_v33, %v2062_v52  ;;  %v13006_v42 = vpack.c.bf16 %v2068_v17, %v2064_v35  ;;  %v15031_v52 = vld [vmem:[#allocation40_spill] sm:$0xff] }
 0x31e   :  { %11483 = vtanh.f32 %v12975_v63 }
 0x320   :  { %9144 = vmatpush1.bf16.msra.mxu0 %v12979_v12  ;;  %9176 = vmatpush1.bf16.msra.mxu1 %v12981_v60 }
 0x321   :  { %9146 = vmatprep.subr.bf16.mxu0 %v12985_v25  ;;  %9178 = vmatprep.subr.bf16.mxu1 %v12987_v21  ;;  %v11482_v62 = vpop.eup %11481 }
 0x324   :  { %9148 = vmatpush1.bf16.msra.mxu0 %v12992_v7  ;;  %9180 = vmatpush1.bf16.msra.mxu1 %v12994_v2 }
 0x325   :  { %9150 = vmatprep.subr.bf16.mxu0 %v12998_v46  ;;  %9182 = vmatprep.subr.bf16.mxu1 %v13000_v30 }
 0x328   :  { %v11484_v47 = vpop.eup %11483  ;;  %9152 = vmatpush1.bf16.msra.mxu0 %v13004_v53  ;;  %9184 = vmatpush1.bf16.msra.mxu1 %v13006_v42 }
 0x329   :  { %v13012_v24 = vmul.f32 %v11484_v47, %v11482_v62  ;;  %9186 = vmatprep.subr.bf16.mxu0 %v12798_v28  ;;  %9218 = vmatprep.subr.bf16.mxu1 %v12800_v16 }
 0x32b   :  { %15024 = vst [vmem:[#allocation49_spill] sm:$0xff] %v13012_v24  ;;  %2139 = vmatmul.mubr.f32.vlgmr.msra.gmra.mrb[26].mxu0 %v13012_v24  ;;  %2210 = vmatmul.mubr.f32.vlgmr.msra.gmra.mrb[26].mxu1 %v13012_v24 }
 0x32c   :  { %9188 = vmatpush1.bf16.msra.mxu0 %v12802_v13  ;;  %9220 = vmatpush1.bf16.msra.mxu1 %v12805_v45 }
 0x32d   :  { %9190 = vmatprep.subr.bf16.mxu0 %v12810_v8  ;;  %9222 = vmatprep.subr.bf16.mxu1 %v12812_v40  ;;  %v15025_v40 = vld [vmem:[#allocation35_spill] sm:$0xff] }
 0x32e   :  { %2398 = vmatprep.mubr.f32.mxu0 %v14988_v20  ;;  %2469 = vmatprep.mubr.f32.mxu1 %v14988_v20 }
 0x330   :  { %9192 = vmatpush1.bf16.msra.mxu0 %v12814_v44  ;;  %9224 = vmatpush1.bf16.msra.mxu1 %v12817_v31 }
 0x331   :  { %9194 = vmatprep.subr.bf16.mxu0 %v12822_v57  ;;  %9226 = vmatprep.subr.bf16.mxu1 %v12824_v59  ;;  %v15026_v59 = vld [vmem:[#allocation36_spill] sm:$0xff] }
 0x334   :  { %9196 = vmatpush1.bf16.msra.mxu0 %v12826_v10  ;;  %9228 = vmatpush1.bf16.msra.mxu1 %v12829_v6 }
 0x335   :  { %9198 = vmatprep.subr.bf16.mxu0 %v12834_v54  ;;  %9230 = vmatprep.subr.bf16.mxu1 %v12836_v1  ;;  %v15027_v54 = vld [vmem:[#allocation37_spill] sm:$0xff] }
 0x338   :  { %9200 = vmatpush1.bf16.msra.mxu0 %v12838_v11  ;;  %9232 = vmatpush1.bf16.msra.mxu1 %v12841_v4 }
 0x339   :  { %9202 = vmatprep.subr.bf16.mxu0 %v12846_v55  ;;  %9234 = vmatprep.subr.bf16.mxu1 %v12848_v34 }
 0x33c   :  { %9204 = vmatpush1.bf16.msra.mxu0 %v12850_v48  ;;  %9236 = vmatpush1.bf16.msra.mxu1 %v12853_v37 }
 0x33d   :  { %9206 = vmatprep.subr.bf16.mxu0 %v12858_v56  ;;  %9238 = vmatprep.subr.bf16.mxu1 %v12860_v51 }
 0x340   :  { %9208 = vmatpush1.bf16.msra.mxu0 %v12862_v36  ;;  %9240 = vmatpush1.bf16.msra.mxu1 %v12865_v38 }
 0x341   :  { %9210 = vmatprep.subr.bf16.mxu0 %v12870_v22  ;;  %9242 = vmatprep.subr.bf16.mxu1 %v12872_v27  ;;  %v15028_v22 = vld [vmem:[#allocation25_spill] sm:$0xff] }
 0x344   :  { %9212 = vmatpush1.bf16.msra.mxu0 %v12874_v32  ;;  %9244 = vmatpush1.bf16.msra.mxu1 %v12877_v3 }
 0x345   :  { %9214 = vmatprep.subr.bf16.mxu0 %v12882_v19  ;;  %9246 = vmatprep.subr.bf16.mxu1 %v12884_v41  ;;  %v15029_v41 = vld [vmem:[#allocation38_spill] sm:$0xff] }
 0x348   :  { %9216 = vmatpush1.bf16.msra.mxu0 %v12886_v9  ;;  %9248 = vmatpush1.bf16.msra.mxu1 %v12889_v18 }
 0x349   :  { %9250 = vmatprep.subr.bf16.mxu0 %v12894_v61  ;;  %9282 = vmatprep.subr.bf16.mxu1 %v12896_v43  ;;  %v15030_v43 = vld [vmem:[#allocation39_spill] sm:$0xff] }
 0x3de   :  { %v1930_v28 = vpop.f32.mrb[4].mxu0  ;;  %v2001_v16 = vpop.f32.mrb[4].mxu1 }
 0x3df   :  { %v11153_v13 = vadd.f32 %v1930_v28, %v12706_v39  ;;  %v1932_v45 = vpop.f32.mrb[5].mxu0  ;;  %v2003_v8 = vpop.f32.mrb[5].mxu1  ;;  %v11169_v1 = vadd.f32 %v2001_v16, %v15027_v54 }
 0x3e0   :  { %v11154_v44 = vadd.f32 %v1932_v45, %v15025_v40  ;;  %v11170_v10 = vadd.f32 %v2003_v8, %v15026_v59  ;;  %v15033_v8 = vld [vmem:[#allocation26_spill] sm:$0xff] }
 0x3e1   :  { %v8522_v31 = vmul.f32 -1.442695, %v11153_v13 }
 0x3e2   :  { %v8523_v57 = vmul.f32 -1.442695, %v11154_v44  ;;  %v8524_v6 = vmul.f32 -1.442695, %v11170_v10  ;;  %v15034_v44 = vld [vmem:[#allocation27_spill] sm:$0xff]  ;;  %v15036_v10 = vld [vmem:[#allocation30_spill] sm:$0xff] }
 0x3e3   :  { %11485 = vpow2.f32 %v8522_v31 }
 0x3e4   :  { %11487 = vpow2.f32 %v8523_v57  ;;  %v15035_v57 = vld [vmem:[#allocation29_spill] sm:$0xff] }
 0x3e5   :  { %11489 = vpow2.f32 %v8524_v6  ;;  %v15037_v6 = vld [vmem:[#allocation31_spill] sm:$0xff] }
 0x3e6   :  { %11491 = vtanh.f32 %v11169_v1  ;;  %v15038_v1 = vld [vmem:[#allocation32_spill] sm:$0xff] }
 0x3ed   :  { %v11486_v11 = vpop.eup %11485 }
 0x3ee   :  { %v11488_v4 = vpop.eup %11487  ;;  %v2219_v55 = vadd.f32 1.0, %v11486_v11  ;;  %v15039_v11 = vld [vmem:[#allocation33_spill] sm:$0xff] }
 0x3ef   :  { %v2225_v34 = vadd.f32 1.0, %v11488_v4  ;;  %v11490_v48 = vpop.eup %11489  ;;  %v15040_v4 = vld [vmem:[#allocation42_spill] sm:$0xff] }
 0x3f0   :  { %11493 = vrcp.f32 %v2219_v55  ;;  %v11492_v37 = vpop.eup %11491  ;;  %v2232_v38 = vadd.f32 1.0, %v11490_v48  ;;  %v15041_v55 = vld [vmem:[#allocation43_spill] sm:$0xff]  ;;  %v15043_v48 = vld [vmem:[#allocation45_spill] sm:$0xff] }
 0x3f1   :  { %11495 = vrcp.f32 %v2225_v34  ;;  %v15042_v34 = vld [vmem:[#allocation44_spill] sm:$0xff] }
 0x3f2   :  { %11497 = vrcp.f32 %v2232_v38  ;;  %v15045_v38 = vld [vmem:[#allocation47_spill] sm:$0xff] }
 0x3fa   :  { %v11494_v56 = vpop.eup %11493 }
 0x3fb   :  { %v11496_v51 = vpop.eup %11495  ;;  %v2236_v36 = vmul.f32 %v11494_v56, %v11492_v37  ;;  %v15044_v37 = vld [vmem:[#allocation46_spill] sm:$0xff] }
 0x3fc   :  { %v2235_v27 = vmul.f32 %v11496_v51, %v15028_v22  ;;  %v11498_v35 = vpop.eup %11497  ;;  %v15046_v22 = vld [vmem:[#allocation48_spill] sm:$0xff] }
 0x3fe   :  { %v13057_v32 = vadd.f32 %v2236_v36, %v2235_v27  ;;  %v2140_v3 = vpop.f32.mrb[26].mxu0  ;;  %v2211_v19 = vpop.f32.mrb[26].mxu1 }
 0x3ff   :  { %v11191_v9 = vadd.f32 %v2140_v3, %v15029_v41  ;;  %v2142_v18 = vpop.f32.mrb[27].mxu0  ;;  %v2213_v61 = vpop.f32.mrb[27].mxu1  ;;  %v11207_v28 = vadd.f32 %v2211_v19, %v12750_v5 }
 0x400   :  { %11499 = vtanh.f32 %v13057_v32  ;;  %v11192_v49 = vadd.f32 %v2142_v18, %v15030_v43  ;;  %v11208_v33 = vadd.f32 %v2213_v61, %v15031_v52  ;;  %v2747_v61 = vld [vmem:[#allocation9 + $0x58] sm:$0xff] }
 0x401   :  { %v8525_v50 = vmul.f32 -1.442695, %v11191_v9 }
 0x402   :  { %v8526_v15 = vmul.f32 -1.442695, %v11192_v49  ;;  %v8527_v62 = vmul.f32 -1.442695, %v11208_v33  ;;  %v2748_v33 = vld [vmem:[#allocation9 + $0x60] sm:$0xff] }
 0x403   :  { %11501 = vpow2.f32 %v8525_v50  ;;  %v2751_v50 = vld [vmem:[#allocation9 + $0x78] sm:$0xff] }
 0x404   :  { %11503 = vpow2.f32 %v8526_v15  ;;  %v2744_v15 = vld [vmem:[#allocation9 + $0x40] sm:$0xff] }
 0x405   :  { %11505 = vpow2.f32 %v8527_v62  ;;  %v2746_v62 = vld [vmem:[#allocation9 + $0x50] sm:$0xff] }
 0x406   :  { %11507 = vtanh.f32 %v11207_v28  ;;  %v2750_v28 = vld [vmem:[#allocation9 + $0x70] sm:$0xff] }
 0x40a   :  { %v11500_v17 = vpop.eup %11499 }
 0x40b   :  { %v13063_v47 = vmul.f32 %v11500_v17, %v11498_v35  ;;  %v13124_v35 = vpack.c.bf16 %v2751_v50, %v2747_v61  ;;  %v13126_v17 = vpack.c.bf16 %v2748_v33, %v2744_v15  ;;  %v2777_v61 = vld [vmem:[#allocation9 + $0x148] sm:$0xff]  ;;  %v2779_v15 = vld [vmem:[#allocation9 + $0x158] sm:$0xff] }
 0x40c   :  { %v2781_v50 = vld [vmem:[#allocation9 + $0x168] sm:$0xff] }
 0x40d   :  { %15032 = vst [vmem:[#allocation25_spill] sm:$0xff] %v13063_v47  ;;  %v11502_v16 = vpop.eup %11501  ;;  %2399 = vmatmul.mubr.f32.vlgmr.msra.gmra.mrb[6].mxu0 %v13063_v47  ;;  %2470 = vmatmul.mubr.f32.vlgmr.msra.gmra.mrb[6].mxu1 %v13063_v47  ;;  %v13170_v33 = vpack.c.bf16 %v2781_v50, %v2777_v61  ;;  %v2796_v61 = vld [vmem:[#allocation9 + $0x1e0] sm:$0xff] }
 0x40e   :  { %v11504_v13 = vpop.eup %11503  ;;  %v2243_v45 = vadd.f32 1.0, %v11502_v16  ;;  %9252 = vmatpush1.bf16.msra.mxu0 %v15033_v8  ;;  %9284 = vmatpush1.bf16.msra.mxu1 %v15034_v44  ;;  %v13129_v16 = vpack.c.bf16 %v2750_v28, %v2746_v62  ;;  %v2755_v8 = vld [vmem:[#allocation9 + $0x98] sm:$0xff]  ;;  %v2776_v28 = vld [vmem:[#allocation9 + $0x140] sm:$0xff] }
 0x40f   :  { %v2249_v31 = vadd.f32 1.0, %v11504_v13  ;;  %9254 = vmatprep.subr.bf16.mxu0 %v15035_v57  ;;  %9286 = vmatprep.subr.bf16.mxu1 %v15036_v10  ;;  %v11506_v56 = vpop.eup %11505  ;;  %v2753_v13 = vld [vmem:[#allocation9 + $0x88] sm:$0xff]  ;;  %v2752_v57 = vld [vmem:[#allocation9 + $0x80] sm:$0xff]  ;;  %v2783_v62 = vld [vmem:[#allocation9 + $0x178] sm:$0xff] }
 0x410   :  { %11509 = vrcp.f32 %v2243_v45  ;;  %2608 = vmatprep.mubr.f32.mxu0 %v14988_v20  ;;  %2679 = vmatprep.mubr.f32.mxu1 %v14988_v20  ;;  %v11508_v51 = vpop.eup %11507  ;;  %v2256_v19 = vadd.f32 1.0, %v11506_v56  ;;  %v2757_v45 = vld [vmem:[#allocation9 + $0xa8] sm:$0xff]  ;;  %v2756_v10 = vld [vmem:[#allocation9 + $0xa0] sm:$0xff] }
 0x411   :  { %11511 = vrcp.f32 %v2249_v31  ;;  %v13134_v44 = vpack.c.bf16 %v2757_v45, %v2753_v13  ;;  %v2759_v31 = vld [vmem:[#allocation9 + $0xb8] sm:$0xff]  ;;  %v2780_v13 = vld [vmem:[#allocation9 + $0x160] sm:$0xff]  ;;  %v13172_v45 = vpack.c.bf16 %v2783_v62, %v2779_v15  ;;  %v2794_v62 = vld [vmem:[#allocation9 + $0x1d0] sm:$0xff] }
 0x412   :  { %9256 = vmatpush1.bf16.msra.mxu0 %v15037_v6  ;;  %9288 = vmatpush1.bf16.msra.mxu1 %v15038_v1  ;;  %11513 = vrcp.f32 %v2256_v19  ;;  %v13136_v6 = vpack.c.bf16 %v2759_v31, %v2755_v8  ;;  %v13138_v1 = vpack.c.bf16 %v2756_v10, %v2752_v57  ;;  %v2766_v19 = vld [vmem:[#allocation9 + $0xf0] sm:$0xff]  ;;  %v13174_v8 = vpack.c.bf16 %v2780_v13, %v2776_v28 }
 0x413   :  { %9258 = vmatprep.subr.bf16.mxu0 %v15039_v11  ;;  %9290 = vmatprep.subr.bf16.mxu1 %v15040_v4  ;;  %v2754_v11 = vld [vmem:[#allocation9 + $0x90] sm:$0xff] }
 0x414   :  { %v2758_v4 = vld [vmem:[#allocation9 + $0xb0] sm:$0xff] }
 0x415   :  { %v2778_v31 = vld [vmem:[#allocation9 + $0x150] sm:$0xff] }
 0x416   :  { %9260 = vmatpush1.bf16.msra.mxu0 %v15041_v55  ;;  %9292 = vmatpush1.bf16.msra.mxu1 %v15042_v34  ;;  %v13141_v55 = vpack.c.bf16 %v2758_v4, %v2754_v11  ;;  %v2761_v34 = vld [vmem:[#allocation9 + $0xc8] sm:$0xff]  ;;  %v2782_v57 = vld [vmem:[#allocation9 + $0x170] sm:$0xff] }
 0x417   :  { %9262 = vmatprep.subr.bf16.mxu0 %v15043_v48  ;;  %9294 = vmatprep.subr.bf16.mxu1 %v15044_v37  ;;  %v2765_v48 = vld [vmem:[#allocation9 + $0xe8] sm:$0xff]  ;;  %v2763_v37 = vld [vmem:[#allocation9 + $0xd8] sm:$0xff]  ;;  %v13177_v10 = vpack.c.bf16 %v2782_v57, %v2778_v31  ;;  %v2798_v28 = vld [vmem:[#allocation9 + $0x1f0] sm:$0xff] }
 0x418   :  { %v13146_v56 = vpack.c.bf16 %v2765_v48, %v2761_v34  ;;  %v2785_v11 = vld [vmem:[#allocation9 + $0x188] sm:$0xff]  ;;  %v2787_v34 = vld [vmem:[#allocation9 + $0x198] sm:$0xff]  ;;  %v13201_v13 = vpack.c.bf16 %v2798_v28, %v2794_v62 }
 0x419   :  { %v2789_v4 = vld [vmem:[#allocation9 + $0x1a8] sm:$0xff] }
 0x41a   :  { %v11510_v36 = vpop.eup %11509  ;;  %9264 = vmatpush1.bf16.msra.mxu0 %v15045_v38  ;;  %9296 = vmatpush1.bf16.msra.mxu1 %v15046_v22  ;;  %v2764_v38 = vld [vmem:[#allocation9 + $0xe0] sm:$0xff]  ;;  %v13182_v48 = vpack.c.bf16 %v2789_v4, %v2785_v11  ;;  %v2947_v31 = vld [vmem:[#allocation10 + $0x8] sm:$0xff]  ;;  %v2949_v11 = vld [vmem:[#allocation10 + $0x18] sm:$0xff] }
 0x41b   :  { %v11512_v27 = vpop.eup %11511  ;;  %v2260_v3 = vmul.f32 %v11510_v36, %v11508_v51  ;;  %9266 = vmatprep.subr.bf16.mxu0 %v12958_v23  ;;  %9298 = vmatprep.subr.bf16.mxu1 %v12960_v0  ;;  %v2741_v23 = vld [vmem:[#allocation9 + $0x28] sm:$0xff]  ;;  %v2739_v0 = vld [vmem:[#allocation9 + $0x18] sm:$0xff]  ;;  %v2760_v36 = vld [vmem:[#allocation9 + $0xc0] sm:$0xff] }
 0x41c   :  { %v2259_v9 = vmul.f32 %v11512_v27, %v12975_v63  ;;  %v11514_v63 = vpop.eup %11513  ;;  %v2767_v51 = vld [vmem:[#allocation9 + $0xf8] sm:$0xff]  ;;  %v13150_v27 = vpack.c.bf16 %v2764_v38, %v2760_v36  ;;  %v2788_v36 = vld [vmem:[#allocation9 + $0x1a0] sm:$0xff]  ;;  %v2951_v57 = vld [vmem:[#allocation10 + $0x28] sm:$0xff] }
 0x41d   :  { %v13148_v22 = vpack.c.bf16 %v2767_v51, %v2763_v37  ;;  %v2791_v37 = vld [vmem:[#allocation9 + $0x1b8] sm:$0xff]  ;;  %v2784_v51 = vld [vmem:[#allocation9 + $0x180] sm:$0xff]  ;;  %v13206_v4 = vpack.c.bf16 %v2951_v57, %v2947_v31 }
 0x41e   :  { %v13087_v18 = vadd.f32 %v2260_v3, %v2259_v9  ;;  %9268 = vmatpush1.bf16.msra.mxu0 %v12964_v26  ;;  %9300 = vmatpush1.bf16.msra.mxu1 %v12966_v29  ;;  %v2737_v29 = vld [vmem:[#allocation9 + $0x8] sm:$0xff]  ;;  %v2762_v3 = vld [vmem:[#allocation9 + $0xd0] sm:$0xff]  ;;  %v13184_v38 = vpack.c.bf16 %v2791_v37, %v2787_v34  ;;  %v2953_v34 = vld [vmem:[#allocation10 + $0x38] sm:$0xff] }
 0x41f   :  { %9270 = vmatprep.subr.bf16.mxu0 %v12970_v58  ;;  %9302 = vmatprep.subr.bf16.mxu1 %v12972_v14  ;;  %v13110_v26 = vpack.c.bf16 %v2741_v23, %v2737_v29  ;;  %v13153_v9 = vpack.c.bf16 %v2766_v19, %v2762_v3  ;;  %v2771_v29 = vld [vmem:[#allocation9 + $0x118] sm:$0xff]  ;;  %v13186_v3 = vpack.c.bf16 %v2788_v36, %v2784_v51  ;;  %v2786_v19 = vld [vmem:[#allocation9 + $0x190] sm:$0xff] }
 0x420   :  { %11515 = vtanh.f32 %v13087_v18  ;;  %v13208_v37 = vpack.c.bf16 %v2953_v34, %v2949_v11 }
 0x422   :  { %9272 = vmatpush1.bf16.msra.mxu0 %v12979_v12  ;;  %9304 = vmatpush1.bf16.msra.mxu1 %v12981_v60  ;;  %v2743_v12 = vld [vmem:[#allocation9 + $0x38] sm:$0xff]  ;;  %v2736_v60 = vld [vmem:[#allocation9] sm:$0xff] }
 0x423   :  { %9274 = vmatprep.subr.bf16.mxu0 %v12985_v25  ;;  %9306 = vmatprep.subr.bf16.mxu1 %v12987_v21  ;;  %v2740_v25 = vld [vmem:[#allocation9 + $0x20] sm:$0xff]  ;;  %v13112_v21 = vpack.c.bf16 %v2743_v12, %v2739_v0  ;;  %v2775_v0 = vld [vmem:[#allocation9 + $0x138] sm:$0xff] }
 0x424   :  { %v2768_v12 = vld [vmem:[#allocation9 + $0x100] sm:$0xff] }
 0x426   :  { %9276 = vmatpush1.bf16.msra.mxu0 %v12992_v7  ;;  %9308 = vmatpush1.bf16.msra.mxu1 %v12994_v2  ;;  %v13114_v7 = vpack.c.bf16 %v2740_v25, %v2736_v60  ;;  %v2738_v2 = vld [vmem:[#allocation9 + $0x10] sm:$0xff]  ;;  %v2772_v60 = vld [vmem:[#allocation9 + $0x120] sm:$0xff]  ;;  %v13160_v25 = vpack.c.bf16 %v2775_v0, %v2771_v29  ;;  %v2793_v29 = vld [vmem:[#allocation9 + $0x1c8] sm:$0xff] }
 0x427   :  { %9278 = vmatprep.subr.bf16.mxu0 %v12998_v46  ;;  %9310 = vmatprep.subr.bf16.mxu1 %v13000_v30  ;;  %v2742_v46 = vld [vmem:[#allocation9 + $0x30] sm:$0xff]  ;;  %v2797_v0 = vld [vmem:[#allocation9 + $0x1e8] sm:$0xff] }
 0x428   :  { %v13117_v30 = vpack.c.bf16 %v2742_v46, %v2738_v2  ;;  %v13162_v2 = vpack.c.bf16 %v2772_v60, %v2768_v12  ;;  %v2770_v46 = vld [vmem:[#allocation9 + $0x110] sm:$0xff]  ;;  %v2795_v12 = vld [vmem:[#allocation9 + $0x1d8] sm:$0xff]  ;;  %v13194_v60 = vpack.c.bf16 %v2797_v0, %v2793_v29 }
 0x42a   :  { %v11516_v58 = vpop.eup %11515  ;;  %9280 = vmatpush1.bf16.msra.mxu0 %v13004_v53  ;;  %9312 = vmatpush1.bf16.msra.mxu1 %v13006_v42  ;;  %v2745_v53 = vld [vmem:[#allocation9 + $0x48] sm:$0xff] }
 0x42b   :  { %v13104_v14 = vmul.f32 %v11516_v58, %v11514_v63  ;;  %9314 = vmatprep.subr.bf16.mxu0 %v13110_v26  ;;  %9346 = vmatprep.subr.bf16.mxu1 %v13112_v21  ;;  %v2749_v42 = vld [vmem:[#allocation9 + $0x68] sm:$0xff] }
 0x42c   :  { %v13122_v49 = vpack.c.bf16 %v2749_v42, %v2745_v53  ;;  %v2769_v63 = vld [vmem:[#allocation9 + $0x108] sm:$0xff]  ;;  %v2774_v53 = vld [vmem:[#allocation9 + $0x130] sm:$0xff] }
 0x42d   :  { %15047 = vst [vmem:[#allocation26_spill] sm:$0xff] %v13104_v14  ;;  %2609 = vmatmul.mubr.f32.vlgmr.msra.gmra.mrb[24].mxu0 %v13104_v14  ;;  %2680 = vmatmul.mubr.f32.vlgmr.msra.gmra.mrb[24].mxu1 %v13104_v14  ;;  %v2773_v58 = vld [vmem:[#allocation9 + $0x128] sm:$0xff]  ;;  %v13165_v42 = vpack.c.bf16 %v2774_v53, %v2770_v46  ;;  %v2799_v46 = vld [vmem:[#allocation9 + $0x1f8] sm:$0xff]  ;;  %v2792_v53 = vld [vmem:[#allocation9 + $0x1c0] sm:$0xff] }
 0x42e   :  { %2868 = vmatprep.mubr.f32.mxu0 %v14988_v20  ;;  %2939 = vmatprep.mubr.f32.mxu1 %v14988_v20  ;;  %v13158_v23 = vpack.c.bf16 %v2773_v58, %v2769_v63  ;;  %v2790_v63 = vld [vmem:[#allocation9 + $0x1b0] sm:$0xff]  ;;  %v13196_v50 = vpack.c.bf16 %v2799_v46, %v2795_v12  ;;  %v13198_v15 = vpack.c.bf16 %v2796_v61, %v2792_v53 }
 0x42f   :  { %9316 = vmatpush1.bf16.msra.mxu0 %v13114_v7  ;;  %9348 = vmatpush1.bf16.msra.mxu1 %v13117_v30  ;;  %v13189_v58 = vpack.c.bf16 %v2790_v63, %v2786_v19 }
 0x430   :  { %9318 = vmatprep.subr.bf16.mxu0 %v13122_v49  ;;  %9350 = vmatprep.subr.bf16.mxu1 %v13124_v35 }
 0x433   :  { %9320 = vmatpush1.bf16.msra.mxu0 %v13126_v17  ;;  %9352 = vmatpush1.bf16.msra.mxu1 %v13129_v16 }
 0x434   :  { %9322 = vmatprep.subr.bf16.mxu0 %v13134_v44  ;;  %9354 = vmatprep.subr.bf16.mxu1 %v13136_v6 }
 0x437   :  { %9324 = vmatpush1.bf16.msra.mxu0 %v13138_v1  ;;  %9356 = vmatpush1.bf16.msra.mxu1 %v13141_v55 }
 0x438   :  { %9326 = vmatprep.subr.bf16.mxu0 %v13146_v56  ;;  %9358 = vmatprep.subr.bf16.mxu1 %v13148_v22 }
 0x43b   :  { %9328 = vmatpush1.bf16.msra.mxu0 %v13150_v27  ;;  %9360 = vmatpush1.bf16.msra.mxu1 %v13153_v9 }
 0x43c   :  { %9330 = vmatprep.subr.bf16.mxu0 %v13158_v23  ;;  %9362 = vmatprep.subr.bf16.mxu1 %v13160_v25 }
 0x43f   :  { %9332 = vmatpush1.bf16.msra.mxu0 %v13162_v2  ;;  %9364 = vmatpush1.bf16.msra.mxu1 %v13165_v42 }
 0x440   :  { %9334 = vmatprep.subr.bf16.mxu0 %v13170_v33  ;;  %9366 = vmatprep.subr.bf16.mxu1 %v13172_v45 }
 0x443   :  { %9336 = vmatpush1.bf16.msra.mxu0 %v13174_v8  ;;  %9368 = vmatpush1.bf16.msra.mxu1 %v13177_v10 }
 0x444   :  { %9338 = vmatprep.subr.bf16.mxu0 %v13182_v48  ;;  %9370 = vmatprep.subr.bf16.mxu1 %v13184_v38 }
 0x447   :  { %9340 = vmatpush1.bf16.msra.mxu0 %v13186_v3  ;;  %9372 = vmatpush1.bf16.msra.mxu1 %v13189_v58 }
 0x448   :  { %9342 = vmatprep.subr.bf16.mxu0 %v13194_v60  ;;  %9374 = vmatprep.subr.bf16.mxu1 %v13196_v50 }
 0x44b   :  { %9344 = vmatpush1.bf16.msra.mxu0 %v13198_v15  ;;  %9376 = vmatpush1.bf16.msra.mxu1 %v13201_v13 }
 0x44c   :  { %9378 = vmatprep.subr.bf16.mxu0 %v13206_v4  ;;  %9410 = vmatprep.subr.bf16.mxu1 %v13208_v37 }
 0x4e0   :  { %v2400_v51 = vpop.f32.mrb[6].mxu0  ;;  %v2471_v36 = vpop.f32.mrb[6].mxu1 }
 0x4e1   :  { %v11155_v19 = vadd.f32 %v2400_v51, %v12706_v39  ;;  %v2402_v63 = vpop.f32.mrb[7].mxu0  ;;  %v2473_v29 = vpop.f32.mrb[7].mxu1  ;;  %v11171_v62 = vadd.f32 %v2471_v36, %v15027_v54  ;;  %v2963_v54 = vld [vmem:[#allocation10 + $0x88] sm:$0xff] }
 0x4e2   :  { %v11156_v0 = vadd.f32 %v2402_v63, %v15025_v40  ;;  %v11172_v53 = vadd.f32 %v2473_v29, %v15026_v59  ;;  %v2967_v59 = vld [vmem:[#allocation10 + $0xa8] sm:$0xff]  ;;  %v2965_v40 = vld [vmem:[#allocation10 + $0x98] sm:$0xff] }
 0x4e3   :  { %v8528_v12 = vmul.f32 -1.442695, %v11155_v19 }
 0x4e4   :  { %v8529_v46 = vmul.f32 -1.442695, %v11156_v0  ;;  %v8530_v61 = vmul.f32 -1.442695, %v11172_v53 }
 0x4e5   :  { %11517 = vpow2.f32 %v8528_v12 }
 0x4e6   :  { %11519 = vpow2.f32 %v8529_v46 }
 0x4e7   :  { %11521 = vpow2.f32 %v8530_v61 }
 0x4e8   :  { %11523 = vtanh.f32 %v11171_v62 }
 0x4ef   :  { %v11518_v28 = vpop.eup %11517 }
 0x4f0   :  { %v11520_v31 = vpop.eup %11519  ;;  %v2689_v57 = vadd.f32 1.0, %v11518_v28 }
 0x4f1   :  { %v2695_v11 = vadd.f32 1.0, %v11520_v31  ;;  %v11522_v34 = vpop.eup %11521 }
 0x4f2   :  { %11525 = vrcp.f32 %v2689_v57  ;;  %v11524_v51 = vpop.eup %11523  ;;  %v2702_v12 = vadd.f32 1.0, %v11522_v34 }
 0x4f3   :  { %11527 = vrcp.f32 %v2695_v11 }
 0x4f4   :  { %11529 = vrcp.f32 %v2702_v12  ;;  %v2959_v12 = vld [vmem:[#allocation10 + $0x68] sm:$0xff] }
 0x4fc   :  { %v11526_v63 = vpop.eup %11525 }
 0x4fd   :  { %v11528_v19 = vpop.eup %11527  ;;  %v2706_v0 = vmul.f32 %v11526_v63, %v11524_v51  ;;  %v2950_v51 = vld [vmem:[#allocation10 + $0x20] sm:$0xff]  ;;  %v2948_v63 = vld [vmem:[#allocation10 + $0x10] sm:$0xff] }
 0x4fe   :  { %v2705_v46 = vmul.f32 %v11528_v19, %v13057_v32  ;;  %v2946_v32 = vld [vmem:[#allocation10] sm:$0xff]  ;;  %v2952_v19 = vld [vmem:[#allocation10 + $0x30] sm:$0xff]  ;;  %v11530_v24 = vpop.eup %11529 }
 0x500   :  { %v13217_v29 = vadd.f32 %v2706_v0, %v2705_v46  ;;  %v2610_v53 = vpop.f32.mrb[24].mxu0  ;;  %v2681_v36 = vpop.f32.mrb[24].mxu1  ;;  %v2955_v0 = vld [vmem:[#allocation10 + $0x48] sm:$0xff]  ;;  %v2957_v46 = vld [vmem:[#allocation10 + $0x58] sm:$0xff] }
 0x501   :  { %v11189_v28 = vadd.f32 %v2610_v53, %v15029_v41  ;;  %v2612_v61 = vpop.f32.mrb[25].mxu0  ;;  %v2683_v62 = vpop.f32.mrb[25].mxu1  ;;  %v2961_v53 = vld [vmem:[#allocation10 + $0x78] sm:$0xff]  ;;  %v13223_v41 = vpack.c.bf16 %v2950_v51, %v2946_v32 }
 0x502   :  { %15048 = vst [vmem:[#allocation27_spill] sm:$0xff] %v13217_v29  ;;  %11531 = vtanh.f32 %v13217_v29  ;;  %v11190_v31 = vadd.f32 %v2612_v61, %v15030_v43  ;;  %v11206_v34 = vadd.f32 %v2683_v62, %v15031_v52  ;;  %v13225_v61 = vpack.c.bf16 %v2952_v19, %v2948_v63  ;;  %v2956_v43 = vld [vmem:[#allocation10 + $0x50] sm:$0xff]  ;;  %v2962_v63 = vld [vmem:[#allocation10 + $0x80] sm:$0xff] }
 0x503   :  { %v8531_v57 = vmul.f32 -1.442695, %v11189_v28  ;;  %15049 = vst [vmem:[#allocation29_spill] sm:$0xff] %v13223_v41  ;;  %v2954_v28 = vld [vmem:[#allocation10 + $0x40] sm:$0xff]  ;;  %v11205_v62 = vadd.f32 %v2681_v36, %v12750_v5  ;;  %v13232_v52 = vpack.c.bf16 %v2961_v53, %v2957_v46  ;;  %v2960_v29 = vld [vmem:[#allocation10 + $0x70] sm:$0xff] }
 0x504   :  { %v8532_v11 = vmul.f32 -1.442695, %v11190_v31  ;;  %v8533_v47 = vmul.f32 -1.442695, %v11206_v34  ;;  %15050 = vst [vmem:[#allocation30_spill] sm:$0xff] %v13225_v61  ;;  %v2958_v31 = vld [vmem:[#allocation10 + $0x60] sm:$0xff]  ;;  %v13240_v36 = vpack.c.bf16 %v2960_v29, %v2956_v43 }
 0x505   :  { %11533 = vpow2.f32 %v8531_v57  ;;  %15053 = vst [vmem:[#allocation33_spill] sm:$0xff] %v13232_v52  ;;  %v2969_v34 = vld [vmem:[#allocation10 + $0xb8] sm:$0xff]  ;;  %v2966_v19 = vld [vmem:[#allocation10 + $0xa0] sm:$0xff]  ;;  %v2968_v53 = vld [vmem:[#allocation10 + $0xb0] sm:$0xff] }
 0x506   :  { %11535 = vpow2.f32 %v8532_v11  ;;  %v13230_v11 = vpack.c.bf16 %v2959_v12, %v2955_v0  ;;  %15055 = vst [vmem:[#allocation43_spill] sm:$0xff] %v13240_v36  ;;  %v13244_v12 = vpack.c.bf16 %v2967_v59, %v2963_v54  ;;  %v13246_v46 = vpack.c.bf16 %v2969_v34, %v2965_v40  ;;  %v2977_v43 = vld [vmem:[#allocation10 + $0xf8] sm:$0xff]  ;;  %v2970_v54 = vld [vmem:[#allocation10 + $0xc0] sm:$0xff] }
 0x507   :  { %11537 = vpow2.f32 %v8533_v47  ;;  %v2964_v47 = vld [vmem:[#allocation10 + $0x90] sm:$0xff]  ;;  %v13252_v59 = vpack.c.bf16 %v2966_v19, %v2962_v63  ;;  %v2974_v29 = vld [vmem:[#allocation10 + $0xe0] sm:$0xff] }
 0x508   :  { %15052 = vst [vmem:[#allocation32_spill] sm:$0xff] %v13230_v11  ;;  %11539 = vtanh.f32 %v11205_v62  ;;  %15056 = vst [vmem:[#allocation44_spill] sm:$0xff] %v13244_v12  ;;  %v13254_v40 = vpack.c.bf16 %v2968_v53, %v2964_v47  ;;  %v13264_v63 = vpack.c.bf16 %v2974_v29, %v2970_v54  ;;  %v2978_v47 = vld [vmem:[#allocation10 + $0x100] sm:$0xff]  ;;  %v2993_v54 = vld [vmem:[#allocation10 + $0x178] sm:$0xff] }
 0x509   :  { %15057 = vst [vmem:[#allocation45_spill] sm:$0xff] %v13246_v46  ;;  %15058 = vst [vmem:[#allocation46_spill] sm:$0xff] %v13252_v59  ;;  %v2982_v53 = vld [vmem:[#allocation10 + $0x120] sm:$0xff] }
 0x50a   :  { %15059 = vst [vmem:[#allocation47_spill] sm:$0xff] %v13254_v40  ;;  %15062 = vst [vmem:[#allocation51_spill] sm:$0xff] %v13264_v63 }
 0x50c   :  { %v11532_v14 = vpop.eup %11531 }
 0x50d   :  { %v13227_v57 = vmul.f32 %v11532_v14, %v11530_v24  ;;  %v13238_v14 = vpack.c.bf16 %v2958_v31, %v2954_v28  ;;  %v2975_v28 = vld [vmem:[#allocation10 + $0xe8] sm:$0xff]  ;;  %v2973_v31 = vld [vmem:[#allocation10 + $0xd8] sm:$0xff] }
 0x50e   :  { %v13260_v34 = vpack.c.bf16 %v2977_v43, %v2973_v31  ;;  %v2980_v31 = vld [vmem:[#allocation10 + $0x110] sm:$0xff] }
 0x50f   :  { %15051 = vst [vmem:[#allocation31_spill] sm:$0xff] %v13227_v57  ;;  %v11534_v32 = vpop.eup %11533  ;;  %2869 = vmatmul.mubr.f32.vlgmr.msra.gmra.mrb[8].mxu0 %v13227_v57  ;;  %2940 = vmatmul.mubr.f32.vlgmr.msra.gmra.mrb[8].mxu1 %v13227_v57  ;;  %15054 = vst [vmem:[#allocation42_spill] sm:$0xff] %v13238_v14  ;;  %v2983_v57 = vld [vmem:[#allocation10 + $0x128] sm:$0xff]  ;;  %v2984_v43 = vld [vmem:[#allocation10 + $0x130] sm:$0xff] }
 0x510   :  { %v11536_v51 = vpop.eup %11535  ;;  %v2713_v24 = vadd.f32 1.0, %v11534_v32  ;;  %9380 = vmatpush1.bf16.msra.mxu0 %v13223_v41  ;;  %9412 = vmatpush1.bf16.msra.mxu1 %v13225_v61  ;;  %v2971_v32 = vld [vmem:[#allocation10 + $0xc8] sm:$0xff]  ;;  %15061 = vst [vmem:[#allocation50_spill] sm:$0xff] %v13260_v34  ;;  %v2992_v61 = vld [vmem:[#allocation10 + $0x170] sm:$0xff] }
 0x511   :  { %v2719_v0 = vadd.f32 1.0, %v11536_v51  ;;  %9382 = vmatprep.subr.bf16.mxu0 %v13230_v11  ;;  %9414 = vmatprep.subr.bf16.mxu1 %v13232_v52  ;;  %v13258_v62 = vpack.c.bf16 %v2975_v28, %v2971_v32  ;;  %v2972_v51 = vld [vmem:[#allocation10 + $0xd0] sm:$0xff] }
 0x512   :  { %11541 = vrcp.f32 %v2713_v24  ;;  %3078 = vmatprep.mubr.f32.mxu0 %v14988_v20  ;;  %3149 = vmatprep.mubr.f32.mxu1 %v14988_v20  ;;  %v2976_v24 = vld [vmem:[#allocation10 + $0xf0] sm:$0xff] }
 0x513   :  { %11543 = vrcp.f32 %v2719_v0  ;;  %15060 = vst [vmem:[#allocation48_spill] sm:$0xff] %v13258_v62  ;;  %v2979_v0 = vld [vmem:[#allocation10 + $0x108] sm:$0xff]  ;;  %v13266_v19 = vpack.c.bf16 %v2976_v24, %v2972_v51  ;;  %v13276_v24 = vpack.c.bf16 %v2982_v53, %v2978_v47 }
 0x514   :  { %9384 = vmatpush1.bf16.msra.mxu0 %v13238_v14  ;;  %9416 = vmatpush1.bf16.msra.mxu1 %v13240_v36  ;;  %v2981_v14 = vld [vmem:[#allocation10 + $0x118] sm:$0xff]  ;;  %v13270_v32 = vpack.c.bf16 %v2983_v57, %v2979_v0  ;;  %v2986_v57 = vld [vmem:[#allocation10 + $0x140] sm:$0xff]  ;;  %v2999_v53 = vld [vmem:[#allocation10 + $0x1a8] sm:$0xff] }
 0x515   :  { %9386 = vmatprep.subr.bf16.mxu0 %v13244_v12  ;;  %9418 = vmatprep.subr.bf16.mxu1 %v13246_v46  ;;  %v2985_v36 = vld [vmem:[#allocation10 + $0x138] sm:$0xff]  ;;  %15063 = vst [vmem:[#allocation52_spill] sm:$0xff] %v13266_v19  ;;  %v2987_v46 = vld [vmem:[#allocation10 + $0x148] sm:$0xff] }
 0x516   :  { %v13272_v28 = vpack.c.bf16 %v2985_v36, %v2981_v14  ;;  %v2991_v12 = vld [vmem:[#allocation10 + $0x168] sm:$0xff]  ;;  %v2990_v14 = vld [vmem:[#allocation10 + $0x160] sm:$0xff] }
 0x517   :  { %v13282_v52 = vpack.c.bf16 %v2991_v12, %v2987_v46  ;;  %v2994_v46 = vld [vmem:[#allocation10 + $0x180] sm:$0xff] }
 0x518   :  { %9388 = vmatpush1.bf16.msra.mxu0 %v13252_v59  ;;  %9420 = vmatpush1.bf16.msra.mxu1 %v13254_v40  ;;  %v11538_v59 = vpop.eup %11537  ;;  %v2989_v40 = vld [vmem:[#allocation10 + $0x158] sm:$0xff] }
 0x519   :  { %9390 = vmatprep.subr.bf16.mxu0 %v13258_v62  ;;  %9422 = vmatprep.subr.bf16.mxu1 %v13260_v34  ;;  %v11540_v29 = vpop.eup %11539  ;;  %v13278_v34 = vpack.c.bf16 %v2984_v43, %v2980_v31  ;;  %v2726_v62 = vadd.f32 1.0, %v11538_v59  ;;  %v13284_v11 = vpack.c.bf16 %v2993_v54, %v2989_v40  ;;  %v2997_v31 = vld [vmem:[#allocation10 + $0x198] sm:$0xff]  ;;  %v13291_v59 = vpack.c.bf16 %v2990_v14, %v2986_v57  ;;  %v2998_v40 = vld [vmem:[#allocation10 + $0x1a0] sm:$0xff]  ;;  %v3007_v57 = vld [vmem:[#allocation10 + $0x1e8] sm:$0xff] }
 0x51a   :  { %v3001_v43 = vld [vmem:[#allocation10 + $0x1b8] sm:$0xff] }
 0x51b   :  { %11545 = vrcp.f32 %v2726_v62  ;;  %v13299_v54 = vpack.c.bf16 %v3001_v43, %v2997_v31  ;;  %v3005_v14 = vld [vmem:[#allocation10 + $0x1d8] sm:$0xff]  ;;  %v13304_v62 = vpack.c.bf16 %v2998_v40, %v2994_v46  ;;  %v3004_v31 = vld [vmem:[#allocation10 + $0x1d0] sm:$0xff] }
 0x51c   :  { %v11542_v51 = vpop.eup %11541  ;;  %9392 = vmatpush1.bf16.msra.mxu0 %v13264_v63  ;;  %9424 = vmatpush1.bf16.msra.mxu1 %v13266_v19  ;;  %v2988_v63 = vld [vmem:[#allocation10 + $0x150] sm:$0xff]  ;;  %v2995_v19 = vld [vmem:[#allocation10 + $0x188] sm:$0xff] }
 0x51d   :  { %v11544_v36 = vpop.eup %11543  ;;  %v2730_v0 = vmul.f32 %v11542_v51, %v11540_v29  ;;  %9394 = vmatprep.subr.bf16.mxu0 %v13270_v32  ;;  %9426 = vmatprep.subr.bf16.mxu1 %v13272_v28  ;;  %v13293_v12 = vpack.c.bf16 %v2992_v61, %v2988_v63  ;;  %v2996_v29 = vld [vmem:[#allocation10 + $0x190] sm:$0xff]  ;;  %v3009_v61 = vld [vmem:[#allocation10 + $0x1f8] sm:$0xff] }
 0x51e   :  { %v2729_v47 = vmul.f32 %v11544_v36, %v13087_v18  ;;  %v13297_v18 = vpack.c.bf16 %v2999_v53, %v2995_v19  ;;  %v3000_v51 = vld [vmem:[#allocation10 + $0x1b0] sm:$0xff]  ;;  %v3003_v36 = vld [vmem:[#allocation10 + $0x1c8] sm:$0xff]  ;;  %v3002_v19 = vld [vmem:[#allocation10 + $0x1c0] sm:$0xff] }
 0x51f   :  { %v13306_v63 = vpack.c.bf16 %v3000_v51, %v2996_v29  ;;  %v3006_v53 = vld [vmem:[#allocation10 + $0x1e0] sm:$0xff]  ;;  %v3008_v43 = vld [vmem:[#allocation10 + $0x1f0] sm:$0xff] }
 0x520   :  { %v13287_v41 = vadd.f32 %v2730_v0, %v2729_v47  ;;  %9396 = vmatpush1.bf16.msra.mxu0 %v13276_v24  ;;  %9428 = vmatpush1.bf16.msra.mxu1 %v13278_v34  ;;  %v13310_v0 = vpack.c.bf16 %v3007_v57, %v3003_v36  ;;  %v13312_v47 = vpack.c.bf16 %v3009_v61, %v3005_v14 }
 0x521   :  { %9398 = vmatprep.subr.bf16.mxu0 %v13282_v52  ;;  %9430 = vmatprep.subr.bf16.mxu1 %v13284_v11  ;;  %v13316_v46 = vpack.c.bf16 %v3006_v53, %v3002_v19  ;;  %v13318_v40 = vpack.c.bf16 %v3008_v43, %v3004_v31  ;;  %v15071_v19 = vld [vmem:[#allocation40_spill] sm:$0xff] }
 0x522   :  { %11547 = vtanh.f32 %v13287_v41 }
 0x524   :  { %9400 = vmatpush1.bf16.msra.mxu0 %v13291_v59  ;;  %9432 = vmatpush1.bf16.msra.mxu1 %v13293_v12 }
 0x525   :  { %9402 = vmatprep.subr.bf16.mxu0 %v13297_v18  ;;  %9434 = vmatprep.subr.bf16.mxu1 %v13299_v54  ;;  %v11546_v29 = vpop.eup %11545 }
 0x528   :  { %9404 = vmatpush1.bf16.msra.mxu0 %v13304_v62  ;;  %9436 = vmatpush1.bf16.msra.mxu1 %v13306_v63 }
 0x529   :  { %9406 = vmatprep.subr.bf16.mxu0 %v13310_v0  ;;  %9438 = vmatprep.subr.bf16.mxu1 %v13312_v47 }
 0x52c   :  { %v11548_v51 = vpop.eup %11547  ;;  %9408 = vmatpush1.bf16.msra.mxu0 %v13316_v46  ;;  %9440 = vmatpush1.bf16.msra.mxu1 %v13318_v40 }
 0x52d   :  { %v13324_v36 = vmul.f32 %v11548_v51, %v11546_v29  ;;  %9442 = vmatprep.subr.bf16.mxu0 %v13110_v26  ;;  %9474 = vmatprep.subr.bf16.mxu1 %v13112_v21 }
 0x52f   :  { %15064 = vst [vmem:[#allocation53_spill] sm:$0xff] %v13324_v36  ;;  %3079 = vmatmul.mubr.f32.vlgmr.msra.gmra.mrb[22].mxu0 %v13324_v36  ;;  %3150 = vmatmul.mubr.f32.vlgmr.msra.gmra.mrb[22].mxu1 %v13324_v36 }
 0x530   :  { %9444 = vmatpush1.bf16.msra.mxu0 %v13114_v7  ;;  %9476 = vmatpush1.bf16.msra.mxu1 %v13117_v30 }
 0x531   :  { %9446 = vmatprep.subr.bf16.mxu0 %v13122_v49  ;;  %9478 = vmatprep.subr.bf16.mxu1 %v13124_v35  ;;  %v15065_v35 = vld [vmem:[#allocation35_spill] sm:$0xff] }
 0x532   :  { %3338 = vmatprep.mubr.f32.mxu0 %v14988_v20  ;;  %3409 = vmatprep.mubr.f32.mxu1 %v14988_v20 }
 0x534   :  { %9448 = vmatpush1.bf16.msra.mxu0 %v13126_v17  ;;  %9480 = vmatpush1.bf16.msra.mxu1 %v13129_v16 }
 0x535   :  { %9450 = vmatprep.subr.bf16.mxu0 %v13134_v44  ;;  %9482 = vmatprep.subr.bf16.mxu1 %v13136_v6  ;;  %v15066_v6 = vld [vmem:[#allocation36_spill] sm:$0xff] }
 0x538   :  { %9452 = vmatpush1.bf16.msra.mxu0 %v13138_v1  ;;  %9484 = vmatpush1.bf16.msra.mxu1 %v13141_v55 }
 0x539   :  { %9454 = vmatprep.subr.bf16.mxu0 %v13146_v56  ;;  %9486 = vmatprep.subr.bf16.mxu1 %v13148_v22  ;;  %v15067_v56 = vld [vmem:[#allocation37_spill] sm:$0xff] }
 0x53c   :  { %9456 = vmatpush1.bf16.msra.mxu0 %v13150_v27  ;;  %9488 = vmatpush1.bf16.msra.mxu1 %v13153_v9 }
 0x53d   :  { %9458 = vmatprep.subr.bf16.mxu0 %v13158_v23  ;;  %9490 = vmatprep.subr.bf16.mxu1 %v13160_v25 }
 0x540   :  { %9460 = vmatpush1.bf16.msra.mxu0 %v13162_v2  ;;  %9492 = vmatpush1.bf16.msra.mxu1 %v13165_v42 }
 0x541   :  { %9462 = vmatprep.subr.bf16.mxu0 %v13170_v33  ;;  %9494 = vmatprep.subr.bf16.mxu1 %v13172_v45 }
 0x544   :  { %9464 = vmatpush1.bf16.msra.mxu0 %v13174_v8  ;;  %9496 = vmatpush1.bf16.msra.mxu1 %v13177_v10 }
 0x545   :  { %9466 = vmatprep.subr.bf16.mxu0 %v13182_v48  ;;  %9498 = vmatprep.subr.bf16.mxu1 %v13184_v38  ;;  %v15068_v48 = vld [vmem:[#allocation27_spill] sm:$0xff] }
 0x548   :  { %9468 = vmatpush1.bf16.msra.mxu0 %v13186_v3  ;;  %9500 = vmatpush1.bf16.msra.mxu1 %v13189_v58 }
 0x549   :  { %9470 = vmatprep.subr.bf16.mxu0 %v13194_v60  ;;  %9502 = vmatprep.subr.bf16.mxu1 %v13196_v50  ;;  %v15069_v50 = vld [vmem:[#allocation38_spill] sm:$0xff] }
 0x54c   :  { %9472 = vmatpush1.bf16.msra.mxu0 %v13198_v15  ;;  %9504 = vmatpush1.bf16.msra.mxu1 %v13201_v13 }
 0x54d   :  { %9506 = vmatprep.subr.bf16.mxu0 %v13206_v4  ;;  %9538 = vmatprep.subr.bf16.mxu1 %v13208_v37  ;;  %v15070_v37 = vld [vmem:[#allocation39_spill] sm:$0xff] }
 0x5e2   :  { %v2870_v26 = vpop.f32.mrb[8].mxu0  ;;  %v2941_v21 = vpop.f32.mrb[8].mxu1 }
 0x5e3   :  { %v11157_v7 = vadd.f32 %v2870_v26, %v12706_v39  ;;  %v2872_v30 = vpop.f32.mrb[9].mxu0  ;;  %v2943_v49 = vpop.f32.mrb[9].mxu1  ;;  %v11173_v22 = vadd.f32 %v2941_v21, %v15067_v56 }
 0x5e4   :  { %v11158_v17 = vadd.f32 %v2872_v30, %v15065_v35  ;;  %v11174_v1 = vadd.f32 %v2943_v49, %v15066_v6  ;;  %v15073_v49 = vld [vmem:[#allocation29_spill] sm:$0xff] }
 0x5e5   :  { %v8534_v16 = vmul.f32 -1.442695, %v11157_v7 }
 0x5e6   :  { %v8535_v44 = vmul.f32 -1.442695, %v11158_v17  ;;  %v8536_v55 = vmul.f32 -1.442695, %v11174_v1  ;;  %v15074_v17 = vld [vmem:[#allocation30_spill] sm:$0xff]  ;;  %v15076_v1 = vld [vmem:[#allocation33_spill] sm:$0xff] }
 0x5e7   :  { %11549 = vpow2.f32 %v8534_v16 }
 0x5e8   :  { %11551 = vpow2.f32 %v8535_v44  ;;  %v15075_v44 = vld [vmem:[#allocation32_spill] sm:$0xff] }
 0x5e9   :  { %11553 = vpow2.f32 %v8536_v55  ;;  %v15077_v55 = vld [vmem:[#allocation42_spill] sm:$0xff] }
 0x5ea   :  { %11555 = vtanh.f32 %v11173_v22  ;;  %v15078_v22 = vld [vmem:[#allocation43_spill] sm:$0xff] }
 0x5f1   :  { %v11550_v27 = vpop.eup %11549 }
 0x5f2   :  { %v11552_v9 = vpop.eup %11551  ;;  %v3159_v23 = vadd.f32 1.0, %v11550_v27  ;;  %v15079_v27 = vld [vmem:[#allocation44_spill] sm:$0xff] }
 0x5f3   :  { %v3165_v25 = vadd.f32 1.0, %v11552_v9  ;;  %v11554_v2 = vpop.eup %11553  ;;  %v15080_v9 = vld [vmem:[#allocation45_spill] sm:$0xff] }
 0x5f4   :  { %11557 = vrcp.f32 %v3159_v23  ;;  %v11556_v42 = vpop.eup %11555  ;;  %v3172_v10 = vadd.f32 1.0, %v11554_v2  ;;  %v15081_v23 = vld [vmem:[#allocation46_spill] sm:$0xff]  ;;  %v15083_v2 = vld [vmem:[#allocation48_spill] sm:$0xff] }
 0x5f5   :  { %11559 = vrcp.f32 %v3165_v25  ;;  %v15082_v25 = vld [vmem:[#allocation47_spill] sm:$0xff] }
 0x5f6   :  { %11561 = vrcp.f32 %v3172_v10  ;;  %v15085_v10 = vld [vmem:[#allocation51_spill] sm:$0xff] }
 0x5fe   :  { %v11558_v33 = vpop.eup %11557 }
 0x5ff   :  { %v11560_v45 = vpop.eup %11559  ;;  %v3176_v8 = vmul.f32 %v11558_v33, %v11556_v42  ;;  %v15084_v42 = vld [vmem:[#allocation50_spill] sm:$0xff] }
 0x600   :  { %v3175_v38 = vmul.f32 %v11560_v45, %v15068_v48  ;;  %v11562_v31 = vpop.eup %11561  ;;  %v15086_v48 = vld [vmem:[#allocation52_spill] sm:$0xff] }
 0x602   :  { %v13369_v3 = vadd.f32 %v3176_v8, %v3175_v38  ;;  %v3080_v58 = vpop.f32.mrb[22].mxu0  ;;  %v3151_v60 = vpop.f32.mrb[22].mxu1 }
 0x603   :  { %v11187_v15 = vadd.f32 %v3080_v58, %v15069_v50  ;;  %v3082_v13 = vpop.f32.mrb[23].mxu0  ;;  %v3153_v4 = vpop.f32.mrb[23].mxu1  ;;  %v11203_v26 = vadd.f32 %v3151_v60, %v12750_v5 }
 0x604   :  { %11563 = vtanh.f32 %v13369_v3  ;;  %v11188_v57 = vadd.f32 %v3082_v13, %v15070_v37  ;;  %v11204_v53 = vadd.f32 %v3153_v4, %v15071_v19  ;;  %v3687_v4 = vld [vmem:[#allocation9 + $0x58] sm:$0xff] }
 0x605   :  { %v8537_v14 = vmul.f32 -1.442695, %v11187_v15 }
 0x606   :  { %v8538_v61 = vmul.f32 -1.442695, %v11188_v57  ;;  %v8539_v29 = vmul.f32 -1.442695, %v11204_v53  ;;  %v3688_v53 = vld [vmem:[#allocation9 + $0x60] sm:$0xff] }
 0x607   :  { %11565 = vpow2.f32 %v8537_v14  ;;  %v3691_v14 = vld [vmem:[#allocation9 + $0x78] sm:$0xff] }
 0x608   :  { %11567 = vpow2.f32 %v8538_v61  ;;  %v3684_v61 = vld [vmem:[#allocation9 + $0x40] sm:$0xff] }
 0x609   :  { %11569 = vpow2.f32 %v8539_v29  ;;  %v3686_v29 = vld [vmem:[#allocation9 + $0x50] sm:$0xff] }
 0x60a   :  { %11571 = vtanh.f32 %v11203_v26  ;;  %v3690_v26 = vld [vmem:[#allocation9 + $0x70] sm:$0xff] }
 0x60e   :  { %v11564_v43 = vpop.eup %11563 }
 0x60f   :  { %v13375_v51 = vmul.f32 %v11564_v43, %v11562_v31  ;;  %v13436_v31 = vpack.c.bf16 %v3691_v14, %v3687_v4  ;;  %v13438_v43 = vpack.c.bf16 %v3688_v53, %v3684_v61  ;;  %v3717_v4 = vld [vmem:[#allocation9 + $0x148] sm:$0xff]  ;;  %v3719_v61 = vld [vmem:[#allocation9 + $0x158] sm:$0xff] }
 0x610   :  { %v3721_v14 = vld [vmem:[#allocation9 + $0x168] sm:$0xff] }
 0x611   :  { %15072 = vst [vmem:[#allocation27_spill] sm:$0xff] %v13375_v51  ;;  %v11566_v21 = vpop.eup %11565  ;;  %3339 = vmatmul.mubr.f32.vlgmr.msra.gmra.mrb[10].mxu0 %v13375_v51  ;;  %3410 = vmatmul.mubr.f32.vlgmr.msra.gmra.mrb[10].mxu1 %v13375_v51  ;;  %v13482_v53 = vpack.c.bf16 %v3721_v14, %v3717_v4  ;;  %v3736_v4 = vld [vmem:[#allocation9 + $0x1e0] sm:$0xff] }
 0x612   :  { %v11568_v7 = vpop.eup %11567  ;;  %v3183_v30 = vadd.f32 1.0, %v11566_v21  ;;  %9508 = vmatpush1.bf16.msra.mxu0 %v15073_v49  ;;  %9540 = vmatpush1.bf16.msra.mxu1 %v15074_v17  ;;  %v13441_v21 = vpack.c.bf16 %v3690_v26, %v3686_v29  ;;  %v3695_v49 = vld [vmem:[#allocation9 + $0x98] sm:$0xff]  ;;  %v3716_v26 = vld [vmem:[#allocation9 + $0x140] sm:$0xff] }
 0x613   :  { %v3189_v16 = vadd.f32 1.0, %v11568_v7  ;;  %9510 = vmatprep.subr.bf16.mxu0 %v15075_v44  ;;  %9542 = vmatprep.subr.bf16.mxu1 %v15076_v1  ;;  %v11570_v33 = vpop.eup %11569  ;;  %v3693_v7 = vld [vmem:[#allocation9 + $0x88] sm:$0xff]  ;;  %v3692_v44 = vld [vmem:[#allocation9 + $0x80] sm:$0xff]  ;;  %v3723_v29 = vld [vmem:[#allocation9 + $0x178] sm:$0xff] }
 0x614   :  { %11573 = vrcp.f32 %v3183_v30  ;;  %3548 = vmatprep.mubr.f32.mxu0 %v14988_v20  ;;  %3619 = vmatprep.mubr.f32.mxu1 %v14988_v20  ;;  %v11572_v45 = vpop.eup %11571  ;;  %v3196_v60 = vadd.f32 1.0, %v11570_v33  ;;  %v3697_v30 = vld [vmem:[#allocation9 + $0xa8] sm:$0xff]  ;;  %v3696_v1 = vld [vmem:[#allocation9 + $0xa0] sm:$0xff] }
 0x615   :  { %11575 = vrcp.f32 %v3189_v16  ;;  %v13446_v17 = vpack.c.bf16 %v3697_v30, %v3693_v7  ;;  %v3699_v16 = vld [vmem:[#allocation9 + $0xb8] sm:$0xff]  ;;  %v3720_v7 = vld [vmem:[#allocation9 + $0x160] sm:$0xff]  ;;  %v13484_v30 = vpack.c.bf16 %v3723_v29, %v3719_v61  ;;  %v3734_v29 = vld [vmem:[#allocation9 + $0x1d0] sm:$0xff] }
 0x616   :  { %9512 = vmatpush1.bf16.msra.mxu0 %v15077_v55  ;;  %9544 = vmatpush1.bf16.msra.mxu1 %v15078_v22  ;;  %11577 = vrcp.f32 %v3196_v60  ;;  %v13448_v55 = vpack.c.bf16 %v3699_v16, %v3695_v49  ;;  %v13450_v22 = vpack.c.bf16 %v3696_v1, %v3692_v44  ;;  %v3706_v60 = vld [vmem:[#allocation9 + $0xf0] sm:$0xff]  ;;  %v13486_v49 = vpack.c.bf16 %v3720_v7, %v3716_v26 }
 0x617   :  { %9514 = vmatprep.subr.bf16.mxu0 %v15079_v27  ;;  %9546 = vmatprep.subr.bf16.mxu1 %v15080_v9  ;;  %v3694_v27 = vld [vmem:[#allocation9 + $0x90] sm:$0xff] }
 0x618   :  { %v3698_v9 = vld [vmem:[#allocation9 + $0xb0] sm:$0xff] }
 0x619   :  { %v3718_v16 = vld [vmem:[#allocation9 + $0x150] sm:$0xff] }
 0x61a   :  { %9516 = vmatpush1.bf16.msra.mxu0 %v15081_v23  ;;  %9548 = vmatpush1.bf16.msra.mxu1 %v15082_v25  ;;  %v13453_v23 = vpack.c.bf16 %v3698_v9, %v3694_v27  ;;  %v3701_v25 = vld [vmem:[#allocation9 + $0xc8] sm:$0xff]  ;;  %v3722_v44 = vld [vmem:[#allocation9 + $0x170] sm:$0xff] }
 0x61b   :  { %9518 = vmatprep.subr.bf16.mxu0 %v15083_v2  ;;  %9550 = vmatprep.subr.bf16.mxu1 %v15084_v42  ;;  %v3705_v2 = vld [vmem:[#allocation9 + $0xe8] sm:$0xff]  ;;  %v3703_v42 = vld [vmem:[#allocation9 + $0xd8] sm:$0xff]  ;;  %v13489_v1 = vpack.c.bf16 %v3722_v44, %v3718_v16  ;;  %v3738_v26 = vld [vmem:[#allocation9 + $0x1f0] sm:$0xff] }
 0x61c   :  { %v13458_v33 = vpack.c.bf16 %v3705_v2, %v3701_v25  ;;  %v3725_v27 = vld [vmem:[#allocation9 + $0x188] sm:$0xff]  ;;  %v3727_v25 = vld [vmem:[#allocation9 + $0x198] sm:$0xff]  ;;  %v13513_v7 = vpack.c.bf16 %v3738_v26, %v3734_v29 }
 0x61d   :  { %v3729_v9 = vld [vmem:[#allocation9 + $0x1a8] sm:$0xff] }
 0x61e   :  { %v11574_v8 = vpop.eup %11573  ;;  %9520 = vmatpush1.bf16.msra.mxu0 %v15085_v10  ;;  %9552 = vmatpush1.bf16.msra.mxu1 %v15086_v48  ;;  %v3704_v10 = vld [vmem:[#allocation9 + $0xe0] sm:$0xff]  ;;  %v13494_v2 = vpack.c.bf16 %v3729_v9, %v3725_v27  ;;  %v3887_v16 = vld [vmem:[#allocation10 + $0x8] sm:$0xff]  ;;  %v3889_v27 = vld [vmem:[#allocation10 + $0x18] sm:$0xff] }
 0x61f   :  { %v11576_v38 = vpop.eup %11575  ;;  %v3200_v58 = vmul.f32 %v11574_v8, %v11572_v45  ;;  %9522 = vmatprep.subr.bf16.mxu0 %v13270_v32  ;;  %9554 = vmatprep.subr.bf16.mxu1 %v13272_v28  ;;  %v3681_v32 = vld [vmem:[#allocation9 + $0x28] sm:$0xff]  ;;  %v3679_v28 = vld [vmem:[#allocation9 + $0x18] sm:$0xff]  ;;  %v3700_v8 = vld [vmem:[#allocation9 + $0xc0] sm:$0xff] }
 0x620   :  { %v3199_v15 = vmul.f32 %v11576_v38, %v13287_v41  ;;  %v11578_v41 = vpop.eup %11577  ;;  %v3707_v45 = vld [vmem:[#allocation9 + $0xf8] sm:$0xff]  ;;  %v13462_v38 = vpack.c.bf16 %v3704_v10, %v3700_v8  ;;  %v3728_v8 = vld [vmem:[#allocation9 + $0x1a0] sm:$0xff]  ;;  %v3891_v44 = vld [vmem:[#allocation10 + $0x28] sm:$0xff] }
 0x621   :  { %v13460_v48 = vpack.c.bf16 %v3707_v45, %v3703_v42  ;;  %v3731_v42 = vld [vmem:[#allocation9 + $0x1b8] sm:$0xff]  ;;  %v3724_v45 = vld [vmem:[#allocation9 + $0x180] sm:$0xff]  ;;  %v13518_v9 = vpack.c.bf16 %v3891_v44, %v3887_v16 }
 0x622   :  { %v13399_v13 = vadd.f32 %v3200_v58, %v3199_v15  ;;  %9524 = vmatpush1.bf16.msra.mxu0 %v13276_v24  ;;  %9556 = vmatpush1.bf16.msra.mxu1 %v13278_v34  ;;  %v3677_v34 = vld [vmem:[#allocation9 + $0x8] sm:$0xff]  ;;  %v3702_v58 = vld [vmem:[#allocation9 + $0xd0] sm:$0xff]  ;;  %v13496_v10 = vpack.c.bf16 %v3731_v42, %v3727_v25  ;;  %v3893_v25 = vld [vmem:[#allocation10 + $0x38] sm:$0xff] }
 0x623   :  { %9526 = vmatprep.subr.bf16.mxu0 %v13282_v52  ;;  %9558 = vmatprep.subr.bf16.mxu1 %v13284_v11  ;;  %v13422_v24 = vpack.c.bf16 %v3681_v32, %v3677_v34  ;;  %v13465_v15 = vpack.c.bf16 %v3706_v60, %v3702_v58  ;;  %v3711_v34 = vld [vmem:[#allocation9 + $0x118] sm:$0xff]  ;;  %v13498_v58 = vpack.c.bf16 %v3728_v8, %v3724_v45  ;;  %v3726_v60 = vld [vmem:[#allocation9 + $0x190] sm:$0xff] }
 0x624   :  { %11579 = vtanh.f32 %v13399_v13  ;;  %v13520_v42 = vpack.c.bf16 %v3893_v25, %v3889_v27 }
 0x626   :  { %9528 = vmatpush1.bf16.msra.mxu0 %v13291_v59  ;;  %9560 = vmatpush1.bf16.msra.mxu1 %v13293_v12  ;;  %v3683_v59 = vld [vmem:[#allocation9 + $0x38] sm:$0xff]  ;;  %v3676_v12 = vld [vmem:[#allocation9] sm:$0xff] }
 0x627   :  { %9530 = vmatprep.subr.bf16.mxu0 %v13297_v18  ;;  %9562 = vmatprep.subr.bf16.mxu1 %v13299_v54  ;;  %v3680_v18 = vld [vmem:[#allocation9 + $0x20] sm:$0xff]  ;;  %v13424_v54 = vpack.c.bf16 %v3683_v59, %v3679_v28  ;;  %v3715_v28 = vld [vmem:[#allocation9 + $0x138] sm:$0xff] }
 0x628   :  { %v3708_v59 = vld [vmem:[#allocation9 + $0x100] sm:$0xff] }
 0x62a   :  { %9532 = vmatpush1.bf16.msra.mxu0 %v13304_v62  ;;  %9564 = vmatpush1.bf16.msra.mxu1 %v13306_v63  ;;  %v13426_v62 = vpack.c.bf16 %v3680_v18, %v3676_v12  ;;  %v3678_v63 = vld [vmem:[#allocation9 + $0x10] sm:$0xff]  ;;  %v3712_v12 = vld [vmem:[#allocation9 + $0x120] sm:$0xff]  ;;  %v13472_v18 = vpack.c.bf16 %v3715_v28, %v3711_v34  ;;  %v3733_v34 = vld [vmem:[#allocation9 + $0x1c8] sm:$0xff] }
 0x62b   :  { %9534 = vmatprep.subr.bf16.mxu0 %v13310_v0  ;;  %9566 = vmatprep.subr.bf16.mxu1 %v13312_v47  ;;  %v3682_v0 = vld [vmem:[#allocation9 + $0x30] sm:$0xff]  ;;  %v3737_v28 = vld [vmem:[#allocation9 + $0x1e8] sm:$0xff] }
 0x62c   :  { %v13429_v47 = vpack.c.bf16 %v3682_v0, %v3678_v63  ;;  %v13474_v63 = vpack.c.bf16 %v3712_v12, %v3708_v59  ;;  %v3710_v0 = vld [vmem:[#allocation9 + $0x110] sm:$0xff]  ;;  %v3735_v59 = vld [vmem:[#allocation9 + $0x1d8] sm:$0xff]  ;;  %v13506_v12 = vpack.c.bf16 %v3737_v28, %v3733_v34 }
 0x62e   :  { %v11580_v52 = vpop.eup %11579  ;;  %9536 = vmatpush1.bf16.msra.mxu0 %v13316_v46  ;;  %9568 = vmatpush1.bf16.msra.mxu1 %v13318_v40  ;;  %v3685_v46 = vld [vmem:[#allocation9 + $0x48] sm:$0xff] }
 0x62f   :  { %v13416_v11 = vmul.f32 %v11580_v52, %v11578_v41  ;;  %9570 = vmatprep.subr.bf16.mxu0 %v13422_v24  ;;  %9602 = vmatprep.subr.bf16.mxu1 %v13424_v54  ;;  %v3689_v40 = vld [vmem:[#allocation9 + $0x68] sm:$0xff] }
 0x630   :  { %v13434_v57 = vpack.c.bf16 %v3689_v40, %v3685_v46  ;;  %v3709_v41 = vld [vmem:[#allocation9 + $0x108] sm:$0xff]  ;;  %v3714_v46 = vld [vmem:[#allocation9 + $0x130] sm:$0xff] }
 0x631   :  { %15087 = vst [vmem:[#allocation29_spill] sm:$0xff] %v13416_v11  ;;  %3549 = vmatmul.mubr.f32.vlgmr.msra.gmra.mrb[20].mxu0 %v13416_v11  ;;  %3620 = vmatmul.mubr.f32.vlgmr.msra.gmra.mrb[20].mxu1 %v13416_v11  ;;  %v3713_v52 = vld [vmem:[#allocation9 + $0x128] sm:$0xff]  ;;  %v13477_v40 = vpack.c.bf16 %v3714_v46, %v3710_v0  ;;  %v3739_v0 = vld [vmem:[#allocation9 + $0x1f8] sm:$0xff]  ;;  %v3732_v46 = vld [vmem:[#allocation9 + $0x1c0] sm:$0xff] }
 0x632   :  { %3808 = vmatprep.mubr.f32.mxu0 %v14988_v20  ;;  %3879 = vmatprep.mubr.f32.mxu1 %v14988_v20  ;;  %v13470_v32 = vpack.c.bf16 %v3713_v52, %v3709_v41  ;;  %v3730_v41 = vld [vmem:[#allocation9 + $0x1b0] sm:$0xff]  ;;  %v13508_v14 = vpack.c.bf16 %v3739_v0, %v3735_v59  ;;  %v13510_v61 = vpack.c.bf16 %v3736_v4, %v3732_v46 }
 0x633   :  { %9572 = vmatpush1.bf16.msra.mxu0 %v13426_v62  ;;  %9604 = vmatpush1.bf16.msra.mxu1 %v13429_v47  ;;  %v13501_v52 = vpack.c.bf16 %v3730_v41, %v3726_v60 }
 0x634   :  { %9574 = vmatprep.subr.bf16.mxu0 %v13434_v57  ;;  %9606 = vmatprep.subr.bf16.mxu1 %v13436_v31 }
 0x637   :  { %9576 = vmatpush1.bf16.msra.mxu0 %v13438_v43  ;;  %9608 = vmatpush1.bf16.msra.mxu1 %v13441_v21 }
 0x638   :  { %9578 = vmatprep.subr.bf16.mxu0 %v13446_v17  ;;  %9610 = vmatprep.subr.bf16.mxu1 %v13448_v55 }
 0x63b   :  { %9580 = vmatpush1.bf16.msra.mxu0 %v13450_v22  ;;  %9612 = vmatpush1.bf16.msra.mxu1 %v13453_v23 }
 0x63c   :  { %9582 = vmatprep.subr.bf16.mxu0 %v13458_v33  ;;  %9614 = vmatprep.subr.bf16.mxu1 %v13460_v48 }
 0x63f   :  { %9584 = vmatpush1.bf16.msra.mxu0 %v13462_v38  ;;  %9616 = vmatpush1.bf16.msra.mxu1 %v13465_v15 }
 0x640   :  { %9586 = vmatprep.subr.bf16.mxu0 %v13470_v32  ;;  %9618 = vmatprep.subr.bf16.mxu1 %v13472_v18 }
 0x643   :  { %9588 = vmatpush1.bf16.msra.mxu0 %v13474_v63  ;;  %9620 = vmatpush1.bf16.msra.mxu1 %v13477_v40 }
 0x644   :  { %9590 = vmatprep.subr.bf16.mxu0 %v13482_v53  ;;  %9622 = vmatprep.subr.bf16.mxu1 %v13484_v30 }
 0x647   :  { %9592 = vmatpush1.bf16.msra.mxu0 %v13486_v49  ;;  %9624 = vmatpush1.bf16.msra.mxu1 %v13489_v1 }
 0x648   :  { %9594 = vmatprep.subr.bf16.mxu0 %v13494_v2  ;;  %9626 = vmatprep.subr.bf16.mxu1 %v13496_v10 }
 0x64b   :  { %9596 = vmatpush1.bf16.msra.mxu0 %v13498_v58  ;;  %9628 = vmatpush1.bf16.msra.mxu1 %v13501_v52 }
 0x64c   :  { %9598 = vmatprep.subr.bf16.mxu0 %v13506_v12  ;;  %9630 = vmatprep.subr.bf16.mxu1 %v13508_v14 }
 0x64f   :  { %9600 = vmatpush1.bf16.msra.mxu0 %v13510_v61  ;;  %9632 = vmatpush1.bf16.msra.mxu1 %v13513_v7 }
 0x650   :  { %9634 = vmatprep.subr.bf16.mxu0 %v13518_v9  ;;  %9666 = vmatprep.subr.bf16.mxu1 %v13520_v42 }
 0x6e4   :  { %v3340_v45 = vpop.f32.mrb[10].mxu0  ;;  %v3411_v8 = vpop.f32.mrb[10].mxu1 }
 0x6e5   :  { %v11159_v60 = vadd.f32 %v3340_v45, %v12706_v39  ;;  %v3342_v41 = vpop.f32.mrb[11].mxu0  ;;  %v3413_v34 = vpop.f32.mrb[11].mxu1  ;;  %v11175_v29 = vadd.f32 %v3411_v8, %v15067_v56  ;;  %v3903_v56 = vld [vmem:[#allocation10 + $0x88] sm:$0xff] }
 0x6e6   :  { %v11160_v28 = vadd.f32 %v3342_v41, %v15065_v35  ;;  %v11176_v46 = vadd.f32 %v3413_v34, %v15066_v6  ;;  %v3907_v6 = vld [vmem:[#allocation10 + $0xa8] sm:$0xff]  ;;  %v3905_v35 = vld [vmem:[#allocation10 + $0x98] sm:$0xff] }
 0x6e7   :  { %v8540_v59 = vmul.f32 -1.442695, %v11159_v60 }
 0x6e8   :  { %v8541_v0 = vmul.f32 -1.442695, %v11160_v28  ;;  %v8542_v4 = vmul.f32 -1.442695, %v11176_v46 }
 0x6e9   :  { %11581 = vpow2.f32 %v8540_v59 }
 0x6ea   :  { %11583 = vpow2.f32 %v8541_v0 }
 0x6eb   :  { %11585 = vpow2.f32 %v8542_v4 }
 0x6ec   :  { %11587 = vtanh.f32 %v11175_v29 }
 0x6f3   :  { %v11582_v26 = vpop.eup %11581 }
 0x6f4   :  { %v11584_v16 = vpop.eup %11583  ;;  %v3629_v44 = vadd.f32 1.0, %v11582_v26 }
 0x6f5   :  { %v3635_v27 = vadd.f32 1.0, %v11584_v16  ;;  %v11586_v25 = vpop.eup %11585 }
 0x6f6   :  { %11589 = vrcp.f32 %v3629_v44  ;;  %v11588_v45 = vpop.eup %11587  ;;  %v3642_v59 = vadd.f32 1.0, %v11586_v25 }
 0x6f7   :  { %11591 = vrcp.f32 %v3635_v27 }
 0x6f8   :  { %11593 = vrcp.f32 %v3642_v59  ;;  %v3899_v59 = vld [vmem:[#allocation10 + $0x68] sm:$0xff] }
 0x700   :  { %v11590_v41 = vpop.eup %11589 }
 0x701   :  { %v11592_v60 = vpop.eup %11591  ;;  %v3646_v28 = vmul.f32 %v11590_v41, %v11588_v45  ;;  %v3890_v45 = vld [vmem:[#allocation10 + $0x20] sm:$0xff]  ;;  %v3888_v41 = vld [vmem:[#allocation10 + $0x10] sm:$0xff] }
 0x702   :  { %v3645_v0 = vmul.f32 %v11592_v60, %v13369_v3  ;;  %v3886_v3 = vld [vmem:[#allocation10] sm:$0xff]  ;;  %v3892_v60 = vld [vmem:[#allocation10 + $0x30] sm:$0xff]  ;;  %v11594_v51 = vpop.eup %11593 }
 0x704   :  { %v13529_v34 = vadd.f32 %v3646_v28, %v3645_v0  ;;  %v3550_v46 = vpop.f32.mrb[20].mxu0  ;;  %v3621_v8 = vpop.f32.mrb[20].mxu1  ;;  %v3895_v28 = vld [vmem:[#allocation10 + $0x48] sm:$0xff]  ;;  %v3897_v0 = vld [vmem:[#allocation10 + $0x58] sm:$0xff] }
 0x705   :  { %v11185_v26 = vadd.f32 %v3550_v46, %v15069_v50  ;;  %v3552_v4 = vpop.f32.mrb[21].mxu0  ;;  %v3623_v29 = vpop.f32.mrb[21].mxu1  ;;  %v3901_v46 = vld [vmem:[#allocation10 + $0x78] sm:$0xff]  ;;  %v13535_v50 = vpack.c.bf16 %v3890_v45, %v3886_v3 }
 0x706   :  { %15088 = vst [vmem:[#allocation30_spill] sm:$0xff] %v13529_v34  ;;  %11595 = vtanh.f32 %v13529_v34  ;;  %v11186_v16 = vadd.f32 %v3552_v4, %v15070_v37  ;;  %v11202_v25 = vadd.f32 %v3623_v29, %v15071_v19  ;;  %v13537_v4 = vpack.c.bf16 %v3892_v60, %v3888_v41  ;;  %v3896_v37 = vld [vmem:[#allocation10 + $0x50] sm:$0xff]  ;;  %v3902_v41 = vld [vmem:[#allocation10 + $0x80] sm:$0xff] }
 0x707   :  { %v8543_v44 = vmul.f32 -1.442695, %v11185_v26  ;;  %15089 = vst [vmem:[#allocation32_spill] sm:$0xff] %v13535_v50  ;;  %v3894_v26 = vld [vmem:[#allocation10 + $0x40] sm:$0xff]  ;;  %v11201_v29 = vadd.f32 %v3621_v8, %v12750_v5  ;;  %v13544_v19 = vpack.c.bf16 %v3901_v46, %v3897_v0  ;;  %v3900_v34 = vld [vmem:[#allocation10 + $0x70] sm:$0xff] }
 0x708   :  { %v8544_v27 = vmul.f32 -1.442695, %v11186_v16  ;;  %v8545_v11 = vmul.f32 -1.442695, %v11202_v25  ;;  %15090 = vst [vmem:[#allocation33_spill] sm:$0xff] %v13537_v4  ;;  %v3898_v16 = vld [vmem:[#allocation10 + $0x60] sm:$0xff]  ;;  %v13552_v8 = vpack.c.bf16 %v3900_v34, %v3896_v37 }
 0x709   :  { %11597 = vpow2.f32 %v8543_v44  ;;  %15093 = vst [vmem:[#allocation44_spill] sm:$0xff] %v13544_v19  ;;  %v3909_v25 = vld [vmem:[#allocation10 + $0xb8] sm:$0xff]  ;;  %v3906_v60 = vld [vmem:[#allocation10 + $0xa0] sm:$0xff]  ;;  %v3908_v46 = vld [vmem:[#allocation10 + $0xb0] sm:$0xff] }
 0x70a   :  { %11599 = vpow2.f32 %v8544_v27  ;;  %v13542_v27 = vpack.c.bf16 %v3899_v59, %v3895_v28  ;;  %15095 = vst [vmem:[#allocation46_spill] sm:$0xff] %v13552_v8  ;;  %v13556_v59 = vpack.c.bf16 %v3907_v6, %v3903_v56  ;;  %v13558_v0 = vpack.c.bf16 %v3909_v25, %v3905_v35  ;;  %v3917_v37 = vld [vmem:[#allocation10 + $0xf8] sm:$0xff]  ;;  %v3910_v56 = vld [vmem:[#allocation10 + $0xc0] sm:$0xff] }
 0x70b   :  { %11601 = vpow2.f32 %v8545_v11  ;;  %v3904_v11 = vld [vmem:[#allocation10 + $0x90] sm:$0xff]  ;;  %v13564_v6 = vpack.c.bf16 %v3906_v60, %v3902_v41  ;;  %v3914_v34 = vld [vmem:[#allocation10 + $0xe0] sm:$0xff] }
 0x70c   :  { %15092 = vst [vmem:[#allocation43_spill] sm:$0xff] %v13542_v27  ;;  %11603 = vtanh.f32 %v11201_v29  ;;  %15096 = vst [vmem:[#allocation47_spill] sm:$0xff] %v13556_v59  ;;  %v13566_v35 = vpack.c.bf16 %v3908_v46, %v3904_v11  ;;  %v13576_v41 = vpack.c.bf16 %v3914_v34, %v3910_v56  ;;  %v3918_v11 = vld [vmem:[#allocation10 + $0x100] sm:$0xff]  ;;  %v3933_v56 = vld [vmem:[#allocation10 + $0x178] sm:$0xff] }
 0x70d   :  { %15097 = vst [vmem:[#allocation48_spill] sm:$0xff] %v13558_v0  ;;  %15098 = vst [vmem:[#allocation50_spill] sm:$0xff] %v13564_v6  ;;  %v3922_v46 = vld [vmem:[#allocation10 + $0x120] sm:$0xff] }
 0x70e   :  { %15099 = vst [vmem:[#allocation51_spill] sm:$0xff] %v13566_v35  ;;  %15102 = vst [vmem:[#allocation55_spill] sm:$0xff] %v13576_v41 }
 0x710   :  { %v11596_v36 = vpop.eup %11595 }
 0x711   :  { %v13539_v44 = vmul.f32 %v11596_v36, %v11594_v51  ;;  %v13550_v51 = vpack.c.bf16 %v3898_v16, %v3894_v26  ;;  %v3915_v26 = vld [vmem:[#allocation10 + $0xe8] sm:$0xff]  ;;  %v3913_v16 = vld [vmem:[#allocation10 + $0xd8] sm:$0xff] }
 0x712   :  { %v13572_v25 = vpack.c.bf16 %v3917_v37, %v3913_v16  ;;  %v3920_v16 = vld [vmem:[#allocation10 + $0x110] sm:$0xff] }
 0x713   :  { %15091 = vst [vmem:[#allocation42_spill] sm:$0xff] %v13539_v44  ;;  %v11598_v3 = vpop.eup %11597  ;;  %3809 = vmatmul.mubr.f32.vlgmr.msra.gmra.mrb[12].mxu0 %v13539_v44  ;;  %3880 = vmatmul.mubr.f32.vlgmr.msra.gmra.mrb[12].mxu1 %v13539_v44  ;;  %15094 = vst [vmem:[#allocation45_spill] sm:$0xff] %v13550_v51  ;;  %v3923_v44 = vld [vmem:[#allocation10 + $0x128] sm:$0xff]  ;;  %v3924_v37 = vld [vmem:[#allocation10 + $0x130] sm:$0xff] }
 0x714   :  { %v11600_v45 = vpop.eup %11599  ;;  %v3653_v36 = vadd.f32 1.0, %v11598_v3  ;;  %9636 = vmatpush1.bf16.msra.mxu0 %v13535_v50  ;;  %9668 = vmatpush1.bf16.msra.mxu1 %v13537_v4  ;;  %v3911_v3 = vld [vmem:[#allocation10 + $0xc8] sm:$0xff]  ;;  %15101 = vst [vmem:[#allocation54_spill] sm:$0xff] %v13572_v25  ;;  %v3932_v4 = vld [vmem:[#allocation10 + $0x170] sm:$0xff] }
 0x715   :  { %v3659_v28 = vadd.f32 1.0, %v11600_v45  ;;  %9638 = vmatprep.subr.bf16.mxu0 %v13542_v27  ;;  %9670 = vmatprep.subr.bf16.mxu1 %v13544_v19  ;;  %v13570_v29 = vpack.c.bf16 %v3915_v26, %v3911_v3  ;;  %v3912_v45 = vld [vmem:[#allocation10 + $0xd0] sm:$0xff] }
 0x716   :  { %11605 = vrcp.f32 %v3653_v36  ;;  %4018 = vmatprep.mubr.f32.mxu0 %v14988_v20  ;;  %4089 = vmatprep.mubr.f32.mxu1 %v14988_v20  ;;  %v3916_v36 = vld [vmem:[#allocation10 + $0xf0] sm:$0xff] }
 0x717   :  { %11607 = vrcp.f32 %v3659_v28  ;;  %15100 = vst [vmem:[#allocation52_spill] sm:$0xff] %v13570_v29  ;;  %v3919_v28 = vld [vmem:[#allocation10 + $0x108] sm:$0xff]  ;;  %v13578_v60 = vpack.c.bf16 %v3916_v36, %v3912_v45  ;;  %v13588_v36 = vpack.c.bf16 %v3922_v46, %v3918_v11 }
 0x718   :  { %9640 = vmatpush1.bf16.msra.mxu0 %v13550_v51  ;;  %9672 = vmatpush1.bf16.msra.mxu1 %v13552_v8  ;;  %v3921_v51 = vld [vmem:[#allocation10 + $0x118] sm:$0xff]  ;;  %v13582_v3 = vpack.c.bf16 %v3923_v44, %v3919_v28  ;;  %v3926_v44 = vld [vmem:[#allocation10 + $0x140] sm:$0xff]  ;;  %v3939_v46 = vld [vmem:[#allocation10 + $0x1a8] sm:$0xff] }
 0x719   :  { %9642 = vmatprep.subr.bf16.mxu0 %v13556_v59  ;;  %9674 = vmatprep.subr.bf16.mxu1 %v13558_v0  ;;  %v3925_v8 = vld [vmem:[#allocation10 + $0x138] sm:$0xff]  ;;  %15103 = vst [vmem:[#allocation56_spill] sm:$0xff] %v13578_v60  ;;  %v3927_v0 = vld [vmem:[#allocation10 + $0x148] sm:$0xff] }
 0x71a   :  { %v13584_v26 = vpack.c.bf16 %v3925_v8, %v3921_v51  ;;  %v3931_v59 = vld [vmem:[#allocation10 + $0x168] sm:$0xff]  ;;  %v3930_v51 = vld [vmem:[#allocation10 + $0x160] sm:$0xff] }
 0x71b   :  { %v13594_v19 = vpack.c.bf16 %v3931_v59, %v3927_v0  ;;  %v3934_v0 = vld [vmem:[#allocation10 + $0x180] sm:$0xff] }
 0x71c   :  { %9644 = vmatpush1.bf16.msra.mxu0 %v13564_v6  ;;  %9676 = vmatpush1.bf16.msra.mxu1 %v13566_v35  ;;  %v11602_v6 = vpop.eup %11601  ;;  %v3929_v35 = vld [vmem:[#allocation10 + $0x158] sm:$0xff] }
 0x71d   :  { %9646 = vmatprep.subr.bf16.mxu0 %v13570_v29  ;;  %9678 = vmatprep.subr.bf16.mxu1 %v13572_v25  ;;  %v11604_v34 = vpop.eup %11603  ;;  %v13590_v25 = vpack.c.bf16 %v3924_v37, %v3920_v16  ;;  %v3666_v29 = vadd.f32 1.0, %v11602_v6  ;;  %v13596_v27 = vpack.c.bf16 %v3933_v56, %v3929_v35  ;;  %v3937_v16 = vld [vmem:[#allocation10 + $0x198] sm:$0xff]  ;;  %v13603_v6 = vpack.c.bf16 %v3930_v51, %v3926_v44  ;;  %v3938_v35 = vld [vmem:[#allocation10 + $0x1a0] sm:$0xff]  ;;  %v3947_v44 = vld [vmem:[#allocation10 + $0x1e8] sm:$0xff] }
 0x71e   :  { %v3941_v37 = vld [vmem:[#allocation10 + $0x1b8] sm:$0xff] }
 0x71f   :  { %11609 = vrcp.f32 %v3666_v29  ;;  %v13611_v56 = vpack.c.bf16 %v3941_v37, %v3937_v16  ;;  %v3945_v51 = vld [vmem:[#allocation10 + $0x1d8] sm:$0xff]  ;;  %v13616_v29 = vpack.c.bf16 %v3938_v35, %v3934_v0  ;;  %v3944_v16 = vld [vmem:[#allocation10 + $0x1d0] sm:$0xff] }
 0x720   :  { %v11606_v45 = vpop.eup %11605  ;;  %9648 = vmatpush1.bf16.msra.mxu0 %v13576_v41  ;;  %9680 = vmatpush1.bf16.msra.mxu1 %v13578_v60  ;;  %v3928_v41 = vld [vmem:[#allocation10 + $0x150] sm:$0xff]  ;;  %v3935_v60 = vld [vmem:[#allocation10 + $0x188] sm:$0xff] }
 0x721   :  { %v11608_v8 = vpop.eup %11607  ;;  %v3670_v28 = vmul.f32 %v11606_v45, %v11604_v34  ;;  %9650 = vmatprep.subr.bf16.mxu0 %v13582_v3  ;;  %9682 = vmatprep.subr.bf16.mxu1 %v13584_v26  ;;  %v13605_v59 = vpack.c.bf16 %v3932_v4, %v3928_v41  ;;  %v3936_v34 = vld [vmem:[#allocation10 + $0x190] sm:$0xff]  ;;  %v3949_v4 = vld [vmem:[#allocation10 + $0x1f8] sm:$0xff] }
 0x722   :  { %v3669_v11 = vmul.f32 %v11608_v8, %v13399_v13  ;;  %v13609_v13 = vpack.c.bf16 %v3939_v46, %v3935_v60  ;;  %v3940_v45 = vld [vmem:[#allocation10 + $0x1b0] sm:$0xff]  ;;  %v3943_v8 = vld [vmem:[#allocation10 + $0x1c8] sm:$0xff]  ;;  %v3942_v60 = vld [vmem:[#allocation10 + $0x1c0] sm:$0xff] }
 0x723   :  { %v13618_v41 = vpack.c.bf16 %v3940_v45, %v3936_v34  ;;  %v3946_v46 = vld [vmem:[#allocation10 + $0x1e0] sm:$0xff]  ;;  %v3948_v37 = vld [vmem:[#allocation10 + $0x1f0] sm:$0xff] }
 0x724   :  { %v13599_v50 = vadd.f32 %v3670_v28, %v3669_v11  ;;  %9652 = vmatpush1.bf16.msra.mxu0 %v13588_v36  ;;  %9684 = vmatpush1.bf16.msra.mxu1 %v13590_v25  ;;  %v13622_v28 = vpack.c.bf16 %v3947_v44, %v3943_v8  ;;  %v13624_v11 = vpack.c.bf16 %v3949_v4, %v3945_v51 }
 0x725   :  { %9654 = vmatprep.subr.bf16.mxu0 %v13594_v19  ;;  %9686 = vmatprep.subr.bf16.mxu1 %v13596_v27  ;;  %v13628_v0 = vpack.c.bf16 %v3946_v46, %v3942_v60  ;;  %v13630_v35 = vpack.c.bf16 %v3948_v37, %v3944_v16  ;;  %v15110_v60 = vld [vmem:[#allocation40_spill] sm:$0xff] }
 0x726   :  { %11611 = vtanh.f32 %v13599_v50 }
 0x728   :  { %9656 = vmatpush1.bf16.msra.mxu0 %v13603_v6  ;;  %9688 = vmatpush1.bf16.msra.mxu1 %v13605_v59 }
 0x729   :  { %9658 = vmatprep.subr.bf16.mxu0 %v13609_v13  ;;  %9690 = vmatprep.subr.bf16.mxu1 %v13611_v56  ;;  %v11610_v34 = vpop.eup %11609 }
 0x72c   :  { %9660 = vmatpush1.bf16.msra.mxu0 %v13616_v29  ;;  %9692 = vmatpush1.bf16.msra.mxu1 %v13618_v41 }
 0x72d   :  { %9662 = vmatprep.subr.bf16.mxu0 %v13622_v28  ;;  %9694 = vmatprep.subr.bf16.mxu1 %v13624_v11 }
 0x730   :  { %v11612_v45 = vpop.eup %11611  ;;  %9664 = vmatpush1.bf16.msra.mxu0 %v13628_v0  ;;  %9696 = vmatpush1.bf16.msra.mxu1 %v13630_v35 }
 0x731   :  { %v13636_v8 = vmul.f32 %v11612_v45, %v11610_v34  ;;  %9698 = vmatprep.subr.bf16.mxu0 %v13422_v24  ;;  %9730 = vmatprep.subr.bf16.mxu1 %v13424_v54 }
 0x733   :  { %4019 = vmatmul.mubr.f32.vlgmr.msra.gmra.mrb[18].mxu0 %v13636_v8  ;;  %4090 = vmatmul.mubr.f32.vlgmr.msra.gmra.mrb[18].mxu1 %v13636_v8 }
 0x734   :  { %9700 = vmatpush1.bf16.msra.mxu0 %v13426_v62  ;;  %9732 = vmatpush1.bf16.msra.mxu1 %v13429_v47 }
 0x735   :  { %9702 = vmatprep.subr.bf16.mxu0 %v13434_v57  ;;  %9734 = vmatprep.subr.bf16.mxu1 %v13436_v31  ;;  %v15104_v31 = vld [vmem:[#allocation35_spill] sm:$0xff] }
 0x736   :  { %4278 = vmatprep.mubr.f32.mxu0 %v14988_v20  ;;  %4349 = vmatprep.mubr.f32.mxu1 %v14988_v20 }
 0x738   :  { %9704 = vmatpush1.bf16.msra.mxu0 %v13438_v43  ;;  %9736 = vmatpush1.bf16.msra.mxu1 %v13441_v21 }
 0x739   :  { %9706 = vmatprep.subr.bf16.mxu0 %v13446_v17  ;;  %9738 = vmatprep.subr.bf16.mxu1 %v13448_v55  ;;  %v15105_v55 = vld [vmem:[#allocation36_spill] sm:$0xff] }
 0x73c   :  { %9708 = vmatpush1.bf16.msra.mxu0 %v13450_v22  ;;  %9740 = vmatpush1.bf16.msra.mxu1 %v13453_v23 }
 0x73d   :  { %9710 = vmatprep.subr.bf16.mxu0 %v13458_v33  ;;  %9742 = vmatprep.subr.bf16.mxu1 %v13460_v48  ;;  %v15106_v33 = vld [vmem:[#allocation37_spill] sm:$0xff] }
 0x740   :  { %9712 = vmatpush1.bf16.msra.mxu0 %v13462_v38  ;;  %9744 = vmatpush1.bf16.msra.mxu1 %v13465_v15 }
 0x741   :  { %9714 = vmatprep.subr.bf16.mxu0 %v13470_v32  ;;  %9746 = vmatprep.subr.bf16.mxu1 %v13472_v18 }
 0x744   :  { %9716 = vmatpush1.bf16.msra.mxu0 %v13474_v63  ;;  %9748 = vmatpush1.bf16.msra.mxu1 %v13477_v40 }
 0x745   :  { %9718 = vmatprep.subr.bf16.mxu0 %v13482_v53  ;;  %9750 = vmatprep.subr.bf16.mxu1 %v13484_v30 }
 0x748   :  { %9720 = vmatpush1.bf16.msra.mxu0 %v13486_v49  ;;  %9752 = vmatpush1.bf16.msra.mxu1 %v13489_v1 }
 0x749   :  { %9722 = vmatprep.subr.bf16.mxu0 %v13494_v2  ;;  %9754 = vmatprep.subr.bf16.mxu1 %v13496_v10  ;;  %v15107_v2 = vld [vmem:[#allocation30_spill] sm:$0xff] }
 0x74c   :  { %9724 = vmatpush1.bf16.msra.mxu0 %v13498_v58  ;;  %9756 = vmatpush1.bf16.msra.mxu1 %v13501_v52 }
 0x74d   :  { %9726 = vmatprep.subr.bf16.mxu0 %v13506_v12  ;;  %9758 = vmatprep.subr.bf16.mxu1 %v13508_v14  ;;  %v15108_v14 = vld [vmem:[#allocation38_spill] sm:$0xff] }
 0x750   :  { %9728 = vmatpush1.bf16.msra.mxu0 %v13510_v61  ;;  %9760 = vmatpush1.bf16.msra.mxu1 %v13513_v7 }
 0x751   :  { %9762 = vmatprep.subr.bf16.mxu0 %v13518_v9  ;;  %9794 = vmatprep.subr.bf16.mxu1 %v13520_v42  ;;  %v15109_v42 = vld [vmem:[#allocation39_spill] sm:$0xff] }
 0x7e6   :  { %v3810_v24 = vpop.f32.mrb[12].mxu0  ;;  %v3881_v54 = vpop.f32.mrb[12].mxu1 }
 0x7e7   :  { %v11161_v62 = vadd.f32 %v3810_v24, %v12706_v39  ;;  %v3812_v47 = vpop.f32.mrb[13].mxu0  ;;  %v3883_v57 = vpop.f32.mrb[13].mxu1  ;;  %v11177_v48 = vadd.f32 %v3881_v54, %v15106_v33 }
 0x7e8   :  { %v11162_v43 = vadd.f32 %v3812_v47, %v15104_v31  ;;  %v11178_v22 = vadd.f32 %v3883_v57, %v15105_v55  ;;  %v15111_v57 = vld [vmem:[#allocation32_spill] sm:$0xff] }
 0x7e9   :  { %v8546_v21 = vmul.f32 -1.442695, %v11161_v62 }
 0x7ea   :  { %v8547_v17 = vmul.f32 -1.442695, %v11162_v43  ;;  %v8548_v23 = vmul.f32 -1.442695, %v11178_v22  ;;  %v15112_v43 = vld [vmem:[#allocation33_spill] sm:$0xff]  ;;  %v15114_v22 = vld [vmem:[#allocation44_spill] sm:$0xff] }
 0x7eb   :  { %11613 = vpow2.f32 %v8546_v21 }
 0x7ec   :  { %11615 = vpow2.f32 %v8547_v17  ;;  %v15113_v17 = vld [vmem:[#allocation43_spill] sm:$0xff] }
 0x7ed   :  { %11617 = vpow2.f32 %v8548_v23  ;;  %v15115_v23 = vld [vmem:[#allocation45_spill] sm:$0xff] }
 0x7ee   :  { %11619 = vtanh.f32 %v11177_v48  ;;  %v15116_v48 = vld [vmem:[#allocation46_spill] sm:$0xff] }
 0x7f5   :  { %v11614_v38 = vpop.eup %11613 }
 0x7f6   :  { %v11616_v15 = vpop.eup %11615  ;;  %v4099_v32 = vadd.f32 1.0, %v11614_v38  ;;  %v15117_v38 = vld [vmem:[#allocation47_spill] sm:$0xff] }
 0x7f7   :  { %v4105_v18 = vadd.f32 1.0, %v11616_v15  ;;  %v11618_v63 = vpop.eup %11617  ;;  %v15118_v15 = vld [vmem:[#allocation48_spill] sm:$0xff] }
 0x7f8   :  { %11621 = vrcp.f32 %v4099_v32  ;;  %v11620_v40 = vpop.eup %11619  ;;  %v4112_v1 = vadd.f32 1.0, %v11618_v63  ;;  %v15119_v32 = vld [vmem:[#allocation50_spill] sm:$0xff]  ;;  %v15121_v63 = vld [vmem:[#allocation52_spill] sm:$0xff] }
 0x7f9   :  { %11623 = vrcp.f32 %v4105_v18  ;;  %v15120_v18 = vld [vmem:[#allocation51_spill] sm:$0xff] }
 0x7fa   :  { %11625 = vrcp.f32 %v4112_v1  ;;  %v15123_v1 = vld [vmem:[#allocation55_spill] sm:$0xff] }
 0x802   :  { %v11622_v53 = vpop.eup %11621 }
 0x803   :  { %v11624_v30 = vpop.eup %11623  ;;  %v4116_v49 = vmul.f32 %v11622_v53, %v11620_v40  ;;  %v15122_v40 = vld [vmem:[#allocation54_spill] sm:$0xff] }
 0x804   :  { %v4115_v10 = vmul.f32 %v11624_v30, %v15107_v2  ;;  %v11626_v16 = vpop.eup %11625  ;;  %v15124_v2 = vld [vmem:[#allocation56_spill] sm:$0xff] }
 0x806   :  { %v13681_v58 = vadd.f32 %v4116_v49, %v4115_v10  ;;  %v4020_v52 = vpop.f32.mrb[18].mxu0  ;;  %v4091_v12 = vpop.f32.mrb[18].mxu1 }
 0x807   :  { %v11183_v61 = vadd.f32 %v4020_v52, %v15108_v14  ;;  %v4022_v7 = vpop.f32.mrb[19].mxu0  ;;  %v4093_v9 = vpop.f32.mrb[19].mxu1  ;;  %v11199_v24 = vadd.f32 %v4091_v12, %v12750_v5 }
 0x808   :  { %11627 = vtanh.f32 %v13681_v58  ;;  %v11184_v44 = vadd.f32 %v4022_v7, %v15109_v42  ;;  %v11200_v46 = vadd.f32 %v4093_v9, %v15110_v60  ;;  %v4651_v9 = vld [vmem:[#allocation12 + $0x98] sm:$0xff] }
 0x809   :  { %v8549_v51 = vmul.f32 -1.442695, %v11183_v61 }
 0x80a   :  { %v8550_v4 = vmul.f32 -1.442695, %v11184_v44  ;;  %v8551_v34 = vmul.f32 -1.442695, %v11200_v46  ;;  %v4656_v46 = vld [vmem:[#allocation12 + $0xc0] sm:$0xff] }
 0x80b   :  { %11629 = vpow2.f32 %v8549_v51  ;;  %v4659_v51 = vld [vmem:[#allocation12 + $0xd8] sm:$0xff] }
 0x80c   :  { %11631 = vpow2.f32 %v8550_v4  ;;  %v4648_v4 = vld [vmem:[#allocation12 + $0x80] sm:$0xff] }
 0x80d   :  { %11633 = vpow2.f32 %v8551_v34  ;;  %v4650_v34 = vld [vmem:[#allocation12 + $0x90] sm:$0xff] }
 0x80e   :  { %11635 = vtanh.f32 %v11199_v24  ;;  %v4658_v24 = vld [vmem:[#allocation12 + $0xd0] sm:$0xff] }
 0x812   :  { %v11628_v37 = vpop.eup %11627 }
 0x813   :  { %v13687_v45 = vmul.f32 %v11628_v37, %v11626_v16  ;;  %v9893_v16 = vpack.c.bf16 %v4659_v51, %v4651_v9  ;;  %v9831_v37 = vpack.c.bf16 %v4656_v46, %v4648_v4  ;;  %v4723_v9 = vld [vmem:[#allocation12 + $0x2d8] sm:$0xff]  ;;  %v4720_v51 = vld [vmem:[#allocation12 + $0x2c0] sm:$0xff] }
 0x815   :  { %v11630_v54 = vpop.eup %11629  ;;  %4279 = vmatmul.mubr.f32.vlgmr.msra.gmra.mrb[14].mxu0 %v13687_v45  ;;  %4350 = vmatmul.mubr.f32.vlgmr.msra.gmra.mrb[14].mxu1 %v13687_v45 }
 0x816   :  { %v11632_v62 = vpop.eup %11631  ;;  %v4123_v47 = vadd.f32 1.0, %v11630_v54  ;;  %9764 = vmatpush1.bf16.msra.mxu0 %v15111_v57  ;;  %9796 = vmatpush1.bf16.msra.mxu1 %v15112_v43  ;;  %v9895_v54 = vpack.c.bf16 %v4658_v24, %v4650_v34  ;;  %v4667_v57 = vld [vmem:[#allocation12 + $0x118] sm:$0xff]  ;;  %v4729_v24 = vld [vmem:[#allocation12 + $0x308] sm:$0xff] }
 0x817   :  { %v4129_v21 = vadd.f32 1.0, %v11632_v62  ;;  %9766 = vmatprep.subr.bf16.mxu0 %v15113_v17  ;;  %9798 = vmatprep.subr.bf16.mxu1 %v15114_v22  ;;  %v11634_v53 = vpop.eup %11633  ;;  %v4665_v62 = vld [vmem:[#allocation12 + $0x108] sm:$0xff]  ;;  %v4664_v17 = vld [vmem:[#allocation12 + $0x100] sm:$0xff] }
 0x818   :  { %11637 = vrcp.f32 %v4123_v47  ;;  %4488 = vmatprep.mubr.f32.mxu0 %v14988_v20  ;;  %4559 = vmatprep.mubr.f32.mxu1 %v14988_v20  ;;  %v11636_v30 = vpop.eup %11635  ;;  %v4136_v12 = vadd.f32 1.0, %v11634_v53  ;;  %v4673_v47 = vld [vmem:[#allocation12 + $0x148] sm:$0xff]  ;;  %v4672_v22 = vld [vmem:[#allocation12 + $0x140] sm:$0xff] }
 0x819   :  { %11639 = vrcp.f32 %v4129_v21  ;;  %v9833_v43 = vpack.c.bf16 %v4673_v47, %v4665_v62  ;;  %v4675_v21 = vld [vmem:[#allocation12 + $0x158] sm:$0xff] }
 0x81a   :  { %9768 = vmatpush1.bf16.msra.mxu0 %v15115_v23  ;;  %9800 = vmatpush1.bf16.msra.mxu1 %v15116_v48  ;;  %11641 = vrcp.f32 %v4136_v12  ;;  %v9897_v23 = vpack.c.bf16 %v4675_v21, %v4667_v57  ;;  %v9835_v48 = vpack.c.bf16 %v4672_v22, %v4664_v17  ;;  %v4690_v12 = vld [vmem:[#allocation12 + $0x1d0] sm:$0xff]  ;;  %v4731_v62 = vld [vmem:[#allocation12 + $0x318] sm:$0xff]  ;;  %v4736_v21 = vld [vmem:[#allocation12 + $0x340] sm:$0xff] }
 0x81b   :  { %9770 = vmatprep.subr.bf16.mxu0 %v15117_v38  ;;  %9802 = vmatprep.subr.bf16.mxu1 %v15118_v15  ;;  %v4666_v38 = vld [vmem:[#allocation12 + $0x110] sm:$0xff]  ;;  %v4739_v57 = vld [vmem:[#allocation12 + $0x358] sm:$0xff] }
 0x81c   :  { %v4674_v15 = vld [vmem:[#allocation12 + $0x150] sm:$0xff]  ;;  %v9913_v17 = vpack.c.bf16 %v4739_v57, %v4731_v62  ;;  %v4803_v62 = vld [vmem:[#allocation12 + $0x558] sm:$0xff]  ;;  %v4800_v57 = vld [vmem:[#allocation12 + $0x540] sm:$0xff] }
 0x81e   :  { %9772 = vmatpush1.bf16.msra.mxu0 %v15119_v32  ;;  %9804 = vmatpush1.bf16.msra.mxu1 %v15120_v18  ;;  %v9899_v32 = vpack.c.bf16 %v4674_v15, %v4666_v38  ;;  %v4681_v18 = vld [vmem:[#allocation12 + $0x188] sm:$0xff] }
 0x81f   :  { %9774 = vmatprep.subr.bf16.mxu0 %v15121_v63  ;;  %9806 = vmatprep.subr.bf16.mxu1 %v15122_v40  ;;  %v4689_v63 = vld [vmem:[#allocation12 + $0x1c8] sm:$0xff]  ;;  %v4683_v40 = vld [vmem:[#allocation12 + $0x198] sm:$0xff] }
 0x820   :  { %v9837_v53 = vpack.c.bf16 %v4689_v63, %v4681_v18  ;;  %v4745_v15 = vld [vmem:[#allocation12 + $0x388] sm:$0xff]  ;;  %v4747_v18 = vld [vmem:[#allocation12 + $0x398] sm:$0xff] }
 0x822   :  { %v11638_v49 = vpop.eup %11637  ;;  %9776 = vmatpush1.bf16.msra.mxu0 %v15123_v1  ;;  %9808 = vmatpush1.bf16.msra.mxu1 %v15124_v2  ;;  %v4688_v1 = vld [vmem:[#allocation12 + $0x1c0] sm:$0xff] }
 0x823   :  { %v11640_v10 = vpop.eup %11639  ;;  %v4140_v52 = vmul.f32 %v11638_v49, %v11636_v30  ;;  %9778 = vmatprep.subr.bf16.mxu0 %v13582_v3  ;;  %9810 = vmatprep.subr.bf16.mxu1 %v13584_v26  ;;  %v4641_v3 = vld [vmem:[#allocation12 + $0x48] sm:$0xff]  ;;  %v4635_v26 = vld [vmem:[#allocation12 + $0x18] sm:$0xff]  ;;  %v4680_v49 = vld [vmem:[#allocation12 + $0x180] sm:$0xff] }
 0x824   :  { %v4139_v61 = vmul.f32 %v11640_v10, %v13599_v50  ;;  %v11642_v50 = vpop.eup %11641  ;;  %v4691_v30 = vld [vmem:[#allocation12 + $0x1d8] sm:$0xff]  ;;  %v9839_v10 = vpack.c.bf16 %v4688_v1, %v4680_v49 }
 0x825   :  { %v9901_v2 = vpack.c.bf16 %v4691_v30, %v4683_v40  ;;  %v4755_v40 = vld [vmem:[#allocation12 + $0x3d8] sm:$0xff]  ;;  %v4752_v30 = vld [vmem:[#allocation12 + $0x3c0] sm:$0xff] }
 0x826   :  { %v13711_v7 = vadd.f32 %v4140_v52, %v4139_v61  ;;  %9780 = vmatpush1.bf16.msra.mxu0 %v13588_v36  ;;  %9812 = vmatpush1.bf16.msra.mxu1 %v13590_v25  ;;  %v4633_v25 = vld [vmem:[#allocation12 + $0x8] sm:$0xff]  ;;  %v4682_v52 = vld [vmem:[#allocation12 + $0x190] sm:$0xff]  ;;  %v9917_v49 = vpack.c.bf16 %v4755_v40, %v4747_v18  ;;  %v4819_v18 = vld [vmem:[#allocation12 + $0x5d8] sm:$0xff] }
 0x827   :  { %9782 = vmatprep.subr.bf16.mxu0 %v13594_v19  ;;  %9814 = vmatprep.subr.bf16.mxu1 %v13596_v27  ;;  %v9825_v36 = vpack.c.bf16 %v4641_v3, %v4633_v25  ;;  %v9903_v61 = vpack.c.bf16 %v4690_v12, %v4682_v52  ;;  %v4699_v25 = vld [vmem:[#allocation12 + $0x218] sm:$0xff]  ;;  %v4761_v12 = vld [vmem:[#allocation12 + $0x408] sm:$0xff]  ;;  %v4816_v40 = vld [vmem:[#allocation12 + $0x5c0] sm:$0xff] }
 0x828   :  { %11643 = vtanh.f32 %v13711_v7 }
 0x82a   :  { %9784 = vmatpush1.bf16.msra.mxu0 %v13603_v6  ;;  %9816 = vmatpush1.bf16.msra.mxu1 %v13605_v59  ;;  %v4643_v6 = vld [vmem:[#allocation12 + $0x58] sm:$0xff]  ;;  %v4632_v59 = vld [vmem:[#allocation12] sm:$0xff] }
 0x82b   :  { %9786 = vmatprep.subr.bf16.mxu0 %v13609_v13  ;;  %9818 = vmatprep.subr.bf16.mxu1 %v13611_v56  ;;  %v4640_v13 = vld [vmem:[#allocation12 + $0x40] sm:$0xff]  ;;  %v9889_v56 = vpack.c.bf16 %v4643_v6, %v4635_v26  ;;  %v4707_v26 = vld [vmem:[#allocation12 + $0x258] sm:$0xff] }
 0x82c   :  { %v4704_v6 = vld [vmem:[#allocation12 + $0x240] sm:$0xff] }
 0x82e   :  { %9788 = vmatpush1.bf16.msra.mxu0 %v13616_v29  ;;  %9820 = vmatpush1.bf16.msra.mxu1 %v13618_v41  ;;  %v9827_v29 = vpack.c.bf16 %v4640_v13, %v4632_v59  ;;  %v4634_v41 = vld [vmem:[#allocation12 + $0x10] sm:$0xff]  ;;  %v9905_v59 = vpack.c.bf16 %v4707_v26, %v4699_v25  ;;  %v4771_v25 = vld [vmem:[#allocation12 + $0x458] sm:$0xff]  ;;  %v4768_v26 = vld [vmem:[#allocation12 + $0x440] sm:$0xff] }
 0x82f   :  { %9790 = vmatprep.subr.bf16.mxu0 %v13622_v28  ;;  %9822 = vmatprep.subr.bf16.mxu1 %v13624_v11  ;;  %v4642_v28 = vld [vmem:[#allocation12 + $0x50] sm:$0xff] }
 0x830   :  { %v9891_v11 = vpack.c.bf16 %v4642_v28, %v4634_v41  ;;  %v4713_v28 = vld [vmem:[#allocation12 + $0x288] sm:$0xff] }
 0x832   :  { %v11644_v19 = vpop.eup %11643  ;;  %9792 = vmatpush1.bf16.msra.mxu0 %v13628_v0  ;;  %9824 = vmatpush1.bf16.msra.mxu1 %v13630_v35  ;;  %v4649_v0 = vld [vmem:[#allocation12 + $0x88] sm:$0xff] }
 0x833   :  { %v13728_v27 = vmul.f32 %v11644_v19, %v11642_v50  ;;  %9826 = vmatprep.subr.bf16.mxu0 %v9825_v36  ;;  %9890 = vmatprep.subr.bf16.mxu1 %v9889_v56  ;;  %v4657_v35 = vld [vmem:[#allocation12 + $0xc8] sm:$0xff]  ;;  %v4696_v36 = vld [vmem:[#allocation12 + $0x200] sm:$0xff]  ;;  %v4698_v56 = vld [vmem:[#allocation12 + $0x210] sm:$0xff] }
 0x834   :  { %v9829_v44 = vpack.c.bf16 %v4657_v35, %v4649_v0  ;;  %v4697_v50 = vld [vmem:[#allocation12 + $0x208] sm:$0xff]  ;;  %v9843_v13 = vpack.c.bf16 %v4704_v6, %v4696_v36  ;;  %v4715_v0 = vld [vmem:[#allocation12 + $0x298] sm:$0xff] }
 0x835   :  { %4489 = vmatmul.mubr.f32.vlgmr.msra.gmra.mrb[16].mxu0 %v13728_v27  ;;  %4560 = vmatmul.mubr.f32.vlgmr.msra.gmra.mrb[16].mxu1 %v13728_v27  ;;  %v4705_v19 = vld [vmem:[#allocation12 + $0x248] sm:$0xff]  ;;  %v9909_v4 = vpack.c.bf16 %v4723_v9, %v4715_v0  ;;  %v4787_v0 = vld [vmem:[#allocation12 + $0x4d8] sm:$0xff]  ;;  %v4784_v9 = vld [vmem:[#allocation12 + $0x4c0] sm:$0xff] }
 0x836   :  { %9828 = vmatpush1.bf16.msra.mxu0 %v9827_v29  ;;  %9892 = vmatpush1.bf16.msra.mxu1 %v9891_v11  ;;  %v9841_v3 = vpack.c.bf16 %v4705_v19, %v4697_v50  ;;  %v4706_v29 = vld [vmem:[#allocation12 + $0x250] sm:$0xff]  ;;  %v4721_v11 = vld [vmem:[#allocation12 + $0x2c8] sm:$0xff]  ;;  %v4763_v50 = vld [vmem:[#allocation12 + $0x418] sm:$0xff] }
 0x837   :  { %9830 = vmatprep.subr.bf16.mxu0 %v9829_v44  ;;  %9894 = vmatprep.subr.bf16.mxu1 %v9893_v16  ;;  %v9907_v41 = vpack.c.bf16 %v4706_v29, %v4698_v56  ;;  %v9845_v35 = vpack.c.bf16 %v4721_v11, %v4713_v28  ;;  %v4712_v44 = vld [vmem:[#allocation12 + $0x280] sm:$0xff]  ;;  %v4714_v16 = vld [vmem:[#allocation12 + $0x290] sm:$0xff]  ;;  %v9921_v36 = vpack.c.bf16 %v4771_v25, %v4763_v50  ;;  %v4777_v29 = vld [vmem:[#allocation12 + $0x488] sm:$0xff] }
 0x838   :  { %v9847_v46 = vpack.c.bf16 %v4720_v51, %v4712_v44  ;;  %v4779_v28 = vld [vmem:[#allocation12 + $0x498] sm:$0xff]  ;;  %v4832_v25 = vld [vmem:[#allocation12 + $0x640] sm:$0xff] }
 0x839   :  { %v9925_v44 = vpack.c.bf16 %v4787_v0, %v4779_v28  ;;  %v4835_v50 = vld [vmem:[#allocation12 + $0x658] sm:$0xff]  ;;  %v4848_v0 = vld [vmem:[#allocation12 + $0x6c0] sm:$0xff] }
 0x83a   :  { %9832 = vmatpush1.bf16.msra.mxu0 %v9831_v37  ;;  %9896 = vmatpush1.bf16.msra.mxu1 %v9895_v54  ;;  %v4722_v37 = vld [vmem:[#allocation12 + $0x2d0] sm:$0xff]  ;;  %v4737_v54 = vld [vmem:[#allocation12 + $0x348] sm:$0xff]  ;;  %v4851_v28 = vld [vmem:[#allocation12 + $0x6d8] sm:$0xff] }
 0x83b   :  { %9834 = vmatprep.subr.bf16.mxu0 %v9833_v43  ;;  %9898 = vmatprep.subr.bf16.mxu1 %v9897_v23  ;;  %v9911_v34 = vpack.c.bf16 %v4722_v37, %v4714_v16  ;;  %v9849_v47 = vpack.c.bf16 %v4737_v54, %v4729_v24  ;;  %v4728_v43 = vld [vmem:[#allocation12 + $0x300] sm:$0xff]  ;;  %v4730_v23 = vld [vmem:[#allocation12 + $0x310] sm:$0xff]  ;;  %v4793_v37 = vld [vmem:[#allocation12 + $0x508] sm:$0xff] }
 0x83c   :  { %v9851_v22 = vpack.c.bf16 %v4736_v21, %v4728_v43  ;;  %v4795_v24 = vld [vmem:[#allocation12 + $0x518] sm:$0xff] }
 0x83d   :  { %v9929_v43 = vpack.c.bf16 %v4803_v62, %v4795_v24  ;;  %v4856_v62 = vld [vmem:[#allocation12 + $0x700] sm:$0xff] }
 0x83e   :  { %9836 = vmatpush1.bf16.msra.mxu0 %v9835_v48  ;;  %9900 = vmatpush1.bf16.msra.mxu1 %v9899_v32  ;;  %v4738_v48 = vld [vmem:[#allocation12 + $0x350] sm:$0xff]  ;;  %v4753_v32 = vld [vmem:[#allocation12 + $0x3c8] sm:$0xff] }
 0x83f   :  { %9838 = vmatprep.subr.bf16.mxu0 %v9837_v53  ;;  %9902 = vmatprep.subr.bf16.mxu1 %v9901_v2  ;;  %v9915_v38 = vpack.c.bf16 %v4738_v48, %v4730_v23  ;;  %v9853_v63 = vpack.c.bf16 %v4753_v32, %v4745_v15  ;;  %v4744_v53 = vld [vmem:[#allocation12 + $0x380] sm:$0xff]  ;;  %v4746_v2 = vld [vmem:[#allocation12 + $0x390] sm:$0xff]  ;;  %v4809_v48 = vld [vmem:[#allocation12 + $0x588] sm:$0xff] }
 0x840   :  { %v9855_v1 = vpack.c.bf16 %v4752_v30, %v4744_v53  ;;  %v4811_v15 = vld [vmem:[#allocation12 + $0x598] sm:$0xff] }
 0x841   :  { %v9933_v53 = vpack.c.bf16 %v4819_v18, %v4811_v15  ;;  %v4883_v15 = vld [vmem:[#allocation12 + $0x7d8] sm:$0xff] }
 0x842   :  { %9840 = vmatpush1.bf16.msra.mxu0 %v9839_v10  ;;  %9904 = vmatpush1.bf16.msra.mxu1 %v9903_v61  ;;  %v4754_v10 = vld [vmem:[#allocation12 + $0x3d0] sm:$0xff]  ;;  %v4769_v61 = vld [vmem:[#allocation12 + $0x448] sm:$0xff] }
 0x843   :  { %9842 = vmatprep.subr.bf16.mxu0 %v9841_v3  ;;  %9906 = vmatprep.subr.bf16.mxu1 %v9905_v59  ;;  %v9919_v52 = vpack.c.bf16 %v4754_v10, %v4746_v2  ;;  %v9857_v19 = vpack.c.bf16 %v4769_v61, %v4761_v12  ;;  %v4760_v3 = vld [vmem:[#allocation12 + $0x400] sm:$0xff]  ;;  %v4762_v59 = vld [vmem:[#allocation12 + $0x410] sm:$0xff]  ;;  %v4825_v10 = vld [vmem:[#allocation12 + $0x608] sm:$0xff] }
 0x844   :  { %v9859_v6 = vpack.c.bf16 %v4768_v26, %v4760_v3  ;;  %v4827_v12 = vld [vmem:[#allocation12 + $0x618] sm:$0xff] }
 0x845   :  { %v9937_v3 = vpack.c.bf16 %v4835_v50, %v4827_v12  ;;  %v4647_v12 = vld [vmem:[#allocation12 + $0x78] sm:$0xff] }
 0x846   :  { %9844 = vmatpush1.bf16.msra.mxu0 %v9843_v13  ;;  %9908 = vmatpush1.bf16.msra.mxu1 %v9907_v41  ;;  %v4770_v13 = vld [vmem:[#allocation12 + $0x450] sm:$0xff]  ;;  %v4785_v41 = vld [vmem:[#allocation12 + $0x4c8] sm:$0xff] }
 0x847   :  { %9846 = vmatprep.subr.bf16.mxu0 %v9845_v35  ;;  %9910 = vmatprep.subr.bf16.mxu1 %v9909_v4  ;;  %v9923_v56 = vpack.c.bf16 %v4770_v13, %v4762_v59  ;;  %v9861_v11 = vpack.c.bf16 %v4785_v41, %v4777_v29  ;;  %v4776_v35 = vld [vmem:[#allocation12 + $0x480] sm:$0xff]  ;;  %v4778_v4 = vld [vmem:[#allocation12 + $0x490] sm:$0xff]  ;;  %v4841_v13 = vld [vmem:[#allocation12 + $0x688] sm:$0xff] }
 0x848   :  { %v9863_v51 = vpack.c.bf16 %v4784_v9, %v4776_v35  ;;  %v4843_v29 = vld [vmem:[#allocation12 + $0x698] sm:$0xff] }
 0x849   :  { %v9941_v35 = vpack.c.bf16 %v4851_v28, %v4843_v29 }
 0x84a   :  { %9848 = vmatpush1.bf16.msra.mxu0 %v9847_v46  ;;  %9912 = vmatpush1.bf16.msra.mxu1 %v9911_v34  ;;  %v4786_v46 = vld [vmem:[#allocation12 + $0x4d0] sm:$0xff]  ;;  %v4801_v34 = vld [vmem:[#allocation12 + $0x548] sm:$0xff] }
 0x84b   :  { %9850 = vmatprep.subr.bf16.mxu0 %v9849_v47  ;;  %9914 = vmatprep.subr.bf16.mxu1 %v9913_v17  ;;  %v9927_v16 = vpack.c.bf16 %v4786_v46, %v4778_v4  ;;  %v9865_v54 = vpack.c.bf16 %v4801_v34, %v4793_v37  ;;  %v4792_v47 = vld [vmem:[#allocation12 + $0x500] sm:$0xff]  ;;  %v4794_v17 = vld [vmem:[#allocation12 + $0x510] sm:$0xff]  ;;  %v4857_v4 = vld [vmem:[#allocation12 + $0x708] sm:$0xff] }
 0x84c   :  { %v9867_v21 = vpack.c.bf16 %v4800_v57, %v4792_v47  ;;  %v4859_v37 = vld [vmem:[#allocation12 + $0x718] sm:$0xff]  ;;  %v4864_v47 = vld [vmem:[#allocation12 + $0x740] sm:$0xff]  ;;  %v4858_v57 = vld [vmem:[#allocation12 + $0x710] sm:$0xff] }
 0x84d   :  { %v4867_v34 = vld [vmem:[#allocation12 + $0x758] sm:$0xff] }
 0x84e   :  { %9852 = vmatpush1.bf16.msra.mxu0 %v9851_v22  ;;  %9916 = vmatpush1.bf16.msra.mxu1 %v9915_v38  ;;  %v4802_v22 = vld [vmem:[#allocation12 + $0x550] sm:$0xff]  ;;  %v4817_v38 = vld [vmem:[#allocation12 + $0x5c8] sm:$0xff] }
 0x84f   :  { %9854 = vmatprep.subr.bf16.mxu0 %v9853_v63  ;;  %9918 = vmatprep.subr.bf16.mxu1 %v9917_v49  ;;  %v9931_v23 = vpack.c.bf16 %v4802_v22, %v4794_v17  ;;  %v9869_v32 = vpack.c.bf16 %v4817_v38, %v4809_v48  ;;  %v4808_v63 = vld [vmem:[#allocation12 + $0x580] sm:$0xff]  ;;  %v4810_v49 = vld [vmem:[#allocation12 + $0x590] sm:$0xff]  ;;  %v4873_v17 = vld [vmem:[#allocation12 + $0x788] sm:$0xff] }
 0x850   :  { %v9871_v30 = vpack.c.bf16 %v4816_v40, %v4808_v63  ;;  %v4881_v22 = vld [vmem:[#allocation12 + $0x7c8] sm:$0xff]  ;;  %v4875_v38 = vld [vmem:[#allocation12 + $0x798] sm:$0xff]  ;;  %v4880_v63 = vld [vmem:[#allocation12 + $0x7c0] sm:$0xff] }
 0x851   :  { %v9885_v48 = vpack.c.bf16 %v4881_v22, %v4873_v17  ;;  %v9949_v18 = vpack.c.bf16 %v4883_v15, %v4875_v38  ;;  %v4874_v40 = vld [vmem:[#allocation12 + $0x790] sm:$0xff] }
 0x852   :  { %9856 = vmatpush1.bf16.msra.mxu0 %v9855_v1  ;;  %9920 = vmatpush1.bf16.msra.mxu1 %v9919_v52  ;;  %v4818_v1 = vld [vmem:[#allocation12 + $0x5d0] sm:$0xff]  ;;  %v4833_v52 = vld [vmem:[#allocation12 + $0x648] sm:$0xff] }
 0x853   :  { %9858 = vmatprep.subr.bf16.mxu0 %v9857_v19  ;;  %9922 = vmatprep.subr.bf16.mxu1 %v9921_v36  ;;  %v9935_v2 = vpack.c.bf16 %v4818_v1, %v4810_v49  ;;  %v9873_v61 = vpack.c.bf16 %v4833_v52, %v4825_v10  ;;  %v4824_v19 = vld [vmem:[#allocation12 + $0x600] sm:$0xff]  ;;  %v4826_v36 = vld [vmem:[#allocation12 + $0x610] sm:$0xff]  ;;  %v4637_v1 = vld [vmem:[#allocation12 + $0x28] sm:$0xff] }
 0x854   :  { %v9875_v26 = vpack.c.bf16 %v4832_v25, %v4824_v19  ;;  %v4639_v10 = vld [vmem:[#allocation12 + $0x38] sm:$0xff] }
 0x856   :  { %9860 = vmatpush1.bf16.msra.mxu0 %v9859_v6  ;;  %9924 = vmatpush1.bf16.msra.mxu1 %v9923_v56  ;;  %v4834_v6 = vld [vmem:[#allocation12 + $0x650] sm:$0xff]  ;;  %v4849_v56 = vld [vmem:[#allocation12 + $0x6c8] sm:$0xff] }
 0x857   :  { %9862 = vmatprep.subr.bf16.mxu0 %v9861_v11  ;;  %9926 = vmatprep.subr.bf16.mxu1 %v9925_v44  ;;  %v9939_v59 = vpack.c.bf16 %v4834_v6, %v4826_v36  ;;  %v9877_v41 = vpack.c.bf16 %v4849_v56, %v4841_v13  ;;  %v4840_v11 = vld [vmem:[#allocation12 + $0x680] sm:$0xff]  ;;  %v4842_v44 = vld [vmem:[#allocation12 + $0x690] sm:$0xff] }
 0x858   :  { %v9879_v9 = vpack.c.bf16 %v4848_v0, %v4840_v11 }
 0x85a   :  { %9864 = vmatpush1.bf16.msra.mxu0 %v9863_v51  ;;  %9928 = vmatpush1.bf16.msra.mxu1 %v9927_v16  ;;  %v4850_v51 = vld [vmem:[#allocation12 + $0x6d0] sm:$0xff]  ;;  %v4865_v16 = vld [vmem:[#allocation12 + $0x748] sm:$0xff] }
 0x85b   :  { %9866 = vmatprep.subr.bf16.mxu0 %v9865_v54  ;;  %9930 = vmatprep.subr.bf16.mxu1 %v9929_v43  ;;  %v9943_v46 = vpack.c.bf16 %v4850_v51, %v4842_v44  ;;  %v9881_v24 = vpack.c.bf16 %v4865_v16, %v4857_v4  ;;  %v9945_v54 = vpack.c.bf16 %v4867_v34, %v4859_v37 }
 0x85c   :  { %v9883_v43 = vpack.c.bf16 %v4864_v47, %v4856_v62 }
 0x85e   :  { %9868 = vmatpush1.bf16.msra.mxu0 %v9867_v21  ;;  %9932 = vmatpush1.bf16.msra.mxu1 %v9931_v23  ;;  %v4866_v21 = vld [vmem:[#allocation12 + $0x750] sm:$0xff] }
 0x85f   :  { %9870 = vmatprep.subr.bf16.mxu0 %v9869_v32  ;;  %9934 = vmatprep.subr.bf16.mxu1 %v9933_v53  ;;  %v9947_v23 = vpack.c.bf16 %v4866_v21, %v4858_v57  ;;  %v4872_v32 = vld [vmem:[#allocation12 + $0x780] sm:$0xff]  ;;  %v4882_v53 = vld [vmem:[#allocation12 + $0x7d0] sm:$0xff] }
 0x860   :  { %v9951_v49 = vpack.c.bf16 %v4882_v53, %v4874_v40  ;;  %v4644_v53 = vld [vmem:[#allocation12 + $0x60] sm:$0xff] }
 0x862   :  { %9872 = vmatpush1.bf16.msra.mxu0 %v9871_v30  ;;  %9936 = vmatpush1.bf16.msra.mxu1 %v9935_v2  ;;  %v9887_v30 = vpack.c.bf16 %v4880_v63, %v4872_v32  ;;  %v4645_v2 = vld [vmem:[#allocation12 + $0x68] sm:$0xff] }
 0x863   :  { %9874 = vmatprep.subr.bf16.mxu0 %v9873_v61  ;;  %9938 = vmatprep.subr.bf16.mxu1 %v9937_v3  ;;  %v9953_v52 = vpack.c.bf16 %v4645_v2, %v4637_v1  ;;  %v10017_v61 = vpack.c.bf16 %v4647_v12, %v4639_v10  ;;  %v4653_v2 = vld [vmem:[#allocation12 + $0xa8] sm:$0xff]  ;;  %v4655_v12 = vld [vmem:[#allocation12 + $0xb8] sm:$0xff] }
 0x866   :  { %9876 = vmatpush1.bf16.msra.mxu0 %v9875_v26  ;;  %9940 = vmatpush1.bf16.msra.mxu1 %v9939_v59 }
 0x867   :  { %9878 = vmatprep.subr.bf16.mxu0 %v9877_v41  ;;  %9942 = vmatprep.subr.bf16.mxu1 %v9941_v35 }
 0x86a   :  { %9880 = vmatpush1.bf16.msra.mxu0 %v9879_v9  ;;  %9944 = vmatpush1.bf16.msra.mxu1 %v9943_v46 }
 0x86b   :  { %9882 = vmatprep.subr.bf16.mxu0 %v9881_v24  ;;  %9946 = vmatprep.subr.bf16.mxu1 %v9945_v54 }
 0x86e   :  { %9884 = vmatpush1.bf16.msra.mxu0 %v9883_v43  ;;  %9948 = vmatpush1.bf16.msra.mxu1 %v9947_v23 }
 0x86f   :  { %9886 = vmatprep.subr.bf16.mxu0 %v9885_v48  ;;  %9950 = vmatprep.subr.bf16.mxu1 %v9949_v18 }
 0x872   :  { %9888 = vmatpush1.bf16.msra.mxu0 %v9887_v30  ;;  %9952 = vmatpush1.bf16.msra.mxu1 %v9951_v49  ;;  %v4638_v30 = vld [vmem:[#allocation12 + $0x30] sm:$0xff] }
 0x873   :  { %9954 = vmatprep.subr.bf16.mxu0 %v9953_v52  ;;  %10018 = vmatprep.subr.bf16.mxu1 %v10017_v61  ;;  %v4646_v49 = vld [vmem:[#allocation12 + $0x70] sm:$0xff]  ;;  %v4661_v52 = vld [vmem:[#allocation12 + $0xe8] sm:$0xff]  ;;  %v4663_v61 = vld [vmem:[#allocation12 + $0xf8] sm:$0xff] }
 0x8e8   :  { %v4280_v50 = vpop.f32.mrb[14].mxu0  ;;  %v4351_v19 = vpop.f32.mrb[14].mxu1 }
 0x8e9   :  { %v11163_v25 = vadd.f32 %v4280_v50, %v12706_v39  ;;  %v4282_v3 = vpop.f32.mrb[15].mxu0  ;;  %v4353_v26 = vpop.f32.mrb[15].mxu1  ;;  %v11179_v29 = vadd.f32 %v4351_v19, %v15106_v33 }
 0x8ea   :  { %v11164_v36 = vadd.f32 %v4282_v3, %v15104_v31  ;;  %v11180_v13 = vadd.f32 %v4353_v26, %v15105_v55  ;;  %v4652_v3 = vld [vmem:[#allocation12 + $0xa0] sm:$0xff] }
 0x8eb   :  { %v8552_v6 = vmul.f32 -1.442695, %v11163_v25  ;;  %v10019_v25 = vpack.c.bf16 %v4646_v49, %v4638_v30  ;;  %v4660_v26 = vld [vmem:[#allocation12 + $0xe0] sm:$0xff]  ;;  %v4725_v30 = vld [vmem:[#allocation12 + $0x2e8] sm:$0xff]  ;;  %v4719_v49 = vld [vmem:[#allocation12 + $0x2b8] sm:$0xff] }
 0x8ec   :  { %v8553_v59 = vmul.f32 -1.442695, %v11164_v36  ;;  %v8554_v56 = vmul.f32 -1.442695, %v11180_v13  ;;  %v4662_v36 = vld [vmem:[#allocation12 + $0xf0] sm:$0xff]  ;;  %v4669_v13 = vld [vmem:[#allocation12 + $0x128] sm:$0xff] }
 0x8ed   :  { %11645 = vpow2.f32 %v8552_v6  ;;  %v9957_v6 = vpack.c.bf16 %v4661_v52, %v4653_v2  ;;  %v4716_v52 = vld [vmem:[#allocation12 + $0x2a0] sm:$0xff] }
 0x8ee   :  { %11647 = vpow2.f32 %v8553_v59  ;;  %v10021_v59 = vpack.c.bf16 %v4663_v61, %v4655_v12  ;;  %v15130_v12 = vld [vmem:[#allocation53_spill] sm:$0xff]  ;;  %v4724_v61 = vld [vmem:[#allocation12 + $0x2e0] sm:$0xff] }
 0x8ef   :  { %11649 = vpow2.f32 %v8554_v56  ;;  %v15125_v56 = vld [vmem:[#allocation41_spill] sm:$0xff] }
 0x8f0   :  { %11651 = vtanh.f32 %v11179_v29  ;;  %v4677_v29 = vld [vmem:[#allocation12 + $0x168] sm:$0xff] }
 0x8f7   :  { %v11646_v41 = vpop.eup %11645 }
 0x8f8   :  { %v11648_v28 = vpop.eup %11647  ;;  %v4569_v11 = vadd.f32 1.0, %v11646_v41  ;;  %v4671_v41 = vld [vmem:[#allocation12 + $0x138] sm:$0xff] }
 0x8f9   :  { %v4575_v0 = vadd.f32 1.0, %v11648_v28  ;;  %v11650_v39 = vpop.eup %11649  ;;  %v4679_v28 = vld [vmem:[#allocation12 + $0x178] sm:$0xff] }
 0x8fa   :  { %11653 = vrcp.f32 %v4569_v11  ;;  %v11652_v35 = vpop.eup %11651  ;;  %v4582_v51 = vadd.f32 1.0, %v11650_v39  ;;  %v9959_v11 = vpack.c.bf16 %v4660_v26, %v4652_v3  ;;  %v4668_v39 = vld [vmem:[#allocation12 + $0x120] sm:$0xff] }
 0x8fb   :  { %11655 = vrcp.f32 %v4575_v0 }
 0x8fc   :  { %11657 = vrcp.f32 %v4582_v51  ;;  %v10025_v51 = vpack.c.bf16 %v4679_v28, %v4671_v41  ;;  %v4732_v28 = vld [vmem:[#allocation12 + $0x320] sm:$0xff] }
 0x904   :  { %v11654_v31 = vpop.eup %11653 }
 0x905   :  { %v11656_v9 = vpop.eup %11655  ;;  %v4586_v44 = vmul.f32 %v11654_v31, %v11652_v35  ;;  %v4676_v35 = vld [vmem:[#allocation12 + $0x160] sm:$0xff]  ;;  %v4670_v31 = vld [vmem:[#allocation12 + $0x130] sm:$0xff] }
 0x906   :  { %v4585_v4 = vmul.f32 %v11656_v9, %v13681_v58  ;;  %v11658_v57 = vpop.eup %11657  ;;  %v4678_v9 = vld [vmem:[#allocation12 + $0x170] sm:$0xff] }
 0x908   :  { %v4587_v55 = vadd.f32 %v4586_v44, %v4585_v4  ;;  %v4490_v46 = vpop.f32.mrb[16].mxu0  ;;  %v4561_v16 = vpop.f32.mrb[16].mxu1  ;;  %v9961_v44 = vpack.c.bf16 %v4677_v29, %v4669_v13  ;;  %v4685_v4 = vld [vmem:[#allocation12 + $0x1a8] sm:$0xff]  ;;  %v4743_v13 = vld [vmem:[#allocation12 + $0x378] sm:$0xff]  ;;  %v9975_v29 = vpack.c.bf16 %v4724_v61, %v4716_v52  ;;  %v4780_v61 = vld [vmem:[#allocation12 + $0x4a0] sm:$0xff] }
 0x909   :  { %v11181_v33 = vadd.f32 %v4490_v46, %v15108_v14  ;;  %v4492_v37 = vpop.f32.mrb[17].mxu0  ;;  %v4563_v34 = vpop.f32.mrb[17].mxu1  ;;  %v11197_v21 = vadd.f32 %v4561_v16, %v12750_v5  ;;  %v4636_v5 = vld [vmem:[#allocation12 + $0x20] sm:$0xff]  ;;  %v4693_v46 = vld [vmem:[#allocation12 + $0x1e8] sm:$0xff]  ;;  %v4687_v16 = vld [vmem:[#allocation12 + $0x1b8] sm:$0xff] }
 0x90a   :  { %11659 = vtanh.f32 %v4587_v55  ;;  %v11182_v24 = vadd.f32 %v4492_v37, %v15109_v42  ;;  %v11198_v47 = vadd.f32 %v4563_v34, %v15110_v60  ;;  %v9955_v19 = vpack.c.bf16 %v4644_v53, %v4636_v5  ;;  %v15126_v55 = vld [vmem:[#allocation28_spill] sm:$0xff]  ;;  %v15129_v53 = vld [vmem:[#allocation31_spill] sm:$0xff] }
 0x90b   :  { %v8555_v54 = vmul.f32 -1.442695, %v11181_v33  ;;  %v4695_v33 = vld [vmem:[#allocation12 + $0x1f8] sm:$0xff]  ;;  %v9963_v37 = vpack.c.bf16 %v4676_v35, %v4668_v39  ;;  %v10027_v34 = vpack.c.bf16 %v4678_v9, %v4670_v31  ;;  %v4717_v5 = vld [vmem:[#allocation12 + $0x2a8] sm:$0xff]  ;;  %v4734_v39 = vld [vmem:[#allocation12 + $0x330] sm:$0xff] }
 0x90c   :  { %v8556_v62 = vmul.f32 -1.442695, %v11182_v24  ;;  %v8557_v58 = vmul.f32 -1.442695, %v11198_v47  ;;  %v4684_v24 = vld [vmem:[#allocation12 + $0x1a0] sm:$0xff]  ;;  %v4694_v47 = vld [vmem:[#allocation12 + $0x1f0] sm:$0xff]  ;;  %v9973_v3 = vpack.c.bf16 %v4725_v30, %v4717_v5 }
 0x90d   :  { %11661 = vpow2.f32 %v8555_v54  ;;  %v4692_v54 = vld [vmem:[#allocation12 + $0x1e0] sm:$0xff]  ;;  %v4742_v35 = vld [vmem:[#allocation12 + $0x370] sm:$0xff] }
 0x90e   :  { %11663 = vpow2.f32 %v8556_v62  ;;  %v4686_v62 = vld [vmem:[#allocation12 + $0x1b0] sm:$0xff] }
 0x90f   :  { %11665 = vpow2.f32 %v8557_v58  ;;  %v4701_v58 = vld [vmem:[#allocation12 + $0x228] sm:$0xff] }
 0x910   :  { %11667 = vtanh.f32 %v11197_v21  ;;  %v15127_v21 = vld [vmem:[#allocation25_spill] sm:$0xff] }
 0x914   :  { %v11660_v43 = vpop.eup %11659 }
 0x915   :  { %v13741_v17 = vmul.f32 %v11660_v43, %v11658_v57  ;;  %v9965_v57 = vpack.c.bf16 %v4693_v46, %v4685_v4  ;;  %v10029_v43 = vpack.c.bf16 %v4695_v33, %v4687_v16  ;;  %v4757_v4 = vld [vmem:[#allocation12 + $0x3e8] sm:$0xff]  ;;  %v4751_v46 = vld [vmem:[#allocation12 + $0x3b8] sm:$0xff] }
 0x916   :  { %v4759_v16 = vld [vmem:[#allocation12 + $0x3f8] sm:$0xff] }
 0x917   :  { %v11662_v22 = vpop.eup %11661 }
 0x918   :  { %v11664_v14 = vpop.eup %11663  ;;  %v4593_v23 = vadd.f32 1.0, %v11662_v22  ;;  %v4709_v22 = vld [vmem:[#allocation12 + $0x268] sm:$0xff] }
 0x919   :  { %v4599_v48 = vadd.f32 1.0, %v11664_v14  ;;  %v11666_v42 = vpop.eup %11665  ;;  %v4703_v14 = vld [vmem:[#allocation12 + $0x238] sm:$0xff] }
 0x91a   :  { %11669 = vrcp.f32 %v4593_v23  ;;  %v11668_v38 = vpop.eup %11667  ;;  %v4606_v18 = vadd.f32 1.0, %v11666_v42  ;;  %v4711_v23 = vld [vmem:[#allocation12 + $0x278] sm:$0xff]  ;;  %v10031_v42 = vpack.c.bf16 %v4694_v47, %v4686_v62  ;;  %v4750_v62 = vld [vmem:[#allocation12 + $0x3b0] sm:$0xff] }
 0x91b   :  { %11671 = vrcp.f32 %v4599_v48  ;;  %v9967_v48 = vpack.c.bf16 %v4692_v54, %v4684_v24  ;;  %v15134_v24 = vld [vmem:[#allocation49_spill] sm:$0xff]  ;;  %v4756_v54 = vld [vmem:[#allocation12 + $0x3e0] sm:$0xff] }
 0x91c   :  { %11673 = vrcp.f32 %v4606_v18  ;;  %v4710_v18 = vld [vmem:[#allocation12 + $0x270] sm:$0xff] }
 0x91d   :  { %v4758_v47 = vld [vmem:[#allocation12 + $0x3f0] sm:$0xff] }
 0x924   :  { %v11670_v15 = vpop.eup %11669 }
 0x925   :  { %v11672_v32 = vpop.eup %11671  ;;  %v4610_v60 = vmul.f32 %v11670_v15, %v11668_v38  ;;  %v4700_v38 = vld [vmem:[#allocation12 + $0x220] sm:$0xff]  ;;  %v15128_v15 = vld [vmem:[#allocation29_spill] sm:$0xff] }
 0x926   :  { %v4609_v63 = vmul.f32 %v11672_v32, %v13711_v7  ;;  %v11674_v1 = vpop.eup %11673  ;;  %v4654_v7 = vld [vmem:[#allocation12 + $0xb0] sm:$0xff]  ;;  %v4708_v32 = vld [vmem:[#allocation12 + $0x260] sm:$0xff] }
 0x927   :  { %v10023_v0 = vpack.c.bf16 %v4662_v36, %v4654_v7  ;;  %v9971_v2 = vpack.c.bf16 %v4708_v32, %v4700_v38  ;;  %v4733_v7 = vld [vmem:[#allocation12 + $0x328] sm:$0xff]  ;;  %v4764_v38 = vld [vmem:[#allocation12 + $0x420] sm:$0xff] }
 0x928   :  { %v4611_v40 = vadd.f32 %v4610_v60, %v4609_v63  ;;  %v4702_v60 = vld [vmem:[#allocation12 + $0x230] sm:$0xff]  ;;  %v9969_v63 = vpack.c.bf16 %v4709_v22, %v4701_v58  ;;  %v15131_v36 = vld [vmem:[#allocation27_spill] sm:$0xff] }
 0x929   :  { %v4765_v58 = vld [vmem:[#allocation12 + $0x428] sm:$0xff]  ;;  %v4772_v32 = vld [vmem:[#allocation12 + $0x460] sm:$0xff] }
 0x92a   :  { %11675 = vtanh.f32 %v4611_v40  ;;  %v10033_v40 = vpack.c.bf16 %v4711_v23, %v4703_v14  ;;  %v4773_v22 = vld [vmem:[#allocation12 + $0x468] sm:$0xff]  ;;  %v4767_v14 = vld [vmem:[#allocation12 + $0x438] sm:$0xff] }
 0x92b   :  { %v4775_v23 = vld [vmem:[#allocation12 + $0x478] sm:$0xff]  ;;  %v9985_v5 = vpack.c.bf16 %v4773_v22, %v4765_v58  ;;  %v4829_v58 = vld [vmem:[#allocation12 + $0x628] sm:$0xff] }
 0x92c   :  { %v10049_v30 = vpack.c.bf16 %v4775_v23, %v4767_v14  ;;  %v4837_v22 = vld [vmem:[#allocation12 + $0x668] sm:$0xff]  ;;  %v4831_v14 = vld [vmem:[#allocation12 + $0x638] sm:$0xff] }
 0x92d   :  { %v4839_v23 = vld [vmem:[#allocation12 + $0x678] sm:$0xff] }
 0x934   :  { %v11676_v10 = vpop.eup %11675 }
 0x935   :  { %v13744_v50 = vmul.f32 %v11676_v10, %v11674_v1  ;;  %v4727_v1 = vld [vmem:[#allocation12 + $0x2f8] sm:$0xff]  ;;  %v10035_v10 = vpack.c.bf16 %v4710_v18, %v4702_v60  ;;  %v15135_v60 = vld [vmem:[#allocation24_spill] sm:$0xff] }
 0x936   :  { %v10037_v26 = vpack.c.bf16 %v4727_v1, %v4719_v49  ;;  %v4766_v18 = vld [vmem:[#allocation12 + $0x430] sm:$0xff]  ;;  %v4789_v49 = vld [vmem:[#allocation12 + $0x4e8] sm:$0xff]  ;;  %v4783_v1 = vld [vmem:[#allocation12 + $0x4b8] sm:$0xff] }
 0x937   :  { %4994 = vmatprep.mubr.f32.mxu0 %v13744_v50  ;;  %5107 = vmatprep.mubr.f32.mxu1 %v13744_v50 }
 0x938   :  { %4995 = vmatmul.mubr.f32.vlgmr.msra.gmra.mrb[32].mxu0 %v15125_v56  ;;  %5108 = vmatmul.mubr.f32.vlgmr.msra.gmra.mrb[32].mxu1 %v15125_v56 }
 0x939   :  { %9956 = vmatpush1.bf16.msra.mxu0 %v9955_v19  ;;  %10020 = vmatpush1.bf16.msra.mxu1 %v10019_v25  ;;  %v4718_v19 = vld [vmem:[#allocation12 + $0x2b0] sm:$0xff] }
 0x93a   :  { %5000 = vmatprep.mubr.f32.mxu0 %v13728_v27  ;;  %5113 = vmatprep.mubr.f32.mxu1 %v13728_v27  ;;  %v4726_v25 = vld [vmem:[#allocation12 + $0x2f0] sm:$0xff] }
 0x93b   :  { %9958 = vmatprep.subr.bf16.mxu0 %v9957_v6  ;;  %10022 = vmatprep.subr.bf16.mxu1 %v10021_v59  ;;  %v4741_v6 = vld [vmem:[#allocation12 + $0x368] sm:$0xff]  ;;  %v4735_v59 = vld [vmem:[#allocation12 + $0x338] sm:$0xff]  ;;  %v10039_v41 = vpack.c.bf16 %v4726_v25, %v4718_v19  ;;  %v4788_v19 = vld [vmem:[#allocation12 + $0x4e0] sm:$0xff] }
 0x93c   :  { %5001 = vmatmul.mubr.f32.gmra.mrb[34].mxu0 %v15126_v55  ;;  %5114 = vmatmul.mubr.f32.gmra.mrb[34].mxu1 %v15126_v55  ;;  %v9977_v31 = vpack.c.bf16 %v4741_v6, %v4733_v7  ;;  %v10041_v9 = vpack.c.bf16 %v4743_v13, %v4735_v59  ;;  %v4790_v7 = vld [vmem:[#allocation12 + $0x4f0] sm:$0xff]  ;;  %v4797_v6 = vld [vmem:[#allocation12 + $0x528] sm:$0xff]  ;;  %v4799_v13 = vld [vmem:[#allocation12 + $0x538] sm:$0xff] }
 0x93d   :  { %9960 = vmatpush1.bf16.msra.mxu0 %v9959_v11  ;;  %10024 = vmatpush1.bf16.msra.mxu1 %v10023_v0  ;;  %v15132_v11 = vld [vmem:[#allocation26_spill] sm:$0xff]  ;;  %v4805_v59 = vld [vmem:[#allocation12 + $0x568] sm:$0xff] }
 0x93e   :  { %5006 = vmatprep.mubr.f32.mxu0 %v13636_v8  ;;  %5119 = vmatprep.mubr.f32.mxu1 %v13636_v8  ;;  %v4740_v0 = vld [vmem:[#allocation12 + $0x360] sm:$0xff] }
 0x93f   :  { %9962 = vmatprep.subr.bf16.mxu0 %v9961_v44  ;;  %10026 = vmatprep.subr.bf16.mxu1 %v10025_v51  ;;  %v4749_v44 = vld [vmem:[#allocation12 + $0x3a8] sm:$0xff]  ;;  %v15133_v51 = vld [vmem:[#allocation42_spill] sm:$0xff]  ;;  %v9979_v33 = vpack.c.bf16 %v4740_v0, %v4732_v28 }
 0x940   :  { %5007 = vmatmul.mubr.f32.gmra.mrb[36].mxu0 %v15127_v21  ;;  %5120 = vmatmul.mubr.f32.gmra.mrb[36].mxu1 %v15127_v21  ;;  %v4796_v0 = vld [vmem:[#allocation12 + $0x520] sm:$0xff] }
 0x941   :  { %9964 = vmatpush1.bf16.msra.mxu0 %v9963_v37  ;;  %10028 = vmatpush1.bf16.msra.mxu1 %v10027_v34  ;;  %v10043_v37 = vpack.c.bf16 %v4742_v35, %v4734_v39  ;;  %v4748_v34 = vld [vmem:[#allocation12 + $0x3a0] sm:$0xff]  ;;  %v9993_v35 = vpack.c.bf16 %v4805_v59, %v4797_v6  ;;  %v4861_v6 = vld [vmem:[#allocation12 + $0x728] sm:$0xff] }
 0x942   :  { %5012 = vmatprep.mubr.f32.mxu0 %v15128_v15  ;;  %5125 = vmatprep.mubr.f32.mxu1 %v15128_v15  ;;  %v4804_v39 = vld [vmem:[#allocation12 + $0x560] sm:$0xff]  ;;  %v4869_v59 = vld [vmem:[#allocation12 + $0x768] sm:$0xff] }
 0x943   :  { %9966 = vmatprep.subr.bf16.mxu0 %v9965_v57  ;;  %10030 = vmatprep.subr.bf16.mxu1 %v10029_v43  ;;  %v9981_v57 = vpack.c.bf16 %v4757_v4, %v4749_v44  ;;  %v10045_v43 = vpack.c.bf16 %v4759_v16, %v4751_v46  ;;  %v4813_v44 = vld [vmem:[#allocation12 + $0x5a8] sm:$0xff]  ;;  %v4815_v46 = vld [vmem:[#allocation12 + $0x5b8] sm:$0xff] }
 0x944   :  { %5013 = vmatmul.mubr.f32.gmra.mrb[38].mxu0 %v15129_v53  ;;  %5126 = vmatmul.mubr.f32.gmra.mrb[38].mxu1 %v15129_v53  ;;  %v4821_v4 = vld [vmem:[#allocation12 + $0x5e8] sm:$0xff]  ;;  %v4823_v16 = vld [vmem:[#allocation12 + $0x5f8] sm:$0xff] }
 0x945   :  { %9968 = vmatpush1.bf16.msra.mxu0 %v9967_v48  ;;  %10032 = vmatpush1.bf16.msra.mxu1 %v10031_v42  ;;  %v9983_v48 = vpack.c.bf16 %v4756_v54, %v4748_v34  ;;  %v10047_v42 = vpack.c.bf16 %v4758_v47, %v4750_v62  ;;  %v4812_v34 = vld [vmem:[#allocation12 + $0x5a0] sm:$0xff]  ;;  %v9997_v62 = vpack.c.bf16 %v4821_v4, %v4813_v44  ;;  %v4877_v44 = vld [vmem:[#allocation12 + $0x7a8] sm:$0xff] }
 0x946   :  { %5018 = vmatprep.mubr.f32.mxu0 %v15130_v12  ;;  %5131 = vmatprep.mubr.f32.mxu1 %v15130_v12  ;;  %v4820_v54 = vld [vmem:[#allocation12 + $0x5e0] sm:$0xff]  ;;  %v10061_v47 = vpack.c.bf16 %v4823_v16, %v4815_v46  ;;  %v4885_v4 = vld [vmem:[#allocation12 + $0x7e8] sm:$0xff]  ;;  %v4879_v46 = vld [vmem:[#allocation12 + $0x7b8] sm:$0xff] }
 0x947   :  { %9970 = vmatprep.subr.bf16.mxu0 %v9969_v63  ;;  %10034 = vmatprep.subr.bf16.mxu1 %v10033_v40  ;;  %v4774_v63 = vld [vmem:[#allocation12 + $0x470] sm:$0xff]  ;;  %v4781_v40 = vld [vmem:[#allocation12 + $0x4a8] sm:$0xff]  ;;  %v4887_v16 = vld [vmem:[#allocation12 + $0x7f8] sm:$0xff] }
 0x948   :  { %5019 = vmatmul.mubr.f32.gmra.mrb[40].mxu0 %v15131_v36  ;;  %5132 = vmatmul.mubr.f32.gmra.mrb[40].mxu1 %v15131_v36  ;;  %v10051_v52 = vpack.c.bf16 %v4774_v63, %v4766_v18  ;;  %v9989_v25 = vpack.c.bf16 %v4789_v49, %v4781_v40  ;;  %v10001_v18 = vpack.c.bf16 %v4837_v22, %v4829_v58  ;;  %v4830_v40 = vld [vmem:[#allocation12 + $0x630] sm:$0xff]  ;;  %v4853_v49 = vld [vmem:[#allocation12 + $0x6e8] sm:$0xff] }
 0x949   :  { %9972 = vmatpush1.bf16.msra.mxu0 %v9971_v2  ;;  %10036 = vmatpush1.bf16.msra.mxu1 %v10035_v10  ;;  %v4791_v2 = vld [vmem:[#allocation12 + $0x4f8] sm:$0xff]  ;;  %v9987_v10 = vpack.c.bf16 %v4772_v32, %v4764_v38  ;;  %v4828_v38 = vld [vmem:[#allocation12 + $0x620] sm:$0xff]  ;;  %v10065_v63 = vpack.c.bf16 %v4839_v23, %v4831_v14  ;;  %v5447_v58 = vld [vmem:[#allocation15 + $0x8] sm:$0xff] }
 0x94a   :  { %5024 = vmatprep.mubr.f32.mxu0 %v15132_v11  ;;  %5137 = vmatprep.mubr.f32.mxu1 %v15132_v11  ;;  %v4836_v32 = vld [vmem:[#allocation12 + $0x660] sm:$0xff]  ;;  %v5451_v22 = vld [vmem:[#allocation15 + $0x28] sm:$0xff] }
 0x94b   :  { %9974 = vmatprep.subr.bf16.mxu0 %v9973_v3  ;;  %10038 = vmatprep.subr.bf16.mxu1 %v10037_v26  ;;  %v10053_v3 = vpack.c.bf16 %v4791_v2, %v4783_v1  ;;  %v4782_v26 = vld [vmem:[#allocation12 + $0x4b0] sm:$0xff]  ;;  %v4847_v1 = vld [vmem:[#allocation12 + $0x6b8] sm:$0xff]  ;;  %v5449_v14 = vld [vmem:[#allocation15 + $0x18] sm:$0xff] }
 0x94c   :  { %5025 = vmatmul.mubr.f32.gmra.mrb[42].mxu0 %v15133_v51  ;;  %5138 = vmatmul.mubr.f32.gmra.mrb[42].mxu1 %v15133_v51  ;;  %v10055_v28 = vpack.c.bf16 %v4790_v7, %v4782_v26  ;;  %v4855_v2 = vld [vmem:[#allocation12 + $0x6f8] sm:$0xff]  ;;  %v4846_v26 = vld [vmem:[#allocation12 + $0x6b0] sm:$0xff]  ;;  %v5453_v23 = vld [vmem:[#allocation15 + $0x38] sm:$0xff] }
 0x94d   :  { %9976 = vmatpush1.bf16.msra.mxu0 %v9975_v29  ;;  %10040 = vmatpush1.bf16.msra.mxu1 %v10039_v41  ;;  %v4807_v29 = vld [vmem:[#allocation12 + $0x578] sm:$0xff]  ;;  %v9991_v41 = vpack.c.bf16 %v4788_v19, %v4780_v61  ;;  %v4844_v61 = vld [vmem:[#allocation12 + $0x6a0] sm:$0xff]  ;;  %v4854_v7 = vld [vmem:[#allocation12 + $0x6f0] sm:$0xff] }
 0x94e   :  { %5030 = vmatprep.mubr.f32.mxu0 %v15134_v24  ;;  %5143 = vmatprep.mubr.f32.mxu1 %v15134_v24  ;;  %v4852_v19 = vld [vmem:[#allocation12 + $0x6e0] sm:$0xff] }
 0x94f   :  { %9978 = vmatprep.subr.bf16.mxu0 %v9977_v31  ;;  %10042 = vmatprep.subr.bf16.mxu1 %v10041_v9  ;;  %v4798_v31 = vld [vmem:[#allocation12 + $0x530] sm:$0xff] }
 0x950   :  { %5031 = vmatmul.mubr.f32.gmra.mrb[44].mxu0 %v13687_v45  ;;  %5144 = vmatmul.mubr.f32.gmra.mrb[44].mxu1 %v13687_v45  ;;  %v4806_v9 = vld [vmem:[#allocation12 + $0x570] sm:$0xff] }
 0x951   :  { %9980 = vmatpush1.bf16.msra.mxu0 %v9979_v33  ;;  %10044 = vmatpush1.bf16.msra.mxu1 %v10043_v37  ;;  %v9995_v33 = vpack.c.bf16 %v4804_v39, %v4796_v0  ;;  %v10059_v37 = vpack.c.bf16 %v4806_v9, %v4798_v31  ;;  %v4860_v0 = vld [vmem:[#allocation12 + $0x720] sm:$0xff]  ;;  %v4862_v31 = vld [vmem:[#allocation12 + $0x730] sm:$0xff] }
 0x952   :  { %5036 = vmatprep.mubr.f32.mxu0 %v15135_v60  ;;  %5149 = vmatprep.mubr.f32.mxu1 %v15135_v60  ;;  %v4868_v39 = vld [vmem:[#allocation12 + $0x760] sm:$0xff]  ;;  %v4870_v9 = vld [vmem:[#allocation12 + $0x770] sm:$0xff] }
 0x953   :  { %9982 = vmatprep.subr.bf16.mxu0 %v9981_v57  ;;  %10046 = vmatprep.subr.bf16.mxu1 %v10045_v43  ;;  %v4814_v57 = vld [vmem:[#allocation12 + $0x5b0] sm:$0xff] }
 0x954   :  { %5037 = vmatmul.mubr.f32.gmra.mrb[46].mxu0 %v13741_v17  ;;  %5150 = vmatmul.mubr.f32.gmra.mrb[46].mxu1 %v13741_v17  ;;  %v4822_v43 = vld [vmem:[#allocation12 + $0x5f0] sm:$0xff] }
 0x955   :  { %9984 = vmatpush1.bf16.msra.mxu0 %v9983_v48  ;;  %10048 = vmatpush1.bf16.msra.mxu1 %v10047_v42  ;;  %v9999_v48 = vpack.c.bf16 %v4820_v54, %v4812_v34  ;;  %v10063_v42 = vpack.c.bf16 %v4822_v43, %v4814_v57  ;;  %v4876_v34 = vld [vmem:[#allocation12 + $0x7a0] sm:$0xff]  ;;  %v4878_v57 = vld [vmem:[#allocation12 + $0x7b0] sm:$0xff] }
 0x956   :  { %5220 = vmatprep.mubr.f32.mxu0 %v13744_v50  ;;  %5333 = vmatprep.mubr.f32.mxu1 %v13744_v50  ;;  %v10057_v50 = vpack.c.bf16 %v4807_v29, %v4799_v13  ;;  %v4863_v13 = vld [vmem:[#allocation12 + $0x738] sm:$0xff]  ;;  %v4884_v54 = vld [vmem:[#allocation12 + $0x7e0] sm:$0xff]  ;;  %v4886_v43 = vld [vmem:[#allocation12 + $0x7f0] sm:$0xff] }
 0x957   :  { %9986 = vmatprep.subr.bf16.mxu0 %v9985_v5  ;;  %10050 = vmatprep.subr.bf16.mxu1 %v10049_v30  ;;  %v4838_v5 = vld [vmem:[#allocation12 + $0x670] sm:$0xff]  ;;  %v4845_v30 = vld [vmem:[#allocation12 + $0x6a8] sm:$0xff]  ;;  %v4871_v29 = vld [vmem:[#allocation12 + $0x778] sm:$0xff] }
 0x959   :  { %9988 = vmatpush1.bf16.msra.mxu0 %v9987_v10  ;;  %10052 = vmatpush1.bf16.msra.mxu1 %v10051_v52  ;;  %v10003_v10 = vpack.c.bf16 %v4836_v32, %v4828_v38  ;;  %v10067_v52 = vpack.c.bf16 %v4838_v5, %v4830_v40  ;;  %v13780_v38 = vpack.c.bf16 %v5451_v22, %v5447_v58  ;;  %v5448_v40 = vld [vmem:[#allocation15 + $0x10] sm:$0xff] }
 0x95a   :  { %9990 = vmatprep.subr.bf16.mxu0 %v9989_v25  ;;  %10054 = vmatprep.subr.bf16.mxu1 %v10053_v3  ;;  %v10005_v25 = vpack.c.bf16 %v4853_v49, %v4845_v30  ;;  %v10069_v3 = vpack.c.bf16 %v4855_v2, %v4847_v1  ;;  %v13782_v32 = vpack.c.bf16 %v5453_v23, %v5449_v14  ;;  %v5452_v5 = vld [vmem:[#allocation15 + $0x30] sm:$0xff]  ;;  %v5455_v30 = vld [vmem:[#allocation15 + $0x48] sm:$0xff]  ;;  %v5457_v1 = vld [vmem:[#allocation15 + $0x58] sm:$0xff] }
 0x95b   :  { %v5459_v49 = vld [vmem:[#allocation15 + $0x68] sm:$0xff]  ;;  %v5461_v2 = vld [vmem:[#allocation15 + $0x78] sm:$0xff]  ;;  %v5478_v14 = vld [vmem:[#allocation15 + $0x100] sm:$0xff] }
 0x95c   :  { %v5482_v23 = vld [vmem:[#allocation15 + $0x120] sm:$0xff] }
 0x95d   :  { %9992 = vmatpush1.bf16.msra.mxu0 %v9991_v41  ;;  %10056 = vmatpush1.bf16.msra.mxu1 %v10055_v28  ;;  %v10007_v41 = vpack.c.bf16 %v4852_v19, %v4844_v61  ;;  %v10071_v28 = vpack.c.bf16 %v4854_v7, %v4846_v26  ;;  %v5454_v61 = vld [vmem:[#allocation15 + $0x40] sm:$0xff]  ;;  %v5456_v26 = vld [vmem:[#allocation15 + $0x50] sm:$0xff] }
 0x95e   :  { %9994 = vmatprep.subr.bf16.mxu0 %v9993_v35  ;;  %10058 = vmatprep.subr.bf16.mxu1 %v10057_v50  ;;  %v10009_v35 = vpack.c.bf16 %v4869_v59, %v4861_v6  ;;  %v10073_v50 = vpack.c.bf16 %v4871_v29, %v4863_v13  ;;  %v5458_v19 = vld [vmem:[#allocation15 + $0x60] sm:$0xff]  ;;  %v5460_v7 = vld [vmem:[#allocation15 + $0x70] sm:$0xff]  ;;  %v5463_v6 = vld [vmem:[#allocation15 + $0x88] sm:$0xff] }
 0x95f   :  { %v5467_v59 = vld [vmem:[#allocation15 + $0xa8] sm:$0xff]  ;;  %v5465_v13 = vld [vmem:[#allocation15 + $0x98] sm:$0xff] }
 0x960   :  { %v5469_v29 = vld [vmem:[#allocation15 + $0xb8] sm:$0xff] }
 0x961   :  { %9996 = vmatpush1.bf16.msra.mxu0 %v9995_v33  ;;  %10060 = vmatpush1.bf16.msra.mxu1 %v10059_v37  ;;  %v10011_v33 = vpack.c.bf16 %v4868_v39, %v4860_v0  ;;  %v10075_v37 = vpack.c.bf16 %v4870_v9, %v4862_v31  ;;  %v5462_v0 = vld [vmem:[#allocation15 + $0x80] sm:$0xff]  ;;  %v5471_v31 = vld [vmem:[#allocation15 + $0xc8] sm:$0xff] }
 0x962   :  { %9998 = vmatprep.subr.bf16.mxu0 %v9997_v62  ;;  %10062 = vmatprep.subr.bf16.mxu1 %v10061_v47  ;;  %v10013_v62 = vpack.c.bf16 %v4885_v4, %v4877_v44  ;;  %v10077_v47 = vpack.c.bf16 %v4887_v16, %v4879_v46  ;;  %v5466_v39 = vld [vmem:[#allocation15 + $0xa0] sm:$0xff]  ;;  %v5475_v9 = vld [vmem:[#allocation15 + $0xe8] sm:$0xff]  ;;  %v5473_v44 = vld [vmem:[#allocation15 + $0xd8] sm:$0xff] }
 0x963   :  { %v5477_v4 = vld [vmem:[#allocation15 + $0xf8] sm:$0xff]  ;;  %v13816_v46 = vpack.c.bf16 %v5466_v39, %v5462_v0  ;;  %v5494_v0 = vld [vmem:[#allocation15 + $0x180] sm:$0xff] }
 0x964   :  { %v5498_v39 = vld [vmem:[#allocation15 + $0x1a0] sm:$0xff] }
 0x965   :  { %10000 = vmatpush1.bf16.msra.mxu0 %v9999_v48  ;;  %10064 = vmatpush1.bf16.msra.mxu1 %v10063_v42  ;;  %v10015_v48 = vpack.c.bf16 %v4884_v54, %v4876_v34  ;;  %v10079_v42 = vpack.c.bf16 %v4886_v43, %v4878_v57  ;;  %15138 = vst [vmem:[#allocation37_spill] sm:$0xff] %v13816_v46  ;;  %v5472_v54 = vld [vmem:[#allocation15 + $0xd0] sm:$0xff]  ;;  %v5481_v57 = vld [vmem:[#allocation15 + $0x118] sm:$0xff] }
 0x966   :  { %10002 = vmatprep.subr.bf16.mxu0 %v10001_v18  ;;  %10066 = vmatprep.subr.bf16.mxu1 %v10065_v63  ;;  %v5446_v18 = vld [vmem:[#allocation15] sm:$0xff]  ;;  %v13824_v34 = vpack.c.bf16 %v5477_v4, %v5473_v44  ;;  %v5485_v43 = vld [vmem:[#allocation15 + $0x138] sm:$0xff] }
 0x967   :  { %v5450_v63 = vld [vmem:[#allocation15 + $0x20] sm:$0xff]  ;;  %v5505_v44 = vld [vmem:[#allocation15 + $0x1d8] sm:$0xff] }
 0x968   :  { %15141 = vst [vmem:[#allocation39_spill] sm:$0xff] %v13824_v34  ;;  %v5509_v4 = vld [vmem:[#allocation15 + $0x1f8] sm:$0xff] }
 0x969   :  { %10004 = vmatpush1.bf16.msra.mxu0 %v10003_v10  ;;  %10068 = vmatpush1.bf16.msra.mxu1 %v10067_v52  ;;  %v13786_v10 = vpack.c.bf16 %v5450_v63, %v5446_v18  ;;  %v13788_v52 = vpack.c.bf16 %v5452_v5, %v5448_v40  ;;  %v5487_v18 = vld [vmem:[#allocation15 + $0x148] sm:$0xff]  ;;  %v5489_v40 = vld [vmem:[#allocation15 + $0x158] sm:$0xff] }
 0x96a   :  { %10006 = vmatprep.subr.bf16.mxu0 %v10005_v25  ;;  %10070 = vmatprep.subr.bf16.mxu1 %v10069_v3  ;;  %v13790_v25 = vpack.c.bf16 %v5459_v49, %v5455_v30  ;;  %v13792_v3 = vpack.c.bf16 %v5461_v2, %v5457_v1  ;;  %v5491_v63 = vld [vmem:[#allocation15 + $0x168] sm:$0xff]  ;;  %v5493_v5 = vld [vmem:[#allocation15 + $0x178] sm:$0xff]  ;;  %v13848_v30 = vpack.c.bf16 %v5482_v23, %v5478_v14  ;;  %v5486_v1 = vld [vmem:[#allocation15 + $0x140] sm:$0xff] }
 0x96b   :  { %v5490_v2 = vld [vmem:[#allocation15 + $0x160] sm:$0xff]  ;;  %v5659_v14 = vld [vmem:[#allocation16 + $0x18] sm:$0xff] }
 0x96c   :  { %15146 = vst [vmem:[#allocation44_spill] sm:$0xff] %v13848_v30  ;;  %v5663_v23 = vld [vmem:[#allocation16 + $0x38] sm:$0xff] }
 0x96d   :  { %10008 = vmatpush1.bf16.msra.mxu0 %v10007_v41  ;;  %10072 = vmatpush1.bf16.msra.mxu1 %v10071_v28  ;;  %v13800_v41 = vpack.c.bf16 %v5458_v19, %v5454_v61  ;;  %v13802_v28 = vpack.c.bf16 %v5460_v7, %v5456_v26  ;;  %v13856_v61 = vpack.c.bf16 %v5493_v5, %v5489_v40  ;;  %v5488_v19 = vld [vmem:[#allocation15 + $0x150] sm:$0xff]  ;;  %v5495_v26 = vld [vmem:[#allocation15 + $0x188] sm:$0xff] }
 0x96e   :  { %10010 = vmatprep.subr.bf16.mxu0 %v10009_v35  ;;  %10074 = vmatprep.subr.bf16.mxu1 %v10073_v50  ;;  %v13808_v35 = vpack.c.bf16 %v5469_v29, %v5465_v13  ;;  %v5464_v50 = vld [vmem:[#allocation15 + $0x90] sm:$0xff]  ;;  %v5499_v7 = vld [vmem:[#allocation15 + $0x1a8] sm:$0xff]  ;;  %v13864_v13 = vpack.c.bf16 %v5490_v2, %v5486_v1  ;;  %v13904_v40 = vpack.c.bf16 %v5663_v23, %v5659_v14 }
 0x96f   :  { %15149 = vst [vmem:[#allocation47_spill] sm:$0xff] %v13856_v61  ;;  %v5658_v5 = vld [vmem:[#allocation16 + $0x10] sm:$0xff]  ;;  %v5665_v1 = vld [vmem:[#allocation16 + $0x48] sm:$0xff] }
 0x970   :  { %15137 = vst [vmem:[#allocation36_spill] sm:$0xff] %v13808_v35  ;;  %15150 = vst [vmem:[#allocation48_spill] sm:$0xff] %v13864_v13  ;;  %v5669_v2 = vld [vmem:[#allocation16 + $0x68] sm:$0xff]  ;;  %v5678_v14 = vld [vmem:[#allocation16 + $0xb0] sm:$0xff] }
 0x971   :  { %10012 = vmatpush1.bf16.msra.mxu0 %v10011_v33  ;;  %10076 = vmatpush1.bf16.msra.mxu1 %v10075_v37  ;;  %v5470_v33 = vld [vmem:[#allocation15 + $0xc0] sm:$0xff]  ;;  %15161 = vst [vmem:[#allocation31_spill] sm:$0xff] %v13904_v40  ;;  %v5681_v23 = vld [vmem:[#allocation16 + $0xc8] sm:$0xff] }
 0x972   :  { %10014 = vmatprep.subr.bf16.mxu0 %v10013_v62  ;;  %10078 = vmatprep.subr.bf16.mxu1 %v10077_v47  ;;  %v5474_v37 = vld [vmem:[#allocation15 + $0xe0] sm:$0xff]  ;;  %v5479_v62 = vld [vmem:[#allocation15 + $0x108] sm:$0xff] }
 0x973   :  { %v5483_v47 = vld [vmem:[#allocation15 + $0x128] sm:$0xff]  ;;  %v13832_v58 = vpack.c.bf16 %v5474_v37, %v5470_v33  ;;  %v13880_v33 = vpack.c.bf16 %v5498_v39, %v5494_v0  ;;  %v5666_v39 = vld [vmem:[#allocation16 + $0x50] sm:$0xff] }
 0x975   :  { %10016 = vmatpush1.bf16.msra.mxu0 %v10015_v48  ;;  %10080 = vmatpush1.bf16.msra.mxu1 %v10079_v42  ;;  %15142 = vst [vmem:[#allocation40_spill] sm:$0xff] %v13832_v58  ;;  %v13840_v48 = vpack.c.bf16 %v5485_v43, %v5481_v57  ;;  %v5480_v42 = vld [vmem:[#allocation15 + $0x110] sm:$0xff]  ;;  %15154 = vst [vmem:[#allocation54_spill] sm:$0xff] %v13880_v33  ;;  %v5657_v57 = vld [vmem:[#allocation16 + $0x8] sm:$0xff] }
 0x976   :  { %10082 = vmatprep.subr.bf16.mxu0 %v13780_v38  ;;  %10114 = vmatprep.subr.bf16.mxu1 %v13782_v32  ;;  %v5661_v43 = vld [vmem:[#allocation16 + $0x28] sm:$0xff] }
 0x977   :  { %15145 = vst [vmem:[#allocation43_spill] sm:$0xff] %v13840_v48 }
 0x978   :  { %5221 = vmatmul.mubr.f32.vlgmr.msra.gmra.mrb[48].mxu0 %v15125_v56  ;;  %5334 = vmatmul.mubr.f32.vlgmr.msra.gmra.mrb[48].mxu1 %v15125_v56  ;;  %v13806_v56 = vpack.c.bf16 %v5467_v59, %v5463_v6  ;;  %v5497_v6 = vld [vmem:[#allocation15 + $0x198] sm:$0xff] }
 0x979   :  { %5226 = vmatprep.mubr.f32.mxu0 %v13728_v27  ;;  %5339 = vmatprep.mubr.f32.mxu1 %v13728_v27  ;;  %v5468_v27 = vld [vmem:[#allocation15 + $0xb0] sm:$0xff]  ;;  %v5501_v59 = vld [vmem:[#allocation15 + $0x1b8] sm:$0xff] }
 0x97a   :  { %10084 = vmatpush1.bf16.msra.mxu0 %v13786_v10  ;;  %10116 = vmatpush1.bf16.msra.mxu1 %v13788_v52  ;;  %15136 = vst [vmem:[#allocation35_spill] sm:$0xff] %v13806_v56  ;;  %v13818_v16 = vpack.c.bf16 %v5468_v27, %v5464_v50  ;;  %v13872_v50 = vpack.c.bf16 %v5501_v59, %v5497_v6  ;;  %v5496_v27 = vld [vmem:[#allocation15 + $0x190] sm:$0xff]  ;;  %v5664_v6 = vld [vmem:[#allocation16 + $0x40] sm:$0xff] }
 0x97b   :  { %10086 = vmatprep.subr.bf16.mxu0 %v13790_v25  ;;  %10118 = vmatprep.subr.bf16.mxu1 %v13792_v3  ;;  %v5668_v59 = vld [vmem:[#allocation16 + $0x60] sm:$0xff] }
 0x97c   :  { %5227 = vmatmul.mubr.f32.gmra.mrb[50].mxu0 %v15126_v55  ;;  %5340 = vmatmul.mubr.f32.gmra.mrb[50].mxu1 %v15126_v55  ;;  %15139 = vst [vmem:[#allocation30_spill] sm:$0xff] %v13818_v16  ;;  %v13822_v55 = vpack.c.bf16 %v5475_v9, %v5471_v31  ;;  %15153 = vst [vmem:[#allocation52_spill] sm:$0xff] %v13872_v50  ;;  %v5503_v31 = vld [vmem:[#allocation15 + $0x1c8] sm:$0xff] }
 0x97d   :  { %5232 = vmatprep.mubr.f32.mxu0 %v13636_v8  ;;  %5345 = vmatprep.mubr.f32.mxu1 %v13636_v8  ;;  %v5476_v8 = vld [vmem:[#allocation15 + $0xf0] sm:$0xff]  ;;  %v5507_v9 = vld [vmem:[#allocation15 + $0x1e8] sm:$0xff] }
 0x97e   :  { %10088 = vmatpush1.bf16.msra.mxu0 %v13800_v41  ;;  %10120 = vmatpush1.bf16.msra.mxu1 %v13802_v28  ;;  %15140 = vst [vmem:[#allocation38_spill] sm:$0xff] %v13822_v55  ;;  %v13834_v22 = vpack.c.bf16 %v5476_v8, %v5472_v54  ;;  %v5502_v54 = vld [vmem:[#allocation15 + $0x1c0] sm:$0xff] }
 0x97f   :  { %10090 = vmatprep.subr.bf16.mxu0 %v13806_v56  ;;  %10122 = vmatprep.subr.bf16.mxu1 %v13808_v35  ;;  %v5506_v8 = vld [vmem:[#allocation15 + $0x1e0] sm:$0xff] }
 0x980   :  { %5233 = vmatmul.mubr.f32.gmra.mrb[52].mxu0 %v15127_v21  ;;  %5346 = vmatmul.mubr.f32.gmra.mrb[52].mxu1 %v15127_v21  ;;  %15143 = vst [vmem:[#allocation32_spill] sm:$0xff] %v13834_v22  ;;  %v13838_v21 = vpack.c.bf16 %v5483_v47, %v5479_v62  ;;  %v13888_v62 = vpack.c.bf16 %v5509_v4, %v5505_v44  ;;  %v5504_v47 = vld [vmem:[#allocation15 + $0x1d0] sm:$0xff]  ;;  %v5679_v44 = vld [vmem:[#allocation16 + $0xb8] sm:$0xff] }
 0x981   :  { %5238 = vmatprep.mubr.f32.mxu0 %v15128_v15  ;;  %5351 = vmatprep.mubr.f32.mxu1 %v15128_v15  ;;  %v5484_v15 = vld [vmem:[#allocation15 + $0x130] sm:$0xff]  ;;  %v13926_v4 = vpack.c.bf16 %v5668_v59, %v5664_v6 }
 0x982   :  { %10092 = vmatpush1.bf16.msra.mxu0 %v13816_v46  ;;  %10124 = vmatpush1.bf16.msra.mxu1 %v13818_v16  ;;  %15144 = vst [vmem:[#allocation33_spill] sm:$0xff] %v13838_v21  ;;  %v13850_v49 = vpack.c.bf16 %v5484_v15, %v5480_v42  ;;  %15157 = vst [vmem:[#allocation41_spill] sm:$0xff] %v13888_v62  ;;  %v13896_v42 = vpack.c.bf16 %v5506_v8, %v5502_v54  ;;  %v5672_v8 = vld [vmem:[#allocation16 + $0x80] sm:$0xff]  ;;  %v5682_v59 = vld [vmem:[#allocation16 + $0xd0] sm:$0xff] }
 0x983   :  { %10094 = vmatprep.subr.bf16.mxu0 %v13822_v55  ;;  %10126 = vmatprep.subr.bf16.mxu1 %v13824_v34 }
 0x984   :  { %5239 = vmatmul.mubr.f32.gmra.mrb[54].mxu0 %v15129_v53  ;;  %5352 = vmatmul.mubr.f32.gmra.mrb[54].mxu1 %v15129_v53  ;;  %15147 = vst [vmem:[#allocation45_spill] sm:$0xff] %v13850_v49  ;;  %v13854_v53 = vpack.c.bf16 %v5491_v63, %v5487_v18  ;;  %15158 = vst [vmem:[#allocation28_spill] sm:$0xff] %v13896_v42  ;;  %v5656_v18 = vld [vmem:[#allocation16] sm:$0xff] }
 0x985   :  { %5244 = vmatprep.mubr.f32.mxu0 %v15130_v12  ;;  %5357 = vmatprep.mubr.f32.mxu1 %v15130_v12  ;;  %v5492_v12 = vld [vmem:[#allocation15 + $0x170] sm:$0xff]  ;;  %v5660_v63 = vld [vmem:[#allocation16 + $0x20] sm:$0xff] }
 0x986   :  { %10096 = vmatpush1.bf16.msra.mxu0 %v13832_v58  ;;  %10128 = vmatpush1.bf16.msra.mxu1 %v13834_v22  ;;  %15148 = vst [vmem:[#allocation46_spill] sm:$0xff] %v13854_v53  ;;  %v13866_v29 = vpack.c.bf16 %v5492_v12, %v5488_v19  ;;  %v5667_v19 = vld [vmem:[#allocation16 + $0x58] sm:$0xff] }
 0x987   :  { %10098 = vmatprep.subr.bf16.mxu0 %v13838_v21  ;;  %10130 = vmatprep.subr.bf16.mxu1 %v13840_v48  ;;  %v5671_v12 = vld [vmem:[#allocation16 + $0x78] sm:$0xff] }
 0x988   :  { %5245 = vmatmul.mubr.f32.gmra.mrb[56].mxu0 %v15131_v36  ;;  %5358 = vmatmul.mubr.f32.gmra.mrb[56].mxu1 %v15131_v36  ;;  %15151 = vst [vmem:[#allocation50_spill] sm:$0xff] %v13866_v29  ;;  %v13870_v36 = vpack.c.bf16 %v5499_v7, %v5495_v26  ;;  %v13912_v26 = vpack.c.bf16 %v5660_v63, %v5656_v18  ;;  %v5685_v18 = vld [vmem:[#allocation16 + $0xe8] sm:$0xff]  ;;  %v5683_v63 = vld [vmem:[#allocation16 + $0xd8] sm:$0xff] }
 0x989   :  { %5250 = vmatprep.mubr.f32.mxu0 %v15132_v11  ;;  %5363 = vmatprep.mubr.f32.mxu1 %v15132_v11  ;;  %v5500_v11 = vld [vmem:[#allocation15 + $0x1b0] sm:$0xff]  ;;  %v13920_v0 = vpack.c.bf16 %v5671_v12, %v5667_v19  ;;  %v5684_v19 = vld [vmem:[#allocation16 + $0xe0] sm:$0xff]  ;;  %v13946_v12 = vpack.c.bf16 %v5685_v18, %v5681_v23 }
 0x98a   :  { %10100 = vmatpush1.bf16.msra.mxu0 %v13848_v30  ;;  %10132 = vmatpush1.bf16.msra.mxu1 %v13850_v49  ;;  %15152 = vst [vmem:[#allocation51_spill] sm:$0xff] %v13870_v36  ;;  %v13882_v37 = vpack.c.bf16 %v5500_v11, %v5496_v27  ;;  %v5670_v27 = vld [vmem:[#allocation16 + $0x70] sm:$0xff]  ;;  %v5673_v11 = vld [vmem:[#allocation16 + $0x88] sm:$0xff] }
 0x98b   :  { %10102 = vmatprep.subr.bf16.mxu0 %v13854_v53  ;;  %10134 = vmatprep.subr.bf16.mxu1 %v13856_v61  ;;  %v13928_v54 = vpack.c.bf16 %v5670_v27, %v5666_v39  ;;  %15165 = vst [vmem:[#allocation42_spill] sm:$0xff] %v13946_v12  ;;  %v5686_v39 = vld [vmem:[#allocation16 + $0xf0] sm:$0xff]  ;;  %v5689_v27 = vld [vmem:[#allocation16 + $0x108] sm:$0xff] }
 0x98c   :  { %5251 = vmatmul.mubr.f32.gmra.mrb[58].mxu0 %v15133_v51  ;;  %5364 = vmatmul.mubr.f32.gmra.mrb[58].mxu1 %v15133_v51  ;;  %15155 = vst [vmem:[#allocation55_spill] sm:$0xff] %v13882_v37  ;;  %v13886_v51 = vpack.c.bf16 %v5507_v9, %v5503_v31  ;;  %v5677_v31 = vld [vmem:[#allocation16 + $0xa8] sm:$0xff]  ;;  %v5675_v9 = vld [vmem:[#allocation16 + $0x98] sm:$0xff]  ;;  %v5690_v18 = vld [vmem:[#allocation16 + $0x110] sm:$0xff] }
 0x98d   :  { %5256 = vmatprep.mubr.f32.mxu0 %v15134_v24  ;;  %5369 = vmatprep.mubr.f32.mxu1 %v15134_v24  ;;  %v5508_v24 = vld [vmem:[#allocation15 + $0x1f0] sm:$0xff] }
 0x98e   :  { %10104 = vmatpush1.bf16.msra.mxu0 %v13864_v13  ;;  %10136 = vmatpush1.bf16.msra.mxu1 %v13866_v29  ;;  %15156 = vst [vmem:[#allocation56_spill] sm:$0xff] %v13886_v51  ;;  %v13898_v15 = vpack.c.bf16 %v5508_v24, %v5504_v47  ;;  %v5676_v47 = vld [vmem:[#allocation16 + $0xa0] sm:$0xff]  ;;  %v13932_v24 = vpack.c.bf16 %v5677_v31, %v5673_v11  ;;  %v5693_v11 = vld [vmem:[#allocation16 + $0x128] sm:$0xff]  ;;  %v5691_v31 = vld [vmem:[#allocation16 + $0x118] sm:$0xff] }
 0x98f   :  { %10106 = vmatprep.subr.bf16.mxu0 %v13870_v36  ;;  %10138 = vmatprep.subr.bf16.mxu1 %v13872_v50 }
 0x990   :  { %5257 = vmatmul.mubr.f32.gmra.mrb[60].mxu0 %v13687_v45  ;;  %5370 = vmatmul.mubr.f32.gmra.mrb[60].mxu1 %v13687_v45  ;;  %15159 = vst [vmem:[#allocation25_spill] sm:$0xff] %v13898_v15  ;;  %v13902_v45 = vpack.c.bf16 %v5661_v43, %v5657_v57  ;;  %v13934_v57 = vpack.c.bf16 %v5679_v44, %v5675_v9  ;;  %v5674_v43 = vld [vmem:[#allocation16 + $0x90] sm:$0xff]  ;;  %v5695_v9 = vld [vmem:[#allocation16 + $0x138] sm:$0xff] }
 0x991   :  { %5262 = vmatprep.mubr.f32.mxu0 %v15135_v60  ;;  %5375 = vmatprep.mubr.f32.mxu1 %v15135_v60  ;;  %v5662_v60 = vld [vmem:[#allocation16 + $0x30] sm:$0xff]  ;;  %v13960_v23 = vpack.c.bf16 %v5695_v9, %v5691_v31 }
 0x992   :  { %10108 = vmatpush1.bf16.msra.mxu0 %v13880_v33  ;;  %10140 = vmatpush1.bf16.msra.mxu1 %v13882_v37  ;;  %15160 = vst [vmem:[#allocation29_spill] sm:$0xff] %v13902_v45  ;;  %v13914_v7 = vpack.c.bf16 %v5662_v60, %v5658_v5  ;;  %15162 = vst [vmem:[#allocation53_spill] sm:$0xff] %v13934_v57  ;;  %v5687_v5 = vld [vmem:[#allocation16 + $0xf8] sm:$0xff]  ;;  %v13940_v60 = vpack.c.bf16 %v5676_v47, %v5672_v8  ;;  %v5688_v47 = vld [vmem:[#allocation16 + $0x100] sm:$0xff] }
 0x993   :  { %10110 = vmatprep.subr.bf16.mxu0 %v13886_v51  ;;  %10142 = vmatprep.subr.bf16.mxu1 %v13888_v62  ;;  %v13948_v6 = vpack.c.bf16 %v5687_v5, %v5683_v63  ;;  %v13954_v8 = vpack.c.bf16 %v5686_v39, %v5682_v59  ;;  %15170 = vst [vmem:[#allocation59_spill] sm:$0xff] %v13960_v23  ;;  %v5694_v63 = vld [vmem:[#allocation16 + $0x130] sm:$0xff]  ;;  %v5697_v5 = vld [vmem:[#allocation16 + $0x148] sm:$0xff]  ;;  %v5696_v59 = vld [vmem:[#allocation16 + $0x140] sm:$0xff] }
 0x994   :  { %5263 = vmatmul.mubr.f32.gmra.mrb[62].mxu0 %v13741_v17  ;;  %5376 = vmatmul.mubr.f32.gmra.mrb[62].mxu1 %v13741_v17  ;;  %v13918_v17 = vpack.c.bf16 %v5669_v2, %v5665_v1  ;;  %15163 = vst [vmem:[#allocation27_spill] sm:$0xff] %v13940_v60  ;;  %v13942_v1 = vpack.c.bf16 %v5678_v14, %v5674_v43  ;;  %v5680_v2 = vld [vmem:[#allocation16 + $0xc0] sm:$0xff]  ;;  %v5698_v31 = vld [vmem:[#allocation16 + $0x150] sm:$0xff] }
 0x995   :  { %5578 = vmatprep.mubr.f32.mxu0 %v14988_v20  ;;  %5649 = vmatprep.mubr.f32.mxu1 %v14988_v20  ;;  %15166 = vst [vmem:[#allocation49_spill] sm:$0xff] %v13948_v6  ;;  %v13952_v44 = vpack.c.bf16 %v5684_v19, %v5680_v2  ;;  %15168 = vst [vmem:[#allocation57_spill] sm:$0xff] %v13954_v8  ;;  %v5692_v43 = vld [vmem:[#allocation16 + $0x120] sm:$0xff]  ;;  %v13958_v14 = vpack.c.bf16 %v5693_v11, %v5689_v27  ;;  %v5702_v9 = vld [vmem:[#allocation16 + $0x170] sm:$0xff] }
 0x996   :  { %10112 = vmatpush1.bf16.msra.mxu0 %v13896_v42  ;;  %10144 = vmatpush1.bf16.msra.mxu1 %v13898_v15  ;;  %15164 = vst [vmem:[#allocation26_spill] sm:$0xff] %v13942_v1  ;;  %v13964_v2 = vpack.c.bf16 %v5692_v43, %v5688_v47  ;;  %v13966_v19 = vpack.c.bf16 %v5694_v63, %v5690_v18  ;;  %v5700_v39 = vld [vmem:[#allocation16 + $0x160] sm:$0xff] }
 0x997   :  { %10146 = vmatprep.subr.bf16.mxu0 %v13902_v45  ;;  %10178 = vmatprep.subr.bf16.mxu1 %v13904_v40  ;;  %15167 = vst [vmem:[#allocation24_spill] sm:$0xff] %v13952_v44  ;;  %15169 = vst [vmem:[#allocation58_spill] sm:$0xff] %v13958_v14  ;;  %v13976_v47 = vpack.c.bf16 %v5700_v39, %v5696_v59  ;;  %v13978_v43 = vpack.c.bf16 %v5702_v9, %v5698_v31  ;;  %v5704_v18 = vld [vmem:[#allocation16 + $0x180] sm:$0xff]  ;;  %v5718_v9 = vld [vmem:[#allocation16 + $0x1f0] sm:$0xff] }
 0x998   :  { %15171 = vst [vmem:[#allocation60_spill] sm:$0xff] %v13964_v2  ;;  %15172 = vst [vmem:[#allocation61_spill] sm:$0xff] %v13966_v19  ;;  %v5708_v63 = vld [vmem:[#allocation16 + $0x1a0] sm:$0xff] }
 0x999   :  { %5579 = vmatmul.mubr.f32.vlgmr.msra.gmra.mrb[32].mxu0 %v14988_v20  ;;  %5650 = vmatmul.mubr.f32.vlgmr.msra.gmra.mrb[32].mxu1 %v14988_v20  ;;  %v13988_v59 = vpack.c.bf16 %v5708_v63, %v5704_v18  ;;  %v5712_v31 = vld [vmem:[#allocation16 + $0x1c0] sm:$0xff] }
 0x99a   :  { %10148 = vmatpush1.bf16.msra.mxu0 %v13912_v26  ;;  %10180 = vmatpush1.bf16.msra.mxu1 %v13914_v7 }
 0x99b   :  { %10150 = vmatprep.subr.bf16.mxu0 %v13918_v17  ;;  %10182 = vmatprep.subr.bf16.mxu1 %v13920_v0 }
 0x99c   :  { %5788 = vmatprep.mubr.f32.mxu0 %v14988_v20  ;;  %5859 = vmatprep.mubr.f32.mxu1 %v14988_v20 }
 0x99e   :  { %10152 = vmatpush1.bf16.msra.mxu0 %v13926_v4  ;;  %10184 = vmatpush1.bf16.msra.mxu1 %v13928_v54 }
 0x99f   :  { %10154 = vmatprep.subr.bf16.mxu0 %v13932_v24  ;;  %10186 = vmatprep.subr.bf16.mxu1 %v13934_v57  ;;  %v5699_v57 = vld [vmem:[#allocation16 + $0x158] sm:$0xff] }
 0x9a2   :  { %10156 = vmatpush1.bf16.msra.mxu0 %v13940_v60  ;;  %10188 = vmatpush1.bf16.msra.mxu1 %v13942_v1  ;;  %v5701_v60 = vld [vmem:[#allocation16 + $0x168] sm:$0xff]  ;;  %v5703_v1 = vld [vmem:[#allocation16 + $0x178] sm:$0xff] }
 0x9a3   :  { %10158 = vmatprep.subr.bf16.mxu0 %v13946_v12  ;;  %10190 = vmatprep.subr.bf16.mxu1 %v13948_v6  ;;  %v13970_v27 = vpack.c.bf16 %v5701_v60, %v5697_v5  ;;  %v13972_v11 = vpack.c.bf16 %v5703_v1, %v5699_v57  ;;  %v5705_v6 = vld [vmem:[#allocation16 + $0x188] sm:$0xff]  ;;  %v5707_v12 = vld [vmem:[#allocation16 + $0x198] sm:$0xff]  ;;  %v5706_v1 = vld [vmem:[#allocation16 + $0x190] sm:$0xff] }
 0x9a4   :  { %v5710_v5 = vld [vmem:[#allocation16 + $0x1b0] sm:$0xff] }
 0x9a5   :  { %v13990_v39 = vpack.c.bf16 %v5710_v5, %v5706_v1 }
 0x9a6   :  { %10160 = vmatpush1.bf16.msra.mxu0 %v13952_v44  ;;  %10192 = vmatpush1.bf16.msra.mxu1 %v13954_v8  ;;  %v5709_v44 = vld [vmem:[#allocation16 + $0x1a8] sm:$0xff]  ;;  %v5711_v8 = vld [vmem:[#allocation16 + $0x1b8] sm:$0xff] }
 0x9a7   :  { %10162 = vmatprep.subr.bf16.mxu0 %v13958_v14  ;;  %10194 = vmatprep.subr.bf16.mxu1 %v13960_v23  ;;  %v13982_v57 = vpack.c.bf16 %v5709_v44, %v5705_v6  ;;  %v13984_v60 = vpack.c.bf16 %v5711_v8, %v5707_v12  ;;  %v5713_v23 = vld [vmem:[#allocation16 + $0x1c8] sm:$0xff]  ;;  %v5715_v14 = vld [vmem:[#allocation16 + $0x1d8] sm:$0xff]  ;;  %v5716_v44 = vld [vmem:[#allocation16 + $0x1e0] sm:$0xff] }
 0x9a8   :  { %v5714_v8 = vld [vmem:[#allocation16 + $0x1d0] sm:$0xff]  ;;  %v14000_v18 = vpack.c.bf16 %v5716_v44, %v5712_v31 }
 0x9a9   :  { %v14002_v63 = vpack.c.bf16 %v5718_v9, %v5714_v8 }
 0x9aa   :  { %10164 = vmatpush1.bf16.msra.mxu0 %v13964_v2  ;;  %10196 = vmatpush1.bf16.msra.mxu1 %v13966_v19  ;;  %v5717_v2 = vld [vmem:[#allocation16 + $0x1e8] sm:$0xff]  ;;  %v5719_v19 = vld [vmem:[#allocation16 + $0x1f8] sm:$0xff] }
 0x9ab   :  { %10166 = vmatprep.subr.bf16.mxu0 %v13970_v27  ;;  %10198 = vmatprep.subr.bf16.mxu1 %v13972_v11  ;;  %v13994_v12 = vpack.c.bf16 %v5717_v2, %v5713_v23  ;;  %v13996_v6 = vpack.c.bf16 %v5719_v19, %v5715_v14  ;;  %v4888_v14 = vld [vmem:[#allocation13] sm:$0xff] }
 0x9ac   :  { %v15173_v23 = vld [vmem:[#allocation34_spill] sm:$0xff] }
 0x9ad   :  { %v15174_v2 = vsub.s32 0, %v15173_v23  ;;  %v15176_v1 = vsub.s32 1, %v15173_v23 }
 0x9ae   :  { %10168 = vmatpush1.bf16.msra.mxu0 %v13976_v47  ;;  %10200 = vmatpush1.bf16.msra.mxu1 %v13978_v43 }
 0x9af   :  { %10170 = vmatprep.subr.bf16.mxu0 %v13982_v57  ;;  %10202 = vmatprep.subr.bf16.mxu1 %v13984_v60  ;;  %v14048_v19 = vrot.slane %v4888_v14, %v15174_v2  ;;  %v14052_v5 = vrot.slane %v4888_v14, %v15176_v1  ;;  %v15180_v1 = vsub.s32 2, %v15173_v23 }
 0x9b1   :  { %15175 = vst [vmem:[#allocation34_spill] sm:$0xff] %v14048_v19  ;;  %15177 = vst [vmem:[#allocation62_spill] sm:$0xff] %v14052_v5 }
 0x9b2   :  { %10172 = vmatpush1.bf16.msra.mxu0 %v13988_v59  ;;  %10204 = vmatpush1.bf16.msra.mxu1 %v13990_v39 }
 0x9b3   :  { %10174 = vmatprep.subr.bf16.mxu0 %v13994_v12  ;;  %10206 = vmatprep.subr.bf16.mxu1 %v13996_v6 }
 0x9b6   :  { %10176 = vmatpush1.bf16.msra.mxu0 %v14000_v18  ;;  %10208 = vmatpush1.bf16.msra.mxu1 %v14002_v63 }
 0x9b7   :  { %10210 = vmatprep.subr.bf16.mxu0 %v13780_v38  ;;  %10242 = vmatprep.subr.bf16.mxu1 %v13782_v32 }
 0x9b9   :  { %5789 = vmatmul.mubr.f32.vlgmr.msra.gmra.mrb[62].mxu0 %v14988_v20  ;;  %5860 = vmatmul.mubr.f32.vlgmr.msra.gmra.mrb[62].mxu1 %v14988_v20 }
 0x9ba   :  { %10212 = vmatpush1.bf16.msra.mxu0 %v13786_v10  ;;  %10244 = vmatpush1.bf16.msra.mxu1 %v13788_v52 }
 0x9bb   :  { %10214 = vmatprep.subr.bf16.mxu0 %v13790_v25  ;;  %10246 = vmatprep.subr.bf16.mxu1 %v13792_v3 }
 0x9bc   :  { %5982 = vmatprep.mubr.f32.mxu0 %v14988_v20  ;;  %6053 = vmatprep.mubr.f32.mxu1 %v14988_v20 }
 0x9be   :  { %10216 = vmatpush1.bf16.msra.mxu0 %v13800_v41  ;;  %10248 = vmatpush1.bf16.msra.mxu1 %v13802_v28 }
 0x9bf   :  { %10218 = vmatprep.subr.bf16.mxu0 %v13806_v56  ;;  %10250 = vmatprep.subr.bf16.mxu1 %v13808_v35 }
 0x9c2   :  { %10220 = vmatpush1.bf16.msra.mxu0 %v13816_v46  ;;  %10252 = vmatpush1.bf16.msra.mxu1 %v13818_v16 }
 0x9c3   :  { %10222 = vmatprep.subr.bf16.mxu0 %v13822_v55  ;;  %10254 = vmatprep.subr.bf16.mxu1 %v13824_v34 }
 0x9c6   :  { %10224 = vmatpush1.bf16.msra.mxu0 %v13832_v58  ;;  %10256 = vmatpush1.bf16.msra.mxu1 %v13834_v22 }
 0x9c7   :  { %10226 = vmatprep.subr.bf16.mxu0 %v13838_v21  ;;  %10258 = vmatprep.subr.bf16.mxu1 %v13840_v48 }
 0x9ca   :  { %10228 = vmatpush1.bf16.msra.mxu0 %v13848_v30  ;;  %10260 = vmatpush1.bf16.msra.mxu1 %v13850_v49 }
 0x9cb   :  { %10230 = vmatprep.subr.bf16.mxu0 %v13854_v53  ;;  %10262 = vmatprep.subr.bf16.mxu1 %v13856_v61 }
 0x9ce   :  { %10232 = vmatpush1.bf16.msra.mxu0 %v13864_v13  ;;  %10264 = vmatpush1.bf16.msra.mxu1 %v13866_v29 }
 0x9cf   :  { %10234 = vmatprep.subr.bf16.mxu0 %v13870_v36  ;;  %10266 = vmatprep.subr.bf16.mxu1 %v13872_v50 }
 0x9d2   :  { %10236 = vmatpush1.bf16.msra.mxu0 %v13880_v33  ;;  %10268 = vmatpush1.bf16.msra.mxu1 %v13882_v37  ;;  %v14063_v37 = vrot.slane %v4888_v14, %v15180_v1  ;;  %v15182_v1 = vsub.s32 4, %v15173_v23 }
 0x9d3   :  { %10238 = vmatprep.subr.bf16.mxu0 %v13886_v51  ;;  %10270 = vmatprep.subr.bf16.mxu1 %v13888_v62 }
 0x9d4   :  { %15181 = vst [vmem:[#allocation64_spill] sm:$0xff] %v14063_v37 }
 0x9d6   :  { %10240 = vmatpush1.bf16.msra.mxu0 %v13896_v42  ;;  %10272 = vmatpush1.bf16.msra.mxu1 %v13898_v15 }
 0x9d7   :  { %10274 = vmatprep.subr.bf16.mxu0 %v13902_v45  ;;  %10306 = vmatprep.subr.bf16.mxu1 %v13904_v40  ;;  %v15178_v40 = vsub.s32 3, %v15173_v23 }
 0x9d9   :  { %v14058_v51 = vrot.slane %v4888_v14, %v15178_v40 }
 0x9db   :  { %15179 = vst [vmem:[#allocation63_spill] sm:$0xff] %v14058_v51 }
 0xa6c   :  { %v5580_v31 = vpop.f32.mrb[32].mxu0  ;;  %v5651_v44 = vpop.f32.mrb[32].mxu1 }
 0xa6d   :  { %v11213_v8 = vadd.f32 %v5580_v31, %v14048_v19  ;;  %v5582_v9 = vpop.f32.mrb[33].mxu0  ;;  %v5653_v42 = vpop.f32.mrb[33].mxu1  ;;  %v11229_v31 = vadd.f32 %v5651_v44, %v14063_v37  ;;  %v15184_v44 = vsub.s32 5, %v15173_v23 }
 0xa6e   :  { %v11214_v15 = vadd.f32 %v5582_v9, %v14052_v5  ;;  %v11230_v2 = vadd.f32 %v5653_v42, %v14058_v51  ;;  %v14068_v5 = vrot.slane %v4888_v14, %v15182_v1 }
 0xa6f   :  { %v8558_v45 = vmul.f32 -1.442695, %v11213_v8  ;;  %v14072_v37 = vrot.slane %v4888_v14, %v15184_v44 }
 0xa70   :  { %v8559_v62 = vmul.f32 -1.442695, %v11214_v15  ;;  %v8560_v33 = vmul.f32 -1.442695, %v11230_v2  ;;  %15183 = vst [vmem:[#allocation65_spill] sm:$0xff] %v14068_v5 }
 0xa71   :  { %11677 = vpow2.f32 %v8558_v45 }
 0xa72   :  { %11679 = vpow2.f32 %v8559_v62 }
 0xa73   :  { %11681 = vpow2.f32 %v8560_v33 }
 0xa74   :  { %11683 = vtanh.f32 %v11229_v31 }
 0xa7b   :  { %v11678_v19 = vpop.eup %11677 }
 0xa7c   :  { %v11680_v50 = vpop.eup %11679  ;;  %v5869_v9 = vadd.f32 1.0, %v11678_v19 }
 0xa7d   :  { %v5875_v15 = vadd.f32 1.0, %v11680_v50  ;;  %v11682_v40 = vpop.eup %11681 }
 0xa7e   :  { %11685 = vrcp.f32 %v5869_v9  ;;  %v11684_v45 = vpop.eup %11683  ;;  %v5882_v51 = vadd.f32 1.0, %v11682_v40 }
 0xa7f   :  { %11687 = vrcp.f32 %v5875_v15 }
 0xa80   :  { %11689 = vrcp.f32 %v5882_v51  ;;  %v15187_v51 = vsub.s32 6, %v15173_v23 }
 0xa88   :  { %v11686_v62 = vpop.eup %11685 }
 0xa89   :  { %v11688_v8 = vpop.eup %11687  ;;  %v5886_v42 = vmul.f32 %v11686_v62, %v11684_v45 }
 0xa8a   :  { %v5885_v2 = vmul.f32 0.0, %v11688_v8  ;;  %v15186_v8 = vsub.s32 7, %v15173_v23  ;;  %v11690_v44 = vpop.eup %11689 }
 0xa8c   :  { %v14074_v33 = vadd.f32 %v5886_v42, %v5885_v2  ;;  %v5790_v50 = vpop.f32.mrb[62].mxu0  ;;  %v5861_v19 = vpop.f32.mrb[62].mxu1  ;;  %v14081_v1 = vrot.slane %v4888_v14, %v15186_v8  ;;  %v14086_v2 = vrot.slane %v4888_v14, %v15187_v51  ;;  %v15188_v14 = vld [vmem:[#allocation53_spill] sm:$0xff]  ;;  %v15193_v51 = vld [vmem:[#allocation24_spill] sm:$0xff] }
 0xa8d   :  { %v11259_v31 = vadd.f32 %v5790_v50, %v14068_v5  ;;  %v5792_v9 = vpop.f32.mrb[63].mxu0  ;;  %v5863_v15 = vpop.f32.mrb[63].mxu1 }
 0xa8e   :  { %15185 = vst [vmem:[#allocation66_spill] sm:$0xff] %v14074_v33  ;;  %11691 = vtanh.f32 %v14074_v33  ;;  %v11260_v40 = vadd.f32 %v5792_v9, %v14072_v37  ;;  %v11276_v42 = vadd.f32 %v5863_v15, %v14081_v1  ;;  %v11275_v33 = vadd.f32 %v5861_v19, %v14086_v2  ;;  %v15191_v19 = vld [vmem:[#allocation42_spill] sm:$0xff]  ;;  %v15192_v15 = vld [vmem:[#allocation49_spill] sm:$0xff] }
 0xa8f   :  { %v8561_v45 = vmul.f32 -1.442695, %v11259_v31 }
 0xa90   :  { %v8562_v62 = vmul.f32 -1.442695, %v11260_v40  ;;  %v8563_v5 = vmul.f32 -1.442695, %v11276_v42 }
 0xa91   :  { %11693 = vpow2.f32 %v8561_v45 }
 0xa92   :  { %11695 = vpow2.f32 %v8562_v62 }
 0xa93   :  { %11697 = vpow2.f32 %v8563_v5  ;;  %v15189_v5 = vld [vmem:[#allocation27_spill] sm:$0xff] }
 0xa94   :  { %11699 = vtanh.f32 %v11275_v33  ;;  %v15190_v33 = vld [vmem:[#allocation26_spill] sm:$0xff] }
 0xa98   :  { %v11692_v50 = vpop.eup %11691 }
 0xa99   :  { %v5889_v9 = vmul.f32 %v11692_v50, %v11690_v44  ;;  %v15194_v44 = vld [vmem:[#allocation57_spill] sm:$0xff] }
 0xa9b   :  { %v11694_v31 = vpop.eup %11693  ;;  %5983 = vmatmul.mubr.f32.vlgmr.msra.gmra.mrb[34].mxu0 %v5889_v9  ;;  %6054 = vmatmul.mubr.f32.vlgmr.msra.gmra.mrb[34].mxu1 %v5889_v9 }
 0xa9c   :  { %v11696_v40 = vpop.eup %11695  ;;  %v5893_v8 = vadd.f32 1.0, %v11694_v31  ;;  %10276 = vmatpush1.bf16.msra.mxu0 %v13912_v26  ;;  %10308 = vmatpush1.bf16.msra.mxu1 %v13914_v7 }
 0xa9d   :  { %v5899_v23 = vadd.f32 1.0, %v11696_v40  ;;  %10278 = vmatprep.subr.bf16.mxu0 %v13918_v17  ;;  %10310 = vmatprep.subr.bf16.mxu1 %v13920_v0  ;;  %v11698_v45 = vpop.eup %11697  ;;  %v15195_v40 = vld [vmem:[#allocation58_spill] sm:$0xff] }
 0xa9e   :  { %11701 = vrcp.f32 %v5893_v8  ;;  %6128 = vmatprep.mubr.f32.mxu0 %v14988_v20  ;;  %6199 = vmatprep.mubr.f32.mxu1 %v14988_v20  ;;  %v11700_v62 = vpop.eup %11699  ;;  %v5906_v31 = vadd.f32 1.0, %v11698_v45  ;;  %v15196_v8 = vld [vmem:[#allocation59_spill] sm:$0xff] }
 0xa9f   :  { %11703 = vrcp.f32 %v5899_v23 }
 0xaa0   :  { %10280 = vmatpush1.bf16.msra.mxu0 %v13926_v4  ;;  %10312 = vmatpush1.bf16.msra.mxu1 %v13928_v54  ;;  %11705 = vrcp.f32 %v5906_v31  ;;  %v15201_v31 = vld [vmem:[#allocation55_spill] sm:$0xff] }
 0xaa1   :  { %10282 = vmatprep.subr.bf16.mxu0 %v13932_v24  ;;  %10314 = vmatprep.subr.bf16.mxu1 %v15188_v14 }
 0xaa4   :  { %10284 = vmatpush1.bf16.msra.mxu0 %v15189_v5  ;;  %10316 = vmatpush1.bf16.msra.mxu1 %v15190_v33 }
 0xaa5   :  { %10286 = vmatprep.subr.bf16.mxu0 %v15191_v19  ;;  %10318 = vmatprep.subr.bf16.mxu1 %v15192_v15  ;;  %v15197_v19 = vld [vmem:[#allocation60_spill] sm:$0xff]  ;;  %v15198_v15 = vld [vmem:[#allocation61_spill] sm:$0xff] }
 0xaa8   :  { %v11702_v42 = vpop.eup %11701  ;;  %10288 = vmatpush1.bf16.msra.mxu0 %v15193_v51  ;;  %10320 = vmatpush1.bf16.msra.mxu1 %v15194_v44 }
 0xaa9   :  { %v11704_v50 = vpop.eup %11703  ;;  %v5910_v9 = vmul.f32 %v11702_v42, %v11700_v62  ;;  %10290 = vmatprep.subr.bf16.mxu0 %v15195_v40  ;;  %10322 = vmatprep.subr.bf16.mxu1 %v15196_v8 }
 0xaaa   :  { %v5909_v23 = vmul.f32 0.0, %v11704_v50  ;;  %v11706_v45 = vpop.eup %11705  ;;  %v15199_v50 = vld [vmem:[#allocation52_spill] sm:$0xff] }
 0xaac   :  { %v14107_v33 = vadd.f32 %v5910_v9, %v5909_v23  ;;  %10292 = vmatpush1.bf16.msra.mxu0 %v15197_v19  ;;  %10324 = vmatpush1.bf16.msra.mxu1 %v15198_v15  ;;  %v15200_v9 = vld [vmem:[#allocation54_spill] sm:$0xff]  ;;  %v15202_v23 = vld [vmem:[#allocation56_spill] sm:$0xff] }
 0xaad   :  { %10294 = vmatprep.subr.bf16.mxu0 %v13970_v27  ;;  %10326 = vmatprep.subr.bf16.mxu1 %v13972_v11 }
 0xaae   :  { %11707 = vtanh.f32 %v14107_v33 }
 0xab0   :  { %10296 = vmatpush1.bf16.msra.mxu0 %v13976_v47  ;;  %10328 = vmatpush1.bf16.msra.mxu1 %v13978_v43 }
 0xab1   :  { %10298 = vmatprep.subr.bf16.mxu0 %v13982_v57  ;;  %10330 = vmatprep.subr.bf16.mxu1 %v13984_v60 }
 0xab4   :  { %10300 = vmatpush1.bf16.msra.mxu0 %v13988_v59  ;;  %10332 = vmatpush1.bf16.msra.mxu1 %v13990_v39 }
 0xab5   :  { %10302 = vmatprep.subr.bf16.mxu0 %v13994_v12  ;;  %10334 = vmatprep.subr.bf16.mxu1 %v13996_v6 }
 0xab8   :  { %v11708_v62 = vpop.eup %11707  ;;  %10304 = vmatpush1.bf16.msra.mxu0 %v14000_v18  ;;  %10336 = vmatpush1.bf16.msra.mxu1 %v14002_v63 }
 0xab9   :  { %v5913_v42 = vmul.f32 %v11708_v62, %v11706_v45  ;;  %10338 = vmatprep.subr.bf16.mxu0 %v13780_v38  ;;  %10370 = vmatprep.subr.bf16.mxu1 %v13782_v32  ;;  %v15203_v45 = vld [vmem:[#allocation41_spill] sm:$0xff]  ;;  %v15204_v62 = vld [vmem:[#allocation28_spill] sm:$0xff] }
 0xabb   :  { %6129 = vmatmul.mubr.f32.vlgmr.msra.gmra.mrb[60].mxu0 %v5913_v42  ;;  %6200 = vmatmul.mubr.f32.vlgmr.msra.gmra.mrb[60].mxu1 %v5913_v42  ;;  %v15205_v42 = vld [vmem:[#allocation25_spill] sm:$0xff] }
 0xabc   :  { %10340 = vmatpush1.bf16.msra.mxu0 %v13786_v10  ;;  %10372 = vmatpush1.bf16.msra.mxu1 %v13788_v52 }
 0xabd   :  { %10342 = vmatprep.subr.bf16.mxu0 %v13790_v25  ;;  %10374 = vmatprep.subr.bf16.mxu1 %v13792_v3 }
 0xabe   :  { %6322 = vmatprep.mubr.f32.mxu0 %v14988_v20  ;;  %6393 = vmatprep.mubr.f32.mxu1 %v14988_v20 }
 0xac0   :  { %10344 = vmatpush1.bf16.msra.mxu0 %v13800_v41  ;;  %10376 = vmatpush1.bf16.msra.mxu1 %v13802_v28 }
 0xac1   :  { %10346 = vmatprep.subr.bf16.mxu0 %v13806_v56  ;;  %10378 = vmatprep.subr.bf16.mxu1 %v13808_v35 }
 0xac4   :  { %10348 = vmatpush1.bf16.msra.mxu0 %v13816_v46  ;;  %10380 = vmatpush1.bf16.msra.mxu1 %v13818_v16 }
 0xac5   :  { %10350 = vmatprep.subr.bf16.mxu0 %v13822_v55  ;;  %10382 = vmatprep.subr.bf16.mxu1 %v13824_v34 }
 0xac8   :  { %10352 = vmatpush1.bf16.msra.mxu0 %v13832_v58  ;;  %10384 = vmatpush1.bf16.msra.mxu1 %v13834_v22 }
 0xac9   :  { %10354 = vmatprep.subr.bf16.mxu0 %v13838_v21  ;;  %10386 = vmatprep.subr.bf16.mxu1 %v13840_v48 }
 0xacc   :  { %10356 = vmatpush1.bf16.msra.mxu0 %v13848_v30  ;;  %10388 = vmatpush1.bf16.msra.mxu1 %v13850_v49  ;;  %v15209_v30 = vld [vmem:[#allocation62_spill] sm:$0xff] }
 0xacd   :  { %10358 = vmatprep.subr.bf16.mxu0 %v13854_v53  ;;  %10390 = vmatprep.subr.bf16.mxu1 %v13856_v61  ;;  %v15206_v61 = vld [vmem:[#allocation29_spill] sm:$0xff]  ;;  %v15208_v53 = vld [vmem:[#allocation34_spill] sm:$0xff] }
 0xad0   :  { %10360 = vmatpush1.bf16.msra.mxu0 %v13864_v13  ;;  %10392 = vmatpush1.bf16.msra.mxu1 %v13866_v29  ;;  %v15207_v13 = vld [vmem:[#allocation31_spill] sm:$0xff] }
 0xad1   :  { %10362 = vmatprep.subr.bf16.mxu0 %v13870_v36  ;;  %10394 = vmatprep.subr.bf16.mxu1 %v15199_v50 }
 0xad4   :  { %10364 = vmatpush1.bf16.msra.mxu0 %v15200_v9  ;;  %10396 = vmatpush1.bf16.msra.mxu1 %v15201_v31 }
 0xad5   :  { %10366 = vmatprep.subr.bf16.mxu0 %v15202_v23  ;;  %10398 = vmatprep.subr.bf16.mxu1 %v15203_v45  ;;  %v15210_v45 = vld [vmem:[#allocation63_spill] sm:$0xff] }
 0xad8   :  { %10368 = vmatpush1.bf16.msra.mxu0 %v15204_v62  ;;  %10400 = vmatpush1.bf16.msra.mxu1 %v15205_v42  ;;  %v15211_v42 = vld [vmem:[#allocation64_spill] sm:$0xff] }
 0xad9   :  { %10402 = vmatprep.subr.bf16.mxu0 %v15206_v61  ;;  %10434 = vmatprep.subr.bf16.mxu1 %v15207_v13 }
 0xb6e   :  { %v5984_v29 = vpop.f32.mrb[34].mxu0  ;;  %v6055_v36 = vpop.f32.mrb[34].mxu1 }
 0xb6f   :  { %v11215_v50 = vadd.f32 %v5984_v29, %v15208_v53  ;;  %v5986_v49 = vpop.f32.mrb[35].mxu0  ;;  %v6057_v9 = vpop.f32.mrb[35].mxu1  ;;  %v11231_v22 = vadd.f32 %v6055_v36, %v15211_v42  ;;  %v15213_v42 = vld [vmem:[#allocation65_spill] sm:$0xff] }
 0xb70   :  { %v11216_v31 = vadd.f32 %v5986_v49, %v15209_v30  ;;  %v11232_v62 = vadd.f32 %v6057_v9, %v15210_v45 }
 0xb71   :  { %v8564_v48 = vmul.f32 -1.442695, %v11215_v50 }
 0xb72   :  { %v8565_v23 = vmul.f32 -1.442695, %v11216_v31  ;;  %v8566_v21 = vmul.f32 -1.442695, %v11232_v62 }
 0xb73   :  { %11709 = vpow2.f32 %v8564_v48 }
 0xb74   :  { %11711 = vpow2.f32 %v8565_v23  ;;  %v15212_v23 = vld [vmem:[#allocation66_spill] sm:$0xff] }
 0xb75   :  { %11713 = vpow2.f32 %v8566_v21 }
 0xb76   :  { %11715 = vtanh.f32 %v11231_v22 }
 0xb7d   :  { %v11710_v61 = vpop.eup %11709 }
 0xb7e   :  { %v11712_v58 = vpop.eup %11711  ;;  %v6209_v13 = vadd.f32 1.0, %v11710_v61 }
 0xb7f   :  { %v6215_v34 = vadd.f32 1.0, %v11712_v58  ;;  %v11714_v29 = vpop.eup %11713 }
 0xb80   :  { %11717 = vrcp.f32 %v6209_v13  ;;  %v11716_v53 = vpop.eup %11715  ;;  %v6222_v48 = vadd.f32 1.0, %v11714_v29 }
 0xb81   :  { %11719 = vrcp.f32 %v6215_v34 }
 0xb82   :  { %11721 = vrcp.f32 %v6222_v48 }
 0xb8a   :  { %v11718_v49 = vpop.eup %11717 }
 0xb8b   :  { %v11720_v50 = vpop.eup %11719  ;;  %v6226_v31 = vmul.f32 %v11718_v49, %v11716_v53 }
 0xb8c   :  { %v6225_v30 = vmul.f32 %v11720_v50, %v15212_v23  ;;  %v11722_v29 = vpop.eup %11721 }
 0xb8e   :  { %v14165_v9 = vadd.f32 %v6226_v31, %v6225_v30  ;;  %v6130_v62 = vpop.f32.mrb[60].mxu0  ;;  %v6201_v36 = vpop.f32.mrb[60].mxu1 }
 0xb8f   :  { %v11257_v61 = vadd.f32 %v6130_v62, %v15213_v42  ;;  %v6132_v21 = vpop.f32.mrb[61].mxu0  ;;  %v6203_v22 = vpop.f32.mrb[61].mxu1  ;;  %v11273_v50 = vadd.f32 %v6201_v36, %v14086_v2  ;;  %v15214_v36 = vld [vmem:[#allocation26_spill] sm:$0xff] }
 0xb90   :  { %v11258_v58 = vadd.f32 %v6132_v21, %v14072_v37  ;;  %11723 = vtanh.f32 %v14165_v9  ;;  %v11274_v53 = vadd.f32 %v6203_v22, %v14081_v1  ;;  %v15215_v21 = vld [vmem:[#allocation42_spill] sm:$0xff]  ;;  %v15216_v22 = vld [vmem:[#allocation49_spill] sm:$0xff] }
 0xb91   :  { %v8567_v34 = vmul.f32 -1.442695, %v11257_v61 }
 0xb92   :  { %v8568_v13 = vmul.f32 -1.442695, %v11258_v58  ;;  %v8569_v49 = vmul.f32 -1.442695, %v11274_v53 }
 0xb93   :  { %11725 = vpow2.f32 %v8567_v34 }
 0xb94   :  { %11727 = vpow2.f32 %v8568_v13 }
 0xb95   :  { %11729 = vpow2.f32 %v8569_v49 }
 0xb96   :  { %11731 = vtanh.f32 %v11273_v50 }
 0xb9a   :  { %v11724_v30 = vpop.eup %11723 }
 0xb9b   :  { %v6229_v31 = vmul.f32 %v11724_v30, %v11722_v29 }
 0xb9d   :  { %v11726_v48 = vpop.eup %11725  ;;  %6323 = vmatmul.mubr.f32.vlgmr.msra.gmra.mrb[36].mxu0 %v6229_v31  ;;  %6394 = vmatmul.mubr.f32.vlgmr.msra.gmra.mrb[36].mxu1 %v6229_v31 }
 0xb9e   :  { %v11728_v23 = vpop.eup %11727  ;;  %v6233_v62 = vadd.f32 1.0, %v11726_v48  ;;  %10404 = vmatpush1.bf16.msra.mxu0 %v13912_v26  ;;  %10436 = vmatpush1.bf16.msra.mxu1 %v13914_v7 }
 0xb9f   :  { %v6239_v61 = vadd.f32 1.0, %v11728_v23  ;;  %10406 = vmatprep.subr.bf16.mxu0 %v13918_v17  ;;  %10438 = vmatprep.subr.bf16.mxu1 %v13920_v0  ;;  %v11730_v58 = vpop.eup %11729  ;;  %v15217_v23 = vld [vmem:[#allocation39_spill] sm:$0xff] }
 0xba0   :  { %11733 = vrcp.f32 %v6233_v62  ;;  %6468 = vmatprep.mubr.f32.mxu0 %v14988_v20  ;;  %6539 = vmatprep.mubr.f32.mxu1 %v14988_v20  ;;  %v11732_v34 = vpop.eup %11731  ;;  %v6246_v30 = vadd.f32 1.0, %v11730_v58  ;;  %v15218_v62 = vld [vmem:[#allocation40_spill] sm:$0xff]  ;;  %v15220_v58 = vld [vmem:[#allocation33_spill] sm:$0xff] }
 0xba1   :  { %11735 = vrcp.f32 %v6239_v61  ;;  %v15219_v61 = vld [vmem:[#allocation32_spill] sm:$0xff] }
 0xba2   :  { %10408 = vmatpush1.bf16.msra.mxu0 %v13926_v4  ;;  %10440 = vmatpush1.bf16.msra.mxu1 %v13928_v54  ;;  %11737 = vrcp.f32 %v6246_v30  ;;  %v15225_v30 = vld [vmem:[#allocation47_spill] sm:$0xff] }
 0xba3   :  { %10410 = vmatprep.subr.bf16.mxu0 %v13932_v24  ;;  %10442 = vmatprep.subr.bf16.mxu1 %v15188_v14 }
 0xba6   :  { %10412 = vmatpush1.bf16.msra.mxu0 %v15189_v5  ;;  %10444 = vmatpush1.bf16.msra.mxu1 %v15214_v36 }
 0xba7   :  { %10414 = vmatprep.subr.bf16.mxu0 %v15215_v21  ;;  %10446 = vmatprep.subr.bf16.mxu1 %v15216_v22 }
 0xbaa   :  { %v11734_v13 = vpop.eup %11733  ;;  %10416 = vmatpush1.bf16.msra.mxu0 %v15193_v51  ;;  %10448 = vmatpush1.bf16.msra.mxu1 %v15194_v44 }
 0xbab   :  { %v11736_v53 = vpop.eup %11735  ;;  %v6250_v29 = vmul.f32 %v11734_v13, %v11732_v34  ;;  %10418 = vmatprep.subr.bf16.mxu0 %v15195_v40  ;;  %10450 = vmatprep.subr.bf16.mxu1 %v15196_v8  ;;  %v15221_v34 = vld [vmem:[#allocation43_spill] sm:$0xff]  ;;  %v15222_v13 = vld [vmem:[#allocation44_spill] sm:$0xff] }
 0xbac   :  { %v6249_v49 = vmul.f32 %v11736_v53, %v14107_v33  ;;  %v11738_v33 = vpop.eup %11737  ;;  %v15223_v53 = vld [vmem:[#allocation45_spill] sm:$0xff] }
 0xbae   :  { %v14191_v50 = vadd.f32 %v6250_v29, %v6249_v49  ;;  %10420 = vmatpush1.bf16.msra.mxu0 %v15197_v19  ;;  %10452 = vmatpush1.bf16.msra.mxu1 %v15198_v15  ;;  %v15224_v29 = vld [vmem:[#allocation46_spill] sm:$0xff]  ;;  %v15226_v49 = vld [vmem:[#allocation48_spill] sm:$0xff] }
 0xbaf   :  { %10422 = vmatprep.subr.bf16.mxu0 %v13970_v27  ;;  %10454 = vmatprep.subr.bf16.mxu1 %v13972_v11 }
 0xbb0   :  { %11739 = vtanh.f32 %v14191_v50 }
 0xbb2   :  { %10424 = vmatpush1.bf16.msra.mxu0 %v13976_v47  ;;  %10456 = vmatpush1.bf16.msra.mxu1 %v13978_v43 }
 0xbb3   :  { %10426 = vmatprep.subr.bf16.mxu0 %v13982_v57  ;;  %10458 = vmatprep.subr.bf16.mxu1 %v13984_v60 }
 0xbb6   :  { %10428 = vmatpush1.bf16.msra.mxu0 %v13988_v59  ;;  %10460 = vmatpush1.bf16.msra.mxu1 %v13990_v39 }
 0xbb7   :  { %10430 = vmatprep.subr.bf16.mxu0 %v13994_v12  ;;  %10462 = vmatprep.subr.bf16.mxu1 %v13996_v6 }
 0xbba   :  { %v11740_v31 = vpop.eup %11739  ;;  %10432 = vmatpush1.bf16.msra.mxu0 %v14000_v18  ;;  %10464 = vmatpush1.bf16.msra.mxu1 %v14002_v63 }
 0xbbb   :  { %v6253_v48 = vmul.f32 %v11740_v31, %v11738_v33  ;;  %10466 = vmatprep.subr.bf16.mxu0 %v13780_v38  ;;  %10498 = vmatprep.subr.bf16.mxu1 %v13782_v32  ;;  %v15227_v33 = vld [vmem:[#allocation50_spill] sm:$0xff]  ;;  %v15228_v31 = vld [vmem:[#allocation51_spill] sm:$0xff] }
 0xbbd   :  { %6469 = vmatmul.mubr.f32.vlgmr.msra.gmra.mrb[58].mxu0 %v6253_v48  ;;  %6540 = vmatmul.mubr.f32.vlgmr.msra.gmra.mrb[58].mxu1 %v6253_v48  ;;  %v15229_v48 = vld [vmem:[#allocation52_spill] sm:$0xff] }
 0xbbe   :  { %10468 = vmatpush1.bf16.msra.mxu0 %v13786_v10  ;;  %10500 = vmatpush1.bf16.msra.mxu1 %v13788_v52 }
 0xbbf   :  { %10470 = vmatprep.subr.bf16.mxu0 %v13790_v25  ;;  %10502 = vmatprep.subr.bf16.mxu1 %v13792_v3 }
 0xbc0   :  { %6662 = vmatprep.mubr.f32.mxu0 %v14988_v20  ;;  %6733 = vmatprep.mubr.f32.mxu1 %v14988_v20 }
 0xbc2   :  { %10472 = vmatpush1.bf16.msra.mxu0 %v13800_v41  ;;  %10504 = vmatpush1.bf16.msra.mxu1 %v13802_v28 }
 0xbc3   :  { %10474 = vmatprep.subr.bf16.mxu0 %v13806_v56  ;;  %10506 = vmatprep.subr.bf16.mxu1 %v13808_v35 }
 0xbc6   :  { %10476 = vmatpush1.bf16.msra.mxu0 %v13816_v46  ;;  %10508 = vmatpush1.bf16.msra.mxu1 %v13818_v16 }
 0xbc7   :  { %10478 = vmatprep.subr.bf16.mxu0 %v13822_v55  ;;  %10510 = vmatprep.subr.bf16.mxu1 %v15217_v23  ;;  %v15239_v55 = vld [vmem:[#allocation62_spill] sm:$0xff] }
 0xbca   :  { %10480 = vmatpush1.bf16.msra.mxu0 %v15218_v62  ;;  %10512 = vmatpush1.bf16.msra.mxu1 %v15219_v61  ;;  %v15230_v61 = vld [vmem:[#allocation54_spill] sm:$0xff] }
 0xbcb   :  { %10482 = vmatprep.subr.bf16.mxu0 %v15220_v58  ;;  %10514 = vmatprep.subr.bf16.mxu1 %v15221_v34  ;;  %v15231_v58 = vld [vmem:[#allocation55_spill] sm:$0xff]  ;;  %v15232_v34 = vld [vmem:[#allocation56_spill] sm:$0xff]  ;;  %v15238_v62 = vld [vmem:[#allocation34_spill] sm:$0xff] }
 0xbce   :  { %10484 = vmatpush1.bf16.msra.mxu0 %v15222_v13  ;;  %10516 = vmatpush1.bf16.msra.mxu1 %v15223_v53  ;;  %v15233_v13 = vld [vmem:[#allocation41_spill] sm:$0xff]  ;;  %v15234_v53 = vld [vmem:[#allocation28_spill] sm:$0xff] }
 0xbcf   :  { %10486 = vmatprep.subr.bf16.mxu0 %v15224_v29  ;;  %10518 = vmatprep.subr.bf16.mxu1 %v15225_v30  ;;  %v15235_v29 = vld [vmem:[#allocation25_spill] sm:$0xff] }
 0xbd0   :  { %v15236_v30 = vld [vmem:[#allocation29_spill] sm:$0xff] }
 0xbd2   :  { %10488 = vmatpush1.bf16.msra.mxu0 %v15226_v49  ;;  %10520 = vmatpush1.bf16.msra.mxu1 %v15227_v33  ;;  %v15237_v49 = vld [vmem:[#allocation31_spill] sm:$0xff] }
 0xbd3   :  { %10490 = vmatprep.subr.bf16.mxu0 %v15228_v31  ;;  %10522 = vmatprep.subr.bf16.mxu1 %v15229_v48 }
 0xbd6   :  { %10492 = vmatpush1.bf16.msra.mxu0 %v15230_v61  ;;  %10524 = vmatpush1.bf16.msra.mxu1 %v15231_v58 }
 0xbd7   :  { %10494 = vmatprep.subr.bf16.mxu0 %v15232_v34  ;;  %10526 = vmatprep.subr.bf16.mxu1 %v15233_v13 }
 0xbda   :  { %10496 = vmatpush1.bf16.msra.mxu0 %v15234_v53  ;;  %10528 = vmatpush1.bf16.msra.mxu1 %v15235_v29  ;;  %v15240_v29 = vld [vmem:[#allocation64_spill] sm:$0xff] }
 0xbdb   :  { %10530 = vmatprep.subr.bf16.mxu0 %v15236_v30  ;;  %10562 = vmatprep.subr.bf16.mxu1 %v15237_v49 }
 0xc70   :  { %v6324_v33 = vpop.f32.mrb[36].mxu0  ;;  %v6395_v31 = vpop.f32.mrb[36].mxu1 }
 0xc71   :  { %v11217_v48 = vadd.f32 %v6324_v33, %v15238_v62  ;;  %v6326_v23 = vpop.f32.mrb[37].mxu0  ;;  %v6397_v61 = vpop.f32.mrb[37].mxu1  ;;  %v11233_v46 = vadd.f32 %v6395_v31, %v15240_v29 }
 0xc72   :  { %v11218_v58 = vadd.f32 %v6326_v23, %v15239_v55  ;;  %v11234_v53 = vadd.f32 %v6397_v61, %v15210_v45 }
 0xc73   :  { %v8570_v16 = vmul.f32 -1.442695, %v11217_v48 }
 0xc74   :  { %v8571_v34 = vmul.f32 -1.442695, %v11218_v58  ;;  %v8572_v13 = vmul.f32 -1.442695, %v11234_v53 }
 0xc75   :  { %11741 = vpow2.f32 %v8570_v16 }
 0xc76   :  { %11743 = vpow2.f32 %v8571_v34 }
 0xc77   :  { %11745 = vpow2.f32 %v8572_v13 }
 0xc78   :  { %11747 = vtanh.f32 %v11233_v46 }
 0xc7f   :  { %v11742_v30 = vpop.eup %11741 }
 0xc80   :  { %v11744_v35 = vpop.eup %11743  ;;  %v6549_v49 = vadd.f32 1.0, %v11742_v30 }
 0xc81   :  { %v6555_v56 = vadd.f32 1.0, %v11744_v35  ;;  %v11746_v33 = vpop.eup %11745 }
 0xc82   :  { %11749 = vrcp.f32 %v6549_v49  ;;  %v11748_v62 = vpop.eup %11747  ;;  %v6562_v16 = vadd.f32 1.0, %v11746_v33 }
 0xc83   :  { %11751 = vrcp.f32 %v6555_v56 }
 0xc84   :  { %11753 = vrcp.f32 %v6562_v16 }
 0xc8c   :  { %v11750_v23 = vpop.eup %11749 }
 0xc8d   :  { %v11752_v48 = vpop.eup %11751  ;;  %v6566_v58 = vmul.f32 %v11750_v23, %v11748_v62 }
 0xc8e   :  { %v6565_v34 = vmul.f32 %v11752_v48, %v14165_v9  ;;  %v11754_v9 = vpop.eup %11753 }
 0xc90   :  { %v14249_v61 = vadd.f32 %v6566_v58, %v6565_v34  ;;  %v6470_v53 = vpop.f32.mrb[58].mxu0  ;;  %v6541_v31 = vpop.f32.mrb[58].mxu1 }
 0xc91   :  { %v11255_v30 = vadd.f32 %v6470_v53, %v15213_v42  ;;  %v6472_v13 = vpop.f32.mrb[59].mxu0  ;;  %v6543_v46 = vpop.f32.mrb[59].mxu1  ;;  %v11271_v48 = vadd.f32 %v6541_v31, %v14086_v2 }
 0xc92   :  { %v11256_v35 = vadd.f32 %v6472_v13, %v14072_v37  ;;  %11755 = vtanh.f32 %v14249_v61  ;;  %v11272_v62 = vadd.f32 %v6543_v46, %v14081_v1 }
 0xc93   :  { %v8573_v56 = vmul.f32 -1.442695, %v11255_v30 }
 0xc94   :  { %v8574_v49 = vmul.f32 -1.442695, %v11256_v35  ;;  %v8575_v23 = vmul.f32 -1.442695, %v11272_v62 }
 0xc95   :  { %11757 = vpow2.f32 %v8573_v56 }
 0xc96   :  { %11759 = vpow2.f32 %v8574_v49 }
 0xc97   :  { %11761 = vpow2.f32 %v8575_v23 }
 0xc98   :  { %11763 = vtanh.f32 %v11271_v48  ;;  %v15241_v48 = vld [vmem:[#allocation35_spill] sm:$0xff] }
 0xc9c   :  { %v11756_v33 = vpop.eup %11755 }
 0xc9d   :  { %v6569_v58 = vmul.f32 %v11756_v33, %v11754_v9 }
 0xc9f   :  { %v11758_v16 = vpop.eup %11757  ;;  %6663 = vmatmul.mubr.f32.vlgmr.msra.gmra.mrb[38].mxu0 %v6569_v58  ;;  %6734 = vmatmul.mubr.f32.vlgmr.msra.gmra.mrb[38].mxu1 %v6569_v58  ;;  %v15242_v58 = vld [vmem:[#allocation36_spill] sm:$0xff] }
 0xca0   :  { %v11760_v34 = vpop.eup %11759  ;;  %v6573_v53 = vadd.f32 1.0, %v11758_v16  ;;  %10532 = vmatpush1.bf16.msra.mxu0 %v13912_v26  ;;  %10564 = vmatpush1.bf16.msra.mxu1 %v13914_v7  ;;  %v15243_v16 = vld [vmem:[#allocation37_spill] sm:$0xff] }
 0xca1   :  { %v6579_v30 = vadd.f32 1.0, %v11760_v34  ;;  %10534 = vmatprep.subr.bf16.mxu0 %v13918_v17  ;;  %10566 = vmatprep.subr.bf16.mxu1 %v13920_v0  ;;  %v11762_v31 = vpop.eup %11761  ;;  %v15244_v34 = vld [vmem:[#allocation30_spill] sm:$0xff] }
 0xca2   :  { %11765 = vrcp.f32 %v6573_v53  ;;  %6808 = vmatprep.mubr.f32.mxu0 %v14988_v20  ;;  %6879 = vmatprep.mubr.f32.mxu1 %v14988_v20  ;;  %v11764_v13 = vpop.eup %11763  ;;  %v6586_v49 = vadd.f32 1.0, %v11762_v31  ;;  %v15245_v53 = vld [vmem:[#allocation38_spill] sm:$0xff]  ;;  %v15247_v31 = vld [vmem:[#allocation40_spill] sm:$0xff] }
 0xca3   :  { %11767 = vrcp.f32 %v6579_v30  ;;  %v15246_v30 = vld [vmem:[#allocation39_spill] sm:$0xff] }
 0xca4   :  { %10536 = vmatpush1.bf16.msra.mxu0 %v13926_v4  ;;  %10568 = vmatpush1.bf16.msra.mxu1 %v13928_v54  ;;  %11769 = vrcp.f32 %v6586_v49  ;;  %v15252_v49 = vld [vmem:[#allocation45_spill] sm:$0xff] }
 0xca5   :  { %10538 = vmatprep.subr.bf16.mxu0 %v13932_v24  ;;  %10570 = vmatprep.subr.bf16.mxu1 %v15188_v14 }
 0xca8   :  { %10540 = vmatpush1.bf16.msra.mxu0 %v15189_v5  ;;  %10572 = vmatpush1.bf16.msra.mxu1 %v15214_v36 }
 0xca9   :  { %10542 = vmatprep.subr.bf16.mxu0 %v15215_v21  ;;  %10574 = vmatprep.subr.bf16.mxu1 %v15216_v22 }
 0xcac   :  { %v11766_v46 = vpop.eup %11765  ;;  %10544 = vmatpush1.bf16.msra.mxu0 %v15193_v51  ;;  %10576 = vmatpush1.bf16.msra.mxu1 %v15194_v44 }
 0xcad   :  { %v11768_v35 = vpop.eup %11767  ;;  %v6590_v56 = vmul.f32 %v11766_v46, %v11764_v13  ;;  %10546 = vmatprep.subr.bf16.mxu0 %v15195_v40  ;;  %10578 = vmatprep.subr.bf16.mxu1 %v15196_v8  ;;  %v15248_v13 = vld [vmem:[#allocation32_spill] sm:$0xff]  ;;  %v15249_v46 = vld [vmem:[#allocation33_spill] sm:$0xff] }
 0xcae   :  { %v6589_v62 = vmul.f32 %v11768_v35, %v14191_v50  ;;  %v11770_v50 = vpop.eup %11769  ;;  %v15250_v35 = vld [vmem:[#allocation43_spill] sm:$0xff] }
 0xcb0   :  { %v14275_v9 = vadd.f32 %v6590_v56, %v6589_v62  ;;  %10548 = vmatpush1.bf16.msra.mxu0 %v15197_v19  ;;  %10580 = vmatpush1.bf16.msra.mxu1 %v15198_v15  ;;  %v15251_v56 = vld [vmem:[#allocation44_spill] sm:$0xff]  ;;  %v15253_v62 = vld [vmem:[#allocation46_spill] sm:$0xff] }
 0xcb1   :  { %10550 = vmatprep.subr.bf16.mxu0 %v13970_v27  ;;  %10582 = vmatprep.subr.bf16.mxu1 %v13972_v11 }
 0xcb2   :  { %11771 = vtanh.f32 %v14275_v9 }
 0xcb4   :  { %10552 = vmatpush1.bf16.msra.mxu0 %v13976_v47  ;;  %10584 = vmatpush1.bf16.msra.mxu1 %v13978_v43 }
 0xcb5   :  { %10554 = vmatprep.subr.bf16.mxu0 %v13982_v57  ;;  %10586 = vmatprep.subr.bf16.mxu1 %v13984_v60 }
 0xcb8   :  { %10556 = vmatpush1.bf16.msra.mxu0 %v13988_v59  ;;  %10588 = vmatpush1.bf16.msra.mxu1 %v13990_v39 }
 0xcb9   :  { %10558 = vmatprep.subr.bf16.mxu0 %v13994_v12  ;;  %10590 = vmatprep.subr.bf16.mxu1 %v13996_v6 }
 0xcbc   :  { %v11772_v33 = vpop.eup %11771  ;;  %10560 = vmatpush1.bf16.msra.mxu0 %v14000_v18  ;;  %10592 = vmatpush1.bf16.msra.mxu1 %v14002_v63 }
 0xcbd   :  { %v6593_v23 = vmul.f32 %v11772_v33, %v11770_v50  ;;  %10594 = vmatprep.subr.bf16.mxu0 %v13780_v38  ;;  %10626 = vmatprep.subr.bf16.mxu1 %v13782_v32  ;;  %v15254_v50 = vld [vmem:[#allocation47_spill] sm:$0xff]  ;;  %v15255_v33 = vld [vmem:[#allocation48_spill] sm:$0xff] }
 0xcbf   :  { %6809 = vmatmul.mubr.f32.vlgmr.msra.gmra.mrb[56].mxu0 %v6593_v23  ;;  %6880 = vmatmul.mubr.f32.vlgmr.msra.gmra.mrb[56].mxu1 %v6593_v23  ;;  %v15256_v23 = vld [vmem:[#allocation50_spill] sm:$0xff] }
 0xcc0   :  { %10596 = vmatpush1.bf16.msra.mxu0 %v13786_v10  ;;  %10628 = vmatpush1.bf16.msra.mxu1 %v13788_v52 }
 0xcc1   :  { %10598 = vmatprep.subr.bf16.mxu0 %v13790_v25  ;;  %10630 = vmatprep.subr.bf16.mxu1 %v13792_v3 }
 0xcc2   :  { %7002 = vmatprep.mubr.f32.mxu0 %v14988_v20  ;;  %7073 = vmatprep.mubr.f32.mxu1 %v14988_v20 }
 0xcc4   :  { %10600 = vmatpush1.bf16.msra.mxu0 %v13800_v41  ;;  %10632 = vmatpush1.bf16.msra.mxu1 %v13802_v28 }
 0xcc5   :  { %10602 = vmatprep.subr.bf16.mxu0 %v15241_v48  ;;  %10634 = vmatprep.subr.bf16.mxu1 %v15242_v58 }
 0xcc8   :  { %10604 = vmatpush1.bf16.msra.mxu0 %v15243_v16  ;;  %10636 = vmatpush1.bf16.msra.mxu1 %v15244_v34 }
 0xcc9   :  { %10606 = vmatprep.subr.bf16.mxu0 %v15245_v53  ;;  %10638 = vmatprep.subr.bf16.mxu1 %v15246_v30  ;;  %v15257_v30 = vld [vmem:[#allocation51_spill] sm:$0xff]  ;;  %v15267_v53 = vld [vmem:[#allocation34_spill] sm:$0xff] }
 0xccc   :  { %10608 = vmatpush1.bf16.msra.mxu0 %v15247_v31  ;;  %10640 = vmatpush1.bf16.msra.mxu1 %v15248_v13  ;;  %v15258_v31 = vld [vmem:[#allocation52_spill] sm:$0xff]  ;;  %v15259_v13 = vld [vmem:[#allocation54_spill] sm:$0xff] }
 0xccd   :  { %10610 = vmatprep.subr.bf16.mxu0 %v15249_v46  ;;  %10642 = vmatprep.subr.bf16.mxu1 %v15250_v35  ;;  %v15260_v46 = vld [vmem:[#allocation55_spill] sm:$0xff]  ;;  %v15261_v35 = vld [vmem:[#allocation56_spill] sm:$0xff] }
 0xcd0   :  { %10612 = vmatpush1.bf16.msra.mxu0 %v15251_v56  ;;  %10644 = vmatpush1.bf16.msra.mxu1 %v15252_v49  ;;  %v15262_v56 = vld [vmem:[#allocation41_spill] sm:$0xff]  ;;  %v15263_v49 = vld [vmem:[#allocation28_spill] sm:$0xff] }
 0xcd1   :  { %10614 = vmatprep.subr.bf16.mxu0 %v15253_v62  ;;  %10646 = vmatprep.subr.bf16.mxu1 %v15254_v50  ;;  %v15264_v62 = vld [vmem:[#allocation25_spill] sm:$0xff] }
 0xcd2   :  { %v15265_v50 = vld [vmem:[#allocation29_spill] sm:$0xff] }
 0xcd4   :  { %10616 = vmatpush1.bf16.msra.mxu0 %v15255_v33  ;;  %10648 = vmatpush1.bf16.msra.mxu1 %v15256_v23  ;;  %v15266_v33 = vld [vmem:[#allocation31_spill] sm:$0xff] }
 0xcd5   :  { %10618 = vmatprep.subr.bf16.mxu0 %v15257_v30  ;;  %10650 = vmatprep.subr.bf16.mxu1 %v15258_v31 }
 0xcd8   :  { %10620 = vmatpush1.bf16.msra.mxu0 %v15259_v13  ;;  %10652 = vmatpush1.bf16.msra.mxu1 %v15260_v46 }
 0xcd9   :  { %10622 = vmatprep.subr.bf16.mxu0 %v15261_v35  ;;  %10654 = vmatprep.subr.bf16.mxu1 %v15262_v56 }
 0xcdc   :  { %10624 = vmatpush1.bf16.msra.mxu0 %v15263_v49  ;;  %10656 = vmatpush1.bf16.msra.mxu1 %v15264_v62 }
 0xcdd   :  { %10658 = vmatprep.subr.bf16.mxu0 %v15265_v50  ;;  %10690 = vmatprep.subr.bf16.mxu1 %v15266_v33 }
 0xd72   :  { %v6664_v23 = vpop.f32.mrb[38].mxu0  ;;  %v6735_v30 = vpop.f32.mrb[38].mxu1 }
 0xd73   :  { %v11219_v31 = vadd.f32 %v6664_v23, %v15267_v53  ;;  %v6666_v34 = vpop.f32.mrb[39].mxu0  ;;  %v6737_v13 = vpop.f32.mrb[39].mxu1  ;;  %v11235_v62 = vadd.f32 %v6735_v30, %v15240_v29 }
 0xd74   :  { %v11220_v46 = vadd.f32 %v6666_v34, %v15239_v55  ;;  %v11236_v49 = vadd.f32 %v6737_v13, %v15210_v45 }
 0xd75   :  { %v8576_v16 = vmul.f32 -1.442695, %v11219_v31 }
 0xd76   :  { %v8577_v35 = vmul.f32 -1.442695, %v11220_v46  ;;  %v8578_v56 = vmul.f32 -1.442695, %v11236_v49 }
 0xd77   :  { %11773 = vpow2.f32 %v8576_v16 }
 0xd78   :  { %11775 = vpow2.f32 %v8577_v35 }
 0xd79   :  { %11777 = vpow2.f32 %v8578_v56 }
 0xd7a   :  { %11779 = vtanh.f32 %v11235_v62 }
 0xd81   :  { %v11774_v50 = vpop.eup %11773 }
 0xd82   :  { %v11776_v58 = vpop.eup %11775  ;;  %v6889_v33 = vadd.f32 1.0, %v11774_v50 }
 0xd83   :  { %v6895_v48 = vadd.f32 1.0, %v11776_v58  ;;  %v11778_v23 = vpop.eup %11777 }
 0xd84   :  { %11781 = vrcp.f32 %v6889_v33  ;;  %v11780_v53 = vpop.eup %11779  ;;  %v6902_v16 = vadd.f32 1.0, %v11778_v23 }
 0xd85   :  { %11783 = vrcp.f32 %v6895_v48 }
 0xd86   :  { %11785 = vrcp.f32 %v6902_v16 }
 0xd8e   :  { %v11782_v34 = vpop.eup %11781 }
 0xd8f   :  { %v11784_v31 = vpop.eup %11783  ;;  %v6906_v46 = vmul.f32 %v11782_v34, %v11780_v53 }
 0xd90   :  { %v6905_v35 = vmul.f32 %v11784_v31, %v14249_v61  ;;  %v11786_v61 = vpop.eup %11785 }
 0xd92   :  { %v14333_v13 = vadd.f32 %v6906_v46, %v6905_v35  ;;  %v6810_v49 = vpop.f32.mrb[56].mxu0  ;;  %v6881_v30 = vpop.f32.mrb[56].mxu1 }
 0xd93   :  { %v11253_v50 = vadd.f32 %v6810_v49, %v15213_v42  ;;  %v6812_v56 = vpop.f32.mrb[57].mxu0  ;;  %v6883_v62 = vpop.f32.mrb[57].mxu1  ;;  %v11269_v31 = vadd.f32 %v6881_v30, %v14086_v2 }
 0xd94   :  { %v11254_v58 = vadd.f32 %v6812_v56, %v14072_v37  ;;  %11787 = vtanh.f32 %v14333_v13  ;;  %v11270_v53 = vadd.f32 %v6883_v62, %v14081_v1 }
 0xd95   :  { %v8579_v48 = vmul.f32 -1.442695, %v11253_v50 }
 0xd96   :  { %v8580_v33 = vmul.f32 -1.442695, %v11254_v58  ;;  %v8581_v34 = vmul.f32 -1.442695, %v11270_v53 }
 0xd97   :  { %11789 = vpow2.f32 %v8579_v48 }
 0xd98   :  { %11791 = vpow2.f32 %v8580_v33 }
 0xd99   :  { %11793 = vpow2.f32 %v8581_v34 }
 0xd9a   :  { %11795 = vtanh.f32 %v11269_v31  ;;  %v15268_v31 = vld [vmem:[#allocation35_spill] sm:$0xff] }
 0xd9e   :  { %v11788_v23 = vpop.eup %11787 }
 0xd9f   :  { %v6909_v46 = vmul.f32 %v11788_v23, %v11786_v61 }
 0xda1   :  { %v11790_v16 = vpop.eup %11789  ;;  %7003 = vmatmul.mubr.f32.vlgmr.msra.gmra.mrb[40].mxu0 %v6909_v46  ;;  %7074 = vmatmul.mubr.f32.vlgmr.msra.gmra.mrb[40].mxu1 %v6909_v46  ;;  %v15269_v46 = vld [vmem:[#allocation36_spill] sm:$0xff] }
 0xda2   :  { %v11792_v35 = vpop.eup %11791  ;;  %v6913_v49 = vadd.f32 1.0, %v11790_v16  ;;  %10660 = vmatpush1.bf16.msra.mxu0 %v13912_v26  ;;  %10692 = vmatpush1.bf16.msra.mxu1 %v13914_v7  ;;  %v15270_v16 = vld [vmem:[#allocation37_spill] sm:$0xff] }
 0xda3   :  { %v6919_v50 = vadd.f32 1.0, %v11792_v35  ;;  %10662 = vmatprep.subr.bf16.mxu0 %v13918_v17  ;;  %10694 = vmatprep.subr.bf16.mxu1 %v13920_v0  ;;  %v11794_v30 = vpop.eup %11793  ;;  %v15271_v35 = vld [vmem:[#allocation30_spill] sm:$0xff] }
 0xda4   :  { %11797 = vrcp.f32 %v6913_v49  ;;  %7148 = vmatprep.mubr.f32.mxu0 %v14988_v20  ;;  %7219 = vmatprep.mubr.f32.mxu1 %v14988_v20  ;;  %v11796_v56 = vpop.eup %11795  ;;  %v6926_v33 = vadd.f32 1.0, %v11794_v30  ;;  %v15272_v49 = vld [vmem:[#allocation38_spill] sm:$0xff]  ;;  %v15274_v30 = vld [vmem:[#allocation40_spill] sm:$0xff] }
 0xda5   :  { %11799 = vrcp.f32 %v6919_v50  ;;  %v15273_v50 = vld [vmem:[#allocation39_spill] sm:$0xff] }
 0xda6   :  { %10664 = vmatpush1.bf16.msra.mxu0 %v13926_v4  ;;  %10696 = vmatpush1.bf16.msra.mxu1 %v13928_v54  ;;  %11801 = vrcp.f32 %v6926_v33  ;;  %v15279_v33 = vld [vmem:[#allocation45_spill] sm:$0xff] }
 0xda7   :  { %10666 = vmatprep.subr.bf16.mxu0 %v13932_v24  ;;  %10698 = vmatprep.subr.bf16.mxu1 %v15188_v14 }
 0xdaa   :  { %10668 = vmatpush1.bf16.msra.mxu0 %v15189_v5  ;;  %10700 = vmatpush1.bf16.msra.mxu1 %v15214_v36 }
 0xdab   :  { %10670 = vmatprep.subr.bf16.mxu0 %v15215_v21  ;;  %10702 = vmatprep.subr.bf16.mxu1 %v15216_v22 }
 0xdae   :  { %v11798_v62 = vpop.eup %11797  ;;  %10672 = vmatpush1.bf16.msra.mxu0 %v15193_v51  ;;  %10704 = vmatpush1.bf16.msra.mxu1 %v15194_v44 }
 0xdaf   :  { %v11800_v58 = vpop.eup %11799  ;;  %v6930_v48 = vmul.f32 %v11798_v62, %v11796_v56  ;;  %10674 = vmatprep.subr.bf16.mxu0 %v15195_v40  ;;  %10706 = vmatprep.subr.bf16.mxu1 %v15196_v8  ;;  %v15275_v56 = vld [vmem:[#allocation32_spill] sm:$0xff]  ;;  %v15276_v62 = vld [vmem:[#allocation33_spill] sm:$0xff] }
 0xdb0   :  { %v6929_v53 = vmul.f32 %v11800_v58, %v14275_v9  ;;  %v11802_v9 = vpop.eup %11801  ;;  %v15277_v58 = vld [vmem:[#allocation43_spill] sm:$0xff] }
 0xdb2   :  { %v14359_v61 = vadd.f32 %v6930_v48, %v6929_v53  ;;  %10676 = vmatpush1.bf16.msra.mxu0 %v15197_v19  ;;  %10708 = vmatpush1.bf16.msra.mxu1 %v15198_v15  ;;  %v15278_v48 = vld [vmem:[#allocation44_spill] sm:$0xff]  ;;  %v15280_v53 = vld [vmem:[#allocation46_spill] sm:$0xff] }
 0xdb3   :  { %10678 = vmatprep.subr.bf16.mxu0 %v13970_v27  ;;  %10710 = vmatprep.subr.bf16.mxu1 %v13972_v11 }
 0xdb4   :  { %11803 = vtanh.f32 %v14359_v61 }
 0xdb6   :  { %10680 = vmatpush1.bf16.msra.mxu0 %v13976_v47  ;;  %10712 = vmatpush1.bf16.msra.mxu1 %v13978_v43 }
 0xdb7   :  { %10682 = vmatprep.subr.bf16.mxu0 %v13982_v57  ;;  %10714 = vmatprep.subr.bf16.mxu1 %v13984_v60 }
 0xdba   :  { %10684 = vmatpush1.bf16.msra.mxu0 %v13988_v59  ;;  %10716 = vmatpush1.bf16.msra.mxu1 %v13990_v39 }
 0xdbb   :  { %10686 = vmatprep.subr.bf16.mxu0 %v13994_v12  ;;  %10718 = vmatprep.subr.bf16.mxu1 %v13996_v6 }
 0xdbe   :  { %v11804_v23 = vpop.eup %11803  ;;  %10688 = vmatpush1.bf16.msra.mxu0 %v14000_v18  ;;  %10720 = vmatpush1.bf16.msra.mxu1 %v14002_v63 }
 0xdbf   :  { %v6933_v34 = vmul.f32 %v11804_v23, %v11802_v9  ;;  %10722 = vmatprep.subr.bf16.mxu0 %v13780_v38  ;;  %10754 = vmatprep.subr.bf16.mxu1 %v13782_v32  ;;  %v15281_v9 = vld [vmem:[#allocation47_spill] sm:$0xff]  ;;  %v15282_v23 = vld [vmem:[#allocation48_spill] sm:$0xff] }
 0xdc1   :  { %7149 = vmatmul.mubr.f32.vlgmr.msra.gmra.mrb[54].mxu0 %v6933_v34  ;;  %7220 = vmatmul.mubr.f32.vlgmr.msra.gmra.mrb[54].mxu1 %v6933_v34  ;;  %v15283_v34 = vld [vmem:[#allocation50_spill] sm:$0xff] }
 0xdc2   :  { %10724 = vmatpush1.bf16.msra.mxu0 %v13786_v10  ;;  %10756 = vmatpush1.bf16.msra.mxu1 %v13788_v52 }
 0xdc3   :  { %10726 = vmatprep.subr.bf16.mxu0 %v13790_v25  ;;  %10758 = vmatprep.subr.bf16.mxu1 %v13792_v3 }
 0xdc4   :  { %7342 = vmatprep.mubr.f32.mxu0 %v14988_v20  ;;  %7413 = vmatprep.mubr.f32.mxu1 %v14988_v20 }
 0xdc6   :  { %10728 = vmatpush1.bf16.msra.mxu0 %v13800_v41  ;;  %10760 = vmatpush1.bf16.msra.mxu1 %v13802_v28 }
 0xdc7   :  { %10730 = vmatprep.subr.bf16.mxu0 %v15268_v31  ;;  %10762 = vmatprep.subr.bf16.mxu1 %v15269_v46 }
 0xdca   :  { %10732 = vmatpush1.bf16.msra.mxu0 %v15270_v16  ;;  %10764 = vmatpush1.bf16.msra.mxu1 %v15271_v35 }
 0xdcb   :  { %10734 = vmatprep.subr.bf16.mxu0 %v15272_v49  ;;  %10766 = vmatprep.subr.bf16.mxu1 %v15273_v50  ;;  %v15284_v50 = vld [vmem:[#allocation51_spill] sm:$0xff]  ;;  %v15294_v49 = vld [vmem:[#allocation34_spill] sm:$0xff] }
 0xdce   :  { %10736 = vmatpush1.bf16.msra.mxu0 %v15274_v30  ;;  %10768 = vmatpush1.bf16.msra.mxu1 %v15275_v56  ;;  %v15285_v30 = vld [vmem:[#allocation52_spill] sm:$0xff]  ;;  %v15286_v56 = vld [vmem:[#allocation54_spill] sm:$0xff] }
 0xdcf   :  { %10738 = vmatprep.subr.bf16.mxu0 %v15276_v62  ;;  %10770 = vmatprep.subr.bf16.mxu1 %v15277_v58  ;;  %v15287_v62 = vld [vmem:[#allocation55_spill] sm:$0xff]  ;;  %v15288_v58 = vld [vmem:[#allocation56_spill] sm:$0xff] }
 0xdd2   :  { %10740 = vmatpush1.bf16.msra.mxu0 %v15278_v48  ;;  %10772 = vmatpush1.bf16.msra.mxu1 %v15279_v33  ;;  %v15289_v48 = vld [vmem:[#allocation41_spill] sm:$0xff]  ;;  %v15290_v33 = vld [vmem:[#allocation28_spill] sm:$0xff] }
 0xdd3   :  { %10742 = vmatprep.subr.bf16.mxu0 %v15280_v53  ;;  %10774 = vmatprep.subr.bf16.mxu1 %v15281_v9  ;;  %v15291_v53 = vld [vmem:[#allocation25_spill] sm:$0xff] }
 0xdd4   :  { %v15292_v9 = vld [vmem:[#allocation29_spill] sm:$0xff] }
 0xdd6   :  { %10744 = vmatpush1.bf16.msra.mxu0 %v15282_v23  ;;  %10776 = vmatpush1.bf16.msra.mxu1 %v15283_v34  ;;  %v15293_v23 = vld [vmem:[#allocation31_spill] sm:$0xff] }
 0xdd7   :  { %10746 = vmatprep.subr.bf16.mxu0 %v15284_v50  ;;  %10778 = vmatprep.subr.bf16.mxu1 %v15285_v30 }
 0xdda   :  { %10748 = vmatpush1.bf16.msra.mxu0 %v15286_v56  ;;  %10780 = vmatpush1.bf16.msra.mxu1 %v15287_v62 }
 0xddb   :  { %10750 = vmatprep.subr.bf16.mxu0 %v15288_v58  ;;  %10782 = vmatprep.subr.bf16.mxu1 %v15289_v48 }
 0xdde   :  { %10752 = vmatpush1.bf16.msra.mxu0 %v15290_v33  ;;  %10784 = vmatpush1.bf16.msra.mxu1 %v15291_v53 }
 0xddf   :  { %10786 = vmatprep.subr.bf16.mxu0 %v15292_v9  ;;  %10818 = vmatprep.subr.bf16.mxu1 %v15293_v23 }
 0xe74   :  { %v7004_v34 = vpop.f32.mrb[40].mxu0  ;;  %v7075_v50 = vpop.f32.mrb[40].mxu1 }
 0xe75   :  { %v11221_v30 = vadd.f32 %v7004_v34, %v15294_v49  ;;  %v7006_v35 = vpop.f32.mrb[41].mxu0  ;;  %v7077_v56 = vpop.f32.mrb[41].mxu1  ;;  %v11237_v53 = vadd.f32 %v7075_v50, %v15240_v29 }
 0xe76   :  { %v11222_v62 = vadd.f32 %v7006_v35, %v15239_v55  ;;  %v11238_v33 = vadd.f32 %v7077_v56, %v15210_v45 }
 0xe77   :  { %v8582_v16 = vmul.f32 -1.442695, %v11221_v30 }
 0xe78   :  { %v8583_v58 = vmul.f32 -1.442695, %v11222_v62  ;;  %v8584_v48 = vmul.f32 -1.442695, %v11238_v33 }
 0xe79   :  { %11805 = vpow2.f32 %v8582_v16 }
 0xe7a   :  { %11807 = vpow2.f32 %v8583_v58 }
 0xe7b   :  { %11809 = vpow2.f32 %v8584_v48 }
 0xe7c   :  { %11811 = vtanh.f32 %v11237_v53 }
 0xe83   :  { %v11806_v9 = vpop.eup %11805 }
 0xe84   :  { %v11808_v46 = vpop.eup %11807  ;;  %v7229_v23 = vadd.f32 1.0, %v11806_v9 }
 0xe85   :  { %v7235_v31 = vadd.f32 1.0, %v11808_v46  ;;  %v11810_v34 = vpop.eup %11809 }
 0xe86   :  { %11813 = vrcp.f32 %v7229_v23  ;;  %v11812_v49 = vpop.eup %11811  ;;  %v7242_v16 = vadd.f32 1.0, %v11810_v34 }
 0xe87   :  { %11815 = vrcp.f32 %v7235_v31 }
 0xe88   :  { %11817 = vrcp.f32 %v7242_v16 }
 0xe90   :  { %v11814_v35 = vpop.eup %11813 }
 0xe91   :  { %v11816_v30 = vpop.eup %11815  ;;  %v7246_v62 = vmul.f32 %v11814_v35, %v11812_v49 }
 0xe92   :  { %v7245_v58 = vmul.f32 %v11816_v30, %v14333_v13  ;;  %v11818_v13 = vpop.eup %11817 }
 0xe94   :  { %v14417_v56 = vadd.f32 %v7246_v62, %v7245_v58  ;;  %v7150_v33 = vpop.f32.mrb[54].mxu0  ;;  %v7221_v50 = vpop.f32.mrb[54].mxu1 }
 0xe95   :  { %v11251_v9 = vadd.f32 %v7150_v33, %v15213_v42  ;;  %v7152_v48 = vpop.f32.mrb[55].mxu0  ;;  %v7223_v53 = vpop.f32.mrb[55].mxu1  ;;  %v11267_v30 = vadd.f32 %v7221_v50, %v14086_v2 }
 0xe96   :  { %v11252_v46 = vadd.f32 %v7152_v48, %v14072_v37  ;;  %11819 = vtanh.f32 %v14417_v56  ;;  %v11268_v49 = vadd.f32 %v7223_v53, %v14081_v1 }
 0xe97   :  { %v8585_v31 = vmul.f32 -1.442695, %v11251_v9 }
 0xe98   :  { %v8586_v23 = vmul.f32 -1.442695, %v11252_v46  ;;  %v8587_v35 = vmul.f32 -1.442695, %v11268_v49 }
 0xe99   :  { %11821 = vpow2.f32 %v8585_v31 }
 0xe9a   :  { %11823 = vpow2.f32 %v8586_v23 }
 0xe9b   :  { %11825 = vpow2.f32 %v8587_v35 }
 0xe9c   :  { %11827 = vtanh.f32 %v11267_v30  ;;  %v15295_v30 = vld [vmem:[#allocation35_spill] sm:$0xff] }
 0xea0   :  { %v11820_v34 = vpop.eup %11819 }
 0xea1   :  { %v7249_v62 = vmul.f32 %v11820_v34, %v11818_v13 }
 0xea3   :  { %v11822_v16 = vpop.eup %11821  ;;  %7343 = vmatmul.mubr.f32.vlgmr.msra.gmra.mrb[42].mxu0 %v7249_v62  ;;  %7414 = vmatmul.mubr.f32.vlgmr.msra.gmra.mrb[42].mxu1 %v7249_v62  ;;  %v15296_v62 = vld [vmem:[#allocation36_spill] sm:$0xff] }
 0xea4   :  { %v11824_v58 = vpop.eup %11823  ;;  %v7253_v33 = vadd.f32 1.0, %v11822_v16  ;;  %10788 = vmatpush1.bf16.msra.mxu0 %v13912_v26  ;;  %10820 = vmatpush1.bf16.msra.mxu1 %v13914_v7  ;;  %v15297_v16 = vld [vmem:[#allocation37_spill] sm:$0xff] }
 0xea5   :  { %v7259_v9 = vadd.f32 1.0, %v11824_v58  ;;  %10790 = vmatprep.subr.bf16.mxu0 %v13918_v17  ;;  %10822 = vmatprep.subr.bf16.mxu1 %v13920_v0  ;;  %v11826_v50 = vpop.eup %11825  ;;  %v15298_v58 = vld [vmem:[#allocation30_spill] sm:$0xff] }
 0xea6   :  { %11829 = vrcp.f32 %v7253_v33  ;;  %7488 = vmatprep.mubr.f32.mxu0 %v14988_v20  ;;  %7559 = vmatprep.mubr.f32.mxu1 %v14988_v20  ;;  %v11828_v48 = vpop.eup %11827  ;;  %v7266_v23 = vadd.f32 1.0, %v11826_v50  ;;  %v15299_v33 = vld [vmem:[#allocation38_spill] sm:$0xff]  ;;  %v15301_v50 = vld [vmem:[#allocation40_spill] sm:$0xff] }
 0xea7   :  { %11831 = vrcp.f32 %v7259_v9  ;;  %v15300_v9 = vld [vmem:[#allocation39_spill] sm:$0xff] }
 0xea8   :  { %10792 = vmatpush1.bf16.msra.mxu0 %v13926_v4  ;;  %10824 = vmatpush1.bf16.msra.mxu1 %v13928_v54  ;;  %11833 = vrcp.f32 %v7266_v23  ;;  %v15306_v23 = vld [vmem:[#allocation45_spill] sm:$0xff] }
 0xea9   :  { %10794 = vmatprep.subr.bf16.mxu0 %v13932_v24  ;;  %10826 = vmatprep.subr.bf16.mxu1 %v15188_v14 }
 0xeac   :  { %10796 = vmatpush1.bf16.msra.mxu0 %v15189_v5  ;;  %10828 = vmatpush1.bf16.msra.mxu1 %v15214_v36 }
 0xead   :  { %10798 = vmatprep.subr.bf16.mxu0 %v15215_v21  ;;  %10830 = vmatprep.subr.bf16.mxu1 %v15216_v22 }
 0xeb0   :  { %v11830_v53 = vpop.eup %11829  ;;  %10800 = vmatpush1.bf16.msra.mxu0 %v15193_v51  ;;  %10832 = vmatpush1.bf16.msra.mxu1 %v15194_v44 }
 0xeb1   :  { %v11832_v46 = vpop.eup %11831  ;;  %v7270_v31 = vmul.f32 %v11830_v53, %v11828_v48  ;;  %10802 = vmatprep.subr.bf16.mxu0 %v15195_v40  ;;  %10834 = vmatprep.subr.bf16.mxu1 %v15196_v8  ;;  %v15302_v48 = vld [vmem:[#allocation32_spill] sm:$0xff]  ;;  %v15303_v53 = vld [vmem:[#allocation33_spill] sm:$0xff] }
 0xeb2   :  { %v7269_v49 = vmul.f32 %v11832_v46, %v14359_v61  ;;  %v11834_v61 = vpop.eup %11833  ;;  %v15304_v46 = vld [vmem:[#allocation43_spill] sm:$0xff] }
 0xeb4   :  { %v14443_v13 = vadd.f32 %v7270_v31, %v7269_v49  ;;  %10804 = vmatpush1.bf16.msra.mxu0 %v15197_v19  ;;  %10836 = vmatpush1.bf16.msra.mxu1 %v15198_v15  ;;  %v15305_v31 = vld [vmem:[#allocation44_spill] sm:$0xff]  ;;  %v15307_v49 = vld [vmem:[#allocation46_spill] sm:$0xff] }
 0xeb5   :  { %10806 = vmatprep.subr.bf16.mxu0 %v13970_v27  ;;  %10838 = vmatprep.subr.bf16.mxu1 %v13972_v11 }
 0xeb6   :  { %11835 = vtanh.f32 %v14443_v13 }
 0xeb8   :  { %10808 = vmatpush1.bf16.msra.mxu0 %v13976_v47  ;;  %10840 = vmatpush1.bf16.msra.mxu1 %v13978_v43 }
 0xeb9   :  { %10810 = vmatprep.subr.bf16.mxu0 %v13982_v57  ;;  %10842 = vmatprep.subr.bf16.mxu1 %v13984_v60 }
 0xebc   :  { %10812 = vmatpush1.bf16.msra.mxu0 %v13988_v59  ;;  %10844 = vmatpush1.bf16.msra.mxu1 %v13990_v39 }
 0xebd   :  { %10814 = vmatprep.subr.bf16.mxu0 %v13994_v12  ;;  %10846 = vmatprep.subr.bf16.mxu1 %v13996_v6 }
 0xec0   :  { %v11836_v34 = vpop.eup %11835  ;;  %10816 = vmatpush1.bf16.msra.mxu0 %v14000_v18  ;;  %10848 = vmatpush1.bf16.msra.mxu1 %v14002_v63 }
 0xec1   :  { %v7273_v35 = vmul.f32 %v11836_v34, %v11834_v61  ;;  %10850 = vmatprep.subr.bf16.mxu0 %v13780_v38  ;;  %10882 = vmatprep.subr.bf16.mxu1 %v13782_v32  ;;  %v15308_v61 = vld [vmem:[#allocation47_spill] sm:$0xff]  ;;  %v15309_v34 = vld [vmem:[#allocation48_spill] sm:$0xff] }
 0xec3   :  { %7489 = vmatmul.mubr.f32.vlgmr.msra.gmra.mrb[52].mxu0 %v7273_v35  ;;  %7560 = vmatmul.mubr.f32.vlgmr.msra.gmra.mrb[52].mxu1 %v7273_v35  ;;  %v15310_v35 = vld [vmem:[#allocation50_spill] sm:$0xff] }
 0xec4   :  { %10852 = vmatpush1.bf16.msra.mxu0 %v13786_v10  ;;  %10884 = vmatpush1.bf16.msra.mxu1 %v13788_v52 }
 0xec5   :  { %10854 = vmatprep.subr.bf16.mxu0 %v13790_v25  ;;  %10886 = vmatprep.subr.bf16.mxu1 %v13792_v3 }
 0xec6   :  { %7682 = vmatprep.mubr.f32.mxu0 %v14988_v20  ;;  %7753 = vmatprep.mubr.f32.mxu1 %v14988_v20 }
 0xec8   :  { %10856 = vmatpush1.bf16.msra.mxu0 %v13800_v41  ;;  %10888 = vmatpush1.bf16.msra.mxu1 %v13802_v28 }
 0xec9   :  { %10858 = vmatprep.subr.bf16.mxu0 %v15295_v30  ;;  %10890 = vmatprep.subr.bf16.mxu1 %v15296_v62 }
 0xecc   :  { %10860 = vmatpush1.bf16.msra.mxu0 %v15297_v16  ;;  %10892 = vmatpush1.bf16.msra.mxu1 %v15298_v58 }
 0xecd   :  { %10862 = vmatprep.subr.bf16.mxu0 %v15299_v33  ;;  %10894 = vmatprep.subr.bf16.mxu1 %v15300_v9  ;;  %v15311_v9 = vld [vmem:[#allocation51_spill] sm:$0xff]  ;;  %v15321_v33 = vld [vmem:[#allocation34_spill] sm:$0xff] }
 0xed0   :  { %10864 = vmatpush1.bf16.msra.mxu0 %v15301_v50  ;;  %10896 = vmatpush1.bf16.msra.mxu1 %v15302_v48  ;;  %v15312_v50 = vld [vmem:[#allocation52_spill] sm:$0xff]  ;;  %v15313_v48 = vld [vmem:[#allocation54_spill] sm:$0xff] }
 0xed1   :  { %10866 = vmatprep.subr.bf16.mxu0 %v15303_v53  ;;  %10898 = vmatprep.subr.bf16.mxu1 %v15304_v46  ;;  %v15314_v53 = vld [vmem:[#allocation55_spill] sm:$0xff]  ;;  %v15315_v46 = vld [vmem:[#allocation56_spill] sm:$0xff] }
 0xed4   :  { %10868 = vmatpush1.bf16.msra.mxu0 %v15305_v31  ;;  %10900 = vmatpush1.bf16.msra.mxu1 %v15306_v23  ;;  %v15316_v31 = vld [vmem:[#allocation41_spill] sm:$0xff]  ;;  %v15317_v23 = vld [vmem:[#allocation28_spill] sm:$0xff] }
 0xed5   :  { %10870 = vmatprep.subr.bf16.mxu0 %v15307_v49  ;;  %10902 = vmatprep.subr.bf16.mxu1 %v15308_v61  ;;  %v15318_v49 = vld [vmem:[#allocation25_spill] sm:$0xff] }
 0xed6   :  { %v15319_v61 = vld [vmem:[#allocation29_spill] sm:$0xff] }
 0xed8   :  { %10872 = vmatpush1.bf16.msra.mxu0 %v15309_v34  ;;  %10904 = vmatpush1.bf16.msra.mxu1 %v15310_v35  ;;  %v15320_v34 = vld [vmem:[#allocation31_spill] sm:$0xff] }
 0xed9   :  { %10874 = vmatprep.subr.bf16.mxu0 %v15311_v9  ;;  %10906 = vmatprep.subr.bf16.mxu1 %v15312_v50 }
 0xedc   :  { %10876 = vmatpush1.bf16.msra.mxu0 %v15313_v48  ;;  %10908 = vmatpush1.bf16.msra.mxu1 %v15314_v53 }
 0xedd   :  { %10878 = vmatprep.subr.bf16.mxu0 %v15315_v46  ;;  %10910 = vmatprep.subr.bf16.mxu1 %v15316_v31 }
 0xee0   :  { %10880 = vmatpush1.bf16.msra.mxu0 %v15317_v23  ;;  %10912 = vmatpush1.bf16.msra.mxu1 %v15318_v49 }
 0xee1   :  { %10914 = vmatprep.subr.bf16.mxu0 %v15319_v61  ;;  %10946 = vmatprep.subr.bf16.mxu1 %v15320_v34 }
 0xf76   :  { %v7344_v35 = vpop.f32.mrb[42].mxu0  ;;  %v7415_v9 = vpop.f32.mrb[42].mxu1 }
 0xf77   :  { %v11223_v50 = vadd.f32 %v7344_v35, %v15321_v33  ;;  %v7346_v58 = vpop.f32.mrb[43].mxu0  ;;  %v7417_v48 = vpop.f32.mrb[43].mxu1  ;;  %v11239_v49 = vadd.f32 %v7415_v9, %v15240_v29 }
 0xf78   :  { %v11224_v53 = vadd.f32 %v7346_v58, %v15239_v55  ;;  %v11240_v23 = vadd.f32 %v7417_v48, %v15210_v45 }
 0xf79   :  { %v8588_v16 = vmul.f32 -1.442695, %v11223_v50 }
 0xf7a   :  { %v8589_v46 = vmul.f32 -1.442695, %v11224_v53  ;;  %v8590_v31 = vmul.f32 -1.442695, %v11240_v23 }
 0xf7b   :  { %11837 = vpow2.f32 %v8588_v16 }
 0xf7c   :  { %11839 = vpow2.f32 %v8589_v46 }
 0xf7d   :  { %11841 = vpow2.f32 %v8590_v31 }
 0xf7e   :  { %11843 = vtanh.f32 %v11239_v49 }
 0xf85   :  { %v11838_v61 = vpop.eup %11837 }
 0xf86   :  { %v11840_v62 = vpop.eup %11839  ;;  %v7569_v34 = vadd.f32 1.0, %v11838_v61 }
 0xf87   :  { %v7575_v30 = vadd.f32 1.0, %v11840_v62  ;;  %v11842_v35 = vpop.eup %11841 }
 0xf88   :  { %11845 = vrcp.f32 %v7569_v34  ;;  %v11844_v33 = vpop.eup %11843  ;;  %v7582_v16 = vadd.f32 1.0, %v11842_v35 }
 0xf89   :  { %11847 = vrcp.f32 %v7575_v30 }
 0xf8a   :  { %11849 = vrcp.f32 %v7582_v16 }
 0xf92   :  { %v11846_v58 = vpop.eup %11845 }
 0xf93   :  { %v11848_v50 = vpop.eup %11847  ;;  %v7586_v53 = vmul.f32 %v11846_v58, %v11844_v33 }
 0xf94   :  { %v7585_v46 = vmul.f32 %v11848_v50, %v14417_v56  ;;  %v11850_v56 = vpop.eup %11849 }
 0xf96   :  { %v14501_v48 = vadd.f32 %v7586_v53, %v7585_v46  ;;  %v7490_v23 = vpop.f32.mrb[52].mxu0  ;;  %v7561_v9 = vpop.f32.mrb[52].mxu1 }
 0xf97   :  { %v11249_v61 = vadd.f32 %v7490_v23, %v15213_v42  ;;  %v7492_v31 = vpop.f32.mrb[53].mxu0  ;;  %v7563_v49 = vpop.f32.mrb[53].mxu1  ;;  %v11265_v50 = vadd.f32 %v7561_v9, %v14086_v2 }
 0xf98   :  { %v11250_v62 = vadd.f32 %v7492_v31, %v14072_v37  ;;  %11851 = vtanh.f32 %v14501_v48  ;;  %v11266_v33 = vadd.f32 %v7563_v49, %v14081_v1 }
 0xf99   :  { %v8591_v30 = vmul.f32 -1.442695, %v11249_v61 }
 0xf9a   :  { %v8592_v34 = vmul.f32 -1.442695, %v11250_v62  ;;  %v8593_v58 = vmul.f32 -1.442695, %v11266_v33 }
 0xf9b   :  { %11853 = vpow2.f32 %v8591_v30 }
 0xf9c   :  { %11855 = vpow2.f32 %v8592_v34 }
 0xf9d   :  { %11857 = vpow2.f32 %v8593_v58 }
 0xf9e   :  { %11859 = vtanh.f32 %v11265_v50  ;;  %v15324_v50 = vld [vmem:[#allocation37_spill] sm:$0xff] }
 0xfa2   :  { %v11852_v35 = vpop.eup %11851 }
 0xfa3   :  { %v7589_v53 = vmul.f32 %v11852_v35, %v11850_v56 }
 0xfa5   :  { %v11854_v16 = vpop.eup %11853  ;;  %7683 = vmatmul.mubr.f32.vlgmr.msra.gmra.mrb[44].mxu0 %v7589_v53  ;;  %7754 = vmatmul.mubr.f32.vlgmr.msra.gmra.mrb[44].mxu1 %v7589_v53  ;;  %v15329_v53 = vld [vmem:[#allocation32_spill] sm:$0xff] }
 0xfa6   :  { %v11856_v46 = vpop.eup %11855  ;;  %v7593_v23 = vadd.f32 1.0, %v11854_v16  ;;  %10916 = vmatpush1.bf16.msra.mxu0 %v13912_v26  ;;  %10948 = vmatpush1.bf16.msra.mxu1 %v13914_v7  ;;  %v15330_v16 = vld [vmem:[#allocation33_spill] sm:$0xff] }
 0xfa7   :  { %v7599_v61 = vadd.f32 1.0, %v11856_v46  ;;  %10918 = vmatprep.subr.bf16.mxu0 %v13918_v17  ;;  %10950 = vmatprep.subr.bf16.mxu1 %v13920_v0  ;;  %v11858_v9 = vpop.eup %11857  ;;  %v15333_v46 = vld [vmem:[#allocation45_spill] sm:$0xff] }
 0xfa8   :  { %11861 = vrcp.f32 %v7593_v23  ;;  %7828 = vmatprep.mubr.f32.mxu0 %v14988_v20  ;;  %7899 = vmatprep.mubr.f32.mxu1 %v14988_v20  ;;  %v11860_v31 = vpop.eup %11859  ;;  %v7606_v34 = vadd.f32 1.0, %v11858_v9  ;;  %v15334_v23 = vld [vmem:[#allocation46_spill] sm:$0xff]  ;;  %v15336_v9 = vld [vmem:[#allocation48_spill] sm:$0xff] }
 0xfa9   :  { %11863 = vrcp.f32 %v7599_v61  ;;  %v15335_v61 = vld [vmem:[#allocation47_spill] sm:$0xff] }
 0xfaa   :  { %10920 = vmatpush1.bf16.msra.mxu0 %v13926_v4  ;;  %10952 = vmatpush1.bf16.msra.mxu1 %v13928_v54  ;;  %11865 = vrcp.f32 %v7606_v34  ;;  %v15341_v34 = vld [vmem:[#allocation55_spill] sm:$0xff] }
 0xfab   :  { %10922 = vmatprep.subr.bf16.mxu0 %v13932_v24  ;;  %10954 = vmatprep.subr.bf16.mxu1 %v15188_v14 }
 0xfae   :  { %10924 = vmatpush1.bf16.msra.mxu0 %v15189_v5  ;;  %10956 = vmatpush1.bf16.msra.mxu1 %v15214_v36 }
 0xfaf   :  { %10926 = vmatprep.subr.bf16.mxu0 %v15215_v21  ;;  %10958 = vmatprep.subr.bf16.mxu1 %v15216_v22 }
 0xfb2   :  { %v11862_v49 = vpop.eup %11861  ;;  %10928 = vmatpush1.bf16.msra.mxu0 %v15193_v51  ;;  %10960 = vmatpush1.bf16.msra.mxu1 %v15194_v44 }
 0xfb3   :  { %v11864_v62 = vpop.eup %11863  ;;  %v7610_v30 = vmul.f32 %v11862_v49, %v11860_v31  ;;  %10930 = vmatprep.subr.bf16.mxu0 %v15195_v40  ;;  %10962 = vmatprep.subr.bf16.mxu1 %v15196_v8  ;;  %v15337_v31 = vld [vmem:[#allocation50_spill] sm:$0xff]  ;;  %v15338_v49 = vld [vmem:[#allocation51_spill] sm:$0xff] }
 0xfb4   :  { %v7609_v33 = vmul.f32 %v11864_v62, %v14443_v13  ;;  %v11866_v13 = vpop.eup %11865  ;;  %v15339_v62 = vld [vmem:[#allocation52_spill] sm:$0xff] }
 0xfb6   :  { %v14527_v56 = vadd.f32 %v7610_v30, %v7609_v33  ;;  %10932 = vmatpush1.bf16.msra.mxu0 %v15197_v19  ;;  %10964 = vmatpush1.bf16.msra.mxu1 %v15198_v15  ;;  %v15340_v30 = vld [vmem:[#allocation54_spill] sm:$0xff]  ;;  %v15342_v33 = vld [vmem:[#allocation56_spill] sm:$0xff] }
 0xfb7   :  { %10934 = vmatprep.subr.bf16.mxu0 %v13970_v27  ;;  %10966 = vmatprep.subr.bf16.mxu1 %v13972_v11 }
 0xfb8   :  { %11867 = vtanh.f32 %v14527_v56 }
 0xfba   :  { %10936 = vmatpush1.bf16.msra.mxu0 %v13976_v47  ;;  %10968 = vmatpush1.bf16.msra.mxu1 %v13978_v43 }
 0xfbb   :  { %10938 = vmatprep.subr.bf16.mxu0 %v13982_v57  ;;  %10970 = vmatprep.subr.bf16.mxu1 %v13984_v60 }
 0xfbe   :  { %10940 = vmatpush1.bf16.msra.mxu0 %v13988_v59  ;;  %10972 = vmatpush1.bf16.msra.mxu1 %v13990_v39 }
 0xfbf   :  { %10942 = vmatprep.subr.bf16.mxu0 %v13994_v12  ;;  %10974 = vmatprep.subr.bf16.mxu1 %v13996_v6 }
 0xfc2   :  { %v11868_v35 = vpop.eup %11867  ;;  %10944 = vmatpush1.bf16.msra.mxu0 %v14000_v18  ;;  %10976 = vmatpush1.bf16.msra.mxu1 %v14002_v63 }
 0xfc3   :  { %v7613_v58 = vmul.f32 %v11868_v35, %v11866_v13  ;;  %10978 = vmatprep.subr.bf16.mxu0 %v13780_v38  ;;  %11010 = vmatprep.subr.bf16.mxu1 %v13782_v32  ;;  %v15322_v38 = vld [vmem:[#allocation35_spill] sm:$0xff]  ;;  %v15323_v32 = vld [vmem:[#allocation36_spill] sm:$0xff]  ;;  %v15343_v13 = vld [vmem:[#allocation41_spill] sm:$0xff] }
 0xfc4   :  { %v15344_v35 = vld [vmem:[#allocation28_spill] sm:$0xff] }
 0xfc5   :  { %7829 = vmatmul.mubr.f32.vlgmr.msra.gmra.mrb[50].mxu0 %v7613_v58  ;;  %7900 = vmatmul.mubr.f32.vlgmr.msra.gmra.mrb[50].mxu1 %v7613_v58  ;;  %v15345_v58 = vld [vmem:[#allocation25_spill] sm:$0xff] }
 0xfc6   :  { %10980 = vmatpush1.bf16.msra.mxu0 %v13786_v10  ;;  %11012 = vmatpush1.bf16.msra.mxu1 %v13788_v52  ;;  %v15325_v10 = vld [vmem:[#allocation30_spill] sm:$0xff] }
 0xfc7   :  { %10982 = vmatprep.subr.bf16.mxu0 %v13790_v25  ;;  %11014 = vmatprep.subr.bf16.mxu1 %v13792_v3  ;;  %v15326_v52 = vld [vmem:[#allocation38_spill] sm:$0xff]  ;;  %v15327_v25 = vld [vmem:[#allocation39_spill] sm:$0xff]  ;;  %v15328_v3 = vld [vmem:[#allocation40_spill] sm:$0xff] }
 0xfc8   :  { %8022 = vmatprep.mubr.f32.mxu0 %v14988_v20  ;;  %8093 = vmatprep.mubr.f32.mxu1 %v14988_v20 }
 0xfca   :  { %10984 = vmatpush1.bf16.msra.mxu0 %v13800_v41  ;;  %11016 = vmatpush1.bf16.msra.mxu1 %v13802_v28  ;;  %v15331_v41 = vld [vmem:[#allocation43_spill] sm:$0xff]  ;;  %v15332_v28 = vld [vmem:[#allocation44_spill] sm:$0xff] }
 0xfcb   :  { %10986 = vmatprep.subr.bf16.mxu0 %v15322_v38  ;;  %11018 = vmatprep.subr.bf16.mxu1 %v15323_v32  ;;  %v15346_v38 = vld [vmem:[#allocation29_spill] sm:$0xff]  ;;  %v15347_v32 = vld [vmem:[#allocation31_spill] sm:$0xff] }
 0xfce   :  { %10988 = vmatpush1.bf16.msra.mxu0 %v15324_v50  ;;  %11020 = vmatpush1.bf16.msra.mxu1 %v15325_v10 }
 0xfcf   :  { %10990 = vmatprep.subr.bf16.mxu0 %v15326_v52  ;;  %11022 = vmatprep.subr.bf16.mxu1 %v15327_v25  ;;  %v15348_v52 = vld [vmem:[#allocation34_spill] sm:$0xff] }
 0xfd2   :  { %10992 = vmatpush1.bf16.msra.mxu0 %v15328_v3  ;;  %11024 = vmatpush1.bf16.msra.mxu1 %v15329_v53 }
 0xfd3   :  { %10994 = vmatprep.subr.bf16.mxu0 %v15330_v16  ;;  %11026 = vmatprep.subr.bf16.mxu1 %v15331_v41 }
 0xfd6   :  { %10996 = vmatpush1.bf16.msra.mxu0 %v15332_v28  ;;  %11028 = vmatpush1.bf16.msra.mxu1 %v15333_v46 }
 0xfd7   :  { %10998 = vmatprep.subr.bf16.mxu0 %v15334_v23  ;;  %11030 = vmatprep.subr.bf16.mxu1 %v15335_v61 }
 0xfda   :  { %11000 = vmatpush1.bf16.msra.mxu0 %v15336_v9  ;;  %11032 = vmatpush1.bf16.msra.mxu1 %v15337_v31 }
 0xfdb   :  { %11002 = vmatprep.subr.bf16.mxu0 %v15338_v49  ;;  %11034 = vmatprep.subr.bf16.mxu1 %v15339_v62 }
 0xfde   :  { %11004 = vmatpush1.bf16.msra.mxu0 %v15340_v30  ;;  %11036 = vmatpush1.bf16.msra.mxu1 %v15341_v34 }
 0xfdf   :  { %11006 = vmatprep.subr.bf16.mxu0 %v15342_v33  ;;  %11038 = vmatprep.subr.bf16.mxu1 %v15343_v13 }
 0xfe2   :  { %11008 = vmatpush1.bf16.msra.mxu0 %v15344_v35  ;;  %11040 = vmatpush1.bf16.msra.mxu1 %v15345_v58 }
 0xfe3   :  { %11042 = vmatprep.subr.bf16.mxu0 %v15346_v38  ;;  %11074 = vmatprep.subr.bf16.mxu1 %v15347_v32 }
0x1078   :  { %v7684_v50 = vpop.f32.mrb[44].mxu0  ;;  %v7755_v10 = vpop.f32.mrb[44].mxu1 }
0x1079   :  { %v11225_v25 = vadd.f32 %v7684_v50, %v15348_v52  ;;  %v7686_v3 = vpop.f32.mrb[45].mxu0  ;;  %v7757_v53 = vpop.f32.mrb[45].mxu1  ;;  %v11241_v61 = vadd.f32 %v7755_v10, %v15240_v29 }
0x107a   :  { %v11226_v16 = vadd.f32 %v7686_v3, %v15239_v55  ;;  %v11242_v46 = vadd.f32 %v7757_v53, %v15210_v45 }
0x107b   :  { %v8594_v41 = vmul.f32 -1.442695, %v11225_v25 }
0x107c   :  { %v8595_v28 = vmul.f32 -1.442695, %v11226_v16  ;;  %v8596_v23 = vmul.f32 -1.442695, %v11242_v46 }
0x107d   :  { %11869 = vpow2.f32 %v8594_v41 }
0x107e   :  { %11871 = vpow2.f32 %v8595_v28 }
0x107f   :  { %11873 = vpow2.f32 %v8596_v23 }
0x1080   :  { %11875 = vtanh.f32 %v11241_v61 }
0x1087   :  { %v11870_v9 = vpop.eup %11869 }
0x1088   :  { %v11872_v31 = vpop.eup %11871  ;;  %v7909_v49 = vadd.f32 1.0, %v11870_v9 }
0x1089   :  { %v7915_v62 = vadd.f32 1.0, %v11872_v31  ;;  %v11874_v30 = vpop.eup %11873 }
0x108a   :  { %11877 = vrcp.f32 %v7909_v49  ;;  %v11876_v34 = vpop.eup %11875  ;;  %v7922_v58 = vadd.f32 1.0, %v11874_v30 }
0x108b   :  { %11879 = vrcp.f32 %v7915_v62 }
0x108c   :  { %11881 = vrcp.f32 %v7922_v58 }
0x1094   :  { %v11878_v33 = vpop.eup %11877 }
0x1095   :  { %v11880_v13 = vpop.eup %11879  ;;  %v7926_v35 = vmul.f32 %v11878_v33, %v11876_v34 }
0x1096   :  { %v7925_v38 = vmul.f32 %v11880_v13, %v14501_v48  ;;  %v11882_v48 = vpop.eup %11881  ;;  %v8300_v13 = vld [vmem:[%s14775_s9 + $0x30] sm:$0xff] }
0x1098   :  { %v14585_v32 = vadd.f32 %v7926_v35, %v7925_v38  ;;  %v7830_v50 = vpop.f32.mrb[50].mxu0  ;;  %v7901_v10 = vpop.f32.mrb[50].mxu1  ;;  %v8301_v35 = vld [vmem:[%s14775_s9 + $0x38] sm:$0xff]  ;;  %v8318_v38 = vld [vmem:[%s14775_s9 + $0xc0] sm:$0xff] }
0x1099   :  { %v11247_v25 = vadd.f32 %v7830_v50, %v15213_v42  ;;  %v7832_v3 = vpop.f32.mrb[51].mxu0  ;;  %v7903_v53 = vpop.f32.mrb[51].mxu1  ;;  %v11263_v9 = vadd.f32 %v7901_v10, %v14086_v2  ;;  %v11119_v58 = vpack.c.bf16 %v8301_v35, %v8300_v13  ;;  %v8319_v50 = vld [vmem:[%s14775_s9 + $0xc8] sm:$0xff]  ;;  %v8302_v10 = vld [vmem:[%s14775_s9 + $0x40] sm:$0xff] }
0x109a   :  { %v11248_v16 = vadd.f32 %v7832_v3, %v14072_v37  ;;  %11883 = vtanh.f32 %v14585_v32  ;;  %v11264_v46 = vadd.f32 %v7903_v53, %v14081_v1  ;;  %v8303_v3 = vld [vmem:[%s14775_s9 + $0x48] sm:$0xff]  ;;  %v8320_v53 = vld [vmem:[%s14775_s9 + $0xd0] sm:$0xff] }
0x109b   :  { %v8597_v41 = vmul.f32 -1.442695, %v11247_v25  ;;  %v11121_v25 = vpack.c.bf16 %v8319_v50, %v8318_v38 }
0x109c   :  { %v8598_v28 = vmul.f32 -1.442695, %v11248_v16  ;;  %v8599_v61 = vmul.f32 -1.442695, %v11264_v46  ;;  %v8321_v16 = vld [vmem:[%s14775_s9 + $0xd8] sm:$0xff]  ;;  %v8304_v46 = vld [vmem:[%s14775_s9 + $0x50] sm:$0xff] }
0x109d   :  { %11885 = vpow2.f32 %v8597_v41  ;;  %v11123_v41 = vpack.c.bf16 %v8303_v3, %v8302_v10 }
0x109e   :  { %11887 = vpow2.f32 %v8598_v28  ;;  %v11125_v28 = vpack.c.bf16 %v8321_v16, %v8320_v53 }
0x109f   :  { %11889 = vpow2.f32 %v8599_v61  ;;  %v8323_v61 = vld [vmem:[%s14775_s9 + $0xe8] sm:$0xff] }
0x10a0   :  { %11891 = vtanh.f32 %v11263_v9 }
0x10a4   :  { %v11884_v23 = vpop.eup %11883 }
0x10a5   :  { %v7929_v31 = vmul.f32 %v11884_v23, %v11882_v48  ;;  %v8305_v48 = vld [vmem:[%s14775_s9 + $0x58] sm:$0xff]  ;;  %v8322_v23 = vld [vmem:[%s14775_s9 + $0xe0] sm:$0xff] }
0x10a6   :  { %v11127_v9 = vpack.c.bf16 %v8305_v48, %v8304_v46 }
0x10a7   :  { %v11886_v49 = vpop.eup %11885  ;;  %8023 = vmatmul.mubr.f32.vlgmr.msra.gmra.mrb[46].mxu0 %v7929_v31  ;;  %8094 = vmatmul.mubr.f32.vlgmr.msra.gmra.mrb[46].mxu1 %v7929_v31  ;;  %v11129_v31 = vpack.c.bf16 %v8323_v61, %v8322_v23 }
0x10a8   :  { %v11888_v62 = vpop.eup %11887  ;;  %v7933_v30 = vadd.f32 1.0, %v11886_v49  ;;  %11044 = vmatpush1.bf16.msra.mxu0 %v13912_v26  ;;  %11076 = vmatpush1.bf16.msra.mxu1 %v13914_v7  ;;  %v8306_v49 = vld [vmem:[%s14775_s9 + $0x60] sm:$0xff] }
0x10a9   :  { %v7939_v34 = vadd.f32 1.0, %v11888_v62  ;;  %11046 = vmatprep.subr.bf16.mxu0 %v13918_v17  ;;  %11078 = vmatprep.subr.bf16.mxu1 %v13920_v0  ;;  %v11890_v26 = vpop.eup %11889  ;;  %v8307_v62 = vld [vmem:[%s14775_s9 + $0x68] sm:$0xff] }
0x10aa   :  { %11893 = vrcp.f32 %v7933_v30  ;;  %8168 = vmatprep.mubr.f32.mxu0 %v14988_v20  ;;  %8239 = vmatprep.mubr.f32.mxu1 %v14988_v20  ;;  %v11892_v7 = vpop.eup %11891  ;;  %v8324_v30 = vld [vmem:[%s14775_s9 + $0xf0] sm:$0xff] }
0x10ab   :  { %11895 = vrcp.f32 %v7939_v34  ;;  %v8325_v34 = vld [vmem:[%s14775_s9 + $0xf8] sm:$0xff] }
0x10ac   :  { %11048 = vmatpush1.bf16.msra.mxu0 %v13926_v4  ;;  %11080 = vmatpush1.bf16.msra.mxu1 %v13928_v54  ;;  %v7946_v54 = vadd.f32 1.0, %v11890_v26  ;;  %v11131_v26 = vpack.c.bf16 %v8307_v62, %v8306_v49 }
0x10ad   :  { %11050 = vmatprep.subr.bf16.mxu0 %v13932_v24  ;;  %11082 = vmatprep.subr.bf16.mxu1 %v15188_v14 }
0x10ae   :  { %11897 = vrcp.f32 %v7946_v54  ;;  %v8404_v54 = vld [vmem:[%s14777_s11] sm:$0xff] }
0x10b0   :  { %11052 = vmatpush1.bf16.msra.mxu0 %v15189_v5  ;;  %11084 = vmatpush1.bf16.msra.mxu1 %v15214_v36  ;;  %v8296_v5 = vld [vmem:[%s14775_s9 + $0x10] sm:$0xff]  ;;  %v8299_v36 = vld [vmem:[%s14775_s9 + $0x28] sm:$0xff] }
0x10b1   :  { %11054 = vmatprep.subr.bf16.mxu0 %v15215_v21  ;;  %11086 = vmatprep.subr.bf16.mxu1 %v15216_v22  ;;  %v8316_v22 = vld [vmem:[%s14775_s9 + $0xb0] sm:$0xff] }
0x10b4   :  { %v11894_v17 = vpop.eup %11893  ;;  %11056 = vmatpush1.bf16.msra.mxu0 %v15193_v51  ;;  %11088 = vmatpush1.bf16.msra.mxu1 %v15194_v44  ;;  %v8314_v51 = vld [vmem:[%s14775_s9 + $0xa0] sm:$0xff]  ;;  %v8315_v44 = vld [vmem:[%s14775_s9 + $0xa8] sm:$0xff] }
0x10b5   :  { %v11896_v0 = vpop.eup %11895  ;;  %v7950_v4 = vmul.f32 %v11894_v17, %v11892_v7  ;;  %11058 = vmatprep.subr.bf16.mxu0 %v15195_v40  ;;  %11090 = vmatprep.subr.bf16.mxu1 %v15196_v8  ;;  %v11113_v40 = vpack.c.bf16 %v8315_v44, %v8314_v51  ;;  %v8298_v8 = vld [vmem:[%s14775_s9 + $0x20] sm:$0xff]  ;;  %v11133_v7 = vpack.c.bf16 %v8325_v34, %v8324_v30  ;;  %v8308_v17 = vld [vmem:[%s14775_s9 + $0x70] sm:$0xff] }
0x10b6   :  { %v7949_v24 = vmul.f32 %v11896_v0, %v14527_v56  ;;  %v11115_v21 = vpack.c.bf16 %v8299_v36, %v8298_v8  ;;  %v8317_v56 = vld [vmem:[%s14775_s9 + $0xb8] sm:$0xff] }
0x10b7   :  { %v11117_v33 = vpack.c.bf16 %v8317_v56, %v8316_v22  ;;  %v8309_v0 = vld [vmem:[%s14775_s9 + $0x78] sm:$0xff] }
0x10b8   :  { %v14611_v14 = vadd.f32 %v7950_v4, %v7949_v24  ;;  %11060 = vmatpush1.bf16.msra.mxu0 %v15197_v19  ;;  %11092 = vmatpush1.bf16.msra.mxu1 %v15198_v15  ;;  %v8297_v19 = vld [vmem:[%s14775_s9 + $0x18] sm:$0xff]  ;;  %v11135_v4 = vpack.c.bf16 %v8309_v0, %v8308_v17  ;;  %v8405_v24 = vld [vmem:[%s14777_s11 + $0x8] sm:$0xff]  ;;  %v8408_v17 = vld [vmem:[%s14777_s11 + $0x20] sm:$0xff] }
0x10b9   :  { %11062 = vmatprep.subr.bf16.mxu0 %v13970_v27  ;;  %11094 = vmatprep.subr.bf16.mxu1 %v13972_v11  ;;  %v11898_v27 = vpop.eup %11897  ;;  %v11111_v15 = vpack.c.bf16 %v8297_v19, %v8296_v5  ;;  %v8409_v0 = vld [vmem:[%s14777_s11 + $0x28] sm:$0xff] }
0x10ba   :  { %11899 = vtanh.f32 %v14611_v14 }
0x10bc   :  { %11064 = vmatpush1.bf16.msra.mxu0 %v13976_v47  ;;  %11096 = vmatpush1.bf16.msra.mxu1 %v13978_v43  ;;  %v8310_v43 = vld [vmem:[%s14775_s9 + $0x80] sm:$0xff] }
0x10bd   :  { %11066 = vmatprep.subr.bf16.mxu0 %v13982_v57  ;;  %11098 = vmatprep.subr.bf16.mxu1 %v13984_v60  ;;  %v8311_v57 = vld [vmem:[%s14775_s9 + $0x88] sm:$0xff] }
0x10be   :  { %v11105_v60 = vpack.c.bf16 %v8311_v57, %v8310_v43  ;;  %v8407_v43 = vld [vmem:[%s14777_s11 + $0x18] sm:$0xff] }
0x10c0   :  { %11068 = vmatpush1.bf16.msra.mxu0 %v13988_v59  ;;  %11100 = vmatpush1.bf16.msra.mxu1 %v13990_v39  ;;  %v8294_v59 = vld [vmem:[%s14775_s9] sm:$0xff]  ;;  %v8295_v39 = vld [vmem:[%s14775_s9 + $0x8] sm:$0xff] }
0x10c1   :  { %11070 = vmatprep.subr.bf16.mxu0 %v13994_v12  ;;  %11102 = vmatprep.subr.bf16.mxu1 %v13996_v6  ;;  %v11107_v12 = vpack.c.bf16 %v8295_v39, %v8294_v59  ;;  %v8312_v6 = vld [vmem:[%s14775_s9 + $0x90] sm:$0xff] }
0x10c4   :  { %v11900_v11 = vpop.eup %11899  ;;  %11072 = vmatpush1.bf16.msra.mxu0 %v14000_v18  ;;  %11104 = vmatpush1.bf16.msra.mxu1 %v14002_v63  ;;  %v8313_v18 = vld [vmem:[%s14775_s9 + $0x98] sm:$0xff] }
0x10c5   :  { %v7953_v47 = vmul.f32 %v11900_v11, %v11898_v27  ;;  %11106 = vmatprep.subr.bf16.mxu0 %v11105_v60  ;;  %v11109_v63 = vpack.c.bf16 %v8313_v18, %v8312_v6  ;;  %v8406_v27 = vld [vmem:[%s14777_s11 + $0x10] sm:$0xff]  ;;  %v12159_v11 = vmov 0.0|0.0  }
0x10c6   :  { %11137 = vmatprep.subr.bf16.mxu1 %v12159_v11  ;;  %v11141_v57 = vpack.c.bf16 %v8407_v43, %v8406_v27 }
0x10c7   :  { %8169 = vmatmul.mubr.f32.vlgmr.msra.gmra.mrb[48].mxu0 %v7953_v47  ;;  %8240 = vmatmul.mubr.f32.vlgmr.msra.gmra.mrb[48].mxu1 %v7953_v47  ;;  %v11138_v47 = vpack.c.bf16 %v8405_v24, %v8404_v54  ;;  %v8411_v54 = vld [vmem:[%s14777_s11 + $0x38] sm:$0xff] }
0x10c8   :  { %11108 = vmatpush3.bf16.msra.mxu0 %v11107_v12  ;;  %8670 = vmatprep.mubr.msk.f32.mxu1 %vm12160_vm0, %v14988_v20 }
0x10c9   :  { %11110 = vmatprep.subr.bf16.mxu0 %v11109_v63  ;;  %11139 = vmatpush3.bf16.msra.mxu1 %v11138_v47  ;;  %v8606_v47 = vld [vmem:[#allocation18] ss:$0 sm:$0xff] }
0x10ca   :  { %11140 = vmatprep.subr.bf16.mxu1 %v12159_v11 }
0x10cc   :  { %11112 = vmatpush3.bf16.msra.mxu0 %v11111_v15 }
0x10cd   :  { %11114 = vmatprep.subr.bf16.mxu0 %v11113_v40  ;;  %11142 = vmatpush3.bf16.msra.mxu1 %v11141_v57 }
0x10ce   :  { %11143 = vmatprep.subr.bf16.mxu1 %v12159_v11 }
0x10d0   :  { %11116 = vmatpush3.bf16.msra.mxu0 %v11115_v21 }
0x10d1   :  { %11118 = vmatprep.subr.bf16.mxu0 %v11117_v33 }
0x10d4   :  { %11120 = vmatpush3.bf16.msra.mxu0 %v11119_v58 }
0x10d5   :  { %11122 = vmatprep.subr.bf16.mxu0 %v11121_v25 }
0x10d8   :  { %11124 = vmatpush3.bf16.msra.mxu0 %v11123_v41 }
0x10d9   :  { %11126 = vmatprep.subr.bf16.mxu0 %v11125_v28 }
0x10dc   :  { %11128 = vmatpush3.bf16.msra.mxu0 %v11127_v9 }
0x10dd   :  { %11130 = vmatprep.subr.bf16.mxu0 %v11129_v31 }
0x10e0   :  { %11132 = vmatpush3.bf16.msra.mxu0 %v11131_v26 }
0x10e1   :  { %11134 = vmatprep.subr.bf16.mxu0 %v11133_v7 }
0x10e4   :  { %11136 = vmatpush3.bf16.msra.mxu0 %v11135_v4  ;;  %v11144_v4 = vpack.c.bf16 %v8409_v0, %v8408_v17 }
0x10e6   :  { %11145 = vmatpush3.bf16.msra.mxu1 %v11144_v4 }
0x10e7   :  { %11146 = vmatprep.subr.bf16.mxu1 %v12159_v11 }
0x117a   :  { %v8024_v60 = vpop.f32.mrb[46].mxu0  ;;  %v8095_v59 = vpop.f32.mrb[46].mxu1 }
0x117b   :  { %v11227_v39 = vadd.f32 %v8024_v60, %v15348_v52  ;;  %v8026_v12 = vpop.f32.mrb[47].mxu0  ;;  %v8097_v6 = vpop.f32.mrb[47].mxu1  ;;  %v11243_v51 = vadd.f32 %v8095_v59, %v15240_v29  ;;  %v8607_v59 = vld [vmem:[#allocation4] ss:$0 sm:$0xff] }
0x117c   :  { %v11228_v18 = vadd.f32 %v8026_v12, %v15239_v55  ;;  %v11244_v19 = vadd.f32 %v8097_v6, %v15210_v45 }
0x117d   :  { %v8600_v63 = vmul.f32 -1.442695, %v11227_v39 }
0x117e   :  { %v8601_v5 = vmul.f32 -1.442695, %v11228_v18  ;;  %v8602_v15 = vmul.f32 -1.442695, %v11244_v19 }
0x117f   :  { %11901 = vpow2.f32 %v8600_v63 }
0x1180   :  { %11903 = vpow2.f32 %v8601_v5 }
0x1181   :  { %11905 = vpow2.f32 %v8602_v15 }
0x1182   :  { %11907 = vtanh.f32 %v11243_v51 }
0x1189   :  { %v11902_v44 = vpop.eup %11901 }
0x118a   :  { %v11904_v40 = vpop.eup %11903  ;;  %v8249_v8 = vadd.f32 1.0, %v11902_v44 }
0x118b   :  { %v8255_v36 = vadd.f32 1.0, %v11904_v40  ;;  %v11906_v52 = vpop.eup %11905 }
0x118c   :  { %11909 = vrcp.f32 %v8249_v8  ;;  %v11908_v21 = vpop.eup %11907  ;;  %v8262_v33 = vadd.f32 1.0, %v11906_v52 }
0x118d   :  { %11911 = vrcp.f32 %v8255_v36 }
0x118e   :  { %11913 = vrcp.f32 %v8262_v33 }
0x1196   :  { %v11910_v55 = vpop.eup %11909 }
0x1197   :  { %v11912_v22 = vpop.eup %11911  ;;  %v8266_v56 = vmul.f32 %v11910_v55, %v11908_v21 }
0x1198   :  { %v8265_v13 = vmul.f32 %v11912_v22, %v14585_v32  ;;  %v11914_v16 = vpop.eup %11913 }
0x119a   :  { %v8267_v45 = vadd.f32 %v8266_v56, %v8265_v13  ;;  %v8170_v35 = vpop.f32.mrb[48].mxu0  ;;  %v8241_v58 = vpop.f32.mrb[48].mxu1 }
0x119b   :  { %v11245_v29 = vadd.f32 %v8170_v35, %v15213_v42  ;;  %v8172_v38 = vpop.f32.mrb[49].mxu0  ;;  %v8243_v50 = vpop.f32.mrb[49].mxu1  ;;  %v11261_v28 = vadd.f32 %v8241_v58, %v14086_v2 }
0x119c   :  { %11915 = vtanh.f32 %v8267_v45  ;;  %v11246_v10 = vadd.f32 %v8172_v38, %v14072_v37  ;;  %v11262_v53 = vadd.f32 %v8243_v50, %v14081_v1 }
0x119d   :  { %v8603_v25 = vmul.f32 -1.442695, %v11245_v29 }
0x119e   :  { %v8604_v3 = vmul.f32 -1.442695, %v11246_v10  ;;  %v8605_v32 = vmul.f32 -1.442695, %v11262_v53 }
0x119f   :  { %11917 = vpow2.f32 %v8603_v25 }
0x11a0   :  { %11919 = vpow2.f32 %v8604_v3 }
0x11a1   :  { %11921 = vpow2.f32 %v8605_v32 }
0x11a2   :  { %11923 = vtanh.f32 %v11261_v28 }
0x11a6   :  { %v11916_v41 = vpop.eup %11915 }
0x11a7   :  { %v8269_v46 = vmul.f32 %v11916_v41, %v11914_v16 }
0x11a9   :  { %v11918_v48 = vpop.eup %11917 }
0x11aa   :  { %v11920_v23 = vpop.eup %11919  ;;  %v8273_v42 = vadd.f32 1.0, %v11918_v48 }
0x11ab   :  { %v8279_v61 = vadd.f32 1.0, %v11920_v23  ;;  %v11922_v37 = vpop.eup %11921 }
0x11ac   :  { %11925 = vrcp.f32 %v8273_v42  ;;  %v11924_v9 = vpop.eup %11923  ;;  %v8286_v1 = vadd.f32 1.0, %v11922_v37 }
0x11ad   :  { %11927 = vrcp.f32 %v8279_v61 }
0x11ae   :  { %11929 = vrcp.f32 %v8286_v1 }
0x11b6   :  { %v11926_v31 = vpop.eup %11925 }
0x11b7   :  { %v11928_v49 = vpop.eup %11927  ;;  %v8290_v62 = vmul.f32 %v11926_v31, %v11924_v9 }
0x11b8   :  { %v8289_v30 = vmul.f32 %v11928_v49, %v14611_v14  ;;  %v11930_v2 = vpop.eup %11929  ;;  %v8410_v14 = vld [vmem:[%s14777_s11 + $0x30] sm:$0xff] }
0x11b9   :  { %v11147_v24 = vpack.c.bf16 %v8411_v54, %v8410_v14 }
0x11ba   :  { %v8291_v34 = vadd.f32 %v8290_v62, %v8289_v30 }
0x11bb   :  { %11148 = vmatpush3.bf16.msra.mxu1 %v11147_v24 }
0x11bc   :  { %11931 = vtanh.f32 %v8291_v34 }
0x11c6   :  { %v11932_v26 = vpop.eup %11931 }
0x11c7   :  { %v8293_v7 = vmul.f32 %v11932_v26, %v11930_v2 }
0x11c9   :  { %8397 = vmatprep.mubr.f32.mxu0 %v8293_v7 }
0x11ca   :  { %8398 = vmatmul.mubr.f32.vlgmr.msra.gmra.mrb[64].mxu0 %v8269_v46 }
0x129d   :  { %v8642_v27 = vpop.f32.mrb[64].mxu0 }
0x129e   :  { %v8643_v43 = vpop.f32.mrb[65].mxu0 }
0x129f   :  { %v8644_v57 = vadd.f32 %v8643_v43, %v8642_v27 }
0x12a1   :  { %v8400_v60 = vadd.f32 %v8644_v57, %v8606_v47 }
0x12a3   :  { %v8403_v11 = vmax.f32 %v8400_v60, 0.0 }
0x12a5   :  { %8671 = vmatmul.mubr.msk.f32.vlgmr.msra.gmra.mrb[64].mxu1 %vm8419_vm1, %v8403_v11 }
0x1378   :  { %v8489_v39 = vpop.f32.mrb[64].mxu1 }
0x1379   :  { %v8490_v12 = vadd.f32 %v8607_v59, %v8489_v39  ;;  %v8672_v6 = vpop.f32.mrb[65].mxu1 }
0x137b   :  { %v8609_v18 = vmul.f32 -1.442695, %v8490_v12 }
0x137d   :  { %11933 = vpow2.f32 %v8609_v18 }
0x1387   :  { %v11934_v63 = vpop.eup %11933 }
0x1388   :  { %v8496_v5 = vadd.f32 1.0, %v11934_v63 }
0x138a   :  { %11935 = vrcp.f32 %v8496_v5 }
0x1394   :  { %v11936_v19 = vpop.eup %11935 }
0x1395   :  { %8500 = vst.msk [vmem:[%s14779_s13] sm:$0xff] %vm8499_vm2, %v11936_v19 }
0x1396   :  { %8505 = vsyncpa [#allocation6], 1 }
0x1397   :  { %8506 = vsyncpa [#allocation8], 1 }
0x1398   :  { %8507 = vsyncpa [#allocation11], 1 }
0x1399   :  { %8508 = vsyncpa [#allocation14], 1 }
0x139a   :  { %8509 = vsyncpa [#allocation17], 1 }

</bundles_post_ra>
